<compile_context>
chip_gen: v7x
topology: tpu7x:2x2x1
jax: 0.10.0
libtpu: 0.0.40
codegen_flags: <defaults>
</compile_context>

<pallas_src>
import functools
import math

import jax
import jax.numpy as jnp
from jax import lax
from jax.experimental import pallas as pl
from jax.experimental.pallas import tpu as pltpu


def _attn_kernel(x_ref, o_ref, *, scale, seq_len, num_packed):
    # x_ref block: (cb, R, D) with R = num_packed * seq_len.
    x = x_ref[...].astype(jnp.float32)
    R = x.shape[1]

    # Q @ K^T as a batched NT contraction (no explicit transpose): (cb, R, R).
    s = lax.dot_general(
        x, x,
        dimension_numbers=(((2,), (2,)), ((0,), (0,))),
        preferred_element_type=jnp.float32,
        precision=lax.Precision.HIGHEST,
    )

    if num_packed > 1:
        # Block-diagonal mask so packed heads do not attend to each other.
        # Head ids built with compares+adds (no integer division on the VPU).
        ri = lax.broadcasted_iota(jnp.int32, (R, 1), 0)
        ci = lax.broadcasted_iota(jnp.int32, (1, R), 1)
        row_head = jnp.zeros((R, 1), jnp.int32)
        col_head = jnp.zeros((1, R), jnp.int32)
        for g in range(1, num_packed):
            row_head = row_head + (ri >= g * seq_len).astype(jnp.int32)
            col_head = col_head + (ci >= g * seq_len).astype(jnp.int32)
        mask = row_head == col_head                      # (R, R)
        s = jnp.where(mask, s, jnp.float32(-1e30))

    # Numerically stable softmax; the 1/sqrt(C) scale is folded into exp:
    # softmax(scale * s) == exp(scale * (s - max(s))) / sum(...).
    m = jnp.max(s, axis=-1, keepdims=True)
    p = jnp.exp((s - m) * jnp.float32(scale))
    denom = jnp.sum(p, axis=-1, keepdims=True)

    # P @ V: (cb, R, D).  Masked columns contribute exactly zero.
    acc = lax.dot_general(
        p, x,
        dimension_numbers=(((2,), (1,)), ((0,), (0,))),
        preferred_element_type=jnp.float32,
        precision=lax.Precision.HIGHEST,
    )

    out = acc * pl.reciprocal(denom, approx=False)
    o_ref[...] = out.astype(o_ref.dtype)


def _round_up(v, m):
    return (v + m - 1) // m * m


def _pick_block_groups(ng, r, d, vmem_budget_bytes):
    """Largest divisor of `ng` whose padded per-step working set fits the budget,
    while keeping the grid >= 2 steps (so v7x megacore can split the work)."""
    def padded(rows, cols):
        # f32 VMEM footprint of one (rows, cols) slab with (8, 128) tiling.
        return _round_up(rows, 8) * _round_up(cols, 128) * 4

    per_group = (
        4 * padded(r, d)     # double-buffered input + output blocks
        + 3 * padded(r, r)   # scores, exp(scores), elementwise temps
        + 2 * padded(r, d)   # accumulator + output cast
    )
    max_cb = max(1, vmem_budget_bytes // per_group)

    best = 1
    for cand in range(1, ng + 1):
        if ng % cand != 0 or cand > max_cb:
            continue
        if ng >= 2 and cand > ng // 2:
            continue  # keep at least 2 grid steps for megacore sharding
        best = cand
    return best


def self_attention(x, *, vmem_budget_bytes=8 * 1024 * 1024):
    """x: (B, C, S, D) float32 -> (B, C, S, D) float32."""
    B, C, S, D = x.shape
    scale = 1.0 / math.sqrt(C)  # matches torch: / sqrt(k.size(1))
    N = B * C

    # Pack G heads per MXU call: largest divisor of N with G*S <= 128 lanes.
    G = 1
    for cand in range(1, N + 1):
        if N % cand == 0 and cand * S <= 128:
            G = cand
    NG = N // G
    R = G * S

    # Free, contiguous wrapper-side reshape: (B,C,S,D) -> (NG, G*S, D).
    xg = x.reshape(NG, R, D)

    cb = _pick_block_groups(NG, R, D, vmem_budget_bytes)
    kernel = functools.partial(_attn_kernel, scale=scale, seq_len=S, num_packed=G)

    out = pl.pallas_call(
        kernel,
        out_shape=jax.ShapeDtypeStruct((NG, R, D), x.dtype),
        grid_spec=pltpu.PrefetchScalarGridSpec(
            num_scalar_prefetch=0,
            grid=(NG // cb,),
            in_specs=[pl.BlockSpec((cb, R, D), lambda i: (i, 0, 0))],
            out_specs=pl.BlockSpec((cb, R, D), lambda i: (i, 0, 0)),
        ),
        compiler_params=pltpu.CompilerParams(
            dimension_semantics=("parallel",),
        ),
    )(xg)

    return out.reshape(B, C, S, D)


def _reference(x):
    B, C, S, D = x.shape
    inv_scale = math.sqrt(C)
    s = jnp.einsum("bcsd,bctd->bcst", x, x,
                   precision=lax.Precision.HIGHEST) / inv_scale
    w = jax.nn.softmax(s, axis=-1)
    return jnp.einsum("bcst,bctd->bcsd", w, x, precision=lax.Precision.HIGHEST)


if __name__ == "__main__":
    # Shapes matching the original module's input x1 = torch.randn(1, 64, 17, 17).
    B, C, S, D = 1, 64, 17, 17
    key = jax.random.PRNGKey(0)
    x = jax.random.normal(key, (B, C, S, D), dtype=jnp.float32)

    out = self_attention(x)
    out = jax.block_until_ready(out)

    ref = _reference(x)
    assert out.shape == (B, C, S, D)
    max_err = float(jnp.max(jnp.abs(out - ref)))
    assert jnp.allclose(out, ref, atol=2e-3, rtol=2e-3), max_err
    print("KERNEL_OK")
</pallas_src>

<mosaic_0001>
module attributes {stable_mosaic.version = 11 : i64} {
  func.func @_attn_kernel(%arg0: i32, %arg1: memref<8x68x17xf32, #tpu.memory_space<vmem>>, %arg2: memref<8x68x17xf32, #tpu.memory_space<vmem>>) attributes {dimension_semantics = [#tpu.dimension_semantics<parallel>], iteration_bounds = array<i64: 2>, scalar_prefetch = 0 : i64, scratch_operands = 0 : i64, tpu.core_type = #tpu.core_type<tc>, window_params = [{transform_indices = @transform_0, window_bounds = array<i64: 8, 68, 17>}, {transform_indices = @transform_1, window_bounds = array<i64: 8, 68, 17>}]} {
    %c0 = arith.constant 0 : index
    %c0_0 = arith.constant 0 : index
    %c0_1 = arith.constant 0 : index
    %0 = vector.load %arg1[%c0, %c0_0, %c0_1] : memref<8x68x17xf32, #tpu.memory_space<vmem>>, vector<8x68x17xf32>
    %cst = arith.constant dense<0.000000e+00> : vector<8x68x68xf32>
    %1 = tpu.matmul %0, %0, %cst {dimension_numbers = #tpu.dot_dimension_numbers<[2], [2], [1], [1], [0, 0, 0, 1, 1, 1], [0], [0]>, precision = #tpu.contract_precision<fp32>} : vector<8x68x17xf32>, vector<8x68x17xf32>, vector<8x68x68xf32> -> vector<8x68x68xf32>
    %2 = tpu.iota {dimensions = array<i32: 0>} : vector<68x1xi32>
    %3 = tpu.iota {dimensions = array<i32: 1>} : vector<1x68xi32>
    %c0_i32 = arith.constant 0 : i32
    %4 = vector.broadcast %c0_i32 : i32 to vector<68x1xi32>
    %c0_i32_2 = arith.constant 0 : i32
    %5 = vector.broadcast %c0_i32_2 : i32 to vector<1x68xi32>
    %c17_i32 = arith.constant 17 : i32
    %6 = vector.broadcast %c17_i32 : i32 to vector<68x1xi32>
    %7 = arith.cmpi sge, %2, %6 : vector<68x1xi32>
    %8 = arith.extui %7 : vector<68x1xi1> to vector<68x1xi32>
    %9 = arith.addi %4, %8 : vector<68x1xi32>
    %c17_i32_3 = arith.constant 17 : i32
    %10 = vector.broadcast %c17_i32_3 : i32 to vector<1x68xi32>
    %11 = arith.cmpi sge, %3, %10 : vector<1x68xi32>
    %12 = arith.extui %11 : vector<1x68xi1> to vector<1x68xi32>
    %13 = arith.addi %5, %12 : vector<1x68xi32>
    %c34_i32 = arith.constant 34 : i32
    %14 = vector.broadcast %c34_i32 : i32 to vector<68x1xi32>
    %15 = arith.cmpi sge, %2, %14 : vector<68x1xi32>
    %16 = arith.extui %15 : vector<68x1xi1> to vector<68x1xi32>
    %17 = arith.addi %9, %16 : vector<68x1xi32>
    %c34_i32_4 = arith.constant 34 : i32
    %18 = vector.broadcast %c34_i32_4 : i32 to vector<1x68xi32>
    %19 = arith.cmpi sge, %3, %18 : vector<1x68xi32>
    %20 = arith.extui %19 : vector<1x68xi1> to vector<1x68xi32>
    %21 = arith.addi %13, %20 : vector<1x68xi32>
    %c51_i32 = arith.constant 51 : i32
    %22 = vector.broadcast %c51_i32 : i32 to vector<68x1xi32>
    %23 = arith.cmpi sge, %2, %22 : vector<68x1xi32>
    %24 = arith.extui %23 : vector<68x1xi1> to vector<68x1xi32>
    %25 = arith.addi %17, %24 : vector<68x1xi32>
    %c51_i32_5 = arith.constant 51 : i32
    %26 = vector.broadcast %c51_i32_5 : i32 to vector<1x68xi32>
    %27 = arith.cmpi sge, %3, %26 : vector<1x68xi32>
    %28 = arith.extui %27 : vector<1x68xi1> to vector<1x68xi32>
    %29 = arith.addi %21, %28 : vector<1x68xi32>
    %30 = vector.broadcast %25 : vector<68x1xi32> to vector<68x68xi32>
    %31 = vector.broadcast %29 : vector<1x68xi32> to vector<68x68xi32>
    %32 = arith.cmpi eq, %30, %31 : vector<68x68xi32>
    %cst_6 = arith.constant -1.000000e+30 : f32
    %33 = vector.shape_cast %32 : vector<68x68xi1> to vector<1x68x68xi1>
    %34 = vector.broadcast %33 : vector<1x68x68xi1> to vector<8x68x68xi1>
    %35 = vector.broadcast %cst_6 : f32 to vector<8x68x68xf32>
    %36 = arith.select %34, %1, %35 : vector<8x68x68xi1>, vector<8x68x68xf32>
    %cst_7 = arith.constant dense<0xFF800000> : vector<8x68xf32>
    %37 = vector.multi_reduction <maximumf>, %36, %cst_7 [2] : vector<8x68x68xf32> to vector<8x68xf32>
    %38 = vector.shape_cast %37 : vector<8x68xf32> to vector<8x68x1xf32>
    %39 = vector.broadcast %38 : vector<8x68x1xf32> to vector<8x68x68xf32>
    %40 = arith.subf %36, %39 : vector<8x68x68xf32>
    %cst_8 = arith.constant 1.250000e-01 : f32
    %41 = vector.broadcast %cst_8 : f32 to vector<8x68x68xf32>
    %42 = arith.mulf %40, %41 : vector<8x68x68xf32>
    %43 = math.exp %42 : vector<8x68x68xf32>
    %cst_9 = arith.constant dense<0.000000e+00> : vector<8x68xf32>
    %44 = vector.multi_reduction <add>, %43, %cst_9 [2] : vector<8x68x68xf32> to vector<8x68xf32>
    %45 = vector.shape_cast %44 : vector<8x68xf32> to vector<8x68x1xf32>
    %cst_10 = arith.constant dense<0.000000e+00> : vector<8x68x17xf32>
    %46 = tpu.matmul %43, %0, %cst_10 {dimension_numbers = #tpu.dot_dimension_numbers<[2], [1], [1], [2], [0, 0, 0, 1, 1, 2], [0], [0]>, precision = #tpu.contract_precision<fp32>} : vector<8x68x68xf32>, vector<8x68x17xf32>, vector<8x68x17xf32> -> vector<8x68x17xf32>
    %47 = tpu.reciprocal %45 : vector<8x68x1xf32> -> vector<8x68x1xf32>
    %48 = vector.broadcast %47 : vector<8x68x1xf32> to vector<8x68x17xf32>
    %49 = arith.mulf %46, %48 : vector<8x68x17xf32>
    %c0_11 = arith.constant 0 : index
    %c0_12 = arith.constant 0 : index
    %c0_13 = arith.constant 0 : index
    %50 = vector.load %arg2[%c0_11, %c0_12, %c0_13] : memref<8x68x17xf32, #tpu.memory_space<vmem>>, vector<8x68x17xf32>
    tpu.vector_store %arg2[%c0_11, %c0_12, %c0_13], %49 {strides = array<i32>} : memref<8x68x17xf32, #tpu.memory_space<vmem>>, vector<8x68x17xf32>,
    return
  }
  func.func @transform_0(%arg0: i32) -> (i32, i32, i32) {
    %c0_i32 = arith.constant 0 : i32
    %c0_i32_0 = arith.constant 0 : i32
    %c0_i32_1 = arith.constant 0 : i32
    return %arg0, %c0_i32, %c0_i32_0 : i32, i32, i32
  }
  func.func @transform_1(%arg0: i32) -> (i32, i32, i32) {
    %c0_i32 = arith.constant 0 : i32
    %c0_i32_0 = arith.constant 0 : i32
    %c0_i32_1 = arith.constant 0 : i32
    return %arg0, %c0_i32, %c0_i32_0 : i32, i32, i32
  }
}

</mosaic_0001>

<bundles_post_ra>
// kernel: tpu_custom_call.1
= control target key start
LH: loop header
LB: loop body
LE: loop exit
PB: predicated region body
PF: predicated region fallthrough
CT: control target
= control target key end

     0   :  { %s25191_s6 = smov 0   ;;  %s33344_s0 = inlined_call_operand.vmem [shape: f32[16,68,17], index: 0, kind: input, shape index: {}]   ;;  %s33345_s1 = inlined_call_operand.vmem [shape: f32[16,68,17], index: 1, kind: output, shape index: {}]  }
   0x1 LB: > { %s16139_s7 = sadd.s32 4294967295, %s25175_s6   ;;  %p16143_p0 = scmp.ge.s32.totalorder %s25175_s6, 1  ;;  %s25175_s6 = sphi %s25191_s6, %s11_s6  }
   0x2   : > { %p89_p1 = scmp.lt.s32.totalorder %s25175_s6, 3 }
   0x4   : > { %p90_p2 = pnand %p16143_p0, %p89_p1 }
   0x6   : > { %93 = sbr.rel (%p90_p2) target bundleno = 2030 (0x7ee), region = 24 }
   0xd   : > { %s16144_s8 = sshll.u32 %s16139_s7, 3  ;;  %v33348_v0 = vmov 0.0|0.0   ;;  %vm25178_vm0 = vmmov 0   ;;  %v33346_v1 = vmov 0.0   ;;  %vm197_vm1 = vcmask 138240  }
   0xe   : > { %22204 = vmatprep.subr.bf16.mxu0 %v33348_v0  ;;  %22276 = vmatprep.subr.bf16.mxu1 %v33348_v0  ;;  %p112_p3 = scmp.lt.s32.totalorder %s16144_s8, 15  ;;  %vm7757_vm6 = vcmask 556032  }
   0xf   : > { %17902 = vmatprep.mubr.msk.f32.mxu0 %vm25178_vm0, %v33346_v1  ;;  %18172 = vmatprep.mubr.msk.f32.mxu1 %vm25178_vm0, %v33346_v1 }
  0x10   : > { %s34953_s8 = smov (!%p112_p3, %s16144_s8), 15 }
  0x11   : > { %s24796_s9 = smul.u32 72, %s34953_s8 }
  0x13   : > { %s25213_s12 = scalar_lea.vmem %s33344_s0, %s24796_s9  ;;  %s31080_s15 = scalar_lea.vmem %s33345_s1, %s24796_s9 }
  0x14   : > { %v125_v2 = vld [vmem:[%s25213_s12] sm:$0xff]  ;;  %v126_v3 = vld [vmem:[%s25213_s12 + $0x8] sm:$0xff]  ;;  %v135_v7 = vld [vmem:[%s25213_s12 + $0x50] sm:$0xff] }
  0x15   : > { %v134_v4 = vld [vmem:[%s25213_s12 + $0x48] sm:$0xff]  ;;  %v199_v5 = vsel %vm197_vm1, %v125_v2, 0  ;;  %v202_v6 = vsel %vm197_vm1, %v126_v3, 0  ;;  %v127_v9 = vld [vmem:[%s25213_s12 + $0x10] sm:$0xff]  ;;  %v128_v10 = vld [vmem:[%s25213_s12 + $0x18] sm:$0xff]  ;;  %v1123_v13 = vsel %vm197_vm1, %v135_v7, 0 }
  0x16   : > { %v1120_v8 = vsel %vm197_vm1, %v134_v4, 0  ;;  %v25224_v11 = vand.u32 4294901760, %v199_v5  ;;  %v25226_v12 = vand.u32 4294901760, %v202_v6  ;;  %v136_v15 = vld [vmem:[%s25213_s12 + $0x58] sm:$0xff]  ;;  %v137_v16 = vld [vmem:[%s25213_s12 + $0x60] sm:$0xff]  ;;  %v25233_v17 = vand.u32 4294901760, %v1123_v13 }
  0x17   : > { %v25229_v14 = vand.u32 4294901760, %v1120_v8  ;;  %v205_v18 = vsel %vm197_vm1, %v127_v9, 0  ;;  %v208_v19 = vsel %vm197_vm1, %v128_v10, 0  ;;  %v1126_v21 = vsel %vm197_vm1, %v136_v15, 0  ;;  %v129_v28 = vld [vmem:[%s25213_s12 + $0x20] sm:$0xff]  ;;  %v130_v29 = vld [vmem:[%s25213_s12 + $0x28] sm:$0xff] }
  0x18   : > { %v25239_v20 = vpack.c.bf16 %v25226_v12, %v25224_v11  ;;  %v1129_v22 = vsel %vm197_vm1, %v137_v16, 0  ;;  %v25248_v24 = vand.u32 4294901760, %v205_v18  ;;  %v25250_v25 = vand.u32 4294901760, %v208_v19  ;;  %v138_v30 = vld [vmem:[%s25213_s12 + $0x68] sm:$0xff]  ;;  %v139_v31 = vld [vmem:[%s25213_s12 + $0x70] sm:$0xff]  ;;  %v132_v43 = vld [vmem:[%s25213_s12 + $0x38] sm:$0xff] }
  0x19   : > { %v25245_v23 = vpack.c.bf16 %v25233_v17, %v25229_v14  ;;  %v25254_v26 = vand.u32 4294901760, %v1126_v21  ;;  %v25256_v27 = vand.u32 4294901760, %v1129_v22  ;;  %v25272_v34 = vsel %vm197_vm1, %v129_v28, 0  ;;  %v131_v42 = vld [vmem:[%s25213_s12 + $0x30] sm:$0xff]  ;;  %v140_v44 = vld [vmem:[%s25213_s12 + $0x78] sm:$0xff]  ;;  %v141_v45 = vld [vmem:[%s25213_s12 + $0x80] sm:$0xff] }
  0x1a   : > { %22206 = vmatpush3.bf16.xpose.msra.mxu0 %v25239_v20  ;;  %v25265_v32 = vpack.c.bf16 %v25250_v25, %v25248_v24  ;;  %v25275_v35 = vsel %vm197_vm1, %v130_v29, 0  ;;  %v25278_v36 = vsel %vm197_vm1, %v138_v30, 0  ;;  %v25281_v37 = vsel %vm197_vm1, %v139_v31, 0  ;;  %v133_v4 = vld [vmem:[%s25213_s12 + $0x40] sm:$0xf] }
  0x1b   : > { %22278 = vmatpush3.bf16.xpose.msra.mxu1 %v25245_v23  ;;  %22207 = vmatprep.subr.bf16.mxu0 %v33348_v0  ;;  %v25269_v33 = vpack.c.bf16 %v25256_v27, %v25254_v26  ;;  %v25285_v38 = vand.u32 4294901760, %v25272_v34  ;;  %v25288_v39 = vand.u32 4294901760, %v25275_v35  ;;  %v25293_v40 = vand.u32 4294901760, %v25278_v36 }
  0x1c   : > { %22279 = vmatprep.subr.bf16.mxu1 %v33348_v0  ;;  %v25296_v41 = vand.u32 4294901760, %v25281_v37  ;;  %v25312_v48 = vsel %vm197_vm1, %v131_v42, 0  ;;  %v25315_v49 = vsel %vm197_vm1, %v132_v43, 0  ;;  %v25318_v50 = vsel %vm197_vm1, %v140_v44, 0 }
  0x1d   : > { %v25305_v46 = vpack.c.bf16 %v25288_v39, %v25285_v38  ;;  %v25321_v51 = vsel %vm197_vm1, %v141_v45, 0  ;;  %v25325_v52 = vand.u32 4294901760, %v25312_v48  ;;  %v25328_v53 = vand.u32 4294901760, %v25315_v49 }
  0x1e   : > { %v25309_v47 = vpack.c.bf16 %v25296_v41, %v25293_v40  ;;  %v25331_v54 = vsub.f32 %v199_v5, %v25224_v11  ;;  %v25334_v55 = vsub.f32 %v202_v6, %v25226_v12  ;;  %v25339_v56 = vand.u32 4294901760, %v25318_v50  ;;  %v142_v5 = vld [vmem:[%s25213_s12 + $0x88] sm:$0xf] }
  0x1f   : > { %v25342_v57 = vand.u32 4294901760, %v25321_v51  ;;  %v25345_v58 = vsub.f32 %v1120_v8, %v25229_v14  ;;  %v25348_v59 = vsub.f32 %v1123_v13, %v25233_v17  ;;  %v25353_v60 = vpack.c.bf16 %v25328_v53, %v25325_v52 }
  0x20   : > { %v25356_v61 = vand.u32 4294901760, %v25331_v54  ;;  %v25359_v62 = vand.u32 4294901760, %v25334_v55  ;;  %v25374_v6 = vsub.f32 %v205_v18, %v25248_v24  ;;  %v25377_v7 = vsub.f32 %v208_v19, %v25250_v25 }
  0x21   : > { %v25363_v63 = vpack.c.bf16 %v25342_v57, %v25339_v56  ;;  %v25366_v2 = vand.u32 4294901760, %v25345_v58  ;;  %v25369_v3 = vand.u32 4294901760, %v25348_v59  ;;  %v25380_v8 = vsub.f32 %v1126_v21, %v25254_v26 }
  0x22   : > { %22209 = vmatpush3.bf16.xpose.msra.mxu0 %v25265_v32  ;;  %33918 = vst [vmem:[#allocation2_spill] sm:$0xff] %v25359_v62  ;;  %v25383_v9 = vsub.f32 %v1129_v22, %v25256_v27  ;;  %v302_v10 = vsub.f32 %v25331_v54, %v25356_v61  ;;  %v312_v13 = vsub.f32 %v25334_v55, %v25359_v62  ;;  %v25393_v15 = vsel %vm197_vm1, %v133_v4, 0 }
  0x23   : > { %22281 = vmatpush3.bf16.xpose.msra.mxu1 %v25269_v33  ;;  %22210 = vmatprep.subr.bf16.mxu0 %v33348_v0  ;;  %33919 = vst [vmem:[#allocation3_spill] sm:$0xff] %v25366_v2  ;;  %33920 = vst [vmem:[#allocation4_spill] sm:$0xff] %v25369_v3  ;;  %v1223_v16 = vsub.f32 %v25345_v58, %v25366_v2  ;;  %v1233_v18 = vsub.f32 %v25348_v59, %v25369_v3  ;;  %v25401_v19 = vsel %vm197_vm1, %v142_v5, 0 }
  0x24   : > { %22282 = vmatprep.subr.bf16.mxu1 %v33348_v0  ;;  %v25404_v21 = vand.u32 4294901760, %v25374_v6  ;;  %v25407_v22 = vand.u32 4294901760, %v25377_v7  ;;  %v25410_v28 = vand.u32 4294901760, %v25380_v8  ;;  %v25413_v29 = vand.u32 4294901760, %v25383_v9 }
  0x25   : > { %v25416_v30 = vand.u32 4294901760, %v25393_v15  ;;  %v303_v31 = vand.u32 4294901760, %v302_v10  ;;  %v313_v42 = vand.u32 4294901760, %v312_v13  ;;  %v25419_v43 = vand.u32 4294901760, %v25401_v19 }
  0x26   : > { %33921 = vst [vmem:[#allocation5_spill] sm:$0xff] %v25404_v21  ;;  %33922 = vst [vmem:[#allocation6_spill] sm:$0xff] %v25407_v22  ;;  %v1224_v44 = vand.u32 4294901760, %v1223_v16  ;;  %v1234_v45 = vand.u32 4294901760, %v1233_v18  ;;  %v322_v4 = vsub.f32 %v25374_v6, %v25404_v21  ;;  %v332_v5 = vsub.f32 %v25377_v7, %v25407_v22 }
  0x27   : > { %33923 = vst [vmem:[#allocation7_spill] sm:$0xff] %v25410_v28  ;;  %33924 = vst [vmem:[#allocation8_spill] sm:$0xff] %v25413_v29  ;;  %v22217_v10 = vpack.c.bf16 %v313_v42, %v303_v31  ;;  %v25432_v13 = vsub.f32 %v25272_v34, %v25285_v38  ;;  %v25436_v16 = vsub.f32 %v25275_v35, %v25288_v39  ;;  %v33925_v18 = vmov 0.0|0.0  }
  0x28   : > { %v22289_v22 = vpack.c.bf16 %v1234_v45, %v1224_v44  ;;  %v323_v34 = vand.u32 4294901760, %v322_v4  ;;  %v333_v21 = vand.u32 4294901760, %v332_v5  ;;  %v25489_v5 = vsub.f32 %v25318_v50, %v25339_v56 }
  0x29   : > { %v25450_v2 = vand.u32 4294901760, %v25432_v13  ;;  %v25453_v62 = vand.u32 4294901760, %v25436_v16 }
  0x2a   : > { %22212 = vmatpush3.bf16.xpose.msra.mxu0 %v25305_v46 }
  0x2b   : > { %22284 = vmatpush3.bf16.xpose.msra.mxu1 %v25309_v47  ;;  %22213 = vmatprep.subr.bf16.mxu0 %v33348_v0  ;;  %33926 = vst [vmem:[#allocation9_spill] sm:$0xff] %v25450_v2  ;;  %33927 = vst [vmem:[#allocation10_spill] sm:$0xff] %v25453_v62  ;;  %v352_v4 = vsub.f32 %v25436_v16, %v25453_v62 }
  0x2c   : > { %22285 = vmatprep.subr.bf16.mxu1 %v33348_v0  ;;  %v1253_v0 = vsub.f32 %v25383_v9, %v25413_v29  ;;  %v25446_v29 = vsub.f32 %v25281_v37, %v25296_v41 }
  0x2d   : > { %v353_v62 = vand.u32 4294901760, %v352_v4  ;;  %v25527_v4 = vsub.f32 %v25393_v15, %v25416_v30 }
  0x2e   : > { %v1254_v3 = vand.u32 4294901760, %v1253_v0  ;;  %v22220_v0 = vpack.c.bf16 %v333_v21, %v323_v34 }
  0x2f   : > { %v25540_v15 = vand.u32 4294901760, %v25527_v4 }
  0x32   : > { %22215 = vmatpush3.bf16.xpose.msra.mxu0 %v25353_v60 }
  0x33   : > { %22287 = vmatpush3.bf16.xpose.msra.mxu1 %v25363_v63  ;;  %17900 = vmatprep.subr.mxu0 %v33346_v1 }
  0x34   : > { %18170 = vmatprep.subr.mxu1 %v33346_v1  ;;  %v1243_v1 = vsub.f32 %v25380_v8, %v25410_v28  ;;  %v25442_v28 = vsub.f32 %v25278_v36, %v25293_v40  ;;  %v33928_v36 = vmov 0.0  }
  0x36   : > { %v1244_v35 = vand.u32 4294901760, %v1243_v1  ;;  %v25458_v37 = vand.u32 4294901760, %v25442_v28 }
  0x38   : > { %33929 = vst [vmem:[#allocation11_spill] sm:$0xff] %v25458_v37  ;;  %v22292_v1 = vpack.c.bf16 %v1254_v3, %v1244_v35 }
  0x3a   : > { %17901 = vmatpush3.xpose.msra.mxu0 %v25416_v30 }
  0x3b   : > { %18171 = vmatpush3.xpose.msra.mxu1 %v25419_v43  ;;  %22216 = vmatprep.subr.bf16.mxu0 %v33925_v18 }
  0x3c   : > { %22288 = vmatprep.subr.bf16.mxu1 %v33925_v18 }
  0x3d   : > { %17903 = vmatmul.mubr.f32.vlgmr.msra.gmra.mrb[0].mxu0 %v303_v31  ;;  %v25461_v31 = vand.u32 4294901760, %v25446_v29 }
  0x3e   : > { %18173 = vmatmul.mubr.f32.vlgmr.msra.gmra.mrb[0].mxu1 %v1224_v44  ;;  %22218 = vmatpush3.bf16.xpose.msra.mxu0 %v22217_v10  ;;  %v342_v44 = vsub.f32 %v25432_v13, %v25450_v2  ;;  %v25493_v10 = vsub.f32 %v25321_v51, %v25342_v57  ;;  %v25504_v51 = vand.u32 4294901760, %v25489_v5 }
  0x3f   : > { %22290 = vmatpush3.bf16.xpose.msra.mxu1 %v22289_v22  ;;  %17905 = vmatprep.mubr.msk.f32.mxu0 %vm25178_vm0, %v33928_v36  ;;  %33930 = vst [vmem:[#allocation12_spill] sm:$0xff] %v25461_v31  ;;  %v25469_v22 = vsub.f32 %v25312_v48, %v25325_v52  ;;  %v1263_v48 = vsub.f32 %v25442_v28, %v25458_v37 }
  0x40   : > { %18175 = vmatprep.mubr.msk.f32.mxu1 %vm25178_vm0, %v33928_v36  ;;  %22219 = vmatprep.subr.bf16.mxu0 %v33925_v18  ;;  %33933 = vst [vmem:[#allocation15_spill] sm:$0xff] %v25504_v51 }
  0x41   : > { %17906 = vmatmul.mubr.f32.gmra.mrb[2].mxu0 %v313_v42  ;;  %22291 = vmatprep.subr.bf16.mxu1 %v33925_v18  ;;  %v25479_v42 = vsub.f32 %v25315_v49, %v25328_v53  ;;  %v343_v49 = vand.u32 4294901760, %v342_v44  ;;  %v25496_v2 = vand.u32 4294901760, %v25469_v22  ;;  %v1264_v50 = vand.u32 4294901760, %v1263_v48 }
  0x42   : > { %18176 = vmatmul.mubr.f32.gmra.mrb[2].mxu1 %v1234_v45  ;;  %17908 = vmatprep.mubr.msk.f32.mxu0 %vm25178_vm0, %v33928_v36  ;;  %v1273_v45 = vsub.f32 %v25446_v29, %v25461_v31 }
  0x43   : > { %18178 = vmatprep.mubr.msk.f32.mxu1 %vm25178_vm0, %v33928_v36  ;;  %33931 = vst [vmem:[#allocation13_spill] sm:$0xff] %v25496_v2  ;;  %v25499_v37 = vand.u32 4294901760, %v25479_v42 }
  0x44   : > { %v1274_v31 = vand.u32 4294901760, %v1273_v45 }
  0x45   : > { %17909 = vmatmul.mubr.f32.gmra.mrb[4].mxu0 %v323_v34  ;;  %33932 = vst [vmem:[#allocation14_spill] sm:$0xff] %v25499_v37  ;;  %v25507_v34 = vand.u32 4294901760, %v25493_v10 }
  0x46   : > { %18179 = vmatmul.mubr.f32.gmra.mrb[4].mxu1 %v1244_v35  ;;  %22221 = vmatpush3.bf16.xpose.msra.mxu0 %v22220_v0  ;;  %v22223_v35 = vpack.c.bf16 %v353_v62, %v343_v49  ;;  %v362_v0 = vsub.f32 %v25469_v22, %v25496_v2  ;;  %v22295_v44 = vpack.c.bf16 %v1274_v31, %v1264_v50 }
  0x47   : > { %22293 = vmatpush3.bf16.xpose.msra.mxu1 %v22292_v1  ;;  %17911 = vmatprep.mubr.msk.f32.mxu0 %vm25178_vm0, %v33928_v36  ;;  %v372_v1 = vsub.f32 %v25479_v42, %v25499_v37  ;;  %v25531_v37 = vsub.f32 %v25401_v19, %v25419_v43 }
  0x48   : > { %18181 = vmatprep.mubr.msk.f32.mxu1 %vm25178_vm0, %v33928_v36  ;;  %22222 = vmatprep.subr.bf16.mxu0 %v33925_v18  ;;  %v363_v48 = vand.u32 4294901760, %v362_v0  ;;  %v22229_v0 = vpack.c.bf16 %v25334_v55, %v25331_v54 }
  0x49   : > { %17912 = vmatmul.mubr.f32.gmra.mrb[6].mxu0 %v333_v21  ;;  %22294 = vmatprep.subr.bf16.mxu1 %v33925_v18  ;;  %v1283_v21 = vsub.f32 %v25489_v5, %v25504_v51  ;;  %v373_v45 = vand.u32 4294901760, %v372_v1  ;;  %v22232_v1 = vpack.c.bf16 %v25377_v7, %v25374_v6 }
  0x4a   : > { %18182 = vmatmul.mubr.f32.gmra.mrb[6].mxu1 %v1254_v3  ;;  %17914 = vmatprep.mubr.msk.f32.mxu0 %vm25178_vm0, %v33928_v36  ;;  %v1293_v3 = vsub.f32 %v25493_v10, %v25507_v34 }
  0x4b   : > { %18184 = vmatprep.mubr.msk.f32.mxu1 %vm25178_vm0, %v33928_v36  ;;  %v1284_v51 = vand.u32 4294901760, %v1283_v21  ;;  %v22226_v19 = vpack.c.bf16 %v373_v45, %v363_v48  ;;  %v22235_v21 = vpack.c.bf16 %v25436_v16, %v25432_v13 }
  0x4c   : > { %v1294_v2 = vand.u32 4294901760, %v1293_v3  ;;  %v22307_v3 = vpack.c.bf16 %v25446_v29, %v25442_v28 }
  0x4d   : > { %17915 = vmatmul.mubr.f32.gmra.mrb[8].mxu0 %v343_v49  ;;  %v25545_v49 = vand.u32 4294901760, %v25531_v37 }
  0x4e   : > { %18185 = vmatmul.mubr.f32.gmra.mrb[8].mxu1 %v1264_v50  ;;  %22224 = vmatpush3.bf16.xpose.msra.mxu0 %v22223_v35  ;;  %v22298_v50 = vpack.c.bf16 %v1294_v2, %v1284_v51 }
  0x4f   : > { %22296 = vmatpush3.bf16.xpose.msra.mxu1 %v22295_v44  ;;  %17917 = vmatprep.mubr.msk.f32.mxu0 %vm25178_vm0, %v33928_v36  ;;  %v22304_v44 = vpack.c.bf16 %v25383_v9, %v25380_v8 }
  0x50   : > { %18187 = vmatprep.mubr.msk.f32.mxu1 %vm25178_vm0, %v33928_v36  ;;  %22225 = vmatprep.subr.bf16.mxu0 %v33925_v18 }
  0x51   : > { %17918 = vmatmul.mubr.f32.gmra.mrb[10].mxu0 %v353_v62  ;;  %22297 = vmatprep.subr.bf16.mxu1 %v33925_v18  ;;  %v382_v62 = vsub.f32 %v25527_v4, %v25540_v15 }
  0x52   : > { %18188 = vmatmul.mubr.f32.gmra.mrb[10].mxu1 %v1274_v31  ;;  %17920 = vmatprep.mubr.msk.f32.mxu0 %vm25178_vm0, %v33928_v36  ;;  %v1303_v31 = vsub.f32 %v25531_v37, %v25545_v49 }
  0x53   : > { %18190 = vmatprep.mubr.msk.f32.mxu1 %vm25178_vm0, %v33928_v36  ;;  %v383_v35 = vand.u32 4294901760, %v382_v62 }
  0x55   : > { %17921 = vmatmul.mubr.f32.gmra.mrb[12].mxu0 %v363_v48  ;;  %v22238_v48 = vpack.c.bf16 %v25479_v42, %v25469_v22 }
  0x56   : > { %18191 = vmatmul.mubr.f32.gmra.mrb[12].mxu1 %v1284_v51  ;;  %22227 = vmatpush3.bf16.xpose.msra.mxu0 %v22226_v19  ;;  %v1304_v51 = vand.u32 4294901760, %v1303_v31 }
  0x57   : > { %22299 = vmatpush3.bf16.xpose.msra.mxu1 %v22298_v50  ;;  %17923 = vmatprep.mubr.msk.f32.mxu0 %vm25178_vm0, %v33928_v36  ;;  %v33947_v50 = vld [vmem:[#allocation15_spill] sm:$0xff] }
  0x58   : > { %18193 = vmatprep.mubr.msk.f32.mxu1 %vm25178_vm0, %v33928_v36  ;;  %17945 = vmatprep.subr.mxu0 %v33928_v36  ;;  %v22334_v62 = vpack.c.bf16 %v25507_v34, %v33947_v50 }
  0x59   : > { %17924 = vmatmul.mubr.f32.gmra.mrb[14].mxu0 %v373_v45  ;;  %18215 = vmatprep.subr.mxu1 %v33928_v36  ;;  %v22310_v45 = vpack.c.bf16 %v25493_v10, %v25489_v5 }
  0x5a   : > { %18194 = vmatmul.mubr.f32.gmra.mrb[14].mxu1 %v1294_v2  ;;  %17926 = vmatprep.mubr.msk.f32.mxu0 %vm25178_vm0, %v33928_v36  ;;  %v22301_v2 = vpack.c.bf16 %v25348_v59, %v25345_v58 }
  0x5b   : > { %18196 = vmatprep.mubr.msk.f32.mxu1 %vm25178_vm0, %v33928_v36 }
  0x5d   : > { %17927 = vmatmul.mubr.f32.gmra.mrb[16].mxu0 %v383_v35 }
  0x5e   : > { %18197 = vmatmul.mubr.f32.gmra.mrb[16].mxu1 %v1304_v51  ;;  %17946 = vmatpush3.xpose.msra.mxu0 %v383_v35  ;;  %v145_v35 = vld [vmem:[%s25213_s12 + $0xa0] sm:$0xff] }
  0x5f   : > { %18216 = vmatpush3.xpose.msra.mxu1 %v1304_v51  ;;  %17947 = vmatprep.mubr.msk.f32.mxu0 %vm25178_vm0, %v33928_v36  ;;  %v146_v51 = vld [vmem:[%s25213_s12 + $0xa8] sm:$0xff] }
  0x60   : > { %18217 = vmatprep.mubr.msk.f32.mxu1 %vm25178_vm0, %v33928_v36  ;;  %22228 = vmatprep.subr.bf16.mxu0 %v33925_v18 }
  0x61   : > { %17948 = vmatmul.mubr.f32.vlgmr.msra.gmra.mrb[0].mxu0 %v25224_v11  ;;  %22300 = vmatprep.subr.bf16.mxu1 %v33925_v18 }
  0x62   : > { %18218 = vmatmul.mubr.f32.vlgmr.msra.gmra.mrb[0].mxu1 %v25229_v14  ;;  %22230 = vmatpush3.bf16.xpose.msra.mxu0 %v22229_v0  ;;  %v154_v0 = vld [vmem:[%s25213_s12 + $0xe8] sm:$0xff] }
  0x63   : > { %22302 = vmatpush3.bf16.xpose.msra.mxu1 %v22301_v2  ;;  %17950 = vmatprep.mubr.msk.f32.mxu0 %vm25178_vm0, %v33928_v36  ;;  %v155_v2 = vld [vmem:[%s25213_s12 + $0xf0] sm:$0xff] }
  0x64   : > { %18220 = vmatprep.mubr.msk.f32.mxu1 %vm25178_vm0, %v33928_v36  ;;  %22231 = vmatprep.subr.bf16.mxu0 %v33925_v18 }
  0x65   : > { %17951 = vmatmul.mubr.f32.gmra.mrb[2].mxu0 %v25226_v12  ;;  %22303 = vmatprep.subr.bf16.mxu1 %v33925_v18 }
  0x66   : > { %18221 = vmatmul.mubr.f32.gmra.mrb[2].mxu1 %v25233_v17  ;;  %17953 = vmatprep.mubr.msk.f32.mxu0 %vm25178_vm0, %v33928_v36 }
  0x67   : > { %18223 = vmatprep.mubr.msk.f32.mxu1 %vm25178_vm0, %v33928_v36 }
  0x69   : > { %17954 = vmatmul.mubr.f32.gmra.mrb[4].mxu0 %v25248_v24 }
  0x6a   : > { %18224 = vmatmul.mubr.f32.gmra.mrb[4].mxu1 %v25254_v26  ;;  %22233 = vmatpush3.bf16.xpose.msra.mxu0 %v22232_v1 }
  0x6b   : > { %22305 = vmatpush3.bf16.xpose.msra.mxu1 %v22304_v44  ;;  %17956 = vmatprep.mubr.msk.f32.mxu0 %vm25178_vm0, %v33928_v36 }
  0x6c   : > { %18226 = vmatprep.mubr.msk.f32.mxu1 %vm25178_vm0, %v33928_v36  ;;  %22234 = vmatprep.subr.bf16.mxu0 %v33925_v18 }
  0x6d   : > { %17957 = vmatmul.mubr.f32.gmra.mrb[6].mxu0 %v25250_v25  ;;  %22306 = vmatprep.subr.bf16.mxu1 %v33925_v18 }
  0x6e   : > { %18227 = vmatmul.mubr.f32.gmra.mrb[6].mxu1 %v25256_v27  ;;  %17959 = vmatprep.mubr.msk.f32.mxu0 %vm25178_vm0, %v33928_v36 }
  0x6f   : > { %18229 = vmatprep.mubr.msk.f32.mxu1 %vm25178_vm0, %v33928_v36 }
  0x71   : > { %17960 = vmatmul.mubr.f32.gmra.mrb[8].mxu0 %v25285_v38 }
  0x72   : > { %18230 = vmatmul.mubr.f32.gmra.mrb[8].mxu1 %v25293_v40  ;;  %22236 = vmatpush3.bf16.xpose.msra.mxu0 %v22235_v21  ;;  %v25918_v21 = vsel %vm197_vm1, %v145_v35, 0  ;;  %v151_v35 = vld [vmem:[%s25213_s12 + $0xd0] sm:$0xf] }
  0x73   : > { %22308 = vmatpush3.bf16.xpose.msra.mxu1 %v22307_v3  ;;  %17962 = vmatprep.mubr.msk.f32.mxu0 %vm25178_vm0, %v33928_v36  ;;  %v25921_v3 = vsel %vm197_vm1, %v146_v51, 0 }
  0x74   : > { %18232 = vmatprep.mubr.msk.f32.mxu1 %vm25178_vm0, %v33928_v36  ;;  %22237 = vmatprep.subr.bf16.mxu0 %v33925_v18 }
  0x75   : > { %17963 = vmatmul.mubr.f32.gmra.mrb[10].mxu0 %v25288_v39  ;;  %22309 = vmatprep.subr.bf16.mxu1 %v33925_v18 }
  0x76   : > { %18233 = vmatmul.mubr.f32.gmra.mrb[10].mxu1 %v25296_v41  ;;  %17965 = vmatprep.mubr.msk.f32.mxu0 %vm25178_vm0, %v33928_v36 }
  0x77   : > { %18235 = vmatprep.mubr.msk.f32.mxu1 %vm25178_vm0, %v33928_v36 }
  0x79   : > { %17966 = vmatmul.mubr.f32.gmra.mrb[12].mxu0 %v25325_v52 }
  0x7a   : > { %18236 = vmatmul.mubr.f32.gmra.mrb[12].mxu1 %v25339_v56  ;;  %22239 = vmatpush3.bf16.xpose.msra.mxu0 %v22238_v48  ;;  %v25927_v48 = vsel %vm197_vm1, %v154_v0, 0  ;;  %v160_v0 = vld [vmem:[%s25213_s12 + $0x118] sm:$0xf] }
  0x7b   : > { %22311 = vmatpush3.bf16.xpose.msra.mxu1 %v22310_v45  ;;  %17968 = vmatprep.mubr.msk.f32.mxu0 %vm25178_vm0, %v33928_v36  ;;  %v25930_v45 = vsel %vm197_vm1, %v155_v2, 0 }
  0x7c   : > { %18238 = vmatprep.mubr.msk.f32.mxu1 %vm25178_vm0, %v33928_v36  ;;  %17990 = vmatprep.subr.mxu0 %v33928_v36 }
  0x7d   : > { %17969 = vmatmul.mubr.f32.gmra.mrb[14].mxu0 %v25328_v53  ;;  %18260 = vmatprep.subr.mxu1 %v33928_v36 }
  0x7e   : > { %18239 = vmatmul.mubr.f32.gmra.mrb[14].mxu1 %v25342_v57  ;;  %17971 = vmatprep.mubr.msk.f32.mxu0 %vm25178_vm0, %v33928_v36 }
  0x7f   : > { %18241 = vmatprep.mubr.msk.f32.mxu1 %vm25178_vm0, %v33928_v36 }
  0x81   : > { %17972 = vmatmul.mubr.f32.gmra.mrb[16].mxu0 %v25416_v30 }
  0x82   : > { %18242 = vmatmul.mubr.f32.gmra.mrb[16].mxu1 %v25419_v43  ;;  %17991 = vmatpush3.xpose.msra.mxu0 %v25527_v4 }
  0x83   : > { %18261 = vmatpush3.xpose.msra.mxu1 %v25531_v37  ;;  %17992 = vmatprep.mubr.msk.f32.mxu0 %vm25178_vm0, %v33928_v36 }
  0x84   : > { %18262 = vmatprep.mubr.msk.f32.mxu1 %vm25178_vm0, %v33928_v36  ;;  %22240 = vmatprep.subr.bf16.mxu0 %v33925_v18 }
  0x85   : > { %17993 = vmatmul.mubr.f32.vlgmr.msra.gmra.mrb[0].mxu0 %v25331_v54  ;;  %22312 = vmatprep.subr.bf16.mxu1 %v33925_v18  ;;  %v33934_v54 = vld [vmem:[#allocation2_spill] sm:$0xff] }
  0x86   : > { %18263 = vmatmul.mubr.f32.vlgmr.msra.gmra.mrb[0].mxu1 %v25345_v58  ;;  %22242 = vmatpush3.bf16.xpose.msra.mxu0 %v25239_v20  ;;  %v33935_v58 = vld [vmem:[#allocation3_spill] sm:$0xff] }
  0x87   : > { %22314 = vmatpush3.bf16.xpose.msra.mxu1 %v25245_v23  ;;  %17995 = vmatprep.mubr.msk.f32.mxu0 %vm25178_vm0, %v33928_v36 }
  0x88   : > { %18265 = vmatprep.mubr.msk.f32.mxu1 %vm25178_vm0, %v33928_v36  ;;  %22243 = vmatprep.subr.bf16.mxu0 %v33925_v18 }
  0x89   : > { %17996 = vmatmul.mubr.f32.gmra.mrb[2].mxu0 %v25334_v55  ;;  %22315 = vmatprep.subr.bf16.mxu1 %v33925_v18  ;;  %v22253_v55 = vpack.c.bf16 %v33934_v54, %v25356_v61 }
  0x8a   : > { %18266 = vmatmul.mubr.f32.gmra.mrb[2].mxu1 %v25348_v59  ;;  %17998 = vmatprep.mubr.msk.f32.mxu0 %vm25178_vm0, %v33928_v36  ;;  %v33936_v59 = vld [vmem:[#allocation4_spill] sm:$0xff] }
  0x8b   : > { %18268 = vmatprep.mubr.msk.f32.mxu1 %vm25178_vm0, %v33928_v36 }
  0x8d   : > { %17999 = vmatmul.mubr.f32.gmra.mrb[4].mxu0 %v25374_v6  ;;  %v22325_v6 = vpack.c.bf16 %v33936_v59, %v33935_v58 }
  0x8e   : > { %18269 = vmatmul.mubr.f32.gmra.mrb[4].mxu1 %v25380_v8  ;;  %22245 = vmatpush3.bf16.xpose.msra.mxu0 %v25265_v32 }
  0x8f   : > { %22317 = vmatpush3.bf16.xpose.msra.mxu1 %v25269_v33  ;;  %18001 = vmatprep.mubr.msk.f32.mxu0 %vm25178_vm0, %v33928_v36 }
  0x90   : > { %18271 = vmatprep.mubr.msk.f32.mxu1 %vm25178_vm0, %v33928_v36  ;;  %22246 = vmatprep.subr.bf16.mxu0 %v33925_v18 }
  0x91   : > { %18002 = vmatmul.mubr.f32.gmra.mrb[6].mxu0 %v25377_v7  ;;  %22318 = vmatprep.subr.bf16.mxu1 %v33925_v18  ;;  %v33938_v7 = vld [vmem:[#allocation6_spill] sm:$0xff] }
  0x92   : > { %18272 = vmatmul.mubr.f32.gmra.mrb[6].mxu1 %v25383_v9  ;;  %18004 = vmatprep.mubr.msk.f32.mxu0 %vm25178_vm0, %v33928_v36  ;;  %v33939_v9 = vld [vmem:[#allocation7_spill] sm:$0xff] }
  0x93   : > { %18274 = vmatprep.mubr.msk.f32.mxu1 %vm25178_vm0, %v33928_v36 }
  0x95   : > { %18005 = vmatmul.mubr.f32.gmra.mrb[8].mxu0 %v25432_v13  ;;  %v33941_v13 = vld [vmem:[#allocation9_spill] sm:$0xff] }
  0x96   : > { %18275 = vmatmul.mubr.f32.gmra.mrb[8].mxu1 %v25442_v28  ;;  %22248 = vmatpush3.bf16.xpose.msra.mxu0 %v25305_v46  ;;  %v33940_v28 = vld [vmem:[#allocation8_spill] sm:$0xff] }
  0x97   : > { %22320 = vmatpush3.bf16.xpose.msra.mxu1 %v25309_v47  ;;  %18007 = vmatprep.mubr.msk.f32.mxu0 %vm25178_vm0, %v33928_v36 }
  0x98   : > { %18277 = vmatprep.mubr.msk.f32.mxu1 %vm25178_vm0, %v33928_v36  ;;  %22249 = vmatprep.subr.bf16.mxu0 %v33925_v18 }
  0x99   : > { %18008 = vmatmul.mubr.f32.gmra.mrb[10].mxu0 %v25436_v16  ;;  %22321 = vmatprep.subr.bf16.mxu1 %v33925_v18  ;;  %v33942_v16 = vld [vmem:[#allocation10_spill] sm:$0xff] }
  0x9a   : > { %18278 = vmatmul.mubr.f32.gmra.mrb[10].mxu1 %v25446_v29  ;;  %18010 = vmatprep.mubr.msk.f32.mxu0 %vm25178_vm0, %v33928_v36  ;;  %v22328_v29 = vpack.c.bf16 %v33940_v28, %v33939_v9 }
  0x9b   : > { %18280 = vmatprep.mubr.msk.f32.mxu1 %vm25178_vm0, %v33928_v36 }
  0x9d   : > { %18011 = vmatmul.mubr.f32.gmra.mrb[12].mxu0 %v25469_v22  ;;  %v33943_v22 = vld [vmem:[#allocation11_spill] sm:$0xff] }
  0x9e   : > { %18281 = vmatmul.mubr.f32.gmra.mrb[12].mxu1 %v25489_v5  ;;  %22251 = vmatpush3.bf16.xpose.msra.mxu0 %v25353_v60 }
  0x9f   : > { %22323 = vmatpush3.bf16.xpose.msra.mxu1 %v25363_v63  ;;  %18013 = vmatprep.mubr.msk.f32.mxu0 %vm25178_vm0, %v33928_v36 }
  0xa0   : > { %18283 = vmatprep.mubr.msk.f32.mxu1 %vm25178_vm0, %v33928_v36  ;;  %18035 = vmatprep.subr.mxu0 %v33928_v36 }
  0xa1   : > { %18014 = vmatmul.mubr.f32.gmra.mrb[14].mxu0 %v25479_v42  ;;  %18305 = vmatprep.subr.mxu1 %v33928_v36  ;;  %v33944_v42 = vld [vmem:[#allocation12_spill] sm:$0xff] }
  0xa2   : > { %18284 = vmatmul.mubr.f32.gmra.mrb[14].mxu1 %v25493_v10  ;;  %18016 = vmatprep.mubr.msk.f32.mxu0 %vm25178_vm0, %v33928_v36  ;;  %v22331_v5 = vpack.c.bf16 %v33944_v42, %v33943_v22  ;;  %v33945_v10 = vld [vmem:[#allocation13_spill] sm:$0xff] }
  0xa3   : > { %18286 = vmatprep.mubr.msk.f32.mxu1 %vm25178_vm0, %v33928_v36 }
  0xa5   : > { %18017 = vmatmul.mubr.f32.gmra.mrb[16].mxu0 %v25527_v4  ;;  %v33946_v4 = vld [vmem:[#allocation14_spill] sm:$0xff] }
  0xa6   : > { %18287 = vmatmul.mubr.f32.gmra.mrb[16].mxu1 %v25531_v37  ;;  %18036 = vmatpush3.xpose.msra.mxu0 %v25416_v30  ;;  %v22259_v37 = vpack.c.bf16 %v33942_v16, %v33941_v13  ;;  %v22262_v19 = vpack.c.bf16 %v33946_v4, %v33945_v10 }
  0xa7   : > { %18306 = vmatpush3.xpose.msra.mxu1 %v25419_v43  ;;  %18037 = vmatprep.mubr.msk.f32.mxu0 %vm25178_vm0, %v33928_v36 }
  0xa8   : > { %18307 = vmatprep.mubr.msk.f32.mxu1 %vm25178_vm0, %v33928_v36  ;;  %22252 = vmatprep.subr.bf16.mxu0 %v33925_v18 }
  0xa9   : > { %18038 = vmatmul.mubr.f32.vlgmr.msra.gmra.mrb[0].mxu0 %v25356_v61  ;;  %22324 = vmatprep.subr.bf16.mxu1 %v33925_v18  ;;  %v33937_v61 = vld [vmem:[#allocation5_spill] sm:$0xff] }
  0xaa   : > { %18308 = vmatmul.mubr.f32.vlgmr.msra.gmra.mrb[0].mxu1 %v33935_v58  ;;  %22254 = vmatpush3.bf16.xpose.msra.mxu0 %v22253_v55  ;;  %v22256_v8 = vpack.c.bf16 %v33938_v7, %v33937_v61  ;;  %v25940_v55 = vand.u32 4294901760, %v25921_v3  ;;  %v25949_v58 = vand.u32 4294901760, %v25930_v45 }
  0xab   : > { %22326 = vmatpush3.bf16.xpose.msra.mxu1 %v22325_v6  ;;  %18040 = vmatprep.mubr.msk.f32.mxu0 %vm25178_vm0, %v33928_v36  ;;  %v156_v6 = vld [vmem:[%s25213_s12 + $0xf8] sm:$0xff] }
  0xac   : > { %18310 = vmatprep.mubr.msk.f32.mxu1 %vm25178_vm0, %v33928_v36  ;;  %22255 = vmatprep.subr.bf16.mxu0 %v33925_v18  ;;  %v26110_v2 = vsub.f32 %v25921_v3, %v25940_v55  ;;  %v26130_v3 = vsel %vm197_vm1, %v151_v35, 0 }
  0xad   : > { %18041 = vmatmul.mubr.f32.gmra.mrb[2].mxu0 %v33934_v54  ;;  %22327 = vmatprep.subr.bf16.mxu1 %v33925_v18  ;;  %v25937_v54 = vand.u32 4294901760, %v25918_v21 }
  0xae   : > { %18311 = vmatmul.mubr.f32.gmra.mrb[2].mxu1 %v33936_v59  ;;  %18043 = vmatprep.mubr.msk.f32.mxu0 %vm25178_vm0, %v33928_v36  ;;  %v148_v59 = vld [vmem:[%s25213_s12 + $0xb8] sm:$0xff] }
  0xaf   : > { %18313 = vmatprep.mubr.msk.f32.mxu1 %vm25178_vm0, %v33928_v36  ;;  %v26104_v51 = vsub.f32 %v25918_v21, %v25937_v54 }
  0xb1   : > { %18044 = vmatmul.mubr.f32.gmra.mrb[4].mxu0 %v33937_v61  ;;  %v157_v61 = vld [vmem:[%s25213_s12 + $0x100] sm:$0xff] }
  0xb2   : > { %18314 = vmatmul.mubr.f32.gmra.mrb[4].mxu1 %v33939_v9  ;;  %22257 = vmatpush3.bf16.xpose.msra.mxu0 %v22256_v8  ;;  %v25980_v9 = vsel %vm197_vm1, %v156_v6, 0  ;;  %v26143_v6 = vand.u32 4294901760, %v26104_v51 }
  0xb3   : > { %22329 = vmatpush3.bf16.xpose.msra.mxu1 %v22328_v29  ;;  %18046 = vmatprep.mubr.msk.f32.mxu0 %vm25178_vm0, %v33928_v36 }
  0xb4   : > { %18316 = vmatprep.mubr.msk.f32.mxu1 %vm25178_vm0, %v33928_v36  ;;  %22258 = vmatprep.subr.bf16.mxu0 %v33925_v18  ;;  %33951 = vst [vmem:[#allocation5_spill] sm:$0xff] %v26143_v6 }
  0xb5   : > { %18047 = vmatmul.mubr.f32.gmra.mrb[6].mxu0 %v33938_v7  ;;  %22330 = vmatprep.subr.bf16.mxu1 %v33925_v18  ;;  %v25965_v7 = vpack.c.bf16 %v25940_v55, %v25937_v54 }
  0xb6   : > { %18317 = vmatmul.mubr.f32.gmra.mrb[6].mxu1 %v33940_v28  ;;  %18049 = vmatprep.mubr.msk.f32.mxu0 %vm25178_vm0, %v33928_v36  ;;  %v25983_v28 = vsel %vm197_vm1, %v157_v61, 0  ;;  %v26148_v61 = vand.u32 4294901760, %v26110_v2 }
  0xb7   : > { %18319 = vmatprep.mubr.msk.f32.mxu1 %vm25178_vm0, %v33928_v36 }
  0xb8   : > { %33952 = vst [vmem:[#allocation6_spill] sm:$0xff] %v26148_v61 }
  0xb9   : > { %18050 = vmatmul.mubr.f32.gmra.mrb[8].mxu0 %v33941_v13 }
  0xba   : > { %18320 = vmatmul.mubr.f32.gmra.mrb[8].mxu1 %v33943_v22  ;;  %22260 = vmatpush3.bf16.xpose.msra.mxu0 %v22259_v37  ;;  %v150_v37 = vld [vmem:[%s25213_s12 + $0xc8] sm:$0xff] }
  0xbb   : > { %22332 = vmatpush3.bf16.xpose.msra.mxu1 %v22331_v5  ;;  %18052 = vmatprep.mubr.msk.f32.mxu0 %vm25178_vm0, %v33928_v36  ;;  %v158_v22 = vld [vmem:[%s25213_s12 + $0x108] sm:$0xff] }
  0xbc   : > { %18322 = vmatprep.mubr.msk.f32.mxu1 %vm25178_vm0, %v33928_v36  ;;  %22261 = vmatprep.subr.bf16.mxu0 %v33925_v18 }
  0xbd   : > { %18053 = vmatmul.mubr.f32.gmra.mrb[10].mxu0 %v33942_v16  ;;  %22333 = vmatprep.subr.bf16.mxu1 %v33925_v18  ;;  %v25998_v16 = vand.u32 4294901760, %v25980_v9 }
  0xbe   : > { %18323 = vmatmul.mubr.f32.gmra.mrb[10].mxu1 %v33944_v42  ;;  %18055 = vmatprep.mubr.msk.f32.mxu0 %vm25178_vm0, %v33928_v36  ;;  %v159_v42 = vld [vmem:[%s25213_s12 + $0x110] sm:$0xff] }
  0xbf   : > { %18325 = vmatprep.mubr.msk.f32.mxu1 %vm25178_vm0, %v33928_v36 }
  0xc1   : > { %18056 = vmatmul.mubr.f32.gmra.mrb[12].mxu0 %v33945_v10 }
  0xc2   : > { %18326 = vmatmul.mubr.f32.gmra.mrb[12].mxu1 %v33947_v50  ;;  %22263 = vmatpush3.bf16.xpose.msra.mxu0 %v22262_v19  ;;  %v26035_v19 = vsel %vm197_vm1, %v159_v42, 0 }
  0xc3   : > { %22335 = vmatpush3.bf16.xpose.msra.mxu1 %v22334_v62  ;;  %18058 = vmatprep.mubr.msk.f32.mxu0 %vm25178_vm0, %v33928_v36 }
  0xc4   : > { %18328 = vmatprep.mubr.msk.f32.mxu1 %vm25178_vm0, %v33928_v36  ;;  %18080 = vmatprep.subr.mxu0 %v33928_v36 }
  0xc5   : > { %18059 = vmatmul.mubr.f32.gmra.mrb[14].mxu0 %v33946_v4  ;;  %18350 = vmatprep.subr.mxu1 %v33928_v36  ;;  %v26029_v4 = vsel %vm197_vm1, %v150_v37, 0 }
  0xc6   : > { %18329 = vmatmul.mubr.f32.gmra.mrb[14].mxu1 %v25507_v34  ;;  %18061 = vmatprep.mubr.msk.f32.mxu0 %vm25178_vm0, %v33928_v36  ;;  %v26044_v62 = vand.u32 4294901760, %v26029_v4 }
  0xc7   : > { %18331 = vmatprep.mubr.msk.f32.mxu1 %vm25178_vm0, %v33928_v36 }
  0xc9   : > { %18062 = vmatmul.mubr.f32.gmra.mrb[16].mxu0 %v25540_v15 }
  0xca   : > { %18332 = vmatmul.mubr.f32.gmra.mrb[16].mxu1 %v25545_v49  ;;  %18081 = vmatpush3.xpose.msra.mxu0 %v25540_v15 }
  0xcb   : > { %18351 = vmatpush3.xpose.msra.mxu1 %v25545_v49  ;;  %18082 = vmatprep.mubr.msk.f32.mxu0 %vm25178_vm0, %v33928_v36 }
  0xcc   : > { %18352 = vmatprep.mubr.msk.f32.mxu1 %vm25178_vm0, %v33928_v36  ;;  %22264 = vmatprep.subr.bf16.mxu0 %v33925_v18 }
  0xcd   : > { %18083 = vmatmul.mubr.f32.vlgmr.msra.gmra.mrb[0].mxu0 %v25224_v11  ;;  %22336 = vmatprep.subr.bf16.mxu1 %v33925_v18 }
  0xce   : > { %18353 = vmatmul.mubr.f32.vlgmr.msra.gmra.mrb[0].mxu1 %v25229_v14  ;;  %22266 = vmatpush3.bf16.xpose.msra.mxu0 %v25239_v20  ;;  %v143_v20 = vld [vmem:[%s25213_s12 + $0x90] sm:$0xff] }
  0xcf   : > { %22338 = vmatpush3.bf16.xpose.msra.mxu1 %v25245_v23  ;;  %18085 = vmatprep.mubr.msk.f32.mxu0 %vm25178_vm0, %v33928_v36  ;;  %v144_v23 = vld [vmem:[%s25213_s12 + $0x98] sm:$0xff] }
  0xd0   : > { %18355 = vmatprep.mubr.msk.f32.mxu1 %vm25178_vm0, %v33928_v36  ;;  %22267 = vmatprep.subr.bf16.mxu0 %v33925_v18 }
  0xd1   : > { %18086 = vmatmul.mubr.f32.gmra.mrb[2].mxu0 %v25226_v12  ;;  %22339 = vmatprep.subr.bf16.mxu1 %v33925_v18 }
  0xd2   : > { %18356 = vmatmul.mubr.f32.gmra.mrb[2].mxu1 %v25233_v17  ;;  %18088 = vmatprep.mubr.msk.f32.mxu0 %vm25178_vm0, %v33928_v36 }
  0xd3   : > { %18358 = vmatprep.mubr.msk.f32.mxu1 %vm25178_vm0, %v33928_v36 }
  0xd5   : > { %18089 = vmatmul.mubr.f32.gmra.mrb[4].mxu0 %v25248_v24 }
  0xd6   : > { %18359 = vmatmul.mubr.f32.gmra.mrb[4].mxu1 %v25254_v26  ;;  %22269 = vmatpush3.bf16.xpose.msra.mxu0 %v25265_v32  ;;  %v152_v32 = vld [vmem:[%s25213_s12 + $0xd8] sm:$0xff] }
  0xd7   : > { %22341 = vmatpush3.bf16.xpose.msra.mxu1 %v25269_v33  ;;  %18091 = vmatprep.mubr.msk.f32.mxu0 %vm25178_vm0, %v33928_v36  ;;  %v153_v33 = vld [vmem:[%s25213_s12 + $0xe0] sm:$0xff] }
  0xd8   : > { %18361 = vmatprep.mubr.msk.f32.mxu1 %vm25178_vm0, %v33928_v36  ;;  %22270 = vmatprep.subr.bf16.mxu0 %v33925_v18 }
  0xd9   : > { %18092 = vmatmul.mubr.f32.gmra.mrb[6].mxu0 %v25250_v25  ;;  %22342 = vmatprep.subr.bf16.mxu1 %v33925_v18 }
  0xda   : > { %18362 = vmatmul.mubr.f32.gmra.mrb[6].mxu1 %v25256_v27  ;;  %18094 = vmatprep.mubr.msk.f32.mxu0 %vm25178_vm0, %v33928_v36 }
  0xdb   : > { %18364 = vmatprep.mubr.msk.f32.mxu1 %vm25178_vm0, %v33928_v36 }
  0xdd   : > { %18095 = vmatmul.mubr.f32.gmra.mrb[8].mxu0 %v25285_v38 }
  0xde   : > { %18365 = vmatmul.mubr.f32.gmra.mrb[8].mxu1 %v25293_v40  ;;  %22272 = vmatpush3.bf16.xpose.msra.mxu0 %v25305_v46  ;;  %v25866_v46 = vsel %vm197_vm1, %v143_v20, 0 }
  0xdf   : > { %22344 = vmatpush3.bf16.xpose.msra.mxu1 %v25309_v47  ;;  %18097 = vmatprep.mubr.msk.f32.mxu0 %vm25178_vm0, %v33928_v36  ;;  %v25869_v47 = vsel %vm197_vm1, %v144_v23, 0  ;;  %v25886_v34 = vand.u32 4294901760, %v25866_v46 }
  0xe0   : > { %18367 = vmatprep.mubr.msk.f32.mxu1 %vm25178_vm0, %v33928_v36  ;;  %22273 = vmatprep.subr.bf16.mxu0 %v33925_v18  ;;  %v25889_v15 = vand.u32 4294901760, %v25869_v47 }
  0xe1   : > { %18098 = vmatmul.mubr.f32.gmra.mrb[10].mxu0 %v25288_v39  ;;  %22345 = vmatprep.subr.bf16.mxu1 %v33925_v18  ;;  %v26048_v20 = vsub.f32 %v25866_v46, %v25886_v34 }
  0xe2   : > { %18368 = vmatmul.mubr.f32.gmra.mrb[10].mxu1 %v25296_v41  ;;  %18100 = vmatprep.mubr.msk.f32.mxu0 %vm25178_vm0, %v33928_v36  ;;  %v25908_v1 = vpack.c.bf16 %v25889_v15, %v25886_v34  ;;  %v26052_v23 = vsub.f32 %v25869_v47, %v25889_v15 }
  0xe3   : > { %18370 = vmatprep.mubr.msk.f32.mxu1 %vm25178_vm0, %v33928_v36  ;;  %v26084_v47 = vand.u32 4294901760, %v26048_v20 }
  0xe5   : > { %18101 = vmatmul.mubr.f32.gmra.mrb[12].mxu0 %v25325_v52 }
  0xe6   : > { %18371 = vmatmul.mubr.f32.gmra.mrb[12].mxu1 %v25339_v56  ;;  %22275 = vmatpush3.bf16.xpose.msra.mxu0 %v25353_v60  ;;  %v25875_v60 = vsel %vm197_vm1, %v152_v32, 0 }
  0xe7   : > { %22347 = vmatpush3.bf16.xpose.msra.mxu1 %v25363_v63  ;;  %18103 = vmatprep.mubr.msk.f32.mxu0 %vm25178_vm0, %v33928_v36  ;;  %v25878_v63 = vsel %vm197_vm1, %v153_v33, 0  ;;  %v25894_v49 = vand.u32 4294901760, %v25875_v60 }
  0xe8   : > { %18373 = vmatprep.mubr.msk.f32.mxu1 %vm25178_vm0, %v33928_v36  ;;  %18125 = vmatprep.subr.mxu0 %v33928_v36  ;;  %v25897_v31 = vand.u32 4294901760, %v25878_v63 }
  0xe9   : > { %18104 = vmatmul.mubr.f32.gmra.mrb[14].mxu0 %v25328_v53  ;;  %18395 = vmatprep.subr.mxu1 %v33928_v36  ;;  %v26065_v32 = vsub.f32 %v25875_v60, %v25894_v49  ;;  %v26087_v60 = vand.u32 4294901760, %v26052_v23 }
  0xea   : > { %18374 = vmatmul.mubr.f32.gmra.mrb[14].mxu1 %v25342_v57  ;;  %18106 = vmatprep.mubr.msk.f32.mxu0 %vm25178_vm0, %v33928_v36  ;;  %v25915_v44 = vpack.c.bf16 %v25897_v31, %v25894_v49  ;;  %v26069_v33 = vsub.f32 %v25878_v63, %v25897_v31 }
  0xeb   : > { %18376 = vmatprep.mubr.msk.f32.mxu1 %vm25178_vm0, %v33928_v36  ;;  %33948 = vst [vmem:[#allocation2_spill] sm:$0xff] %v26087_v60  ;;  %v2154_v21 = vsub.f32 %v26052_v23, %v26087_v60 }
  0xec   : > { %v26099_v63 = vand.u32 4294901760, %v26069_v33 }
  0xed   : > { %18107 = vmatmul.mubr.f32.gmra.mrb[16].mxu0 %v25416_v30  ;;  %v2155_v42 = vand.u32 4294901760, %v2154_v21 }
  0xee   : > { %18377 = vmatmul.mubr.f32.gmra.mrb[16].mxu1 %v25419_v43  ;;  %18126 = vmatpush3.xpose.msra.mxu0 %v25416_v30  ;;  %33950 = vst [vmem:[#allocation4_spill] sm:$0xff] %v26099_v63 }
  0xef   : > { %18396 = vmatpush3.xpose.msra.mxu1 %v25419_v43  ;;  %18127 = vmatprep.mubr.msk.f32.mxu0 %vm25178_vm0, %v33928_v36 }
  0xf0   : > { %18397 = vmatprep.mubr.msk.f32.mxu1 %vm25178_vm0, %v33928_v36  ;;  %22348 = vmatprep.subr.bf16.mxu0 %v33925_v18 }
  0xf1   : > { %18128 = vmatmul.mubr.f32.vlgmr.msra.gmra.mrb[0].mxu0 %v25224_v11  ;;  %22420 = vmatprep.subr.bf16.mxu1 %v33925_v18  ;;  %v25946_v11 = vand.u32 4294901760, %v25927_v48 }
  0xf2   : > { %18398 = vmatmul.mubr.f32.vlgmr.msra.gmra.mrb[0].mxu1 %v25229_v14  ;;  %22350 = vmatpush3.bf16.xpose.msra.mxu0 %v25908_v1  ;;  %v147_v14 = vld [vmem:[%s25213_s12 + $0xb0] sm:$0xff] }
  0xf3   : > { %22422 = vmatpush3.bf16.xpose.msra.mxu1 %v25915_v44  ;;  %18130 = vmatprep.mubr.msk.f32.mxu0 %vm25178_vm0, %v33928_v36  ;;  %v25971_v8 = vpack.c.bf16 %v25949_v58, %v25946_v11 }
  0xf4   : > { %18400 = vmatprep.mubr.msk.f32.mxu1 %vm25178_vm0, %v33928_v36  ;;  %22351 = vmatprep.subr.bf16.mxu0 %v33925_v18 }
  0xf5   : > { %18131 = vmatmul.mubr.f32.gmra.mrb[2].mxu0 %v25226_v12  ;;  %22423 = vmatprep.subr.bf16.mxu1 %v33925_v18  ;;  %v25974_v12 = vsel %vm197_vm1, %v147_v14, 0  ;;  %v26114_v14 = vsub.f32 %v25927_v48, %v25946_v11 }
  0xf6   : > { %18401 = vmatmul.mubr.f32.gmra.mrb[2].mxu1 %v25233_v17  ;;  %18133 = vmatprep.mubr.msk.f32.mxu0 %vm25178_vm0, %v33928_v36  ;;  %v25977_v17 = vsel %vm197_vm1, %v148_v59, 0  ;;  %v25989_v29 = vand.u32 4294901760, %v25974_v12  ;;  %v26118_v59 = vsub.f32 %v25930_v45, %v25949_v58  ;;  %v26140_v45 = vsel %vm197_vm1, %v160_v0, 0 }
  0xf7   : > { %18403 = vmatprep.mubr.msk.f32.mxu1 %vm25178_vm0, %v33928_v36  ;;  %v25992_v13 = vand.u32 4294901760, %v25977_v17  ;;  %v26165_v35 = vand.u32 4294901760, %v26140_v45 }
  0xf8   : > { %v26154_v37 = vand.u32 4294901760, %v26118_v59  ;;  %v26178_v60 = vsub.f32 %v25974_v12, %v25989_v29 }
  0xf9   : > { %18134 = vmatmul.mubr.f32.gmra.mrb[4].mxu0 %v25248_v24  ;;  %v26001_v24 = vand.u32 4294901760, %v25983_v28  ;;  %v26017_v5 = vpack.c.bf16 %v25992_v13, %v25989_v29 }
  0xfa   : > { %18404 = vmatmul.mubr.f32.gmra.mrb[4].mxu1 %v25254_v26  ;;  %22353 = vmatpush3.bf16.xpose.msra.mxu0 %v25965_v7  ;;  %v149_v26 = vld [vmem:[%s25213_s12 + $0xc0] sm:$0xff]  ;;  %33954 = vst [vmem:[#allocation8_spill] sm:$0xff] %v26154_v37  ;;  %v3095_v21 = vsub.f32 %v26118_v59, %v26154_v37  ;;  %v26191_v37 = vsub.f32 %v25980_v9, %v25998_v16 }
  0xfb   : > { %22425 = vmatpush3.bf16.xpose.msra.mxu1 %v25971_v8  ;;  %18136 = vmatprep.mubr.msk.f32.mxu0 %vm25178_vm0, %v33928_v36  ;;  %v26023_v10 = vpack.c.bf16 %v26001_v24, %v25998_v16 }
  0xfc   : > { %18406 = vmatprep.mubr.msk.f32.mxu1 %vm25178_vm0, %v33928_v36  ;;  %22354 = vmatprep.subr.bf16.mxu0 %v33925_v18 }
  0xfd   : > { %18137 = vmatmul.mubr.f32.gmra.mrb[6].mxu0 %v25250_v25  ;;  %22426 = vmatprep.subr.bf16.mxu1 %v33925_v18  ;;  %v26026_v25 = vsel %vm197_vm1, %v149_v26, 0  ;;  %v26151_v26 = vand.u32 4294901760, %v26114_v14 }
  0xfe   : > { %18407 = vmatmul.mubr.f32.gmra.mrb[6].mxu1 %v25256_v27  ;;  %18139 = vmatprep.mubr.msk.f32.mxu0 %vm25178_vm0, %v33928_v36  ;;  %v26032_v27 = vsel %vm197_vm1, %v158_v22, 0  ;;  %v26041_v50 = vand.u32 4294901760, %v26026_v25  ;;  %v26160_v22 = vand.u32 4294901760, %v26130_v3 }
  0xff   : > { %18409 = vmatprep.mubr.msk.f32.mxu1 %vm25178_vm0, %v33928_v36  ;;  %33953 = vst [vmem:[#allocation7_spill] sm:$0xff] %v26151_v26 }
 0x100   : > { %v26081_v46 = vpack.c.bf16 %v26044_v62, %v26041_v50 }
 0x101   : > { %18140 = vmatmul.mubr.f32.gmra.mrb[8].mxu0 %v25285_v38  ;;  %v26058_v38 = vand.u32 4294901760, %v26032_v27 }
 0x102   : > { %18410 = vmatmul.mubr.f32.gmra.mrb[8].mxu1 %v25293_v40  ;;  %22356 = vmatpush3.bf16.xpose.msra.mxu0 %v26017_v5  ;;  %v26061_v40 = vand.u32 4294901760, %v26035_v19 }
 0x103   : > { %22428 = vmatpush3.bf16.xpose.msra.mxu1 %v26023_v10  ;;  %18142 = vmatprep.mubr.msk.f32.mxu0 %vm25178_vm0, %v33928_v36 }
 0x104   : > { %18412 = vmatprep.mubr.msk.f32.mxu1 %vm25178_vm0, %v33928_v36  ;;  %22357 = vmatprep.subr.bf16.mxu0 %v33925_v18 }
 0x105   : > { %18143 = vmatmul.mubr.f32.gmra.mrb[10].mxu0 %v25288_v39  ;;  %22429 = vmatprep.subr.bf16.mxu1 %v33925_v18  ;;  %v26093_v39 = vpack.c.bf16 %v26061_v40, %v26058_v38 }
 0x106   : > { %18413 = vmatmul.mubr.f32.gmra.mrb[10].mxu1 %v25296_v41  ;;  %18145 = vmatprep.mubr.msk.f32.mxu0 %vm25178_vm0, %v33928_v36  ;;  %v26096_v41 = vand.u32 4294901760, %v26065_v32 }
 0x107   : > { %18415 = vmatprep.mubr.msk.f32.mxu1 %vm25178_vm0, %v33928_v36 }
 0x108   : > { %33949 = vst [vmem:[#allocation3_spill] sm:$0xff] %v26096_v41  ;;  %v3065_v48 = vsub.f32 %v26065_v32, %v26096_v41  ;;  %v2164_v41 = vsub.f32 %v26104_v51, %v26143_v6  ;;  %v26202_v6 = vand.u32 4294901760, %v26178_v60 }
 0x109   : > { %18146 = vmatmul.mubr.f32.gmra.mrb[12].mxu0 %v25325_v52  ;;  %v2144_v52 = vsub.f32 %v26048_v20, %v26084_v47 }
 0x10a   : > { %18416 = vmatmul.mubr.f32.gmra.mrb[12].mxu1 %v25339_v56  ;;  %22359 = vmatpush3.bf16.xpose.msra.mxu0 %v26081_v46  ;;  %v3075_v56 = vsub.f32 %v26069_v33, %v26099_v63  ;;  %v3066_v0 = vand.u32 4294901760, %v3065_v48  ;;  %v2165_v12 = vand.u32 4294901760, %v2164_v41  ;;  %33955 = vst [vmem:[#allocation9_spill] sm:$0xff] %v26202_v6 }
 0x10b   : > { %22431 = vmatpush3.bf16.xpose.msra.mxu1 %v26093_v39  ;;  %18148 = vmatprep.mubr.msk.f32.mxu0 %vm25178_vm0, %v33928_v36 }
 0x10c   : > { %18418 = vmatprep.mubr.msk.f32.mxu1 %vm25178_vm0, %v33928_v36  ;;  %18440 = vmatprep.subr.mxu0 %v33928_v36  ;;  %v3076_v63 = vand.u32 4294901760, %v3075_v56 }
 0x10d   : > { %18149 = vmatmul.mubr.f32.gmra.mrb[14].mxu0 %v25328_v53  ;;  %18710 = vmatprep.subr.mxu1 %v33928_v36  ;;  %v2145_v53 = vand.u32 4294901760, %v2144_v52  ;;  %v3085_v52 = vsub.f32 %v26114_v14, %v26151_v26 }
 0x10e   : > { %18419 = vmatmul.mubr.f32.gmra.mrb[14].mxu1 %v25342_v57  ;;  %18151 = vmatprep.mubr.msk.f32.mxu0 %vm25178_vm0, %v33928_v36  ;;  %v2174_v57 = vsub.f32 %v26110_v2, %v26148_v61  ;;  %v22433_v56 = vpack.c.bf16 %v3076_v63, %v3066_v0  ;;  %v3096_v61 = vand.u32 4294901760, %v3095_v21  ;;  %v26227_v21 = vsub.f32 %v26026_v25, %v26041_v50 }
 0x10f   : > { %18421 = vmatprep.mubr.msk.f32.mxu1 %vm25178_vm0, %v33928_v36  ;;  %v22361_v48 = vpack.c.bf16 %v2155_v42, %v2145_v53  ;;  %v3086_v26 = vand.u32 4294901760, %v3085_v52  ;;  %v26245_v25 = vsub.f32 %v26035_v19, %v26061_v40 }
 0x111   : > { %18152 = vmatmul.mubr.f32.gmra.mrb[16].mxu0 %v25416_v30  ;;  %v26184_v30 = vsub.f32 %v25977_v17, %v25992_v13  ;;  %v2175_v17 = vand.u32 4294901760, %v2174_v57  ;;  %v2184_v57 = vsub.f32 %v26178_v60, %v26202_v6  ;;  %v26248_v6 = vand.u32 4294901760, %v26227_v21 }
 0x112   : > { %18422 = vmatmul.mubr.f32.gmra.mrb[16].mxu1 %v25419_v43  ;;  %18441 = vmatpush3.xpose.msra.mxu0 %v26160_v22  ;;  %v26195_v43 = vsub.f32 %v25983_v28, %v26001_v24  ;;  %v26210_v28 = vand.u32 4294901760, %v26191_v37 }
 0x113   : > { %18711 = vmatpush3.xpose.msra.mxu1 %v26165_v35  ;;  %18442 = vmatprep.mubr.msk.f32.mxu0 %vm25178_vm0, %v33928_v36  ;;  %v26205_v9 = vand.u32 4294901760, %v26184_v30  ;;  %33959 = vst [vmem:[#allocation13_spill] sm:$0xff] %v26248_v6 }
 0x114   : > { %18712 = vmatprep.mubr.msk.f32.mxu1 %vm25178_vm0, %v33928_v36  ;;  %22360 = vmatprep.subr.bf16.mxu0 %v33925_v18  ;;  %33957 = vst [vmem:[#allocation11_spill] sm:$0xff] %v26210_v28  ;;  %v26213_v41 = vand.u32 4294901760, %v26195_v43 }
 0x115   : > { %18443 = vmatmul.mubr.f32.vlgmr.msra.gmra.mrb[18].mxu0 %v2145_v53  ;;  %22432 = vmatprep.subr.bf16.mxu1 %v33925_v18  ;;  %33956 = vst [vmem:[#allocation10_spill] sm:$0xff] %v26205_v9  ;;  %v22364_v53 = vpack.c.bf16 %v2175_v17, %v2165_v12  ;;  %v2194_v52 = vsub.f32 %v26184_v30, %v26205_v9 }
 0x116   : > { %18713 = vmatmul.mubr.f32.vlgmr.msra.gmra.mrb[18].mxu1 %v3066_v0  ;;  %22362 = vmatpush3.bf16.xpose.msra.mxu0 %v22361_v48  ;;  %33958 = vst [vmem:[#allocation12_spill] sm:$0xff] %v26213_v41  ;;  %v22436_v0 = vpack.c.bf16 %v3096_v61, %v3086_v26  ;;  %v3115_v48 = vsub.f32 %v26195_v43, %v26213_v41 }
 0x117   : > { %22434 = vmatpush3.bf16.xpose.msra.mxu1 %v22433_v56  ;;  %18445 = vmatprep.mubr.msk.f32.mxu0 %vm25178_vm0, %v33928_v36  ;;  %v26241_v56 = vsub.f32 %v26032_v27, %v26058_v38  ;;  %v2195_v9 = vand.u32 4294901760, %v2194_v52  ;;  %v26279_v52 = vsub.f32 %v26130_v3, %v26160_v22 }
 0x118   : > { %18715 = vmatprep.mubr.msk.f32.mxu1 %vm25178_vm0, %v33928_v36  ;;  %22363 = vmatprep.subr.bf16.mxu0 %v33925_v18  ;;  %v3116_v41 = vand.u32 4294901760, %v3115_v48 }
 0x119   : > { %18446 = vmatmul.mubr.f32.gmra.mrb[20].mxu0 %v2155_v42  ;;  %22435 = vmatprep.subr.bf16.mxu1 %v33925_v18  ;;  %v26231_v42 = vsub.f32 %v26029_v4, %v26044_v62  ;;  %v2185_v4 = vand.u32 4294901760, %v2184_v57  ;;  %v26256_v19 = vand.u32 4294901760, %v26241_v56  ;;  %v26292_v3 = vand.u32 4294901760, %v26279_v52 }
 0x11a   : > { %18716 = vmatmul.mubr.f32.gmra.mrb[20].mxu1 %v3076_v63  ;;  %18448 = vmatprep.mubr.msk.f32.mxu0 %vm25178_vm0, %v33928_v36  ;;  %v3105_v63 = vsub.f32 %v26191_v37, %v26210_v28 }
 0x11b   : > { %18718 = vmatprep.mubr.msk.f32.mxu1 %vm25178_vm0, %v33928_v36  ;;  %v26251_v28 = vand.u32 4294901760, %v26231_v42  ;;  %33961 = vst [vmem:[#allocation15_spill] sm:$0xff] %v26256_v19 }
 0x11c   : > { %v3106_v27 = vand.u32 4294901760, %v3105_v63 }
 0x11d   : > { %18449 = vmatmul.mubr.f32.gmra.mrb[22].mxu0 %v2165_v12  ;;  %33960 = vst [vmem:[#allocation14_spill] sm:$0xff] %v26251_v28  ;;  %v22367_v12 = vpack.c.bf16 %v2195_v9, %v2185_v4 }
 0x11e   : > { %18719 = vmatmul.mubr.f32.gmra.mrb[22].mxu1 %v3086_v26  ;;  %22365 = vmatpush3.bf16.xpose.msra.mxu0 %v22364_v53  ;;  %v26259_v26 = vand.u32 4294901760, %v26245_v25  ;;  %v2204_v53 = vsub.f32 %v26227_v21, %v26248_v6  ;;  %v22439_v57 = vpack.c.bf16 %v3116_v41, %v3106_v27 }
 0x11f   : > { %22437 = vmatpush3.bf16.xpose.msra.mxu1 %v22436_v0  ;;  %18451 = vmatprep.mubr.msk.f32.mxu0 %vm25178_vm0, %v33928_v36  ;;  %v2214_v0 = vsub.f32 %v26231_v42, %v26251_v28  ;;  %v26283_v28 = vsub.f32 %v26140_v45, %v26165_v35 }
 0x120   : > { %18721 = vmatprep.mubr.msk.f32.mxu1 %vm25178_vm0, %v33928_v36  ;;  %22366 = vmatprep.subr.bf16.mxu0 %v33925_v18  ;;  %v2205_v63 = vand.u32 4294901760, %v2204_v53  ;;  %v22373_v53 = vpack.c.bf16 %v26052_v23, %v26048_v20 }
 0x121   : > { %18452 = vmatmul.mubr.f32.gmra.mrb[24].mxu0 %v2175_v17  ;;  %22438 = vmatprep.subr.bf16.mxu1 %v33925_v18  ;;  %v3125_v17 = vsub.f32 %v26241_v56, %v26256_v19  ;;  %v2215_v48 = vand.u32 4294901760, %v2214_v0  ;;  %v22376_v0 = vpack.c.bf16 %v26110_v2, %v26104_v51 }
 0x122   : > { %18722 = vmatmul.mubr.f32.gmra.mrb[24].mxu1 %v3096_v61  ;;  %18454 = vmatprep.mubr.msk.f32.mxu0 %vm25178_vm0, %v33928_v36  ;;  %v3135_v61 = vsub.f32 %v26245_v25, %v26259_v26 }
 0x123   : > { %18724 = vmatprep.mubr.msk.f32.mxu1 %vm25178_vm0, %v33928_v36  ;;  %v3126_v19 = vand.u32 4294901760, %v3125_v17  ;;  %v22370_v45 = vpack.c.bf16 %v2215_v48, %v2205_v63  ;;  %v22379_v17 = vpack.c.bf16 %v26184_v30, %v26178_v60 }
 0x124   : > { %v3136_v6 = vand.u32 4294901760, %v3135_v61  ;;  %v22451_v61 = vpack.c.bf16 %v26195_v43, %v26191_v37 }
 0x125   : > { %18455 = vmatmul.mubr.f32.gmra.mrb[26].mxu0 %v2185_v4  ;;  %v26297_v4 = vand.u32 4294901760, %v26283_v28 }
 0x126   : > { %18725 = vmatmul.mubr.f32.gmra.mrb[26].mxu1 %v3106_v27  ;;  %22368 = vmatpush3.bf16.xpose.msra.mxu0 %v22367_v12  ;;  %v22442_v27 = vpack.c.bf16 %v3136_v6, %v3126_v19 }
 0x127   : > { %22440 = vmatpush3.bf16.xpose.msra.mxu1 %v22439_v57  ;;  %18457 = vmatprep.mubr.msk.f32.mxu0 %vm25178_vm0, %v33928_v36  ;;  %v22448_v57 = vpack.c.bf16 %v26118_v59, %v26114_v14 }
 0x128   : > { %18727 = vmatprep.mubr.msk.f32.mxu1 %vm25178_vm0, %v33928_v36  ;;  %22369 = vmatprep.subr.bf16.mxu0 %v33925_v18 }
 0x129   : > { %18458 = vmatmul.mubr.f32.gmra.mrb[28].mxu0 %v2195_v9  ;;  %22441 = vmatprep.subr.bf16.mxu1 %v33925_v18  ;;  %v2224_v9 = vsub.f32 %v26279_v52, %v26292_v3 }
 0x12a   : > { %18728 = vmatmul.mubr.f32.gmra.mrb[28].mxu1 %v3116_v41  ;;  %18460 = vmatprep.mubr.msk.f32.mxu0 %vm25178_vm0, %v33928_v36  ;;  %v3145_v41 = vsub.f32 %v26283_v28, %v26297_v4 }
 0x12b   : > { %18730 = vmatprep.mubr.msk.f32.mxu1 %vm25178_vm0, %v33928_v36  ;;  %v2225_v12 = vand.u32 4294901760, %v2224_v9 }
 0x12d   : > { %18461 = vmatmul.mubr.f32.gmra.mrb[30].mxu0 %v2205_v63  ;;  %v22382_v63 = vpack.c.bf16 %v26231_v42, %v26227_v21 }
 0x12e   : > { %18731 = vmatmul.mubr.f32.gmra.mrb[30].mxu1 %v3126_v19  ;;  %22371 = vmatpush3.bf16.xpose.msra.mxu0 %v22370_v45  ;;  %v3146_v19 = vand.u32 4294901760, %v3145_v41 }
 0x12f   : > { %22443 = vmatpush3.bf16.xpose.msra.mxu1 %v22442_v27  ;;  %18463 = vmatprep.mubr.msk.f32.mxu0 %vm25178_vm0, %v33928_v36  ;;  %v33975_v27 = vld [vmem:[#allocation15_spill] sm:$0xff] }
 0x130   : > { %18733 = vmatprep.mubr.msk.f32.mxu1 %vm25178_vm0, %v33928_v36  ;;  %18485 = vmatprep.subr.mxu0 %v33928_v36  ;;  %v22478_v9 = vpack.c.bf16 %v26259_v26, %v33975_v27 }
 0x131   : > { %18464 = vmatmul.mubr.f32.gmra.mrb[32].mxu0 %v2215_v48  ;;  %18755 = vmatprep.subr.mxu1 %v33928_v36  ;;  %v22454_v48 = vpack.c.bf16 %v26245_v25, %v26241_v56 }
 0x132   : > { %18734 = vmatmul.mubr.f32.gmra.mrb[32].mxu1 %v3136_v6  ;;  %18466 = vmatprep.mubr.msk.f32.mxu0 %vm25178_vm0, %v33928_v36  ;;  %v22445_v6 = vpack.c.bf16 %v26069_v33, %v26065_v32 }
 0x133   : > { %18736 = vmatprep.mubr.msk.f32.mxu1 %vm25178_vm0, %v33928_v36 }
 0x135   : > { %18467 = vmatmul.mubr.f32.gmra.mrb[34].mxu0 %v2225_v12 }
 0x136   : > { %18737 = vmatmul.mubr.f32.gmra.mrb[34].mxu1 %v3146_v19  ;;  %18486 = vmatpush3.xpose.msra.mxu0 %v2225_v12  ;;  %v170_v12 = vld [vmem:[%s25213_s12 + $0x168] sm:$0xff] }
 0x137   : > { %18756 = vmatpush3.xpose.msra.mxu1 %v3146_v19  ;;  %18487 = vmatprep.mubr.msk.f32.mxu0 %vm25178_vm0, %v33928_v36  ;;  %v171_v19 = vld [vmem:[%s25213_s12 + $0x170] sm:$0xff] }
 0x138   : > { %18757 = vmatprep.mubr.msk.f32.mxu1 %vm25178_vm0, %v33928_v36  ;;  %22372 = vmatprep.subr.bf16.mxu0 %v33925_v18 }
 0x139   : > { %18488 = vmatmul.mubr.f32.vlgmr.msra.gmra.mrb[18].mxu0 %v25886_v34  ;;  %22444 = vmatprep.subr.bf16.mxu1 %v33925_v18 }
 0x13a   : > { %18758 = vmatmul.mubr.f32.vlgmr.msra.gmra.mrb[18].mxu1 %v25894_v49  ;;  %22374 = vmatpush3.bf16.xpose.msra.mxu0 %v22373_v53 }
 0x13b   : > { %22446 = vmatpush3.bf16.xpose.msra.mxu1 %v22445_v6  ;;  %18490 = vmatprep.mubr.msk.f32.mxu0 %vm25178_vm0, %v33928_v36 }
 0x13c   : > { %18760 = vmatprep.mubr.msk.f32.mxu1 %vm25178_vm0, %v33928_v36  ;;  %22375 = vmatprep.subr.bf16.mxu0 %v33925_v18 }
 0x13d   : > { %18491 = vmatmul.mubr.f32.gmra.mrb[20].mxu0 %v25889_v15  ;;  %22447 = vmatprep.subr.bf16.mxu1 %v33925_v18 }
 0x13e   : > { %18761 = vmatmul.mubr.f32.gmra.mrb[20].mxu1 %v25897_v31  ;;  %18493 = vmatprep.mubr.msk.f32.mxu0 %vm25178_vm0, %v33928_v36 }
 0x13f   : > { %18763 = vmatprep.mubr.msk.f32.mxu1 %vm25178_vm0, %v33928_v36 }
 0x141   : > { %18494 = vmatmul.mubr.f32.gmra.mrb[22].mxu0 %v25937_v54 }
 0x142   : > { %18764 = vmatmul.mubr.f32.gmra.mrb[22].mxu1 %v25946_v11  ;;  %22377 = vmatpush3.bf16.xpose.msra.mxu0 %v22376_v0 }
 0x143   : > { %22449 = vmatpush3.bf16.xpose.msra.mxu1 %v22448_v57  ;;  %18496 = vmatprep.mubr.msk.f32.mxu0 %vm25178_vm0, %v33928_v36 }
 0x144   : > { %18766 = vmatprep.mubr.msk.f32.mxu1 %vm25178_vm0, %v33928_v36  ;;  %22378 = vmatprep.subr.bf16.mxu0 %v33925_v18 }
 0x145   : > { %18497 = vmatmul.mubr.f32.gmra.mrb[24].mxu0 %v25940_v55  ;;  %22450 = vmatprep.subr.bf16.mxu1 %v33925_v18 }
 0x146   : > { %18767 = vmatmul.mubr.f32.gmra.mrb[24].mxu1 %v25949_v58  ;;  %18499 = vmatprep.mubr.msk.f32.mxu0 %vm25178_vm0, %v33928_v36 }
 0x147   : > { %18769 = vmatprep.mubr.msk.f32.mxu1 %vm25178_vm0, %v33928_v36 }
 0x149   : > { %18500 = vmatmul.mubr.f32.gmra.mrb[26].mxu0 %v25989_v29 }
 0x14a   : > { %18770 = vmatmul.mubr.f32.gmra.mrb[26].mxu1 %v25998_v16  ;;  %22380 = vmatpush3.bf16.xpose.msra.mxu0 %v22379_v17  ;;  %v26638_v17 = vsel %vm197_vm1, %v171_v19, 0  ;;  %v166_v19 = vld [vmem:[%s25213_s12 + $0x148] sm:$0xff] }
 0x14b   : > { %22452 = vmatpush3.bf16.xpose.msra.mxu1 %v22451_v61  ;;  %18502 = vmatprep.mubr.msk.f32.mxu0 %vm25178_vm0, %v33928_v36 }
 0x14c   : > { %18772 = vmatprep.mubr.msk.f32.mxu1 %vm25178_vm0, %v33928_v36  ;;  %22381 = vmatprep.subr.bf16.mxu0 %v33925_v18 }
 0x14d   : > { %18503 = vmatmul.mubr.f32.gmra.mrb[28].mxu0 %v25992_v13  ;;  %22453 = vmatprep.subr.bf16.mxu1 %v33925_v18 }
 0x14e   : > { %18773 = vmatmul.mubr.f32.gmra.mrb[28].mxu1 %v26001_v24  ;;  %18505 = vmatprep.mubr.msk.f32.mxu0 %vm25178_vm0, %v33928_v36 }
 0x14f   : > { %18775 = vmatprep.mubr.msk.f32.mxu1 %vm25178_vm0, %v33928_v36 }
 0x151   : > { %18506 = vmatmul.mubr.f32.gmra.mrb[30].mxu0 %v26041_v50 }
 0x152   : > { %18776 = vmatmul.mubr.f32.gmra.mrb[30].mxu1 %v26058_v38  ;;  %22383 = vmatpush3.bf16.xpose.msra.mxu0 %v22382_v63 }
 0x153   : > { %22455 = vmatpush3.bf16.xpose.msra.mxu1 %v22454_v48  ;;  %18508 = vmatprep.mubr.msk.f32.mxu0 %vm25178_vm0, %v33928_v36  ;;  %v26658_v48 = vand.u32 4294901760, %v26638_v17 }
 0x154   : > { %18778 = vmatprep.mubr.msk.f32.mxu1 %vm25178_vm0, %v33928_v36  ;;  %18530 = vmatprep.subr.mxu0 %v33928_v36 }
 0x155   : > { %18509 = vmatmul.mubr.f32.gmra.mrb[32].mxu0 %v26044_v62  ;;  %18800 = vmatprep.subr.mxu1 %v33928_v36 }
 0x156   : > { %18779 = vmatmul.mubr.f32.gmra.mrb[32].mxu1 %v26061_v40  ;;  %18511 = vmatprep.mubr.msk.f32.mxu0 %vm25178_vm0, %v33928_v36 }
 0x157   : > { %18781 = vmatprep.mubr.msk.f32.mxu1 %vm25178_vm0, %v33928_v36 }
 0x159   : > { %18512 = vmatmul.mubr.f32.gmra.mrb[34].mxu0 %v26160_v22 }
 0x15a   : > { %18782 = vmatmul.mubr.f32.gmra.mrb[34].mxu1 %v26165_v35  ;;  %18531 = vmatpush3.xpose.msra.mxu0 %v26279_v52 }
 0x15b   : > { %18801 = vmatpush3.xpose.msra.mxu1 %v26283_v28  ;;  %18532 = vmatprep.mubr.msk.f32.mxu0 %vm25178_vm0, %v33928_v36 }
 0x15c   : > { %18802 = vmatprep.mubr.msk.f32.mxu1 %vm25178_vm0, %v33928_v36  ;;  %22384 = vmatprep.subr.bf16.mxu0 %v33925_v18 }
 0x15d   : > { %18533 = vmatmul.mubr.f32.vlgmr.msra.gmra.mrb[18].mxu0 %v26048_v20  ;;  %22456 = vmatprep.subr.bf16.mxu1 %v33925_v18  ;;  %v33962_v20 = vld [vmem:[#allocation2_spill] sm:$0xff] }
 0x15e   : > { %18803 = vmatmul.mubr.f32.vlgmr.msra.gmra.mrb[18].mxu1 %v26065_v32  ;;  %22386 = vmatpush3.bf16.xpose.msra.mxu0 %v25908_v1  ;;  %v33963_v32 = vld [vmem:[#allocation3_spill] sm:$0xff] }
 0x15f   : > { %22458 = vmatpush3.bf16.xpose.msra.mxu1 %v25915_v44  ;;  %18535 = vmatprep.mubr.msk.f32.mxu0 %vm25178_vm0, %v33928_v36 }
 0x160   : > { %18805 = vmatprep.mubr.msk.f32.mxu1 %vm25178_vm0, %v33928_v36  ;;  %22387 = vmatprep.subr.bf16.mxu0 %v33925_v18 }
 0x161   : > { %18536 = vmatmul.mubr.f32.gmra.mrb[20].mxu0 %v26052_v23  ;;  %22459 = vmatprep.subr.bf16.mxu1 %v33925_v18  ;;  %v22397_v23 = vpack.c.bf16 %v33962_v20, %v26084_v47 }
 0x162   : > { %18806 = vmatmul.mubr.f32.gmra.mrb[20].mxu1 %v26069_v33  ;;  %18538 = vmatprep.mubr.msk.f32.mxu0 %vm25178_vm0, %v33928_v36  ;;  %v33964_v33 = vld [vmem:[#allocation4_spill] sm:$0xff] }
 0x163   : > { %18808 = vmatprep.mubr.msk.f32.mxu1 %vm25178_vm0, %v33928_v36 }
 0x165   : > { %18539 = vmatmul.mubr.f32.gmra.mrb[22].mxu0 %v26104_v51  ;;  %v33966_v51 = vld [vmem:[#allocation6_spill] sm:$0xff] }
 0x166   : > { %18809 = vmatmul.mubr.f32.gmra.mrb[22].mxu1 %v26114_v14  ;;  %22389 = vmatpush3.bf16.xpose.msra.mxu0 %v25965_v7  ;;  %v33967_v14 = vld [vmem:[#allocation7_spill] sm:$0xff] }
 0x167   : > { %22461 = vmatpush3.bf16.xpose.msra.mxu1 %v25971_v8  ;;  %18541 = vmatprep.mubr.msk.f32.mxu0 %vm25178_vm0, %v33928_v36 }
 0x168   : > { %18811 = vmatprep.mubr.msk.f32.mxu1 %vm25178_vm0, %v33928_v36  ;;  %22390 = vmatprep.subr.bf16.mxu0 %v33925_v18 }
 0x169   : > { %18542 = vmatmul.mubr.f32.gmra.mrb[24].mxu0 %v26110_v2  ;;  %22462 = vmatprep.subr.bf16.mxu1 %v33925_v18 }
 0x16a   : > { %18812 = vmatmul.mubr.f32.gmra.mrb[24].mxu1 %v26118_v59  ;;  %18544 = vmatprep.mubr.msk.f32.mxu0 %vm25178_vm0, %v33928_v36  ;;  %v33968_v59 = vld [vmem:[#allocation8_spill] sm:$0xff] }
 0x16b   : > { %18814 = vmatprep.mubr.msk.f32.mxu1 %vm25178_vm0, %v33928_v36 }
 0x16d   : > { %18545 = vmatmul.mubr.f32.gmra.mrb[26].mxu0 %v26178_v60  ;;  %v22469_v60 = vpack.c.bf16 %v33964_v33, %v33963_v32 }
 0x16e   : > { %18815 = vmatmul.mubr.f32.gmra.mrb[26].mxu1 %v26191_v37  ;;  %22392 = vmatpush3.bf16.xpose.msra.mxu0 %v26017_v5  ;;  %v22472_v37 = vpack.c.bf16 %v33968_v59, %v33967_v14 }
 0x16f   : > { %22464 = vmatpush3.bf16.xpose.msra.mxu1 %v26023_v10  ;;  %18547 = vmatprep.mubr.msk.f32.mxu0 %vm25178_vm0, %v33928_v36 }
 0x170   : > { %18817 = vmatprep.mubr.msk.f32.mxu1 %vm25178_vm0, %v33928_v36  ;;  %22393 = vmatprep.subr.bf16.mxu0 %v33925_v18 }
 0x171   : > { %18548 = vmatmul.mubr.f32.gmra.mrb[28].mxu0 %v26184_v30  ;;  %22465 = vmatprep.subr.bf16.mxu1 %v33925_v18  ;;  %v33969_v30 = vld [vmem:[#allocation9_spill] sm:$0xff] }
 0x172   : > { %18818 = vmatmul.mubr.f32.gmra.mrb[28].mxu1 %v26195_v43  ;;  %18550 = vmatprep.mubr.msk.f32.mxu0 %vm25178_vm0, %v33928_v36  ;;  %v33970_v43 = vld [vmem:[#allocation10_spill] sm:$0xff] }
 0x173   : > { %18820 = vmatprep.mubr.msk.f32.mxu1 %vm25178_vm0, %v33928_v36 }
 0x175   : > { %18551 = vmatmul.mubr.f32.gmra.mrb[30].mxu0 %v26227_v21  ;;  %v33971_v21 = vld [vmem:[#allocation11_spill] sm:$0xff] }
 0x176   : > { %18821 = vmatmul.mubr.f32.gmra.mrb[30].mxu1 %v26241_v56  ;;  %22395 = vmatpush3.bf16.xpose.msra.mxu0 %v26081_v46 }
 0x177   : > { %22467 = vmatpush3.bf16.xpose.msra.mxu1 %v26093_v39  ;;  %18553 = vmatprep.mubr.msk.f32.mxu0 %vm25178_vm0, %v33928_v36 }
 0x178   : > { %18823 = vmatprep.mubr.msk.f32.mxu1 %vm25178_vm0, %v33928_v36  ;;  %18575 = vmatprep.subr.mxu0 %v33928_v36 }
 0x179   : > { %18554 = vmatmul.mubr.f32.gmra.mrb[32].mxu0 %v26231_v42  ;;  %18845 = vmatprep.subr.mxu1 %v33928_v36  ;;  %v33972_v42 = vld [vmem:[#allocation12_spill] sm:$0xff] }
 0x17a   : > { %18824 = vmatmul.mubr.f32.gmra.mrb[32].mxu1 %v26245_v25  ;;  %18556 = vmatprep.mubr.msk.f32.mxu0 %vm25178_vm0, %v33928_v36  ;;  %v22475_v56 = vpack.c.bf16 %v33972_v42, %v33971_v21  ;;  %v33973_v25 = vld [vmem:[#allocation13_spill] sm:$0xff] }
 0x17b   : > { %18826 = vmatprep.mubr.msk.f32.mxu1 %vm25178_vm0, %v33928_v36 }
 0x17d   : > { %18557 = vmatmul.mubr.f32.gmra.mrb[34].mxu0 %v26279_v52  ;;  %v33974_v52 = vld [vmem:[#allocation14_spill] sm:$0xff] }
 0x17e   : > { %18827 = vmatmul.mubr.f32.gmra.mrb[34].mxu1 %v26283_v28  ;;  %18576 = vmatpush3.xpose.msra.mxu0 %v26160_v22  ;;  %v22403_v28 = vpack.c.bf16 %v33970_v43, %v33969_v30  ;;  %v22406_v45 = vpack.c.bf16 %v33974_v52, %v33973_v25 }
 0x17f   : > { %18846 = vmatpush3.xpose.msra.mxu1 %v26165_v35  ;;  %18577 = vmatprep.mubr.msk.f32.mxu0 %vm25178_vm0, %v33928_v36 }
 0x180   : > { %18847 = vmatprep.mubr.msk.f32.mxu1 %vm25178_vm0, %v33928_v36  ;;  %22396 = vmatprep.subr.bf16.mxu0 %v33925_v18 }
 0x181   : > { %18578 = vmatmul.mubr.f32.vlgmr.msra.gmra.mrb[18].mxu0 %v26084_v47  ;;  %22468 = vmatprep.subr.bf16.mxu1 %v33925_v18  ;;  %v33965_v47 = vld [vmem:[#allocation5_spill] sm:$0xff] }
 0x182   : > { %18848 = vmatmul.mubr.f32.vlgmr.msra.gmra.mrb[18].mxu1 %v33963_v32  ;;  %22398 = vmatpush3.bf16.xpose.msra.mxu0 %v22397_v23  ;;  %v22400_v2 = vpack.c.bf16 %v33966_v51, %v33965_v47  ;;  %v164_v23 = vld [vmem:[%s25213_s12 + $0x138] sm:$0xff] }
 0x183   : > { %22470 = vmatpush3.bf16.xpose.msra.mxu1 %v22469_v60  ;;  %18580 = vmatprep.mubr.msk.f32.mxu0 %vm25178_vm0, %v33928_v36  ;;  %v172_v60 = vld [vmem:[%s25213_s12 + $0x178] sm:$0xff] }
 0x184   : > { %18850 = vmatprep.mubr.msk.f32.mxu1 %vm25178_vm0, %v33928_v36  ;;  %22399 = vmatprep.subr.bf16.mxu0 %v33925_v18 }
 0x185   : > { %18581 = vmatmul.mubr.f32.gmra.mrb[20].mxu0 %v33962_v20  ;;  %22471 = vmatprep.subr.bf16.mxu1 %v33925_v18  ;;  %v163_v20 = vld [vmem:[%s25213_s12 + $0x130] sm:$0xff] }
 0x186   : > { %18851 = vmatmul.mubr.f32.gmra.mrb[20].mxu1 %v33964_v33  ;;  %18583 = vmatprep.mubr.msk.f32.mxu0 %vm25178_vm0, %v33928_v36 }
 0x187   : > { %18853 = vmatprep.mubr.msk.f32.mxu1 %vm25178_vm0, %v33928_v36 }
 0x189   : > { %18584 = vmatmul.mubr.f32.gmra.mrb[22].mxu0 %v33965_v47  ;;  %v173_v47 = vld [vmem:[%s25213_s12 + $0x180] sm:$0xff] }
 0x18a   : > { %18854 = vmatmul.mubr.f32.gmra.mrb[22].mxu1 %v33967_v14  ;;  %22401 = vmatpush3.bf16.xpose.msra.mxu0 %v22400_v2 }
 0x18b   : > { %22473 = vmatpush3.bf16.xpose.msra.mxu1 %v22472_v37  ;;  %18586 = vmatprep.mubr.msk.f32.mxu0 %vm25178_vm0, %v33928_v36 }
 0x18c   : > { %18856 = vmatprep.mubr.msk.f32.mxu1 %vm25178_vm0, %v33928_v36  ;;  %22402 = vmatprep.subr.bf16.mxu0 %v33925_v18 }
 0x18d   : > { %18587 = vmatmul.mubr.f32.gmra.mrb[24].mxu0 %v33966_v51  ;;  %22474 = vmatprep.subr.bf16.mxu1 %v33925_v18 }
 0x18e   : > { %18857 = vmatmul.mubr.f32.gmra.mrb[24].mxu1 %v33968_v59  ;;  %18589 = vmatprep.mubr.msk.f32.mxu0 %vm25178_vm0, %v33928_v36 }
 0x18f   : > { %18859 = vmatprep.mubr.msk.f32.mxu1 %vm25178_vm0, %v33928_v36 }
 0x191   : > { %18590 = vmatmul.mubr.f32.gmra.mrb[26].mxu0 %v33969_v30 }
 0x192   : > { %18860 = vmatmul.mubr.f32.gmra.mrb[26].mxu1 %v33971_v21  ;;  %22404 = vmatpush3.bf16.xpose.msra.mxu0 %v22403_v28  ;;  %v26681_v28 = vsel %vm197_vm1, %v163_v20, 0  ;;  %v26684_v21 = vsel %vm197_vm1, %v164_v23, 0 }
 0x193   : > { %22476 = vmatpush3.bf16.xpose.msra.mxu1 %v22475_v56  ;;  %18592 = vmatprep.mubr.msk.f32.mxu0 %vm25178_vm0, %v33928_v36  ;;  %v26692_v56 = vsel %vm197_vm1, %v172_v60, 0 }
 0x194   : > { %18862 = vmatprep.mubr.msk.f32.mxu1 %vm25178_vm0, %v33928_v36  ;;  %22405 = vmatprep.subr.bf16.mxu0 %v33925_v18 }
 0x195   : > { %18593 = vmatmul.mubr.f32.gmra.mrb[28].mxu0 %v33970_v43  ;;  %22477 = vmatprep.subr.bf16.mxu1 %v33925_v18 }
 0x196   : > { %18863 = vmatmul.mubr.f32.gmra.mrb[28].mxu1 %v33972_v42  ;;  %18595 = vmatprep.mubr.msk.f32.mxu0 %vm25178_vm0, %v33928_v36 }
 0x197   : > { %18865 = vmatprep.mubr.msk.f32.mxu1 %vm25178_vm0, %v33928_v36 }
 0x199   : > { %18596 = vmatmul.mubr.f32.gmra.mrb[30].mxu0 %v33973_v25  ;;  %v26695_v25 = vsel %vm197_vm1, %v173_v47, 0 }
 0x19a   : > { %18866 = vmatmul.mubr.f32.gmra.mrb[30].mxu1 %v33975_v27  ;;  %22407 = vmatpush3.bf16.xpose.msra.mxu0 %v22406_v45 }
 0x19b   : > { %22479 = vmatpush3.bf16.xpose.msra.mxu1 %v22478_v9  ;;  %18598 = vmatprep.mubr.msk.f32.mxu0 %vm25178_vm0, %v33928_v36 }
 0x19c   : > { %18868 = vmatprep.mubr.msk.f32.mxu1 %vm25178_vm0, %v33928_v36  ;;  %18620 = vmatprep.subr.mxu0 %v33928_v36 }
 0x19d   : > { %18599 = vmatmul.mubr.f32.gmra.mrb[32].mxu0 %v33974_v52  ;;  %18890 = vmatprep.subr.mxu1 %v33928_v36 }
 0x19e   : > { %18869 = vmatmul.mubr.f32.gmra.mrb[32].mxu1 %v26259_v26  ;;  %18601 = vmatprep.mubr.msk.f32.mxu0 %vm25178_vm0, %v33928_v36 }
 0x19f   : > { %18871 = vmatprep.mubr.msk.f32.mxu1 %vm25178_vm0, %v33928_v36 }
 0x1a1   : > { %18602 = vmatmul.mubr.f32.gmra.mrb[34].mxu0 %v26292_v3 }
 0x1a2   : > { %18872 = vmatmul.mubr.f32.gmra.mrb[34].mxu1 %v26297_v4  ;;  %18621 = vmatpush3.xpose.msra.mxu0 %v26292_v3  ;;  %v161_v3 = vld [vmem:[%s25213_s12 + $0x120] sm:$0xff] }
 0x1a3   : > { %18891 = vmatpush3.xpose.msra.mxu1 %v26297_v4  ;;  %18622 = vmatprep.mubr.msk.f32.mxu0 %vm25178_vm0, %v33928_v36  ;;  %v162_v4 = vld [vmem:[%s25213_s12 + $0x128] sm:$0xff]  ;;  %v26622_v6 = vsel %vm197_vm1, %v161_v3, 0  ;;  %v26730_v3 = vand.u32 4294901760, %v26695_v25 }
 0x1a4   : > { %18892 = vmatprep.mubr.msk.f32.mxu1 %vm25178_vm0, %v33928_v36  ;;  %22408 = vmatprep.subr.bf16.mxu0 %v33925_v18  ;;  %v26625_v0 = vsel %vm197_vm1, %v162_v4, 0 }
 0x1a5   : > { %18623 = vmatmul.mubr.f32.vlgmr.msra.gmra.mrb[18].mxu0 %v25886_v34  ;;  %22480 = vmatprep.subr.bf16.mxu1 %v33925_v18  ;;  %v26646_v61 = vand.u32 4294901760, %v26625_v0 }
 0x1a6   : > { %18893 = vmatmul.mubr.f32.vlgmr.msra.gmra.mrb[18].mxu1 %v25894_v49  ;;  %22410 = vmatpush3.bf16.xpose.msra.mxu0 %v25908_v1  ;;  %v7566_v1 = vlaneseq }
 0x1a7   : > { %22482 = vmatpush3.bf16.xpose.msra.mxu1 %v25915_v44  ;;  %18625 = vmatprep.mubr.msk.f32.mxu0 %vm25178_vm0, %v33928_v36 }
 0x1a8   : > { %18895 = vmatprep.mubr.msk.f32.mxu1 %vm25178_vm0, %v33928_v36  ;;  %22411 = vmatprep.subr.bf16.mxu0 %v33925_v18  ;;  %v7577_v44 = vand.u32 127, %v7566_v1  ;;  %v26612_v41 = vshrl.u32 %v7566_v1, 7 }
 0x1a9   : > { %18626 = vmatmul.mubr.f32.gmra.mrb[20].mxu0 %v25889_v15  ;;  %22483 = vmatprep.subr.bf16.mxu1 %v33925_v18 }
 0x1aa   : > { %18896 = vmatmul.mubr.f32.gmra.mrb[20].mxu1 %v25897_v31  ;;  %18628 = vmatprep.mubr.msk.f32.mxu0 %vm25178_vm0, %v33928_v36  ;;  %vm7596_vm2 = vcmp.ge.s32.totalorder %v7577_v44, 17  ;;  %vm7625_vm3 = vcmp.ge.s32.totalorder %v7577_v44, 34  ;;  %vm7655_vm4 = vcmp.ge.s32.totalorder %v7577_v44, 51  ;;  %v7569_v57 = vadd.s32 16, %v26612_v41 }
 0x1ab   : > { %18898 = vmatprep.mubr.msk.f32.mxu1 %vm25178_vm0, %v33928_v36  ;;  %v7571_v32 = vadd.s32 32, %v26612_v41  ;;  %v33980_v44 = vmov 0 }
 0x1ac   : > { %vm7580_vm7 = vcmp.ge.s32.totalorder %v7569_v57, 17  ;;  %v7573_v57 = vadd.s32 48, %v26612_v41 }
 0x1ad   : > { %18629 = vmatmul.mubr.f32.gmra.mrb[22].mxu0 %v25937_v54  ;;  %vm7602_vm8 = vcmp.ge.s32.totalorder %v7571_v32, 34  ;;  %v174_v32 = vld [vmem:[%s25213_s12 + $0x188] sm:$0xff] }
 0x1ae   : > { %18899 = vmatmul.mubr.f32.gmra.mrb[22].mxu1 %v25946_v11  ;;  %22413 = vmatpush3.bf16.xpose.msra.mxu0 %v25965_v7  ;;  %v25180_v7 = vmov 0   ;;  %vm7634_vm11 = vcmp.ge.s32.totalorder %v7573_v57, 51 }
 0x1af   : > { %22485 = vmatpush3.bf16.xpose.msra.mxu1 %v25971_v8  ;;  %18631 = vmatprep.mubr.msk.f32.mxu0 %vm25178_vm0, %v33928_v36  ;;  %v7597_v8 = vsel %vm7596_vm2, 1, %v25180_v7  ;;  %v7626_v26 = vsel %vm7625_vm3, 1, %v25180_v7  ;;  %v7589_v43 = vsel %vm7580_vm7, 1, %v25180_v7  ;;  %v7611_v4 = vsel %vm7602_vm8, 1, %v25180_v7 }
 0x1b0   : > { %18901 = vmatprep.mubr.msk.f32.mxu1 %vm25178_vm0, %v33928_v36  ;;  %22414 = vmatprep.subr.bf16.mxu0 %v33925_v18  ;;  %vm7782_vm2 = vcmask 551936   ;;  %vm8506_vm3 = vcmask 1043456  }
 0x1b1   : > { %18632 = vmatmul.mubr.f32.gmra.mrb[24].mxu0 %v25940_v55  ;;  %22486 = vmatprep.subr.bf16.mxu1 %v33925_v18 }
 0x1b2   : > { %18902 = vmatmul.mubr.f32.gmra.mrb[24].mxu1 %v25949_v58  ;;  %18634 = vmatprep.mubr.msk.f32.mxu0 %vm25178_vm0, %v33928_v36 }
 0x1b3   : > { %18904 = vmatprep.mubr.msk.f32.mxu1 %vm25178_vm0, %v33928_v36 }
 0x1b5   : > { %18635 = vmatmul.mubr.f32.gmra.mrb[26].mxu0 %v25989_v29 }
 0x1b6   : > { %18905 = vmatmul.mubr.f32.gmra.mrb[26].mxu1 %v25998_v16  ;;  %22416 = vmatpush3.bf16.xpose.msra.mxu0 %v26017_v5  ;;  %v7627_v5 = vadd.s32 %v7626_v26, %v7597_v8  ;;  %v26717_v8 = vand.u32 4294901760, %v26681_v28  ;;  %v26720_v26 = vand.u32 4294901760, %v26684_v21 }
 0x1b7   : > { %22488 = vmatpush3.bf16.xpose.msra.mxu1 %v26023_v10  ;;  %18637 = vmatprep.mubr.msk.f32.mxu0 %vm25178_vm0, %v33928_v36  ;;  %v7656_v10 = vsel %vm7655_vm4, 1, %v25180_v7  ;;  %vm16016_vm4 = vcmask 134144  }
 0x1b8   : > { %18907 = vmatprep.mubr.msk.f32.mxu1 %vm25178_vm0, %v33928_v36  ;;  %22417 = vmatprep.subr.bf16.mxu0 %v33925_v18  ;;  %v26619_v53 = vadd.s32 %v7656_v10, %v7627_v5  ;;  %v26727_v10 = vand.u32 4294901760, %v26692_v56 }
 0x1b9   : > { %18638 = vmatmul.mubr.f32.gmra.mrb[28].mxu0 %v25992_v13  ;;  %22489 = vmatprep.subr.bf16.mxu1 %v33925_v18 }
 0x1ba   : > { %18908 = vmatmul.mubr.f32.gmra.mrb[28].mxu1 %v26001_v24  ;;  %18640 = vmatprep.mubr.msk.f32.mxu0 %vm25178_vm0, %v33928_v36  ;;  %33976 = vst [vmem:[#allocation2_spill] sm:$0xff] %v26619_v53  ;;  %vm16148_vm5 = vcmp.eq.s32.totalorder %v26619_v53, 0  ;;  %vm26712_vm9 = vcmp.eq.s32.totalorder %v7589_v43, %v26619_v53  ;;  %vm16150_vm10 = vcmp.eq.s32.totalorder %v26619_v53, 1  ;;  %v26766_v43 = vpack.c.bf16 %v26730_v3, %v26727_v10 }
 0x1bb   : > { %18910 = vmatprep.mubr.msk.f32.mxu1 %vm25178_vm0, %v33928_v36  ;;  %v33981_v44 = vsel %vm26712_vm9, 4294967295, %v33980_v44  ;;  %vm16151_vm13 = vcmp.eq.s32.totalorder %v26619_v53, 2  ;;  %vm16152_vm15 = vcmp.eq.s32.totalorder %v26619_v53, 3 }
 0x1bc   : > { %33982 = vst [vmem:[#allocation6_spill] sm:$0xff] %v33981_v44 }
 0x1bd   : > { %18641 = vmatmul.mubr.f32.gmra.mrb[30].mxu0 %v26041_v50 }
 0x1be   : > { %18911 = vmatmul.mubr.f32.gmra.mrb[30].mxu1 %v26058_v38  ;;  %22419 = vmatpush3.bf16.xpose.msra.mxu0 %v26081_v46  ;;  %v26635_v46 = vsel %vm197_vm1, %v170_v12, 0  ;;  %v165_v12 = vld [vmem:[%s25213_s12 + $0x140] sm:$0xff] }
 0x1bf   : > { %22491 = vmatpush3.bf16.xpose.msra.mxu1 %v26093_v39  ;;  %18643 = vmatprep.mubr.msk.f32.mxu0 %vm25178_vm0, %v33928_v36  ;;  %v26643_v39 = vand.u32 4294901760, %v26622_v6  ;;  %v26655_v63 = vand.u32 4294901760, %v26635_v46 }
 0x1c0   : > { %18913 = vmatprep.mubr.msk.f32.mxu1 %vm25178_vm0, %v33928_v36  ;;  %18665 = vmatprep.subr.mxu0 %v33928_v36 }
 0x1c1   : > { %18644 = vmatmul.mubr.f32.gmra.mrb[32].mxu0 %v26044_v62  ;;  %18935 = vmatprep.subr.mxu1 %v33928_v36  ;;  %v26672_v59 = vpack.c.bf16 %v26646_v61, %v26643_v39  ;;  %v26689_v42 = vpack.c.bf16 %v26658_v48, %v26655_v63 }
 0x1c2   : > { %18914 = vmatmul.mubr.f32.gmra.mrb[32].mxu1 %v26061_v40  ;;  %18646 = vmatprep.mubr.msk.f32.mxu0 %vm25178_vm0, %v33928_v36 }
 0x1c3   : > { %18916 = vmatprep.mubr.msk.f32.mxu1 %vm25178_vm0, %v33928_v36 }
 0x1c4   : > { %v1067_v33 = vpop.f32.mrb[0].mxu0 }
 0x1c5   : > { %v26667_v51 = vsel %vm16148_vm5, %v1067_v33, -1e+30  ;;  %v1988_v2 = vpop.f32.mrb[0].mxu1  ;;  %v18129_v14 = vpop.f32.mrb[1].mxu0  ;;  %18647 = vmatmul.mubr.f32.gmra.mrb[34].mxu0 %v26160_v22  ;;  %v175_v33 = vld [vmem:[%s25213_s12 + $0x190] sm:$0xff] }
 0x1c6   : > { %33977 = vst [vmem:[#allocation3_spill] sm:$0xff] %v26667_v51  ;;  %v18399_v37 = vpop.f32.mrb[1].mxu1  ;;  %18917 = vmatmul.mubr.f32.gmra.mrb[34].mxu1 %v26165_v35  ;;  %18666 = vmatpush3.xpose.msra.mxu0 %v26160_v22  ;;  %v7758_v30 = vsel %vm7757_vm6, %v26667_v51, -inf  ;;  %v26699_v52 = vsel %vm16148_vm5, %v1988_v2, -1e+30  ;;  %v26758_v2 = vpack.c.bf16 %v26720_v26, %v26717_v8  ;;  %v7620_v14 = vadd.s32 1, %v7611_v4 }
 0x1c7   : > { %18936 = vmatpush3.xpose.msra.mxu1 %v26165_v35  ;;  %7759 = vmax.xlane.f32.xlu0 %v7758_v30  ;;  %33978 = vst [vmem:[#allocation4_spill] sm:$0xff] %v26699_v52 }
 0x1c8   : > { %v1073_v45 = vpop.f32.mrb[2].mxu0  ;;  %18667 = vmatprep.mubr.msk.f32.mxu0 %vm25178_vm0, %v33928_v36  ;;  %18937 = vmatprep.mubr.msk.f32.mxu1 %vm25178_vm0, %v33928_v36  ;;  %vm26797_vm12 = vcmp.eq.s32.totalorder %v7620_v14, %v26619_v53 }
 0x1c9   : > { %v26707_v27 = vsel %vm16148_vm5, %v1073_v45, -1e+30  ;;  %v1994_v9 = vpop.f32.mrb[2].mxu1  ;;  %v18132_v1 = vpop.f32.mrb[3].mxu0  ;;  %18668 = vmatmul.mubr.f32.vlgmr.msra.gmra.mrb[18].mxu0 %v25886_v34  ;;  %22492 = vmatprep.subr.bf16.mxu0 %v33925_v18  ;;  %v26769_v45 = vsel %vm197_vm1, %v165_v12, 0 }
 0x1ca   : > { %33979 = vst [vmem:[#allocation5_spill] sm:$0xff] %v26707_v27  ;;  %v18402_v5 = vpop.f32.mrb[3].mxu1  ;;  %18938 = vmatmul.mubr.f32.vlgmr.msra.gmra.mrb[18].mxu1 %v25894_v49  ;;  %22564 = vmatprep.subr.bf16.mxu1 %v33925_v18  ;;  %v7761_v34 = vsel %vm7757_vm6, %v26707_v27, -inf  ;;  %v7786_v49 = vsel %vm7757_vm6, %v26699_v52, -inf  ;;  %v26743_v20 = vsel %vm16148_vm5, %v1994_v9, -1e+30 }
 0x1cb   : > { %22494 = vmatpush3.bf16.xpose.msra.mxu0 %v26672_v59  ;;  %22566 = vmatpush3.bf16.xpose.msra.mxu1 %v26689_v42  ;;  %33983 = vst [vmem:[#allocation7_spill] sm:$0xff] %v26743_v20  ;;  %v26772_v9 = vsel %vm197_vm1, %v166_v19, 0  ;;  %v7789_v1 = vsel %vm7757_vm6, %v26743_v20, -inf  ;;  %v33987_v19 = vmov 0  ;;  %v26923_v20 = vsub.f32 %v26638_v17, %v26658_v48 }
 0x1cc   : > { %7787 = vmax.xlane.f32.xlu0 %v7786_v49  ;;  %7762 = vmax.xlane.f32.xlu1 %v7761_v34  ;;  %v1079_v23 = vpop.f32.mrb[4].mxu0  ;;  %v33988_v19 = vsel %vm26797_vm12, 4294967295, %v33987_v19 }
 0x1cd   : > { %v26749_v60 = vsel %vm26712_vm9, %v1079_v23, -1e+30  ;;  %v2000_v47 = vpop.f32.mrb[4].mxu1  ;;  %18670 = vmatprep.mubr.msk.f32.mxu0 %vm25178_vm0, %v33928_v36  ;;  %18940 = vmatprep.mubr.msk.f32.mxu1 %vm25178_vm0, %v33928_v36  ;;  %v18135_v41 = vpop.f32.mrb[5].mxu0  ;;  %33989 = vst [vmem:[#allocation11_spill] sm:$0xff] %v33988_v19  ;;  %v26802_v23 = vand.u32 4294901760, %v26769_v45 }
 0x1ce   : > { %33984 = vst [vmem:[#allocation8_spill] sm:$0xff] %v26749_v60  ;;  %v18405_v37 = vpop.f32.mrb[5].mxu1  ;;  %18671 = vmatmul.mubr.f32.gmra.mrb[20].mxu0 %v25889_v15  ;;  %18941 = vmatmul.mubr.f32.gmra.mrb[20].mxu1 %v25897_v31  ;;  %v7764_v30 = vsel %vm7757_vm6, %v26749_v60, -inf  ;;  %v26781_v15 = vsel %vm197_vm1, %v174_v32, 0  ;;  %v26784_v31 = vsel %vm197_vm1, %v175_v33, 0  ;;  %v26805_v32 = vand.u32 4294901760, %v26772_v9 }
 0x1cf   : > { %18673 = vmatprep.mubr.msk.f32.mxu0 %vm25178_vm0, %v33928_v36  ;;  %18943 = vmatprep.mubr.msk.f32.mxu1 %vm25178_vm0, %v33928_v36  ;;  %v26788_v5 = vsel %vm26712_vm9, %v2000_v47, -1e+30  ;;  %v26812_v41 = vand.u32 4294901760, %v26781_v15  ;;  %v26815_v14 = vand.u32 4294901760, %v26784_v31  ;;  %v7643_v37 = vsel %vm7634_vm11, 1, %v25180_v7 }
 0x1d0   : > { %33985 = vst [vmem:[#allocation9_spill] sm:$0xff] %v26788_v5  ;;  %7790 = vmax.xlane.f32.xlu1 %v7789_v1  ;;  %7765 = vmax.xlane.f32.xlu0 %v7764_v30  ;;  %v1085_v34 = vpop.f32.mrb[6].mxu0  ;;  %v167_v1 = vld [vmem:[%s25213_s12 + $0x150] sm:$0xff]  ;;  %v26967_v27 = vand.u32 4294901760, %v26923_v20 }
 0x1d1   : > { %v26792_v4 = vsel %vm16150_vm10, %v1085_v34, -1e+30  ;;  %v2006_v49 = vpop.f32.mrb[6].mxu1  ;;  %v18138_v12 = vpop.f32.mrb[7].mxu0  ;;  %22495 = vmatprep.subr.bf16.mxu0 %v33925_v18  ;;  %22567 = vmatprep.subr.bf16.mxu1 %v33925_v18  ;;  %v168_v34 = vld [vmem:[%s25213_s12 + $0x158] sm:$0xff] }
 0x1d2   : > { %33986 = vst [vmem:[#allocation10_spill] sm:$0xff] %v26792_v4  ;;  %v18408_v33 = vpop.f32.mrb[7].mxu1  ;;  %18674 = vmatmul.mubr.f32.gmra.mrb[22].mxu0 %v25937_v54  ;;  %18944 = vmatmul.mubr.f32.gmra.mrb[22].mxu1 %v25946_v11  ;;  %v7767_v47 = vsel %vm7757_vm6, %v26792_v4, -inf  ;;  %v7792_v54 = vsel %vm7757_vm6, %v26788_v5, -inf  ;;  %v26825_v11 = vsel %vm16150_vm10, %v2006_v49, -1e+30  ;;  %v26850_v5 = vpack.c.bf16 %v26815_v14, %v26812_v41 }
 0x1d3   : > { %22497 = vmatpush3.bf16.xpose.msra.mxu0 %v26758_v2  ;;  %22569 = vmatpush3.bf16.xpose.msra.mxu1 %v26766_v43  ;;  %33990 = vst [vmem:[#allocation12_spill] sm:$0xff] %v26825_v11  ;;  %v176_v12 = vld [vmem:[%s25213_s12 + $0x198] sm:$0xff]  ;;  %v7652_v49 = vadd.s32 2, %v7643_v37  ;;  %v177_v4 = vld [vmem:[%s25213_s12 + $0x1a0] sm:$0xff]  ;;  %v7795_v37 = vsel %vm7757_vm6, %v26825_v11, -inf  ;;  %34006 = vst [vmem:[#allocation26_spill] sm:$0xff] %v26967_v27 }
 0x1d4   : > { %7793 = vmax.xlane.f32.xlu1 %v7792_v54  ;;  %7768 = vmax.xlane.f32.xlu0 %v7767_v47  ;;  %v1091_v30 = vpop.f32.mrb[8].mxu0  ;;  %33992 = vst [vmem:[#allocation14_spill] sm:$0xff] %v26850_v5  ;;  %v26872_v11 = vsel %vm197_vm1, %v177_v4, 0 }
 0x1d5   : > { %v26832_v7 = vsel %vm26797_vm12, %v1091_v30, -1e+30  ;;  %v2012_v57 = vpop.f32.mrb[8].mxu1  ;;  %18676 = vmatprep.mubr.msk.f32.mxu0 %vm25178_vm0, %v33928_v36  ;;  %18946 = vmatprep.mubr.msk.f32.mxu1 %vm25178_vm0, %v33928_v36  ;;  %v18141_v33 = vpop.f32.mrb[9].mxu0  ;;  %v26846_v30 = vpack.c.bf16 %v26805_v32, %v26802_v23  ;;  %vm26881_vm14 = vcmp.eq.s32.totalorder %v7652_v49, %v26619_v53  ;;  %v26907_v49 = vsub.f32 %v26622_v6, %v26643_v39 }
 0x1d6   : > { %33991 = vst [vmem:[#allocation13_spill] sm:$0xff] %v26832_v7  ;;  %v18411_v54 = vpop.f32.mrb[9].mxu1  ;;  %18677 = vmatmul.mubr.f32.gmra.mrb[24].mxu0 %v25940_v55  ;;  %18947 = vmatmul.mubr.f32.gmra.mrb[24].mxu1 %v25949_v58  ;;  %v7770_v47 = vsel %vm7757_vm6, %v26832_v7, -inf  ;;  %v26859_v55 = vsel %vm197_vm1, %v167_v1, 0  ;;  %v26862_v58 = vsel %vm197_vm1, %v168_v34, 0  ;;  %v26865_v33 = vsel %vm197_vm1, %v176_v12, 0 }
 0x1d7   : > { %18679 = vmatprep.mubr.msk.f32.mxu0 %vm25178_vm0, %v33928_v36  ;;  %18949 = vmatprep.mubr.msk.f32.mxu1 %vm25178_vm0, %v33928_v36  ;;  %v26869_v54 = vsel %vm26797_vm12, %v2012_v57, -1e+30  ;;  %v33995_v12 = vmov 0 }
 0x1d8   : > { %33993 = vst [vmem:[#allocation15_spill] sm:$0xff] %v26869_v54  ;;  %7796 = vmax.xlane.f32.xlu1 %v7795_v37  ;;  %7771 = vmax.xlane.f32.xlu0 %v7770_v47  ;;  %v1097_v7 = vpop.f32.mrb[10].mxu0  ;;  %v33996_v12 = vsel %vm26881_vm14, 4294967295, %v33995_v12  ;;  %v26893_v47 = vand.u32 4294901760, %v26862_v58  ;;  %v26896_v37 = vand.u32 4294901760, %v26865_v33 }
 0x1d9   : > { %v26876_v1 = vsel %vm16151_vm13, %v1097_v7, -1e+30  ;;  %v2018_v60 = vpop.f32.mrb[10].mxu1  ;;  %v18144_v34 = vpop.f32.mrb[11].mxu0  ;;  %22498 = vmatprep.subr.bf16.mxu0 %v33925_v18  ;;  %22570 = vmatprep.subr.bf16.mxu1 %v33925_v18  ;;  %33997 = vst [vmem:[#allocation17_spill] sm:$0xff] %v33996_v12  ;;  %v26890_v7 = vand.u32 4294901760, %v26859_v55 }
 0x1da   : > { %33994 = vst [vmem:[#allocation16_spill] sm:$0xff] %v26876_v1  ;;  %v18414_v57 = vpop.f32.mrb[11].mxu1  ;;  %18680 = vmatmul.mubr.f32.gmra.mrb[26].mxu0 %v25989_v29  ;;  %18950 = vmatmul.mubr.f32.gmra.mrb[26].mxu1 %v25998_v16  ;;  %v7773_v4 = vsel %vm7757_vm6, %v26876_v1, -inf  ;;  %v7798_v29 = vsel %vm7757_vm6, %v26869_v54, -inf  ;;  %v26903_v16 = vand.u32 4294901760, %v26872_v11  ;;  %v26911_v34 = vsub.f32 %v26625_v0, %v26646_v61 }
 0x1db   : > { %22500 = vmatpush3.bf16.xpose.msra.mxu0 %v26846_v30  ;;  %22572 = vmatpush3.bf16.xpose.msra.mxu1 %v26850_v5  ;;  %v26915_v57 = vsel %vm16151_vm13, %v2018_v60, -1e+30  ;;  %v26919_v54 = vsub.f32 %v26635_v46, %v26655_v63  ;;  %v26940_v17 = vpack.c.bf16 %v26893_v47, %v26890_v7 }
 0x1dc   : > { %33998 = vst [vmem:[#allocation18_spill] sm:$0xff] %v26915_v57  ;;  %7799 = vmax.xlane.f32.xlu1 %v7798_v29  ;;  %7774 = vmax.xlane.f32.xlu0 %v7773_v4  ;;  %v1103_v1 = vpop.f32.mrb[12].mxu0  ;;  %v26954_v29 = vand.u32 4294901760, %v26907_v49 }
 0x1dd   : > { %v26927_v6 = vsel %vm26881_vm14, %v1103_v1, -1e+30  ;;  %v2024_v0 = vpop.f32.mrb[12].mxu1  ;;  %18682 = vmatprep.mubr.msk.f32.mxu0 %vm25178_vm0, %v33928_v36  ;;  %18952 = vmatprep.mubr.msk.f32.mxu1 %vm25178_vm0, %v33928_v36  ;;  %v18147_v60 = vpop.f32.mrb[13].mxu0  ;;  %34000 = vst [vmem:[#allocation20_spill] sm:$0xff] %v26940_v17  ;;  %v7801_v1 = vsel %vm7757_vm6, %v26915_v57, -inf }
 0x1de   : > { %33999 = vst [vmem:[#allocation19_spill] sm:$0xff] %v26927_v6  ;;  %v18417_v4 = vpop.f32.mrb[13].mxu1  ;;  %18683 = vmatmul.mubr.f32.gmra.mrb[28].mxu0 %v25992_v13  ;;  %18953 = vmatmul.mubr.f32.gmra.mrb[28].mxu1 %v26001_v24  ;;  %v7776_v46 = vsel %vm7757_vm6, %v26927_v6, -inf  ;;  %v26950_v13 = vpack.c.bf16 %v26903_v16, %v26896_v37  ;;  %v169_v24 = vld [vmem:[%s25213_s12 + $0x160] sm:$0xf]  ;;  %34002 = vst [vmem:[#allocation22_spill] sm:$0xff] %v26954_v29 }
 0x1df   : > { %18685 = vmatprep.mubr.msk.f32.mxu0 %vm25178_vm0, %v33928_v36  ;;  %18955 = vmatprep.mubr.msk.f32.mxu1 %vm25178_vm0, %v33928_v36  ;;  %v26957_v60 = vand.u32 4294901760, %v26911_v34  ;;  %v26961_v4 = vsel %vm26881_vm14, %v2024_v0, -1e+30  ;;  %v26964_v57 = vand.u32 4294901760, %v26919_v54  ;;  %v178_v0 = vld [vmem:[%s25213_s12 + $0x1a8] sm:$0xf] }
 0x1e0   : > { %34001 = vst [vmem:[#allocation21_spill] sm:$0xff] %v26950_v13  ;;  %34004 = vst [vmem:[#allocation24_spill] sm:$0xff] %v26961_v4  ;;  %7802 = vmax.xlane.f32.xlu1 %v7801_v1  ;;  %7777 = vmax.xlane.f32.xlu0 %v7776_v46  ;;  %v1109_v6 = vpop.f32.mrb[14].mxu0  ;;  %v26978_v46 = vsub.f32 %v26681_v28, %v26717_v8  ;;  %v26982_v1 = vsub.f32 %v26684_v21, %v26720_v26 }
 0x1e1   : > { %34003 = vst [vmem:[#allocation23_spill] sm:$0xff] %v26957_v60  ;;  %34005 = vst [vmem:[#allocation25_spill] sm:$0xff] %v26964_v57  ;;  %v26971_v52 = vsel %vm16152_vm15, %v1109_v6, -1e+30  ;;  %v2030_v51 = vpop.f32.mrb[14].mxu1  ;;  %v18150_v19 = vpop.f32.mrb[15].mxu0  ;;  %22501 = vmatprep.subr.bf16.mxu0 %v33925_v18  ;;  %22573 = vmatprep.subr.bf16.mxu1 %v33925_v18  ;;  %v26990_v6 = vsub.f32 %v26692_v56, %v26727_v10  ;;  %v26994_v28 = vsub.f32 %v26695_v25, %v26730_v3 }
 0x1e2   : > { %34007 = vst [vmem:[#allocation27_spill] sm:$0xff] %v26971_v52  ;;  %v18420_v12 = vpop.f32.mrb[15].mxu1  ;;  %18686 = vmatmul.mubr.f32.gmra.mrb[30].mxu0 %v26041_v50  ;;  %18956 = vmatmul.mubr.f32.gmra.mrb[30].mxu1 %v26058_v38  ;;  %v7779_v19 = vsel %vm7757_vm6, %v26971_v52, -inf  ;;  %v7804_v50 = vsel %vm7757_vm6, %v26961_v4, -inf  ;;  %v27001_v38 = vsel %vm197_vm1, %v169_v24, 0  ;;  %v3986_v21 = vsub.f32 %v26907_v49, %v26954_v29 }
 0x1e3   : > { %22503 = vmatpush3.bf16.xpose.msra.mxu0 %v26940_v17  ;;  %22575 = vmatpush3.bf16.xpose.msra.mxu1 %v26950_v13  ;;  %v3996_v56 = vsub.f32 %v26911_v34, %v26957_v60  ;;  %v27009_v25 = vsel %vm16152_vm15, %v2030_v51, -1e+30  ;;  %v27012_v52 = vsel %vm197_vm1, %v178_v0, 0  ;;  %v4907_v24 = vsub.f32 %v26919_v54, %v26964_v57 }
 0x1e4   : > { %34008 = vst [vmem:[#allocation28_spill] sm:$0xff] %v27009_v25  ;;  %7805 = vmax.xlane.f32.xlu1 %v7804_v50  ;;  %7780 = vmax.xlane.f32.xlu0 %v7779_v19  ;;  %v1115_v12 = vpop.f32.mrb[16].mxu0  ;;  %v4917_v4 = vsub.f32 %v26923_v20, %v26967_v27  ;;  %v27027_v0 = vand.u32 4294901760, %v26978_v46  ;;  %v27030_v19 = vand.u32 4294901760, %v26982_v1  ;;  %v27037_v27 = vand.u32 4294901760, %v27001_v38 }
 0x1e5   : > { %v27020_v44 = vsel %vm16152_vm15, %v1115_v12, -1e+30  ;;  %v2036_v60 = vpop.f32.mrb[16].mxu1  ;;  %18688 = vmatprep.mubr.msk.f32.mxu0 %vm25178_vm0, %v33928_v36  ;;  %18958 = vmatprep.mubr.msk.f32.mxu1 %vm25178_vm0, %v33928_v36  ;;  %v18153_v51 = vpop.f32.mrb[17].mxu0  ;;  %v27040_v57 = vand.u32 4294901760, %v26990_v6  ;;  %v7807_v29 = vsel %vm7757_vm6, %v27009_v25, -inf }
 0x1e6   : > { %34009 = vst [vmem:[#allocation29_spill] sm:$0xff] %v27020_v44  ;;  %v18423_v50 = vpop.f32.mrb[17].mxu1  ;;  %18689 = vmatmul.mubr.f32.gmra.mrb[32].mxu0 %v26044_v62  ;;  %18959 = vmatmul.mubr.f32.gmra.mrb[32].mxu1 %v26061_v40  ;;  %v7783_v12 = vsel %vm7782_vm2, %v27020_v44, -inf  ;;  %v27043_v51 = vand.u32 4294901760, %v26994_v28  ;;  %v27052_v62 = vand.u32 4294901760, %v27012_v52  ;;  %v3987_v40 = vand.u32 4294901760, %v3986_v21 }
 0x1e7   : > { %18691 = vmatprep.mubr.msk.f32.mxu0 %vm25178_vm0, %v33928_v36  ;;  %18961 = vmatprep.mubr.msk.f32.mxu1 %vm25178_vm0, %v33928_v36  ;;  %v3997_v50 = vand.u32 4294901760, %v3996_v56  ;;  %v27056_v44 = vsel %vm16152_vm15, %v2036_v60, -1e+30  ;;  %v4908_v13 = vand.u32 4294901760, %v4907_v24  ;;  %v4918_v17 = vand.u32 4294901760, %v4917_v4 }
 0x1e8   : > { %34010 = vst [vmem:[#allocation30_spill] sm:$0xff] %v27056_v44  ;;  %7808 = vmax.xlane.f32.xlu1 %v7807_v29  ;;  %7784 = vmax.xlane.f32.xlu0 %v7783_v12  ;;  %v4006_v25 = vsub.f32 %v26978_v46, %v27027_v0  ;;  %v4016_v5 = vsub.f32 %v26982_v1, %v27030_v19  ;;  %v7810_v21 = vsel %vm7782_vm2, %v27056_v44, -inf }
 0x1e9   : > { %18980 = vmatprep.subr.mxu0 %v33928_v36  ;;  %19250 = vmatprep.subr.mxu1 %v33928_v36  ;;  %v4927_v29 = vsub.f32 %v26990_v6, %v27040_v57  ;;  %v4937_v60 = vsub.f32 %v26994_v28, %v27043_v51  ;;  %v27072_v4 = vsub.f32 %v26769_v45, %v26802_v23 }
 0x1ea   : > { %18692 = vmatmul.mubr.f32.gmra.mrb[34].mxu0 %v26160_v22  ;;  %18962 = vmatmul.mubr.f32.gmra.mrb[34].mxu1 %v26165_v35  ;;  %v22505_v22 = vpack.c.bf16 %v3997_v50, %v3987_v40  ;;  %v27080_v35 = vsub.f32 %v26772_v9, %v26805_v32  ;;  %v22577_v56 = vpack.c.bf16 %v4918_v17, %v4908_v13  ;;  %v4007_v9 = vand.u32 4294901760, %v4006_v25 }
 0x1eb   : > { %18981 = vmatpush3.xpose.msra.mxu0 %v27037_v27  ;;  %19251 = vmatpush3.xpose.msra.mxu1 %v27052_v62  ;;  %v27086_v45 = vsub.f32 %v26781_v15, %v26812_v41  ;;  %v27090_v24 = vsub.f32 %v26784_v31, %v26815_v14  ;;  %v4017_v12 = vand.u32 4294901760, %v4016_v5  ;;  %v4938_v44 = vand.u32 4294901760, %v4937_v60 }
 0x1ec   : > { %7811 = vmax.xlane.f32.xlu1 %v7810_v21  ;;  %18982 = vmatprep.mubr.msk.f32.mxu0 %vm25178_vm0, %v33928_v36  ;;  %v4928_v21 = vand.u32 4294901760, %v4927_v29  ;;  %v27096_v53 = vand.u32 4294901760, %v27072_v4  ;;  %v27100_v15 = vand.u32 4294901760, %v27080_v35  ;;  %v27123_v60 = vsub.f32 %v26859_v55, %v26890_v7 }
 0x1ed   : > { %19252 = vmatprep.mubr.msk.f32.mxu1 %vm25178_vm0, %v33928_v36  ;;  %22504 = vmatprep.subr.bf16.mxu0 %v33925_v18  ;;  %v27105_v31 = vand.u32 4294901760, %v27086_v45  ;;  %v27108_v5 = vand.u32 4294901760, %v27090_v24  ;;  %v27140_v55 = vsub.f32 %v26872_v11, %v26903_v16 }
 0x1ee   : > { %18983 = vmatmul.mubr.f32.vlgmr.msra.gmra.mrb[36].mxu0 %v3987_v40  ;;  %19253 = vmatmul.mubr.f32.vlgmr.msra.gmra.mrb[36].mxu1 %v4908_v13  ;;  %34011 = vst [vmem:[#allocation31_spill] sm:$0xff] %v27100_v15  ;;  %v22508_v13 = vpack.c.bf16 %v4017_v12, %v4007_v9  ;;  %v22580_v25 = vpack.c.bf16 %v4938_v44, %v4928_v21 }
 0x1ef   : > { %22576 = vmatprep.subr.bf16.mxu1 %v33925_v18  ;;  %22506 = vmatpush3.bf16.xpose.msra.mxu0 %v22505_v22  ;;  %34012 = vst [vmem:[#allocation32_spill] sm:$0xff] %v27105_v31  ;;  %34013 = vst [vmem:[#allocation33_spill] sm:$0xff] %v27108_v5  ;;  %v4026_v40 = vsub.f32 %v27072_v4, %v27096_v53  ;;  %v4036_v29 = vsub.f32 %v27080_v35, %v27100_v15 }
 0x1f0   : > { %22578 = vmatpush3.bf16.xpose.msra.mxu1 %v22577_v56  ;;  %18985 = vmatprep.mubr.msk.f32.mxu0 %vm25178_vm0, %v33928_v36  ;;  %v4957_v22 = vsub.f32 %v27090_v24, %v27108_v5  ;;  %v27136_v56 = vsub.f32 %v26865_v33, %v26896_v37 }
 0x1f1   : > { %19255 = vmatprep.mubr.msk.f32.mxu1 %vm25178_vm0, %v33928_v36  ;;  %22507 = vmatprep.subr.bf16.mxu0 %v33925_v18  ;;  %v4037_v15 = vand.u32 4294901760, %v4036_v29 }
 0x1f2   : > { %18986 = vmatmul.mubr.f32.gmra.mrb[38].mxu0 %v3997_v50  ;;  %19256 = vmatmul.mubr.f32.gmra.mrb[38].mxu1 %v4918_v17  ;;  %v27127_v17 = vsub.f32 %v26862_v58, %v26893_v47  ;;  %v4947_v50 = vsub.f32 %v27086_v45, %v27105_v31  ;;  %v4027_v58 = vand.u32 4294901760, %v4026_v40  ;;  %v27145_v31 = vand.u32 4294901760, %v27123_v60 }
 0x1f3   : > { %18988 = vmatprep.mubr.msk.f32.mxu0 %vm25178_vm0, %v33928_v36  ;;  %19258 = vmatprep.mubr.msk.f32.mxu1 %vm25178_vm0, %v33928_v36  ;;  %v4958_v33 = vand.u32 4294901760, %v4957_v22  ;;  %v27178_v22 = vsub.f32 %v27012_v52, %v27052_v62 }
 0x1f4   : > { %22579 = vmatprep.subr.bf16.mxu1 %v33925_v18  ;;  %34014 = vst [vmem:[#allocation34_spill] sm:$0xff] %v27145_v31  ;;  %v27148_v5 = vand.u32 4294901760, %v27127_v17  ;;  %v4948_v11 = vand.u32 4294901760, %v4947_v50 }
 0x1f6   : > { %18989 = vmatmul.mubr.f32.gmra.mrb[40].mxu0 %v4007_v9  ;;  %19259 = vmatmul.mubr.f32.gmra.mrb[40].mxu1 %v4928_v21  ;;  %34015 = vst [vmem:[#allocation35_spill] sm:$0xff] %v27148_v5  ;;  %v27153_v9 = vand.u32 4294901760, %v27136_v56  ;;  %v27156_v21 = vand.u32 4294901760, %v27140_v55  ;;  %v4056_v40 = vsub.f32 %v27127_v17, %v27148_v5  ;;  %v22583_v29 = vpack.c.bf16 %v4958_v33, %v4948_v11 }
 0x1f7   : > { %22509 = vmatpush3.bf16.xpose.msra.mxu0 %v22508_v13  ;;  %18991 = vmatprep.mubr.msk.f32.mxu0 %vm25178_vm0, %v33928_v36  ;;  %v22511_v13 = vpack.c.bf16 %v4037_v15, %v4027_v58 }
 0x1f8   : > { %22581 = vmatpush3.bf16.xpose.msra.mxu1 %v22580_v25  ;;  %19261 = vmatprep.mubr.msk.f32.mxu1 %vm25178_vm0, %v33928_v36  ;;  %v4046_v25 = vsub.f32 %v27123_v60, %v27145_v31  ;;  %v4967_v50 = vsub.f32 %v27136_v56, %v27153_v9  ;;  %v4057_v31 = vand.u32 4294901760, %v4056_v40 }
 0x1f9   : > { %22510 = vmatprep.subr.bf16.mxu0 %v33925_v18  ;;  %22582 = vmatprep.subr.bf16.mxu1 %v33925_v18 }
 0x1fa   : > { %18992 = vmatmul.mubr.f32.gmra.mrb[42].mxu0 %v4017_v12  ;;  %19262 = vmatmul.mubr.f32.gmra.mrb[42].mxu1 %v4938_v44  ;;  %v4977_v44 = vsub.f32 %v27140_v55, %v27156_v21  ;;  %v27174_v12 = vsub.f32 %v27001_v38, %v27037_v27  ;;  %v4047_v5 = vand.u32 4294901760, %v4046_v25  ;;  %v27190_v38 = vand.u32 4294901760, %v27178_v22 }
 0x1fb   : > { %18994 = vmatprep.mubr.msk.f32.mxu0 %vm25178_vm0, %v33928_v36  ;;  %19264 = vmatprep.mubr.msk.f32.mxu1 %vm25178_vm0, %v33928_v36 }
 0x1fc   : > { %v27187_v52 = vand.u32 4294901760, %v27174_v12 }
 0x1fe   : > { %18995 = vmatmul.mubr.f32.gmra.mrb[44].mxu0 %v4027_v58  ;;  %19265 = vmatmul.mubr.f32.gmra.mrb[44].mxu1 %v4948_v11  ;;  %v4968_v58 = vand.u32 4294901760, %v4967_v50  ;;  %v4978_v11 = vand.u32 4294901760, %v4977_v44  ;;  %v22520_v50 = vpack.c.bf16 %v26982_v1, %v26978_v46  ;;  %v22592_v44 = vpack.c.bf16 %v26994_v28, %v26990_v6 }
 0x1ff   : > { %22512 = vmatpush3.bf16.xpose.msra.mxu0 %v22511_v13  ;;  %18997 = vmatprep.mubr.msk.f32.mxu0 %vm25178_vm0, %v33928_v36  ;;  %v22514_v13 = vpack.c.bf16 %v4057_v31, %v4047_v5 }
 0x200   : > { %22584 = vmatpush3.bf16.xpose.msra.mxu1 %v22583_v29  ;;  %19267 = vmatprep.mubr.msk.f32.mxu1 %vm25178_vm0, %v33928_v36  ;;  %v22586_v25 = vpack.c.bf16 %v4978_v11, %v4968_v58  ;;  %v22517_v29 = vpack.c.bf16 %v26911_v34, %v26907_v49 }
 0x201   : > { %22513 = vmatprep.subr.bf16.mxu0 %v33925_v18  ;;  %22585 = vmatprep.subr.bf16.mxu1 %v33925_v18 }
 0x202   : > { %18998 = vmatmul.mubr.f32.gmra.mrb[46].mxu0 %v4037_v15  ;;  %19268 = vmatmul.mubr.f32.gmra.mrb[46].mxu1 %v4958_v33  ;;  %v4066_v15 = vsub.f32 %v27174_v12, %v27187_v52  ;;  %v4987_v33 = vsub.f32 %v27178_v22, %v27190_v38 }
 0x203   : > { %19000 = vmatprep.mubr.msk.f32.mxu0 %vm25178_vm0, %v33928_v36  ;;  %19270 = vmatprep.mubr.msk.f32.mxu1 %vm25178_vm0, %v33928_v36 }
 0x204   : > { %v4988_v40 = vand.u32 4294901760, %v4987_v33 }
 0x206   : > { %19001 = vmatmul.mubr.f32.gmra.mrb[48].mxu0 %v4047_v5  ;;  %19271 = vmatmul.mubr.f32.gmra.mrb[48].mxu1 %v4968_v58  ;;  %v4067_v5 = vand.u32 4294901760, %v4066_v15  ;;  %v22523_v58 = vpack.c.bf16 %v27080_v35, %v27072_v4 }
 0x207   : > { %22515 = vmatpush3.bf16.xpose.msra.mxu0 %v22514_v13  ;;  %19003 = vmatprep.mubr.msk.f32.mxu0 %vm25178_vm0, %v33928_v36  ;;  %v22526_v13 = vpack.c.bf16 %v27127_v17, %v27123_v60 }
 0x208   : > { %22587 = vmatpush3.bf16.xpose.msra.mxu1 %v22586_v25  ;;  %19273 = vmatprep.mubr.msk.f32.mxu1 %vm25178_vm0, %v33928_v36  ;;  %v22598_v25 = vpack.c.bf16 %v27140_v55, %v27136_v56 }
 0x209   : > { %19025 = vmatprep.subr.mxu0 %v33928_v36  ;;  %19295 = vmatprep.subr.mxu1 %v33928_v36 }
 0x20a   : > { %19004 = vmatmul.mubr.f32.gmra.mrb[50].mxu0 %v4057_v31  ;;  %19274 = vmatmul.mubr.f32.gmra.mrb[50].mxu1 %v4978_v11  ;;  %v22589_v31 = vpack.c.bf16 %v26923_v20, %v26919_v54  ;;  %v22595_v11 = vpack.c.bf16 %v27090_v24, %v27086_v45 }
 0x20b   : > { %19006 = vmatprep.mubr.msk.f32.mxu0 %vm25178_vm0, %v33928_v36  ;;  %19276 = vmatprep.mubr.msk.f32.mxu1 %vm25178_vm0, %v33928_v36 }
 0x20e   : > { %19007 = vmatmul.mubr.f32.gmra.mrb[52].mxu0 %v4067_v5  ;;  %19277 = vmatmul.mubr.f32.gmra.mrb[52].mxu1 %v4988_v40 }
 0x20f   : > { %19026 = vmatpush3.xpose.msra.mxu0 %v4067_v5  ;;  %19027 = vmatprep.mubr.msk.f32.mxu0 %vm25178_vm0, %v33928_v36 }
 0x210   : > { %19296 = vmatpush3.xpose.msra.mxu1 %v4988_v40  ;;  %19297 = vmatprep.mubr.msk.f32.mxu1 %vm25178_vm0, %v33928_v36 }
 0x211   : > { %22516 = vmatprep.subr.bf16.mxu0 %v33925_v18  ;;  %22588 = vmatprep.subr.bf16.mxu1 %v33925_v18 }
 0x212   : > { %19028 = vmatmul.mubr.f32.vlgmr.msra.gmra.mrb[36].mxu0 %v26643_v39 }
 0x213   : > { %19298 = vmatmul.mubr.f32.vlgmr.msra.gmra.mrb[36].mxu1 %v26655_v63  ;;  %22518 = vmatpush3.bf16.xpose.msra.mxu0 %v22517_v29 }
 0x214   : > { %22590 = vmatpush3.bf16.xpose.msra.mxu1 %v22589_v31  ;;  %19030 = vmatprep.mubr.msk.f32.mxu0 %vm25178_vm0, %v33928_v36  ;;  %v181_v31 = vld [vmem:[%s25213_s12 + $0x1c0] sm:$0xff] }
 0x215   : > { %19300 = vmatprep.mubr.msk.f32.mxu1 %vm25178_vm0, %v33928_v36  ;;  %22519 = vmatprep.subr.bf16.mxu0 %v33925_v18 }
 0x216   : > { %19031 = vmatmul.mubr.f32.gmra.mrb[38].mxu0 %v26646_v61  ;;  %22591 = vmatprep.subr.bf16.mxu1 %v33925_v18 }
 0x217   : > { %19301 = vmatmul.mubr.f32.gmra.mrb[38].mxu1 %v26658_v48  ;;  %19033 = vmatprep.mubr.msk.f32.mxu0 %vm25178_vm0, %v33928_v36 }
 0x218   : > { %19303 = vmatprep.mubr.msk.f32.mxu1 %vm25178_vm0, %v33928_v36 }
 0x21a   : > { %19034 = vmatmul.mubr.f32.gmra.mrb[40].mxu0 %v26717_v8 }
 0x21b   : > { %19304 = vmatmul.mubr.f32.gmra.mrb[40].mxu1 %v26727_v10  ;;  %22521 = vmatpush3.bf16.xpose.msra.mxu0 %v22520_v50  ;;  %v182_v50 = vld [vmem:[%s25213_s12 + $0x1c8] sm:$0xff] }
 0x21c   : > { %22593 = vmatpush3.bf16.xpose.msra.mxu1 %v22592_v44  ;;  %19036 = vmatprep.mubr.msk.f32.mxu0 %vm25178_vm0, %v33928_v36 }
 0x21d   : > { %19306 = vmatprep.mubr.msk.f32.mxu1 %vm25178_vm0, %v33928_v36  ;;  %22522 = vmatprep.subr.bf16.mxu0 %v33925_v18 }
 0x21e   : > { %19037 = vmatmul.mubr.f32.gmra.mrb[42].mxu0 %v26720_v26  ;;  %22594 = vmatprep.subr.bf16.mxu1 %v33925_v18 }
 0x21f   : > { %19307 = vmatmul.mubr.f32.gmra.mrb[42].mxu1 %v26730_v3  ;;  %19039 = vmatprep.mubr.msk.f32.mxu0 %vm25178_vm0, %v33928_v36 }
 0x220   : > { %19309 = vmatprep.mubr.msk.f32.mxu1 %vm25178_vm0, %v33928_v36 }
 0x222   : > { %19040 = vmatmul.mubr.f32.gmra.mrb[44].mxu0 %v26802_v23 }
 0x223   : > { %19310 = vmatmul.mubr.f32.gmra.mrb[44].mxu1 %v26812_v41  ;;  %22524 = vmatpush3.bf16.xpose.msra.mxu0 %v22523_v58 }
 0x224   : > { %22596 = vmatpush3.bf16.xpose.msra.mxu1 %v22595_v11  ;;  %19042 = vmatprep.mubr.msk.f32.mxu0 %vm25178_vm0, %v33928_v36 }
 0x225   : > { %19312 = vmatprep.mubr.msk.f32.mxu1 %vm25178_vm0, %v33928_v36  ;;  %22525 = vmatprep.subr.bf16.mxu0 %v33925_v18 }
 0x226   : > { %19043 = vmatmul.mubr.f32.gmra.mrb[46].mxu0 %v26805_v32  ;;  %22597 = vmatprep.subr.bf16.mxu1 %v33925_v18 }
 0x227   : > { %19313 = vmatmul.mubr.f32.gmra.mrb[46].mxu1 %v26815_v14  ;;  %19045 = vmatprep.mubr.msk.f32.mxu0 %vm25178_vm0, %v33928_v36 }
 0x228   : > { %19315 = vmatprep.mubr.msk.f32.mxu1 %vm25178_vm0, %v33928_v36 }
 0x22a   : > { %19046 = vmatmul.mubr.f32.gmra.mrb[48].mxu0 %v26890_v7 }
 0x22b   : > { %19316 = vmatmul.mubr.f32.gmra.mrb[48].mxu1 %v26896_v37  ;;  %22527 = vmatpush3.bf16.xpose.msra.mxu0 %v22526_v13  ;;  %v190_v13 = vld [vmem:[%s25213_s12 + $0x208] sm:$0xff] }
 0x22c   : > { %22599 = vmatpush3.bf16.xpose.msra.mxu1 %v22598_v25  ;;  %19048 = vmatprep.mubr.msk.f32.mxu0 %vm25178_vm0, %v33928_v36  ;;  %v191_v25 = vld [vmem:[%s25213_s12 + $0x210] sm:$0xff] }
 0x22d   : > { %19318 = vmatprep.mubr.msk.f32.mxu1 %vm25178_vm0, %v33928_v36  ;;  %19070 = vmatprep.subr.mxu0 %v33928_v36 }
 0x22e   : > { %19049 = vmatmul.mubr.f32.gmra.mrb[50].mxu0 %v26893_v47  ;;  %19340 = vmatprep.subr.mxu1 %v33928_v36 }
 0x22f   : > { %19319 = vmatmul.mubr.f32.gmra.mrb[50].mxu1 %v26903_v16  ;;  %19051 = vmatprep.mubr.msk.f32.mxu0 %vm25178_vm0, %v33928_v36 }
 0x230   : > { %19321 = vmatprep.mubr.msk.f32.mxu1 %vm25178_vm0, %v33928_v36 }
 0x232   : > { %19052 = vmatmul.mubr.f32.gmra.mrb[52].mxu0 %v27037_v27 }
 0x233   : > { %19322 = vmatmul.mubr.f32.gmra.mrb[52].mxu1 %v27052_v62  ;;  %19071 = vmatpush3.xpose.msra.mxu0 %v27174_v12 }
 0x234   : > { %19341 = vmatpush3.xpose.msra.mxu1 %v27178_v22  ;;  %19072 = vmatprep.mubr.msk.f32.mxu0 %vm25178_vm0, %v33928_v36 }
 0x235   : > { %19342 = vmatprep.mubr.msk.f32.mxu1 %vm25178_vm0, %v33928_v36  ;;  %22528 = vmatprep.subr.bf16.mxu0 %v33925_v18 }
 0x236   : > { %19073 = vmatmul.mubr.f32.vlgmr.msra.gmra.mrb[36].mxu0 %v26907_v49  ;;  %22600 = vmatprep.subr.bf16.mxu1 %v33925_v18  ;;  %v34018_v49 = vld [vmem:[#allocation21_spill] sm:$0xff] }
 0x237   : > { %19343 = vmatmul.mubr.f32.vlgmr.msra.gmra.mrb[36].mxu1 %v26919_v54  ;;  %22530 = vmatpush3.bf16.xpose.msra.mxu0 %v26672_v59  ;;  %v34017_v54 = vld [vmem:[#allocation20_spill] sm:$0xff] }
 0x238   : > { %22602 = vmatpush3.bf16.xpose.msra.mxu1 %v26689_v42  ;;  %19075 = vmatprep.mubr.msk.f32.mxu0 %vm25178_vm0, %v33928_v36 }
 0x239   : > { %19345 = vmatprep.mubr.msk.f32.mxu1 %vm25178_vm0, %v33928_v36  ;;  %22531 = vmatprep.subr.bf16.mxu0 %v33925_v18 }
 0x23a   : > { %19076 = vmatmul.mubr.f32.gmra.mrb[38].mxu0 %v26911_v34  ;;  %22603 = vmatprep.subr.bf16.mxu1 %v33925_v18  ;;  %v34019_v34 = vld [vmem:[#allocation22_spill] sm:$0xff] }
 0x23b   : > { %19346 = vmatmul.mubr.f32.gmra.mrb[38].mxu1 %v26923_v20  ;;  %19078 = vmatprep.mubr.msk.f32.mxu0 %vm25178_vm0, %v33928_v36  ;;  %v34016_v20 = vld [vmem:[#allocation14_spill] sm:$0xff] }
 0x23c   : > { %19348 = vmatprep.mubr.msk.f32.mxu1 %vm25178_vm0, %v33928_v36 }
 0x23e   : > { %19079 = vmatmul.mubr.f32.gmra.mrb[40].mxu0 %v26978_v46  ;;  %v34020_v46 = vld [vmem:[#allocation23_spill] sm:$0xff] }
 0x23f   : > { %19349 = vmatmul.mubr.f32.gmra.mrb[40].mxu1 %v26990_v6  ;;  %22533 = vmatpush3.bf16.xpose.msra.mxu0 %v26758_v2  ;;  %v34021_v6 = vld [vmem:[#allocation25_spill] sm:$0xff] }
 0x240   : > { %22605 = vmatpush3.bf16.xpose.msra.mxu1 %v26766_v43  ;;  %19081 = vmatprep.mubr.msk.f32.mxu0 %vm25178_vm0, %v33928_v36 }
 0x241   : > { %19351 = vmatprep.mubr.msk.f32.mxu1 %vm25178_vm0, %v33928_v36  ;;  %22534 = vmatprep.subr.bf16.mxu0 %v33925_v18 }
 0x242   : > { %19082 = vmatmul.mubr.f32.gmra.mrb[42].mxu0 %v26982_v1  ;;  %22606 = vmatprep.subr.bf16.mxu1 %v33925_v18  ;;  %v22541_v1 = vpack.c.bf16 %v34020_v46, %v34019_v34 }
 0x243   : > { %19352 = vmatmul.mubr.f32.gmra.mrb[42].mxu1 %v26994_v28  ;;  %19084 = vmatprep.mubr.msk.f32.mxu0 %vm25178_vm0, %v33928_v36  ;;  %v34022_v28 = vld [vmem:[#allocation26_spill] sm:$0xff] }
 0x244   : > { %19354 = vmatprep.mubr.msk.f32.mxu1 %vm25178_vm0, %v33928_v36 }
 0x246   : > { %19085 = vmatmul.mubr.f32.gmra.mrb[44].mxu0 %v27072_v4  ;;  %v22613_v4 = vpack.c.bf16 %v34022_v28, %v34021_v6 }
 0x247   : > { %19355 = vmatmul.mubr.f32.gmra.mrb[44].mxu1 %v27086_v45  ;;  %22536 = vmatpush3.bf16.xpose.msra.mxu0 %v26846_v30  ;;  %v22616_v45 = vpack.c.bf16 %v27043_v51, %v27040_v57 }
 0x248   : > { %22608 = vmatpush3.bf16.xpose.msra.mxu1 %v34016_v20  ;;  %19087 = vmatprep.mubr.msk.f32.mxu0 %vm25178_vm0, %v33928_v36 }
 0x249   : > { %19357 = vmatprep.mubr.msk.f32.mxu1 %vm25178_vm0, %v33928_v36  ;;  %22537 = vmatprep.subr.bf16.mxu0 %v33925_v18 }
 0x24a   : > { %19088 = vmatmul.mubr.f32.gmra.mrb[46].mxu0 %v27080_v35  ;;  %22609 = vmatprep.subr.bf16.mxu1 %v33925_v18  ;;  %v22544_v35 = vpack.c.bf16 %v27030_v19, %v27027_v0 }
 0x24b   : > { %19358 = vmatmul.mubr.f32.gmra.mrb[46].mxu1 %v27090_v24  ;;  %19090 = vmatprep.mubr.msk.f32.mxu0 %vm25178_vm0, %v33928_v36  ;;  %v34024_v24 = vld [vmem:[#allocation32_spill] sm:$0xff] }
 0x24c   : > { %19360 = vmatprep.mubr.msk.f32.mxu1 %vm25178_vm0, %v33928_v36 }
 0x24e   : > { %19091 = vmatmul.mubr.f32.gmra.mrb[48].mxu0 %v27123_v60  ;;  %v34025_v60 = vld [vmem:[#allocation33_spill] sm:$0xff] }
 0x24f   : > { %19361 = vmatmul.mubr.f32.gmra.mrb[48].mxu1 %v27136_v56  ;;  %22539 = vmatpush3.bf16.xpose.msra.mxu0 %v34017_v54  ;;  %v22622_v56 = vpack.c.bf16 %v27156_v21, %v27153_v9 }
 0x250   : > { %22611 = vmatpush3.bf16.xpose.msra.mxu1 %v34018_v49  ;;  %19093 = vmatprep.mubr.msk.f32.mxu0 %vm25178_vm0, %v33928_v36 }
 0x251   : > { %19363 = vmatprep.mubr.msk.f32.mxu1 %vm25178_vm0, %v33928_v36  ;;  %19115 = vmatprep.subr.mxu0 %v33928_v36 }
 0x252   : > { %19094 = vmatmul.mubr.f32.gmra.mrb[50].mxu0 %v27127_v17  ;;  %19385 = vmatprep.subr.mxu1 %v33928_v36  ;;  %v22619_v17 = vpack.c.bf16 %v34025_v60, %v34024_v24 }
 0x253   : > { %19364 = vmatmul.mubr.f32.gmra.mrb[50].mxu1 %v27140_v55  ;;  %19096 = vmatprep.mubr.msk.f32.mxu0 %vm25178_vm0, %v33928_v36 }
 0x254   : > { %19366 = vmatprep.mubr.msk.f32.mxu1 %vm25178_vm0, %v33928_v36 }
 0x256   : > { %19097 = vmatmul.mubr.f32.gmra.mrb[52].mxu0 %v27174_v12 }
 0x257   : > { %19367 = vmatmul.mubr.f32.gmra.mrb[52].mxu1 %v27178_v22  ;;  %19116 = vmatpush3.xpose.msra.mxu0 %v27037_v27 }
 0x258   : > { %19386 = vmatpush3.xpose.msra.mxu1 %v27052_v62  ;;  %19117 = vmatprep.mubr.msk.f32.mxu0 %vm25178_vm0, %v33928_v36 }
 0x259   : > { %19387 = vmatprep.mubr.msk.f32.mxu1 %vm25178_vm0, %v33928_v36  ;;  %22540 = vmatprep.subr.bf16.mxu0 %v33925_v18 }
 0x25a   : > { %19118 = vmatmul.mubr.f32.vlgmr.msra.gmra.mrb[36].mxu0 %v34019_v34  ;;  %22612 = vmatprep.subr.bf16.mxu1 %v33925_v18 }
 0x25b   : > { %19388 = vmatmul.mubr.f32.vlgmr.msra.gmra.mrb[36].mxu1 %v34021_v6  ;;  %22542 = vmatpush3.bf16.xpose.msra.mxu0 %v22541_v1  ;;  %v27577_v1 = vsel %vm197_vm1, %v181_v31, 0  ;;  %v27580_v6 = vsel %vm197_vm1, %v182_v50, 0 }
 0x25c   : > { %22614 = vmatpush3.bf16.xpose.msra.mxu1 %v22613_v4  ;;  %19120 = vmatprep.mubr.msk.f32.mxu0 %vm25178_vm0, %v33928_v36  ;;  %v27586_v4 = vsel %vm197_vm1, %v191_v25, 0 }
 0x25d   : > { %19390 = vmatprep.mubr.msk.f32.mxu1 %vm25178_vm0, %v33928_v36  ;;  %22543 = vmatprep.subr.bf16.mxu0 %v33925_v18 }
 0x25e   : > { %19121 = vmatmul.mubr.f32.gmra.mrb[38].mxu0 %v34020_v46  ;;  %22615 = vmatprep.subr.bf16.mxu1 %v33925_v18 }
 0x25f   : > { %19391 = vmatmul.mubr.f32.gmra.mrb[38].mxu1 %v34022_v28  ;;  %19123 = vmatprep.mubr.msk.f32.mxu0 %vm25178_vm0, %v33928_v36  ;;  %v27583_v28 = vsel %vm197_vm1, %v190_v13, 0 }
 0x260   : > { %19393 = vmatprep.mubr.msk.f32.mxu1 %vm25178_vm0, %v33928_v36 }
 0x262   : > { %19124 = vmatmul.mubr.f32.gmra.mrb[40].mxu0 %v27027_v0 }
 0x263   : > { %19394 = vmatmul.mubr.f32.gmra.mrb[40].mxu1 %v27040_v57  ;;  %22545 = vmatpush3.bf16.xpose.msra.mxu0 %v22544_v35  ;;  %v34023_v57 = vld [vmem:[#allocation31_spill] sm:$0xff] }
 0x264   : > { %22617 = vmatpush3.bf16.xpose.msra.mxu1 %v22616_v45  ;;  %19126 = vmatprep.mubr.msk.f32.mxu0 %vm25178_vm0, %v33928_v36  ;;  %v22547_v0 = vpack.c.bf16 %v34023_v57, %v27096_v53 }
 0x265   : > { %19396 = vmatprep.mubr.msk.f32.mxu1 %vm25178_vm0, %v33928_v36  ;;  %22546 = vmatprep.subr.bf16.mxu0 %v33925_v18 }
 0x266   : > { %19127 = vmatmul.mubr.f32.gmra.mrb[42].mxu0 %v27030_v19  ;;  %22618 = vmatprep.subr.bf16.mxu1 %v33925_v18  ;;  %v34027_v19 = vld [vmem:[#allocation35_spill] sm:$0xff] }
 0x267   : > { %19397 = vmatmul.mubr.f32.gmra.mrb[42].mxu1 %v27043_v51  ;;  %19129 = vmatprep.mubr.msk.f32.mxu0 %vm25178_vm0, %v33928_v36 }
 0x268   : > { %19399 = vmatprep.mubr.msk.f32.mxu1 %vm25178_vm0, %v33928_v36 }
 0x26a   : > { %19130 = vmatmul.mubr.f32.gmra.mrb[44].mxu0 %v27096_v53  ;;  %v34026_v53 = vld [vmem:[#allocation34_spill] sm:$0xff] }
 0x26b   : > { %19400 = vmatmul.mubr.f32.gmra.mrb[44].mxu1 %v34024_v24  ;;  %22548 = vmatpush3.bf16.xpose.msra.mxu0 %v22547_v0  ;;  %v22550_v51 = vpack.c.bf16 %v34027_v19, %v34026_v53 }
 0x26c   : > { %22620 = vmatpush3.bf16.xpose.msra.mxu1 %v22619_v17  ;;  %19132 = vmatprep.mubr.msk.f32.mxu0 %vm25178_vm0, %v33928_v36  ;;  %v27608_v17 = vand.u32 4294901760, %v27577_v1 }
 0x26d   : > { %19402 = vmatprep.mubr.msk.f32.mxu1 %vm25178_vm0, %v33928_v36  ;;  %22549 = vmatprep.subr.bf16.mxu0 %v33925_v18 }
 0x26e   : > { %19133 = vmatmul.mubr.f32.gmra.mrb[46].mxu0 %v34023_v57  ;;  %22621 = vmatprep.subr.bf16.mxu1 %v33925_v18 }
 0x26f   : > { %19403 = vmatmul.mubr.f32.gmra.mrb[46].mxu1 %v34025_v60  ;;  %19135 = vmatprep.mubr.msk.f32.mxu0 %vm25178_vm0, %v33928_v36 }
 0x270   : > { %19405 = vmatprep.mubr.msk.f32.mxu1 %vm25178_vm0, %v33928_v36 }
 0x272   : > { %19136 = vmatmul.mubr.f32.gmra.mrb[48].mxu0 %v34026_v53  ;;  %v27617_v53 = vand.u32 4294901760, %v27586_v4 }
 0x273   : > { %19406 = vmatmul.mubr.f32.gmra.mrb[48].mxu1 %v27153_v9  ;;  %22551 = vmatpush3.bf16.xpose.msra.mxu0 %v22550_v51 }
 0x274   : > { %22623 = vmatpush3.bf16.xpose.msra.mxu1 %v22622_v56  ;;  %19138 = vmatprep.mubr.msk.f32.mxu0 %vm25178_vm0, %v33928_v36 }
 0x275   : > { %19408 = vmatprep.mubr.msk.f32.mxu1 %vm25178_vm0, %v33928_v36  ;;  %19160 = vmatprep.subr.mxu0 %v33928_v36 }
 0x276   : > { %19139 = vmatmul.mubr.f32.gmra.mrb[50].mxu0 %v34027_v19  ;;  %19430 = vmatprep.subr.mxu1 %v33928_v36  ;;  %v183_v19 = vld [vmem:[%s25213_s12 + $0x1d0] sm:$0xff] }
 0x277   : > { %19409 = vmatmul.mubr.f32.gmra.mrb[50].mxu1 %v27156_v21  ;;  %19141 = vmatprep.mubr.msk.f32.mxu0 %vm25178_vm0, %v33928_v36 }
 0x278   : > { %19411 = vmatprep.mubr.msk.f32.mxu1 %vm25178_vm0, %v33928_v36 }
 0x27a   : > { %19142 = vmatmul.mubr.f32.gmra.mrb[52].mxu0 %v27187_v52 }
 0x27b   : > { %19412 = vmatmul.mubr.f32.gmra.mrb[52].mxu1 %v27190_v38  ;;  %19161 = vmatpush3.xpose.msra.mxu0 %v27187_v52 }
 0x27c   : > { %19431 = vmatpush3.xpose.msra.mxu1 %v27190_v38  ;;  %19162 = vmatprep.mubr.msk.f32.mxu0 %vm25178_vm0, %v33928_v36 }
 0x27d   : > { %19432 = vmatprep.mubr.msk.f32.mxu1 %vm25178_vm0, %v33928_v36  ;;  %22552 = vmatprep.subr.bf16.mxu0 %v33925_v18 }
 0x27e   : > { %19163 = vmatmul.mubr.f32.vlgmr.msra.gmra.mrb[36].mxu0 %v26643_v39  ;;  %22624 = vmatprep.subr.bf16.mxu1 %v33925_v18 }
 0x27f   : > { %19433 = vmatmul.mubr.f32.vlgmr.msra.gmra.mrb[36].mxu1 %v26655_v63  ;;  %22554 = vmatpush3.bf16.xpose.msra.mxu0 %v26672_v59  ;;  %v179_v59 = vld [vmem:[%s25213_s12 + $0x1b0] sm:$0xff] }
 0x280   : > { %22626 = vmatpush3.bf16.xpose.msra.mxu1 %v26689_v42  ;;  %19165 = vmatprep.mubr.msk.f32.mxu0 %vm25178_vm0, %v33928_v36  ;;  %v180_v42 = vld [vmem:[%s25213_s12 + $0x1b8] sm:$0xff] }
 0x281   : > { %19435 = vmatprep.mubr.msk.f32.mxu1 %vm25178_vm0, %v33928_v36  ;;  %22555 = vmatprep.subr.bf16.mxu0 %v33925_v18  ;;  %v27519_v55 = vsel %vm197_vm1, %v180_v42, 0  ;;  %v192_v42 = vld [vmem:[%s25213_s12 + $0x218] sm:$0xff] }
 0x282   : > { %19166 = vmatmul.mubr.f32.gmra.mrb[38].mxu0 %v26646_v61  ;;  %22627 = vmatprep.subr.bf16.mxu1 %v33925_v18  ;;  %v27538_v52 = vand.u32 4294901760, %v27519_v55 }
 0x283   : > { %19436 = vmatmul.mubr.f32.gmra.mrb[38].mxu1 %v26658_v48  ;;  %19168 = vmatprep.mubr.msk.f32.mxu0 %vm25178_vm0, %v33928_v36 }
 0x284   : > { %19438 = vmatprep.mubr.msk.f32.mxu1 %vm25178_vm0, %v33928_v36 }
 0x286   : > { %19169 = vmatmul.mubr.f32.gmra.mrb[40].mxu0 %v26717_v8 }
 0x287   : > { %19439 = vmatmul.mubr.f32.gmra.mrb[40].mxu1 %v26727_v10  ;;  %22557 = vmatpush3.bf16.xpose.msra.mxu0 %v26758_v2  ;;  %v188_v2 = vld [vmem:[%s25213_s12 + $0x1f8] sm:$0xff] }
 0x288   : > { %22629 = vmatpush3.bf16.xpose.msra.mxu1 %v26766_v43  ;;  %19171 = vmatprep.mubr.msk.f32.mxu0 %vm25178_vm0, %v33928_v36  ;;  %v189_v43 = vld [vmem:[%s25213_s12 + $0x200] sm:$0xff]  ;;  %v27522_v9 = vsel %vm197_vm1, %v188_v2, 0 }
 0x289   : > { %19441 = vmatprep.mubr.msk.f32.mxu1 %vm25178_vm0, %v33928_v36  ;;  %22558 = vmatprep.subr.bf16.mxu0 %v33925_v18  ;;  %v27525_v21 = vsel %vm197_vm1, %v189_v43, 0  ;;  %v27541_v38 = vand.u32 4294901760, %v27522_v9  ;;  %v193_v2 = vld [vmem:[%s25213_s12 + $0x220] sm:$0xff] }
 0x28a   : > { %19172 = vmatmul.mubr.f32.gmra.mrb[42].mxu0 %v26720_v26  ;;  %22630 = vmatprep.subr.bf16.mxu1 %v33925_v18  ;;  %v27544_v15 = vand.u32 4294901760, %v27525_v21 }
 0x28b   : > { %19442 = vmatmul.mubr.f32.gmra.mrb[42].mxu1 %v26730_v3  ;;  %19174 = vmatprep.mubr.msk.f32.mxu0 %vm25178_vm0, %v33928_v36 }
 0x28c   : > { %19444 = vmatprep.mubr.msk.f32.mxu1 %vm25178_vm0, %v33928_v36 }
 0x28e   : > { %19175 = vmatmul.mubr.f32.gmra.mrb[44].mxu0 %v26802_v23 }
 0x28f   : > { %19445 = vmatmul.mubr.f32.gmra.mrb[44].mxu1 %v26812_v41  ;;  %22560 = vmatpush3.bf16.xpose.msra.mxu0 %v26846_v30  ;;  %v27516_v30 = vsel %vm197_vm1, %v179_v59, 0  ;;  %v184_v59 = vld [vmem:[%s25213_s12 + $0x1d8] sm:$0xff] }
 0x290   : > { %22632 = vmatpush3.bf16.xpose.msra.mxu1 %v34016_v20  ;;  %19177 = vmatprep.mubr.msk.f32.mxu0 %vm25178_vm0, %v33928_v36  ;;  %v27535_v22 = vand.u32 4294901760, %v27516_v30 }
 0x291   : > { %19447 = vmatprep.mubr.msk.f32.mxu1 %vm25178_vm0, %v33928_v36  ;;  %22561 = vmatprep.subr.bf16.mxu0 %v33925_v18 }
 0x292   : > { %19178 = vmatmul.mubr.f32.gmra.mrb[46].mxu0 %v26805_v32  ;;  %22633 = vmatprep.subr.bf16.mxu1 %v33925_v18 }
 0x293   : > { %19448 = vmatmul.mubr.f32.gmra.mrb[46].mxu1 %v26815_v14  ;;  %19180 = vmatprep.mubr.msk.f32.mxu0 %vm25178_vm0, %v33928_v36 }
 0x294   : > { %19450 = vmatprep.mubr.msk.f32.mxu1 %vm25178_vm0, %v33928_v36 }
 0x296   : > { %19181 = vmatmul.mubr.f32.gmra.mrb[48].mxu0 %v26890_v7 }
 0x297   : > { %19451 = vmatmul.mubr.f32.gmra.mrb[48].mxu1 %v26896_v37  ;;  %22563 = vmatpush3.bf16.xpose.msra.mxu0 %v34017_v54  ;;  %v27568_v54 = vpack.c.bf16 %v27538_v52, %v27535_v22 }
 0x298   : > { %22635 = vmatpush3.bf16.xpose.msra.mxu1 %v34018_v49  ;;  %19183 = vmatprep.mubr.msk.f32.mxu0 %vm25178_vm0, %v33928_v36  ;;  %v27572_v49 = vpack.c.bf16 %v27544_v15, %v27541_v38 }
 0x299   : > { %19453 = vmatprep.mubr.msk.f32.mxu1 %vm25178_vm0, %v33928_v36  ;;  %19205 = vmatprep.subr.mxu0 %v33928_v36 }
 0x29a   : > { %19184 = vmatmul.mubr.f32.gmra.mrb[50].mxu0 %v26893_v47  ;;  %19475 = vmatprep.subr.mxu1 %v33928_v36 }
 0x29b   : > { %19454 = vmatmul.mubr.f32.gmra.mrb[50].mxu1 %v26903_v16  ;;  %19186 = vmatprep.mubr.msk.f32.mxu0 %vm25178_vm0, %v33928_v36 }
 0x29c   : > { %v2909_v12 = vpop.f32.mrb[18].mxu0  ;;  %19456 = vmatprep.mubr.msk.f32.mxu1 %vm25178_vm0, %v33928_v36 }
 0x29d   : > { %v27548_v5 = vsel %vm16148_vm5, %v2909_v12, -1e+30  ;;  %v3830_v40 = vpop.f32.mrb[18].mxu1  ;;  %v18669_v29 = vpop.f32.mrb[19].mxu0 }
 0x29e   : > { %34029 = vst [vmem:[#allocation14_spill] sm:$0xff] %v27548_v5  ;;  %v27554_v44 = vsel %vm16148_vm5, %v3830_v40, -1e+30  ;;  %v18939_v58 = vpop.f32.mrb[19].mxu1  ;;  %19187 = vmatmul.mubr.f32.gmra.mrb[52].mxu0 %v27037_v27  ;;  %v7813_v11 = vsel %vm7757_vm6, %v27548_v5, -inf }
 0x29f   : > { %34030 = vst [vmem:[#allocation20_spill] sm:$0xff] %v27554_v44  ;;  %19457 = vmatmul.mubr.f32.gmra.mrb[52].mxu1 %v27052_v62  ;;  %19206 = vmatpush3.xpose.msra.mxu0 %v27037_v27  ;;  %v7840_v20 = vsel %vm7757_vm6, %v27554_v44, -inf  ;;  %v27834_v44 = vsub.f32 %v27577_v1, %v27608_v17 }
 0x2a0   : > { %19476 = vmatpush3.xpose.msra.mxu1 %v27052_v62  ;;  %7841 = vmax.xlane.f32.xlu1 %v7840_v20  ;;  %v27655_v20 = vsel %vm197_vm1, %v183_v19, 0 }
 0x2a1   : > { %7814 = vmax.xlane.f32.xlu0 %v7813_v11  ;;  %v2915_v34 = vpop.f32.mrb[20].mxu0  ;;  %v3836_v46 = vpop.f32.mrb[20].mxu1  ;;  %19207 = vmatprep.mubr.msk.f32.mxu0 %vm25178_vm0, %v33928_v36 }
 0x2a2   : > { %v27590_v35 = vsel %vm16148_vm5, %v2915_v34, -1e+30  ;;  %v27594_v45 = vsel %vm16148_vm5, %v3836_v46, -1e+30  ;;  %19477 = vmatprep.mubr.msk.f32.mxu1 %vm25178_vm0, %v33928_v36  ;;  %v18672_v57 = vpop.f32.mrb[21].mxu0  ;;  %v18942_v0 = vpop.f32.mrb[21].mxu1  ;;  %19208 = vmatmul.mubr.f32.vlgmr.msra.gmra.mrb[36].mxu0 %v26643_v39 }
 0x2a3   : > { %34031 = vst [vmem:[#allocation21_spill] sm:$0xff] %v27590_v35  ;;  %34032 = vst [vmem:[#allocation22_spill] sm:$0xff] %v27594_v45  ;;  %19478 = vmatmul.mubr.f32.vlgmr.msra.gmra.mrb[36].mxu1 %v26655_v63  ;;  %22636 = vmatprep.subr.bf16.mxu0 %v33925_v18  ;;  %v7843_v24 = vsel %vm7757_vm6, %v27594_v45, -inf  ;;  %v7816_v60 = vsel %vm7757_vm6, %v27590_v35, -inf  ;;  %v27611_v39 = vand.u32 4294901760, %v27580_v6  ;;  %v27614_v63 = vand.u32 4294901760, %v27583_v28 }
 0x2a4   : > { %22708 = vmatprep.subr.bf16.mxu1 %v33925_v18  ;;  %22638 = vmatpush3.bf16.xpose.msra.mxu0 %v27568_v54  ;;  %v27661_v34 = vsel %vm197_vm1, %v192_v42, 0  ;;  %v27664_v46 = vsel %vm197_vm1, %v193_v2, 0  ;;  %v185_v42 = vld [vmem:[%s25213_s12 + $0x1e0] sm:$0xff] }
 0x2a5   : > { %22710 = vmatpush3.bf16.xpose.msra.mxu1 %v27572_v49  ;;  %7844 = vmax.xlane.f32.xlu1 %v7843_v24  ;;  %v2921_v51 = vpop.f32.mrb[22].mxu0  ;;  %v3842_v56 = vpop.f32.mrb[22].mxu1  ;;  %v27646_v11 = vpack.c.bf16 %v27611_v39, %v27608_v17  ;;  %v27650_v13 = vpack.c.bf16 %v27617_v53, %v27614_v63  ;;  %v27838_v5 = vsub.f32 %v27580_v6, %v27611_v39 }
 0x2a6   : > { %7817 = vmax.xlane.f32.xlu0 %v7816_v60  ;;  %v27626_v12 = vsel %vm26712_vm9, %v2921_v51, -1e+30  ;;  %v27630_v40 = vsel %vm26712_vm9, %v3842_v56, -1e+30  ;;  %19210 = vmatprep.mubr.msk.f32.mxu0 %vm25178_vm0, %v33928_v36  ;;  %v18675_v29 = vpop.f32.mrb[23].mxu0  ;;  %v18945_v31 = vpop.f32.mrb[23].mxu1 }
 0x2a7   : > { %34034 = vst [vmem:[#allocation23_spill] sm:$0xff] %v27626_v12  ;;  %34035 = vst [vmem:[#allocation25_spill] sm:$0xff] %v27630_v40  ;;  %19480 = vmatprep.mubr.msk.f32.mxu1 %vm25178_vm0, %v33928_v36  ;;  %19211 = vmatmul.mubr.f32.gmra.mrb[38].mxu0 %v26646_v61  ;;  %v7846_v50 = vsel %vm7757_vm6, %v27630_v40, -inf  ;;  %v7819_v58 = vsel %vm7757_vm6, %v27626_v12, -inf  ;;  %v27684_v56 = vand.u32 4294901760, %v27655_v20  ;;  %v27695_v31 = vand.u32 4294901760, %v27664_v46 }
 0x2a8   : > { %19481 = vmatmul.mubr.f32.gmra.mrb[38].mxu1 %v26658_v48  ;;  %19213 = vmatprep.mubr.msk.f32.mxu0 %vm25178_vm0, %v33928_v36  ;;  %v27658_v48 = vsel %vm197_vm1, %v184_v59, 0  ;;  %v27786_v40 = vsub.f32 %v27525_v21, %v27544_v15 }
 0x2a9   : > { %7847 = vmax.xlane.f32.xlu1 %v7846_v50  ;;  %v2927_v61 = vpop.f32.mrb[24].mxu0  ;;  %v3848_v25 = vpop.f32.mrb[24].mxu1  ;;  %19483 = vmatprep.mubr.msk.f32.mxu1 %vm25178_vm0, %v33928_v36  ;;  %v27687_v59 = vand.u32 4294901760, %v27658_v48  ;;  %v194_v50 = vld [vmem:[%s25213_s12 + $0x228] sm:$0xff] }
 0x2aa   : > { %7820 = vmax.xlane.f32.xlu0 %v7819_v58  ;;  %v27668_v57 = vsel %vm16150_vm10, %v2927_v61, -1e+30  ;;  %v27672_v0 = vsel %vm16150_vm10, %v3848_v25, -1e+30  ;;  %v18678_v24 = vpop.f32.mrb[25].mxu0  ;;  %v18948_v60 = vpop.f32.mrb[25].mxu1  ;;  %22639 = vmatprep.subr.bf16.mxu0 %v33925_v18 }
 0x2ab   : > { %34036 = vst [vmem:[#allocation26_spill] sm:$0xff] %v27668_v57  ;;  %34037 = vst [vmem:[#allocation31_spill] sm:$0xff] %v27672_v0  ;;  %19214 = vmatmul.mubr.f32.gmra.mrb[40].mxu0 %v26717_v8  ;;  %22711 = vmatprep.subr.bf16.mxu1 %v33925_v18  ;;  %v7849_v19 = vsel %vm7757_vm6, %v27672_v0, -inf  ;;  %v7822_v51 = vsel %vm7757_vm6, %v27668_v57, -inf  ;;  %v27690_v8 = vand.u32 4294901760, %v27661_v34  ;;  %v195_v58 = vld [vmem:[%s25213_s12 + $0x230] sm:$0xff] }
 0x2ac   : > { %19484 = vmatmul.mubr.f32.gmra.mrb[40].mxu1 %v26727_v10  ;;  %22641 = vmatpush3.bf16.xpose.msra.mxu0 %v27646_v11  ;;  %v186_v10 = vld [vmem:[%s25213_s12 + $0x1e8] sm:$0xff]  ;;  %v27740_v57 = vsel %vm197_vm1, %v195_v58, 0  ;;  %v27830_v45 = vand.u32 4294901760, %v27786_v40 }
 0x2ad   : > { %22713 = vmatpush3.bf16.xpose.msra.mxu1 %v27650_v13  ;;  %7850 = vmax.xlane.f32.xlu1 %v7849_v19  ;;  %v2933_v2 = vpop.f32.mrb[26].mxu0  ;;  %v3854_v29 = vpop.f32.mrb[26].mxu1 }
 0x2ae   : > { %7823 = vmax.xlane.f32.xlu0 %v7822_v51  ;;  %v27702_v25 = vsel %vm26797_vm12, %v2933_v2, -1e+30  ;;  %v27706_v24 = vsel %vm26797_vm12, %v3854_v29, -1e+30  ;;  %19216 = vmatprep.mubr.msk.f32.mxu0 %vm25178_vm0, %v33928_v36  ;;  %v18681_v60 = vpop.f32.mrb[27].mxu0  ;;  %v18951_v19 = vpop.f32.mrb[27].mxu1  ;;  %v27722_v29 = vpack.c.bf16 %v27687_v59, %v27684_v56 }
 0x2af   : > { %34039 = vst [vmem:[#allocation32_spill] sm:$0xff] %v27702_v25  ;;  %34040 = vst [vmem:[#allocation33_spill] sm:$0xff] %v27706_v24  ;;  %19486 = vmatprep.mubr.msk.f32.mxu1 %vm25178_vm0, %v33928_v36  ;;  %19217 = vmatmul.mubr.f32.gmra.mrb[42].mxu0 %v26720_v26  ;;  %v7852_v51 = vsel %vm7757_vm6, %v27706_v24, -inf  ;;  %v7825_v2 = vsel %vm7757_vm6, %v27702_v25, -inf  ;;  %v27725_v60 = vsel %vm197_vm1, %v185_v42, 0  ;;  %v27728_v26 = vsel %vm197_vm1, %v186_v10, 0 }
 0x2b0   : > { %19487 = vmatmul.mubr.f32.gmra.mrb[42].mxu1 %v26730_v3  ;;  %19219 = vmatprep.mubr.msk.f32.mxu0 %vm25178_vm0, %v33928_v36  ;;  %v27734_v3 = vpack.c.bf16 %v27695_v31, %v27690_v8  ;;  %v27737_v25 = vsel %vm197_vm1, %v194_v50, 0  ;;  %34049 = vst [vmem:[#allocation41_spill] sm:$0xff] %v27830_v45 }
 0x2b1   : > { %7853 = vmax.xlane.f32.xlu1 %v7852_v51  ;;  %v2939_v19 = vpop.f32.mrb[28].mxu0  ;;  %v3860_v24 = vpop.f32.mrb[28].mxu1  ;;  %19489 = vmatprep.mubr.msk.f32.mxu1 %vm25178_vm0, %v33928_v36 }
 0x2b2   : > { %7826 = vmax.xlane.f32.xlu0 %v7825_v2  ;;  %v27744_v42 = vsel %vm16151_vm13, %v2939_v19, -1e+30  ;;  %v27748_v10 = vsel %vm16151_vm13, %v3860_v24, -1e+30  ;;  %v18684_v51 = vpop.f32.mrb[29].mxu0  ;;  %v18954_v0 = vpop.f32.mrb[29].mxu1  ;;  %22642 = vmatprep.subr.bf16.mxu0 %v33925_v18  ;;  %v27773_v19 = vsub.f32 %v27516_v30, %v27535_v22 }
 0x2b3   : > { %34041 = vst [vmem:[#allocation34_spill] sm:$0xff] %v27744_v42  ;;  %34042 = vst [vmem:[#allocation35_spill] sm:$0xff] %v27748_v10  ;;  %19220 = vmatmul.mubr.f32.gmra.mrb[44].mxu0 %v26802_v23  ;;  %22714 = vmatprep.subr.bf16.mxu1 %v33925_v18  ;;  %v7855_v50 = vsel %vm7757_vm6, %v27748_v10, -inf  ;;  %v7828_v58 = vsel %vm7757_vm6, %v27744_v42, -inf  ;;  %v27758_v2 = vand.u32 4294901760, %v27725_v60  ;;  %v27761_v24 = vand.u32 4294901760, %v27728_v26 }
 0x2b4   : > { %19490 = vmatmul.mubr.f32.gmra.mrb[44].mxu1 %v26812_v41  ;;  %22644 = vmatpush3.bf16.xpose.msra.mxu0 %v27722_v29  ;;  %v27766_v23 = vand.u32 4294901760, %v27737_v25  ;;  %v27769_v0 = vand.u32 4294901760, %v27740_v57  ;;  %v27777_v51 = vsub.f32 %v27519_v55, %v27538_v52  ;;  %v27782_v10 = vsub.f32 %v27522_v9, %v27541_v38 }
 0x2b5   : > { %22716 = vmatpush3.bf16.xpose.msra.mxu1 %v27734_v3  ;;  %7856 = vmax.xlane.f32.xlu1 %v7855_v50  ;;  %v2945_v41 = vpop.f32.mrb[30].mxu0  ;;  %v3866_v42 = vpop.f32.mrb[30].mxu1 }
 0x2b6   : > { %7829 = vmax.xlane.f32.xlu0 %v7828_v58  ;;  %v27790_v12 = vsel %vm26881_vm14, %v2945_v41, -1e+30  ;;  %v27794_v55 = vsel %vm26881_vm14, %v3866_v42, -1e+30  ;;  %19222 = vmatprep.mubr.msk.f32.mxu0 %vm25178_vm0, %v33928_v36  ;;  %v18687_v50 = vpop.f32.mrb[31].mxu0  ;;  %v18957_v9 = vpop.f32.mrb[31].mxu1  ;;  %v27810_v42 = vpack.c.bf16 %v27761_v24, %v27758_v2  ;;  %v27814_v41 = vpack.c.bf16 %v27769_v0, %v27766_v23 }
 0x2b7   : > { %34044 = vst [vmem:[#allocation36_spill] sm:$0xff] %v27790_v12  ;;  %34045 = vst [vmem:[#allocation37_spill] sm:$0xff] %v27794_v55  ;;  %19492 = vmatprep.mubr.msk.f32.mxu1 %vm25178_vm0, %v33928_v36  ;;  %19223 = vmatmul.mubr.f32.gmra.mrb[46].mxu0 %v26805_v32  ;;  %v7858_v21 = vsel %vm7757_vm6, %v27794_v55, -inf  ;;  %v7831_v58 = vsel %vm7757_vm6, %v27790_v12, -inf  ;;  %v187_v32 = vld [vmem:[%s25213_s12 + $0x1f0] sm:$0xf] }
 0x2b8   : > { %19493 = vmatmul.mubr.f32.gmra.mrb[46].mxu1 %v26815_v14  ;;  %19225 = vmatprep.mubr.msk.f32.mxu0 %vm25178_vm0, %v33928_v36  ;;  %v27818_v50 = vand.u32 4294901760, %v27773_v19  ;;  %v27821_v9 = vand.u32 4294901760, %v27777_v51  ;;  %v196_v55 = vld [vmem:[%s25213_s12 + $0x238] sm:$0xf]  ;;  %v27827_v35 = vand.u32 4294901760, %v27782_v10 }
 0x2b9   : > { %7859 = vmax.xlane.f32.xlu1 %v7858_v21  ;;  %v2951_v14 = vpop.f32.mrb[32].mxu0  ;;  %v3872_v12 = vpop.f32.mrb[32].mxu1  ;;  %19495 = vmatprep.mubr.msk.f32.mxu1 %vm25178_vm0, %v33928_v36 }
 0x2ba   : > { %34046 = vst [vmem:[#allocation38_spill] sm:$0xff] %v27818_v50  ;;  %34047 = vst [vmem:[#allocation39_spill] sm:$0xff] %v27821_v9  ;;  %7832 = vmax.xlane.f32.xlu0 %v7831_v58  ;;  %v27842_v21 = vsel %vm16152_vm15, %v2951_v14, -1e+30  ;;  %v27846_v30 = vsel %vm16152_vm15, %v3872_v12, -1e+30  ;;  %22645 = vmatprep.subr.bf16.mxu0 %v33925_v18  ;;  %v27857_v58 = vsub.f32 %v27583_v28, %v27614_v63 }
 0x2bb   : > { %34048 = vst [vmem:[#allocation40_spill] sm:$0xff] %v27827_v35  ;;  %34050 = vst [vmem:[#allocation42_spill] sm:$0xff] %v27842_v21  ;;  %v18690_v61 = vpop.f32.mrb[33].mxu0  ;;  %v18960_v43 = vpop.f32.mrb[33].mxu1  ;;  %19226 = vmatmul.mubr.f32.gmra.mrb[48].mxu0 %v26890_v7  ;;  %22717 = vmatprep.subr.bf16.mxu1 %v33925_v18  ;;  %v7861_v1 = vsel %vm7757_vm6, %v27846_v30, -inf  ;;  %v7834_v6 = vsel %vm7757_vm6, %v27842_v21, -inf  ;;  %v27861_v12 = vsub.f32 %v27586_v4, %v27617_v53 }
 0x2bc   : > { %34051 = vst [vmem:[#allocation43_spill] sm:$0xff] %v27846_v30  ;;  %19496 = vmatmul.mubr.f32.gmra.mrb[48].mxu1 %v26896_v37  ;;  %22647 = vmatpush3.bf16.xpose.msra.mxu0 %v27810_v42  ;;  %v27866_v7 = vsel %vm197_vm1, %v187_v32, 0  ;;  %v27869_v43 = vsel %vm197_vm1, %v196_v55, 0  ;;  %v5828_v61 = vsub.f32 %v27773_v19, %v27818_v50  ;;  %v5838_v28 = vsub.f32 %v27777_v51, %v27821_v9 }
 0x2bd   : > { %22719 = vmatpush3.bf16.xpose.msra.mxu1 %v27814_v41  ;;  %7862 = vmax.xlane.f32.xlu1 %v7861_v1  ;;  %v2957_v4 = vpop.f32.mrb[34].mxu0  ;;  %v3878_v14 = vpop.f32.mrb[34].mxu1  ;;  %v6749_v37 = vsub.f32 %v27782_v10, %v27827_v35  ;;  %v6759_v32 = vsub.f32 %v27786_v40, %v27830_v45  ;;  %v27881_v55 = vand.u32 4294901760, %v27834_v44  ;;  %v27884_v21 = vand.u32 4294901760, %v27838_v5 }
 0x2be   : > { %7835 = vmax.xlane.f32.xlu0 %v7834_v6  ;;  %v27888_v30 = vsel %vm16152_vm15, %v2957_v4, -1e+30  ;;  %v27892_v1 = vsel %vm16152_vm15, %v3878_v14, -1e+30  ;;  %19228 = vmatprep.mubr.msk.f32.mxu0 %vm25178_vm0, %v33928_v36  ;;  %v18693_v35 = vpop.f32.mrb[35].mxu0  ;;  %v18963_v45 = vpop.f32.mrb[35].mxu1 }
 0x2bf   : > { %34052 = vst [vmem:[#allocation44_spill] sm:$0xff] %v27884_v21  ;;  %34053 = vst [vmem:[#allocation45_spill] sm:$0xff] %v27888_v30  ;;  %19498 = vmatprep.mubr.msk.f32.mxu1 %vm25178_vm0, %v33928_v36  ;;  %19229 = vmatmul.mubr.f32.gmra.mrb[50].mxu0 %v26893_v47  ;;  %v7864_v6 = vsel %vm7782_vm2, %v27892_v1, -inf  ;;  %v7837_v4 = vsel %vm7782_vm2, %v27888_v30, -inf  ;;  %v27904_v33 = vand.u32 4294901760, %v27857_v58  ;;  %v27907_v14 = vand.u32 4294901760, %v27861_v12 }
 0x2c0   : > { %34054 = vst [vmem:[#allocation46_spill] sm:$0xff] %v27892_v1  ;;  %19499 = vmatmul.mubr.f32.gmra.mrb[50].mxu1 %v26903_v16  ;;  %19231 = vmatprep.mubr.msk.f32.mxu0 %vm25178_vm0, %v33928_v36  ;;  %v27913_v35 = vand.u32 4294901760, %v27866_v7  ;;  %v5829_v47 = vand.u32 4294901760, %v5828_v61  ;;  %v5839_v45 = vand.u32 4294901760, %v5838_v28  ;;  %v27918_v30 = vand.u32 4294901760, %v27869_v43 }
 0x2c1   : > { %34055 = vst [vmem:[#allocation47_spill] sm:$0xff] %v27904_v33  ;;  %34056 = vst [vmem:[#allocation48_spill] sm:$0xff] %v27907_v14  ;;  %7865 = vmax.xlane.f32.xlu1 %v7864_v6  ;;  %19501 = vmatprep.mubr.msk.f32.mxu1 %vm25178_vm0, %v33928_v36  ;;  %v6750_v1 = vand.u32 4294901760, %v6749_v37  ;;  %v6760_v9 = vand.u32 4294901760, %v6759_v32  ;;  %v5848_v16 = vsub.f32 %v27834_v44, %v27881_v55 }
 0x2c2   : > { %7838 = vmax.xlane.f32.xlu0 %v7837_v4  ;;  %19520 = vmatprep.subr.mxu0 %v33928_v36  ;;  %v5858_v50 = vsub.f32 %v27838_v5, %v27884_v21  ;;  %v6769_v61 = vsub.f32 %v27857_v58, %v27904_v33  ;;  %v6779_v28 = vsub.f32 %v27861_v12, %v27907_v14 }
 0x2c3   : > { %19232 = vmatmul.mubr.f32.gmra.mrb[52].mxu0 %v27037_v27  ;;  %19790 = vmatprep.subr.mxu1 %v33928_v36  ;;  %v27933_v37 = vsub.f32 %v27655_v20, %v27684_v56  ;;  %v22649_v32 = vpack.c.bf16 %v5839_v45, %v5829_v47  ;;  %v27939_v27 = vsub.f32 %v27658_v48, %v27687_v59  ;;  %v5849_v20 = vand.u32 4294901760, %v5848_v16 }
 0x2c4   : > { %19502 = vmatmul.mubr.f32.gmra.mrb[52].mxu1 %v27052_v62  ;;  %19521 = vmatpush3.xpose.msra.mxu0 %v27913_v35  ;;  %v22721_v6 = vpack.c.bf16 %v6760_v9, %v6750_v1  ;;  %v27946_v4 = vsub.f32 %v27661_v34, %v27690_v8  ;;  %v27950_v62 = vsub.f32 %v27664_v46, %v27695_v31  ;;  %v5859_v48 = vand.u32 4294901760, %v5858_v50 }
 0x2c5   : > { %19791 = vmatpush3.xpose.msra.mxu1 %v27918_v30  ;;  %19522 = vmatprep.mubr.msk.f32.mxu0 %vm25178_vm0, %v33928_v36  ;;  %v6770_v14 = vand.u32 4294901760, %v6769_v61  ;;  %v6780_v33 = vand.u32 4294901760, %v6779_v28  ;;  %v27957_v21 = vand.u32 4294901760, %v27933_v37  ;;  %v27960_v34 = vand.u32 4294901760, %v27939_v27 }
 0x2c6   : > { %19792 = vmatprep.mubr.msk.f32.mxu1 %vm25178_vm0, %v33928_v36  ;;  %22648 = vmatprep.subr.bf16.mxu0 %v33925_v18  ;;  %v27965_v46 = vand.u32 4294901760, %v27946_v4  ;;  %v22652_v50 = vpack.c.bf16 %v5859_v48, %v5849_v20  ;;  %v27982_v28 = vsub.f32 %v27725_v60, %v27758_v2  ;;  %v28000_v60 = vsub.f32 %v27740_v57, %v27769_v0 }
 0x2c7   : > { %19523 = vmatmul.mubr.f32.vlgmr.msra.gmra.mrb[54].mxu0 %v5829_v47  ;;  %22720 = vmatprep.subr.bf16.mxu1 %v33925_v18  ;;  %34057 = vst [vmem:[#allocation49_spill] sm:$0xff] %v27957_v21  ;;  %34058 = vst [vmem:[#allocation50_spill] sm:$0xff] %v27960_v34  ;;  %v27968_v47 = vand.u32 4294901760, %v27950_v62  ;;  %v5868_v16 = vsub.f32 %v27933_v37, %v27957_v21  ;;  %v5878_v61 = vsub.f32 %v27939_v27, %v27960_v34 }
 0x2c8   : > { %19793 = vmatmul.mubr.f32.vlgmr.msra.gmra.mrb[54].mxu1 %v6750_v1  ;;  %22650 = vmatpush3.bf16.xpose.msra.mxu0 %v22649_v32  ;;  %34059 = vst [vmem:[#allocation51_spill] sm:$0xff] %v27965_v46  ;;  %v22724_v1 = vpack.c.bf16 %v6780_v33, %v6770_v14  ;;  %v28003_v21 = vand.u32 4294901760, %v27982_v28 }
 0x2c9   : > { %22722 = vmatpush3.bf16.xpose.msra.mxu1 %v22721_v6  ;;  %19525 = vmatprep.mubr.msk.f32.mxu0 %vm25178_vm0, %v33928_v36  ;;  %34060 = vst [vmem:[#allocation52_spill] sm:$0xff] %v27968_v47  ;;  %v6799_v32 = vsub.f32 %v27950_v62, %v27968_v47  ;;  %v27996_v6 = vsub.f32 %v27737_v25, %v27766_v23  ;;  %v5879_v34 = vand.u32 4294901760, %v5878_v61 }
 0x2ca   : > { %19795 = vmatprep.mubr.msk.f32.mxu1 %vm25178_vm0, %v33928_v36  ;;  %22651 = vmatprep.subr.bf16.mxu0 %v33925_v18  ;;  %34061 = vst [vmem:[#allocation53_spill] sm:$0xff] %v28003_v21  ;;  %v28034_v61 = vsub.f32 %v27866_v7, %v27913_v35 }
 0x2cb   : > { %19526 = vmatmul.mubr.f32.gmra.mrb[56].mxu0 %v5839_v45  ;;  %22723 = vmatprep.subr.bf16.mxu1 %v33925_v18  ;;  %v27986_v45 = vsub.f32 %v27728_v26, %v27761_v24  ;;  %v5869_v26 = vand.u32 4294901760, %v5868_v16  ;;  %v6800_v47 = vand.u32 4294901760, %v6799_v32  ;;  %v28011_v57 = vand.u32 4294901760, %v27996_v6 }
 0x2cc   : > { %19796 = vmatmul.mubr.f32.gmra.mrb[56].mxu1 %v6760_v9  ;;  %19528 = vmatprep.mubr.msk.f32.mxu0 %vm25178_vm0, %v33928_v36  ;;  %v6789_v9 = vsub.f32 %v27946_v4, %v27965_v46  ;;  %v28047_v7 = vand.u32 4294901760, %v28034_v61 }
 0x2cd   : > { %19798 = vmatprep.mubr.msk.f32.mxu1 %vm25178_vm0, %v33928_v36  ;;  %v28006_v46 = vand.u32 4294901760, %v27986_v45  ;;  %34063 = vst [vmem:[#allocation55_spill] sm:$0xff] %v28011_v57 }
 0x2ce   : > { %v6790_v25 = vand.u32 4294901760, %v6789_v9 }
 0x2cf   : > { %19529 = vmatmul.mubr.f32.gmra.mrb[58].mxu0 %v5849_v20  ;;  %34062 = vst [vmem:[#allocation54_spill] sm:$0xff] %v28006_v46  ;;  %v22655_v20 = vpack.c.bf16 %v5879_v34, %v5869_v26 }
 0x2d0   : > { %19799 = vmatmul.mubr.f32.gmra.mrb[58].mxu1 %v6770_v14  ;;  %22653 = vmatpush3.bf16.xpose.msra.mxu0 %v22652_v50  ;;  %v28014_v14 = vand.u32 4294901760, %v28000_v60  ;;  %v5888_v50 = vsub.f32 %v27982_v28, %v28003_v21  ;;  %v22727_v16 = vpack.c.bf16 %v6800_v47, %v6790_v25 }
 0x2d1   : > { %22725 = vmatpush3.bf16.xpose.msra.mxu1 %v22724_v1  ;;  %19531 = vmatprep.mubr.msk.f32.mxu0 %vm25178_vm0, %v33928_v36  ;;  %v5898_v1 = vsub.f32 %v27986_v45, %v28006_v46  ;;  %v28038_v46 = vsub.f32 %v27869_v43, %v27918_v30 }
 0x2d2   : > { %19801 = vmatprep.mubr.msk.f32.mxu1 %vm25178_vm0, %v33928_v36  ;;  %22654 = vmatprep.subr.bf16.mxu0 %v33925_v18  ;;  %v5889_v9 = vand.u32 4294901760, %v5888_v50  ;;  %v22661_v50 = vpack.c.bf16 %v27777_v51, %v27773_v19 }
 0x2d3   : > { %19532 = vmatmul.mubr.f32.gmra.mrb[60].mxu0 %v5859_v48  ;;  %22726 = vmatprep.subr.bf16.mxu1 %v33925_v18  ;;  %v6809_v48 = vsub.f32 %v27996_v6, %v28011_v57  ;;  %v5899_v32 = vand.u32 4294901760, %v5898_v1  ;;  %v22664_v1 = vpack.c.bf16 %v27838_v5, %v27834_v44 }
 0x2d4   : > { %19802 = vmatmul.mubr.f32.gmra.mrb[60].mxu1 %v6780_v33  ;;  %19534 = vmatprep.mubr.msk.f32.mxu0 %vm25178_vm0, %v33928_v36  ;;  %v6819_v33 = vsub.f32 %v28000_v60, %v28014_v14 }
 0x2d5   : > { %19804 = vmatprep.mubr.msk.f32.mxu1 %vm25178_vm0, %v33928_v36  ;;  %v6810_v57 = vand.u32 4294901760, %v6809_v48  ;;  %v22658_v43 = vpack.c.bf16 %v5899_v32, %v5889_v9  ;;  %v22667_v48 = vpack.c.bf16 %v27939_v27, %v27933_v37 }
 0x2d6   : > { %v6820_v21 = vand.u32 4294901760, %v6819_v33  ;;  %v22739_v33 = vpack.c.bf16 %v27950_v62, %v27946_v4 }
 0x2d7   : > { %19535 = vmatmul.mubr.f32.gmra.mrb[62].mxu0 %v5869_v26  ;;  %v28052_v26 = vand.u32 4294901760, %v28038_v46 }
 0x2d8   : > { %19805 = vmatmul.mubr.f32.gmra.mrb[62].mxu1 %v6790_v25  ;;  %22656 = vmatpush3.bf16.xpose.msra.mxu0 %v22655_v20  ;;  %v22730_v25 = vpack.c.bf16 %v6820_v21, %v6810_v57 }
 0x2d9   : > { %22728 = vmatpush3.bf16.xpose.msra.mxu1 %v22727_v16  ;;  %19537 = vmatprep.mubr.msk.f32.mxu0 %vm25178_vm0, %v33928_v36  ;;  %v22736_v16 = vpack.c.bf16 %v27861_v12, %v27857_v58 }
 0x2da   : > { %19807 = vmatprep.mubr.msk.f32.mxu1 %vm25178_vm0, %v33928_v36  ;;  %22657 = vmatprep.subr.bf16.mxu0 %v33925_v18 }
 0x2db   : > { %19538 = vmatmul.mubr.f32.gmra.mrb[64].mxu0 %v5879_v34  ;;  %22729 = vmatprep.subr.bf16.mxu1 %v33925_v18  ;;  %v5908_v34 = vsub.f32 %v28034_v61, %v28047_v7 }
 0x2dc   : > { %19808 = vmatmul.mubr.f32.gmra.mrb[64].mxu1 %v6800_v47  ;;  %19540 = vmatprep.mubr.msk.f32.mxu0 %vm25178_vm0, %v33928_v36  ;;  %v6829_v47 = vsub.f32 %v28038_v46, %v28052_v26 }
 0x2dd   : > { %19810 = vmatprep.mubr.msk.f32.mxu1 %vm25178_vm0, %v33928_v36  ;;  %v5909_v20 = vand.u32 4294901760, %v5908_v34  ;;  %v7763_v34 = vpop.xlane.xlu1 %7762 }
 0x2df   : > { %19541 = vmatmul.mubr.f32.gmra.mrb[66].mxu0 %v5889_v9  ;;  %v22670_v9 = vpack.c.bf16 %v27986_v45, %v27982_v28 }
 0x2e0   : > { %19811 = vmatmul.mubr.f32.gmra.mrb[66].mxu1 %v6810_v57  ;;  %22659 = vmatpush3.bf16.xpose.msra.mxu0 %v22658_v43  ;;  %v6830_v57 = vand.u32 4294901760, %v6829_v47  ;;  %v34076_v47 = vld [vmem:[#allocation53_spill] sm:$0xff] }
 0x2e1   : > { %22731 = vmatpush3.bf16.xpose.msra.mxu1 %v22730_v25  ;;  %19543 = vmatprep.mubr.msk.f32.mxu0 %vm25178_vm0, %v33928_v36 }
 0x2e2   : > { %19813 = vmatprep.mubr.msk.f32.mxu1 %vm25178_vm0, %v33928_v36  ;;  %19565 = vmatprep.subr.mxu0 %v33928_v36 }
 0x2e3   : > { %19544 = vmatmul.mubr.f32.gmra.mrb[68].mxu0 %v5899_v32  ;;  %19835 = vmatprep.subr.mxu1 %v33928_v36  ;;  %v22742_v32 = vpack.c.bf16 %v28000_v60, %v27996_v6 }
 0x2e4   : > { %19814 = vmatmul.mubr.f32.gmra.mrb[68].mxu1 %v6820_v21  ;;  %19546 = vmatprep.mubr.msk.f32.mxu0 %vm25178_vm0, %v33928_v36  ;;  %v22733_v21 = vpack.c.bf16 %v27786_v40, %v27782_v10 }
 0x2e5   : > { %19816 = vmatprep.mubr.msk.f32.mxu1 %vm25178_vm0, %v33928_v36 }
 0x2e7   : > { %19547 = vmatmul.mubr.f32.gmra.mrb[70].mxu0 %v5909_v20 }
 0x2e8   : > { %19817 = vmatmul.mubr.f32.gmra.mrb[70].mxu1 %v6830_v57  ;;  %19566 = vmatpush3.xpose.msra.mxu0 %v5909_v20  ;;  %v34077_v20 = vld [vmem:[#allocation54_spill] sm:$0xff] }
 0x2e9   : > { %19836 = vmatpush3.xpose.msra.mxu1 %v6830_v57  ;;  %19567 = vmatprep.mubr.msk.f32.mxu0 %vm25178_vm0, %v33928_v36  ;;  %v22694_v57 = vpack.c.bf16 %v34077_v20, %v34076_v47 }
 0x2ea   : > { %19837 = vmatprep.mubr.msk.f32.mxu1 %vm25178_vm0, %v33928_v36  ;;  %22660 = vmatprep.subr.bf16.mxu0 %v33925_v18 }
 0x2eb   : > { %19568 = vmatmul.mubr.f32.vlgmr.msra.gmra.mrb[54].mxu0 %v27535_v22  ;;  %22732 = vmatprep.subr.bf16.mxu1 %v33925_v18 }
 0x2ec   : > { %19838 = vmatmul.mubr.f32.vlgmr.msra.gmra.mrb[54].mxu1 %v27541_v38  ;;  %22662 = vmatpush3.bf16.xpose.msra.mxu0 %v22661_v50  ;;  %v34078_v50 = vld [vmem:[#allocation55_spill] sm:$0xff] }
 0x2ed   : > { %22734 = vmatpush3.bf16.xpose.msra.mxu1 %v22733_v21  ;;  %19570 = vmatprep.mubr.msk.f32.mxu0 %vm25178_vm0, %v33928_v36  ;;  %v22766_v21 = vpack.c.bf16 %v28014_v14, %v34078_v50 }
 0x2ee   : > { %19840 = vmatprep.mubr.msk.f32.mxu1 %vm25178_vm0, %v33928_v36  ;;  %22663 = vmatprep.subr.bf16.mxu0 %v33925_v18 }
 0x2ef   : > { %19571 = vmatmul.mubr.f32.gmra.mrb[56].mxu0 %v27538_v52  ;;  %22735 = vmatprep.subr.bf16.mxu1 %v33925_v18 }
 0x2f0   : > { %19841 = vmatmul.mubr.f32.gmra.mrb[56].mxu1 %v27544_v15  ;;  %19573 = vmatprep.mubr.msk.f32.mxu0 %vm25178_vm0, %v33928_v36 }
 0x2f1   : > { %19843 = vmatprep.mubr.msk.f32.mxu1 %vm25178_vm0, %v33928_v36 }
 0x2f3   : > { %19574 = vmatmul.mubr.f32.gmra.mrb[58].mxu0 %v27608_v17 }
 0x2f4   : > { %19844 = vmatmul.mubr.f32.gmra.mrb[58].mxu1 %v27614_v63  ;;  %22665 = vmatpush3.bf16.xpose.msra.mxu0 %v22664_v1  ;;  %v34079_v1 = vld [vmem:[#allocation4_spill] sm:$0xff] }
 0x2f5   : > { %22737 = vmatpush3.bf16.xpose.msra.mxu1 %v22736_v16  ;;  %19576 = vmatprep.mubr.msk.f32.mxu0 %vm25178_vm0, %v33928_v36 }
 0x2f6   : > { %19846 = vmatprep.mubr.msk.f32.mxu1 %vm25178_vm0, %v33928_v36  ;;  %22666 = vmatprep.subr.bf16.mxu0 %v33925_v18 }
 0x2f7   : > { %19577 = vmatmul.mubr.f32.gmra.mrb[60].mxu0 %v27611_v39  ;;  %22738 = vmatprep.subr.bf16.mxu1 %v33925_v18 }
 0x2f8   : > { %19847 = vmatmul.mubr.f32.gmra.mrb[60].mxu1 %v27617_v53  ;;  %19579 = vmatprep.mubr.msk.f32.mxu0 %vm25178_vm0, %v33928_v36 }
 0x2f9   : > { %19849 = vmatprep.mubr.msk.f32.mxu1 %vm25178_vm0, %v33928_v36 }
 0x2fb   : > { %19580 = vmatmul.mubr.f32.gmra.mrb[62].mxu0 %v27684_v56 }
 0x2fc   : > { %19850 = vmatmul.mubr.f32.gmra.mrb[62].mxu1 %v27690_v8  ;;  %22668 = vmatpush3.bf16.xpose.msra.mxu0 %v22667_v48 }
 0x2fd   : > { %22740 = vmatpush3.bf16.xpose.msra.mxu1 %v22739_v33  ;;  %19582 = vmatprep.mubr.msk.f32.mxu0 %vm25178_vm0, %v33928_v36  ;;  %v7791_v33 = vpop.xlane.xlu1 %7790 }
 0x2fe   : > { %19852 = vmatprep.mubr.msk.f32.mxu1 %vm25178_vm0, %v33928_v36  ;;  %22669 = vmatprep.subr.bf16.mxu0 %v33925_v18 }
 0x2ff   : > { %19583 = vmatmul.mubr.f32.gmra.mrb[64].mxu0 %v27687_v59  ;;  %22741 = vmatprep.subr.bf16.mxu1 %v33925_v18 }
 0x300   : > { %19853 = vmatmul.mubr.f32.gmra.mrb[64].mxu1 %v27695_v31  ;;  %19585 = vmatprep.mubr.msk.f32.mxu0 %vm25178_vm0, %v33928_v36 }
 0x301   : > { %19855 = vmatprep.mubr.msk.f32.mxu1 %vm25178_vm0, %v33928_v36 }
 0x303   : > { %19586 = vmatmul.mubr.f32.gmra.mrb[66].mxu0 %v27758_v2 }
 0x304   : > { %19856 = vmatmul.mubr.f32.gmra.mrb[66].mxu1 %v27766_v23  ;;  %22671 = vmatpush3.bf16.xpose.msra.mxu0 %v22670_v9 }
 0x305   : > { %22743 = vmatpush3.bf16.xpose.msra.mxu1 %v22742_v32  ;;  %19588 = vmatprep.mubr.msk.f32.mxu0 %vm25178_vm0, %v33928_v36  ;;  %v34080_v32 = vld [vmem:[#allocation5_spill] sm:$0xff] }
 0x306   : > { %19858 = vmatprep.mubr.msk.f32.mxu1 %vm25178_vm0, %v33928_v36  ;;  %19610 = vmatprep.subr.mxu0 %v33928_v36 }
 0x307   : > { %19589 = vmatmul.mubr.f32.gmra.mrb[68].mxu0 %v27761_v24  ;;  %19880 = vmatprep.subr.mxu1 %v33928_v36 }
 0x308   : > { %19859 = vmatmul.mubr.f32.gmra.mrb[68].mxu1 %v27769_v0  ;;  %19591 = vmatprep.mubr.msk.f32.mxu0 %vm25178_vm0, %v33928_v36 }
 0x309   : > { %19861 = vmatprep.mubr.msk.f32.mxu1 %vm25178_vm0, %v33928_v36 }
 0x30b   : > { %19592 = vmatmul.mubr.f32.gmra.mrb[70].mxu0 %v27913_v35 }
 0x30c   : > { %19862 = vmatmul.mubr.f32.gmra.mrb[70].mxu1 %v27918_v30  ;;  %19611 = vmatpush3.xpose.msra.mxu0 %v28034_v61 }
 0x30d   : > { %19881 = vmatpush3.xpose.msra.mxu1 %v28038_v46  ;;  %19612 = vmatprep.mubr.msk.f32.mxu0 %vm25178_vm0, %v33928_v36 }
 0x30e   : > { %19882 = vmatprep.mubr.msk.f32.mxu1 %vm25178_vm0, %v33928_v36  ;;  %22672 = vmatprep.subr.bf16.mxu0 %v33925_v18 }
 0x30f   : > { %19613 = vmatmul.mubr.f32.vlgmr.msra.gmra.mrb[54].mxu0 %v27773_v19  ;;  %22744 = vmatprep.subr.bf16.mxu1 %v33925_v18  ;;  %v34067_v19 = vld [vmem:[#allocation41_spill] sm:$0xff] }
 0x310   : > { %19883 = vmatmul.mubr.f32.vlgmr.msra.gmra.mrb[54].mxu1 %v27782_v10  ;;  %22674 = vmatpush3.bf16.xpose.msra.mxu0 %v27568_v54  ;;  %v34066_v10 = vld [vmem:[#allocation40_spill] sm:$0xff] }
 0x311   : > { %22746 = vmatpush3.bf16.xpose.msra.mxu1 %v27572_v49  ;;  %19615 = vmatprep.mubr.msk.f32.mxu0 %vm25178_vm0, %v33928_v36 }
 0x312   : > { %19885 = vmatprep.mubr.msk.f32.mxu1 %vm25178_vm0, %v33928_v36  ;;  %22675 = vmatprep.subr.bf16.mxu0 %v33925_v18 }
 0x313   : > { %19616 = vmatmul.mubr.f32.gmra.mrb[56].mxu0 %v27777_v51  ;;  %22747 = vmatprep.subr.bf16.mxu1 %v33925_v18  ;;  %v22757_v51 = vpack.c.bf16 %v34067_v19, %v34066_v10 }
 0x314   : > { %19886 = vmatmul.mubr.f32.gmra.mrb[56].mxu1 %v27786_v40  ;;  %19618 = vmatprep.mubr.msk.f32.mxu0 %vm25178_vm0, %v33928_v36 }
 0x315   : > { %19888 = vmatprep.mubr.msk.f32.mxu1 %vm25178_vm0, %v33928_v36 }
 0x317   : > { %19619 = vmatmul.mubr.f32.gmra.mrb[58].mxu0 %v27834_v44  ;;  %v34065_v44 = vld [vmem:[#allocation39_spill] sm:$0xff] }
 0x318   : > { %19889 = vmatmul.mubr.f32.gmra.mrb[58].mxu1 %v27857_v58  ;;  %22677 = vmatpush3.bf16.xpose.msra.mxu0 %v27646_v11  ;;  %v34068_v58 = vld [vmem:[#allocation44_spill] sm:$0xff] }
 0x319   : > { %22749 = vmatpush3.bf16.xpose.msra.mxu1 %v27650_v13  ;;  %19621 = vmatprep.mubr.msk.f32.mxu0 %vm25178_vm0, %v33928_v36 }
 0x31a   : > { %19891 = vmatprep.mubr.msk.f32.mxu1 %vm25178_vm0, %v33928_v36  ;;  %22678 = vmatprep.subr.bf16.mxu0 %v33925_v18 }
 0x31b   : > { %19622 = vmatmul.mubr.f32.gmra.mrb[60].mxu0 %v27838_v5  ;;  %22750 = vmatprep.subr.bf16.mxu1 %v33925_v18  ;;  %v34064_v5 = vld [vmem:[#allocation38_spill] sm:$0xff] }
 0x31c   : > { %19892 = vmatmul.mubr.f32.gmra.mrb[60].mxu1 %v27861_v12  ;;  %19624 = vmatprep.mubr.msk.f32.mxu0 %vm25178_vm0, %v33928_v36  ;;  %v22685_v40 = vpack.c.bf16 %v34065_v44, %v34064_v5  ;;  %v22688_v12 = vpack.c.bf16 %v34068_v58, %v27881_v55 }
 0x31d   : > { %19894 = vmatprep.mubr.msk.f32.mxu1 %vm25178_vm0, %v33928_v36 }
 0x31f   : > { %19625 = vmatmul.mubr.f32.gmra.mrb[62].mxu0 %v27933_v37  ;;  %v34069_v37 = vld [vmem:[#allocation47_spill] sm:$0xff] }
 0x320   : > { %19895 = vmatmul.mubr.f32.gmra.mrb[62].mxu1 %v27946_v4  ;;  %22680 = vmatpush3.bf16.xpose.msra.mxu0 %v27722_v29 }
 0x321   : > { %22752 = vmatpush3.bf16.xpose.msra.mxu1 %v27734_v3  ;;  %19627 = vmatprep.mubr.msk.f32.mxu0 %vm25178_vm0, %v33928_v36 }
 0x322   : > { %19897 = vmatprep.mubr.msk.f32.mxu1 %vm25178_vm0, %v33928_v36  ;;  %22681 = vmatprep.subr.bf16.mxu0 %v33925_v18 }
 0x323   : > { %19628 = vmatmul.mubr.f32.gmra.mrb[64].mxu0 %v27939_v27  ;;  %22753 = vmatprep.subr.bf16.mxu1 %v33925_v18  ;;  %v34070_v27 = vld [vmem:[#allocation48_spill] sm:$0xff] }
 0x324   : > { %19898 = vmatmul.mubr.f32.gmra.mrb[64].mxu1 %v27950_v62  ;;  %19630 = vmatprep.mubr.msk.f32.mxu0 %vm25178_vm0, %v33928_v36  ;;  %v22760_v4 = vpack.c.bf16 %v34070_v27, %v34069_v37  ;;  %v34072_v62 = vld [vmem:[#allocation50_spill] sm:$0xff] }
 0x325   : > { %19900 = vmatprep.mubr.msk.f32.mxu1 %vm25178_vm0, %v33928_v36 }
 0x327   : > { %19631 = vmatmul.mubr.f32.gmra.mrb[66].mxu0 %v27982_v28  ;;  %v34073_v28 = vld [vmem:[#allocation51_spill] sm:$0xff] }
 0x328   : > { %19901 = vmatmul.mubr.f32.gmra.mrb[66].mxu1 %v27996_v6  ;;  %22683 = vmatpush3.bf16.xpose.msra.mxu0 %v27810_v42 }
 0x329   : > { %22755 = vmatpush3.bf16.xpose.msra.mxu1 %v27814_v41  ;;  %19633 = vmatprep.mubr.msk.f32.mxu0 %vm25178_vm0, %v33928_v36 }
 0x32a   : > { %19903 = vmatprep.mubr.msk.f32.mxu1 %vm25178_vm0, %v33928_v36  ;;  %19655 = vmatprep.subr.mxu0 %v33928_v36 }
 0x32b   : > { %19634 = vmatmul.mubr.f32.gmra.mrb[68].mxu0 %v27986_v45  ;;  %19925 = vmatprep.subr.mxu1 %v33928_v36  ;;  %v34074_v45 = vld [vmem:[#allocation52_spill] sm:$0xff] }
 0x32c   : > { %19904 = vmatmul.mubr.f32.gmra.mrb[68].mxu1 %v28000_v60  ;;  %19636 = vmatprep.mubr.msk.f32.mxu0 %vm25178_vm0, %v33928_v36  ;;  %v22763_v6 = vpack.c.bf16 %v34074_v45, %v34073_v28  ;;  %v7760_v60 = vpop.xlane.xlu0 %7759 }
 0x32d   : > { %19906 = vmatprep.mubr.msk.f32.mxu1 %vm25178_vm0, %v33928_v36 }
 0x32f   : > { %19637 = vmatmul.mubr.f32.gmra.mrb[70].mxu0 %v28034_v61  ;;  %v34075_v61 = vld [vmem:[#allocation3_spill] sm:$0xff] }
 0x330   : > { %19907 = vmatmul.mubr.f32.gmra.mrb[70].mxu1 %v28038_v46  ;;  %19656 = vmatpush3.xpose.msra.mxu0 %v27913_v35  ;;  %v7975_v43 = vsub.f32 %v34075_v61, %v7760_v60  ;;  %v7788_v25 = vpop.xlane.xlu0 %7787 }
 0x331   : > { %19926 = vmatpush3.xpose.msra.mxu1 %v27918_v30  ;;  %19657 = vmatprep.mubr.msk.f32.mxu0 %vm25178_vm0, %v33928_v36  ;;  %v7984_v16 = vsub.f32 %v34079_v1, %v7788_v25  ;;  %v34089_v1 = vld [vmem:[#allocation13_spill] sm:$0xff] }
 0x332   : > { %19927 = vmatprep.mubr.msk.f32.mxu1 %vm25178_vm0, %v33928_v36  ;;  %22684 = vmatprep.subr.bf16.mxu0 %v33925_v18  ;;  %v8047_v48 = vmul.f32 0.125, %v7975_v43 }
 0x333   : > { %19658 = vmatmul.mubr.f32.vlgmr.msra.gmra.mrb[54].mxu0 %v34064_v5  ;;  %22756 = vmatprep.subr.bf16.mxu1 %v33925_v18  ;;  %v8056_v9 = vmul.f32 0.125, %v7984_v16  ;;  %v7976_v5 = vsub.f32 %v34080_v32, %v7763_v34 }
 0x334   : > { %19928 = vmatmul.mubr.f32.vlgmr.msra.gmra.mrb[54].mxu1 %v34066_v10  ;;  %22686 = vmatpush3.bf16.xpose.msra.mxu0 %v22685_v40  ;;  %v8119_v40 = vmul.f32 1.442695, %v8047_v48  ;;  %v34081_v10 = vld [vmem:[#allocation7_spill] sm:$0xff] }
 0x335   : > { %22758 = vmatpush3.bf16.xpose.msra.mxu1 %v22757_v51  ;;  %19660 = vmatprep.mubr.msk.f32.mxu0 %vm25178_vm0, %v33928_v36  ;;  %v8137_v51 = vmul.f32 1.442695, %v8056_v9 }
 0x336   : > { %19930 = vmatprep.mubr.msk.f32.mxu1 %vm25178_vm0, %v33928_v36  ;;  %22687 = vmatprep.subr.bf16.mxu0 %v33925_v18  ;;  %24809 = vpow2.f32 %v8119_v40 }
 0x337   : > { %19661 = vmatmul.mubr.f32.gmra.mrb[56].mxu0 %v34065_v44  ;;  %22759 = vmatprep.subr.bf16.mxu1 %v33925_v18  ;;  %v7766_v44 = vpop.xlane.xlu0 %7765  ;;  %24811 = vpow2.f32 %v8137_v51  ;;  %v34093_v51 = vld [vmem:[#allocation16_spill] sm:$0xff] }
 0x338   : > { %19931 = vmatmul.mubr.f32.gmra.mrb[56].mxu1 %v34067_v19  ;;  %19663 = vmatprep.mubr.msk.f32.mxu0 %vm25178_vm0, %v33928_v36  ;;  %v7985_v19 = vsub.f32 %v34081_v10, %v7791_v33  ;;  %v34090_v33 = vld [vmem:[#allocation15_spill] sm:$0xff] }
 0x339   : > { %19933 = vmatprep.mubr.msk.f32.mxu1 %vm25178_vm0, %v33928_v36 }
 0x33b   : > { %19664 = vmatmul.mubr.f32.gmra.mrb[58].mxu0 %v27881_v55  ;;  %v34071_v55 = vld [vmem:[#allocation49_spill] sm:$0xff] }
 0x33c   : > { %19934 = vmatmul.mubr.f32.gmra.mrb[58].mxu1 %v34069_v37  ;;  %22689 = vmatpush3.bf16.xpose.msra.mxu0 %v22688_v12  ;;  %v22691_v46 = vpack.c.bf16 %v34072_v62, %v34071_v55  ;;  %v7794_v12 = vpop.xlane.xlu1 %7793  ;;  %v8057_v37 = vmul.f32 0.125, %v7985_v19 }
 0x33d   : > { %22761 = vmatpush3.bf16.xpose.msra.mxu1 %v22760_v4  ;;  %19666 = vmatprep.mubr.msk.f32.mxu0 %vm25178_vm0, %v33928_v36 }
 0x33e   : > { %19936 = vmatprep.mubr.msk.f32.mxu1 %vm25178_vm0, %v33928_v36  ;;  %22690 = vmatprep.subr.bf16.mxu0 %v33925_v18 }
 0x33f   : > { %19667 = vmatmul.mubr.f32.gmra.mrb[60].mxu0 %v34068_v58  ;;  %22762 = vmatprep.subr.bf16.mxu1 %v33925_v18  ;;  %v8048_v58 = vmul.f32 0.125, %v7976_v5 }
 0x340   : > { %19937 = vmatmul.mubr.f32.gmra.mrb[60].mxu1 %v34070_v27  ;;  %19669 = vmatprep.mubr.msk.f32.mxu0 %vm25178_vm0, %v33928_v36 }
 0x341   : > { %19939 = vmatprep.mubr.msk.f32.mxu1 %vm25178_vm0, %v33928_v36  ;;  %v8121_v27 = vmul.f32 1.442695, %v8048_v58 }
 0x343   : > { %19670 = vmatmul.mubr.f32.gmra.mrb[62].mxu0 %v34071_v55  ;;  %v34083_v55 = vld [vmem:[#allocation9_spill] sm:$0xff]  ;;  %24813 = vpow2.f32 %v8121_v27 }
 0x344   : > { %19940 = vmatmul.mubr.f32.gmra.mrb[62].mxu1 %v34073_v28  ;;  %22692 = vmatpush3.bf16.xpose.msra.mxu0 %v22691_v46  ;;  %v7797_v46 = vpop.xlane.xlu1 %7796 }
 0x345   : > { %22764 = vmatpush3.bf16.xpose.msra.mxu1 %v22763_v6  ;;  %19672 = vmatprep.mubr.msk.f32.mxu0 %vm25178_vm0, %v33928_v36 }
 0x346   : > { %19942 = vmatprep.mubr.msk.f32.mxu1 %vm25178_vm0, %v33928_v36  ;;  %22693 = vmatprep.subr.bf16.mxu0 %v33925_v18 }
 0x347   : > { %19673 = vmatmul.mubr.f32.gmra.mrb[64].mxu0 %v34072_v62  ;;  %22765 = vmatprep.subr.bf16.mxu1 %v33925_v18  ;;  %v7986_v62 = vsub.f32 %v34083_v55, %v7794_v12 }
 0x348   : > { %19943 = vmatmul.mubr.f32.gmra.mrb[64].mxu1 %v34074_v45  ;;  %19675 = vmatprep.mubr.msk.f32.mxu0 %vm25178_vm0, %v33928_v36  ;;  %v7800_v6 = vpop.xlane.xlu1 %7799 }
 0x349   : > { %19945 = vmatprep.mubr.msk.f32.mxu1 %vm25178_vm0, %v33928_v36  ;;  %v8058_v45 = vmul.f32 0.125, %v7986_v62  ;;  %v7988_v9 = vsub.f32 %v34090_v33, %v7800_v6 }
 0x34b   : > { %19676 = vmatmul.mubr.f32.gmra.mrb[66].mxu0 %v34076_v47  ;;  %v8141_v34 = vmul.f32 1.442695, %v8058_v45  ;;  %v34086_v47 = vld [vmem:[#allocation10_spill] sm:$0xff] }
 0x34c   : > { %19946 = vmatmul.mubr.f32.gmra.mrb[66].mxu1 %v34078_v50  ;;  %22695 = vmatpush3.bf16.xpose.msra.mxu0 %v22694_v57  ;;  %v7803_v32 = vpop.xlane.xlu1 %7802 }
 0x34d   : > { %22767 = vmatpush3.bf16.xpose.msra.mxu1 %v22766_v21  ;;  %19678 = vmatprep.mubr.msk.f32.mxu0 %vm25178_vm0, %v33928_v36 }
 0x34e   : > { %19948 = vmatprep.mubr.msk.f32.mxu1 %vm25178_vm0, %v33928_v36  ;;  %19700 = vmatprep.subr.mxu0 %v33928_v36 }
 0x34f   : > { %19679 = vmatmul.mubr.f32.gmra.mrb[68].mxu0 %v34077_v20  ;;  %19970 = vmatprep.subr.mxu1 %v33928_v36 }
 0x350   : > { %19949 = vmatmul.mubr.f32.gmra.mrb[68].mxu1 %v28014_v14  ;;  %19681 = vmatprep.mubr.msk.f32.mxu0 %vm25178_vm0, %v33928_v36  ;;  %v7769_v14 = vpop.xlane.xlu0 %7768 }
 0x351   : > { %19951 = vmatprep.mubr.msk.f32.mxu1 %vm25178_vm0, %v33928_v36  ;;  %v7978_v20 = vsub.f32 %v34086_v47, %v7769_v14  ;;  %v34094_v14 = vld [vmem:[#allocation18_spill] sm:$0xff] }
 0x352   : > { %v7989_v27 = vsub.f32 %v34094_v14, %v7803_v32  ;;  %v34102_v32 = vld [vmem:[#allocation27_spill] sm:$0xff] }
 0x353   : > { %19682 = vmatmul.mubr.f32.gmra.mrb[70].mxu0 %v28047_v7  ;;  %v8050_v48 = vmul.f32 0.125, %v7978_v20 }
 0x354   : > { %19952 = vmatmul.mubr.f32.gmra.mrb[70].mxu1 %v28052_v26  ;;  %19701 = vmatpush3.xpose.msra.mxu0 %v28047_v7  ;;  %v8139_v7 = vmul.f32 1.442695, %v8057_v37  ;;  %v7772_v28 = vpop.xlane.xlu0 %7771 }
 0x355   : > { %19971 = vmatpush3.xpose.msra.mxu1 %v28052_v26  ;;  %19702 = vmatprep.mubr.msk.f32.mxu0 %vm25178_vm0, %v33928_v36  ;;  %v34082_v26 = vld [vmem:[#allocation8_spill] sm:$0xff]  ;;  %v7979_v16 = vsub.f32 %v34089_v1, %v7772_v28 }
 0x356   : > { %19972 = vmatprep.mubr.msk.f32.mxu1 %vm25178_vm0, %v33928_v36  ;;  %22696 = vmatprep.subr.bf16.mxu0 %v33925_v18  ;;  %v7977_v4 = vsub.f32 %v34082_v26, %v7766_v44  ;;  %24815 = vpow2.f32 %v8139_v7  ;;  %v8125_v7 = vmul.f32 1.442695, %v8050_v48  ;;  %v8060_v26 = vmul.f32 0.125, %v7988_v9 }
 0x357   : > { %19703 = vmatmul.mubr.f32.vlgmr.msra.gmra.mrb[54].mxu0 %v27535_v22  ;;  %22768 = vmatprep.subr.bf16.mxu1 %v33925_v18  ;;  %v8051_v37 = vmul.f32 0.125, %v7979_v16  ;;  %v34101_v16 = vld [vmem:[#allocation24_spill] sm:$0xff] }
 0x358   : > { %19973 = vmatmul.mubr.f32.vlgmr.msra.gmra.mrb[54].mxu1 %v27541_v38  ;;  %22698 = vmatpush3.bf16.xpose.msra.mxu0 %v27568_v54  ;;  %v8049_v54 = vmul.f32 0.125, %v7977_v4  ;;  %v7775_v25 = vpop.xlane.xlu0 %7774 }
 0x359   : > { %22770 = vmatpush3.bf16.xpose.msra.mxu1 %v27572_v49  ;;  %19705 = vmatprep.mubr.msk.f32.mxu0 %vm25178_vm0, %v33928_v36  ;;  %v28336_v49 = vpop.eup %24809  ;;  %v7980_v58 = vsub.f32 %v34093_v51, %v7775_v25  ;;  %v8127_v6 = vmul.f32 1.442695, %v8051_v37 }
 0x35a   : > { %19975 = vmatprep.mubr.msk.f32.mxu1 %vm25178_vm0, %v33928_v36  ;;  %22699 = vmatprep.subr.bf16.mxu0 %v33925_v18  ;;  %34084 = vst [vmem:[#allocation38_spill] sm:$0xff] %v28336_v49  ;;  %v28341_v60 = vpop.eup %24811  ;;  %v8480_v61 = vsel %vm7757_vm6, %v28336_v49, 0  ;;  %v8123_v43 = vmul.f32 1.442695, %v8049_v54  ;;  %v7806_v54 = vpop.xlane.xlu1 %7805 }
 0x35b   : > { %19706 = vmatmul.mubr.f32.gmra.mrb[56].mxu0 %v27538_v52  ;;  %22771 = vmatprep.subr.bf16.mxu1 %v33925_v18  ;;  %34085 = vst [vmem:[#allocation39_spill] sm:$0xff] %v28341_v60  ;;  %v28355_v50 = vand.u32 4294901760, %v8480_v61  ;;  %v28362_v21 = vpop.eup %24813  ;;  %v8052_v62 = vmul.f32 0.125, %v7980_v58  ;;  %v7990_v48 = vsub.f32 %v34101_v16, %v7806_v54 }
 0x35c   : > { %19976 = vmatmul.mubr.f32.gmra.mrb[56].mxu1 %v27544_v15  ;;  %19708 = vmatprep.mubr.msk.f32.mxu0 %vm25178_vm0, %v33928_v36  ;;  %34088 = vst [vmem:[#allocation40_spill] sm:$0xff] %v28362_v21  ;;  %24817 = vpow2.f32 %v8123_v43  ;;  %v7778_v10 = vpop.xlane.xlu0 %7777  ;;  %v8483_v12 = vsel %vm7757_vm6, %v28362_v21, 0 }
 0x35d   : > { %19978 = vmatprep.mubr.msk.f32.mxu1 %vm25178_vm0, %v33928_v36  ;;  %24819 = vpow2.f32 %v8141_v34  ;;  %v28374_v19 = vsub.f32 %v8480_v61, %v28355_v50  ;;  %v8061_v61 = vmul.f32 0.125, %v7989_v27  ;;  %v8145_v34 = vmul.f32 1.442695, %v8060_v26 }
 0x35e   : > { %24821 = vpow2.f32 %v8125_v7  ;;  %v7809_v51 = vpop.xlane.xlu1 %7808  ;;  %v8062_v27 = vmul.f32 0.125, %v7990_v48  ;;  %v28497_v7 = vld [vmem:[%s25213_s12 + $0x50] sm:$0xff] }
 0x35f   : > { %19709 = vmatmul.mubr.f32.gmra.mrb[58].mxu0 %v27608_v17  ;;  %34092 = vst [vmem:[#allocation44_spill] sm:$0xff] %v28374_v19  ;;  %v33508_v45 = vand.u32 4294901760, %v28374_v19  ;;  %v8147_v9 = vmul.f32 1.442695, %v8061_v61 }
 0x360   : > { %19979 = vmatmul.mubr.f32.gmra.mrb[58].mxu1 %v27614_v63  ;;  %22701 = vmatpush3.bf16.xpose.msra.mxu0 %v27646_v11  ;;  %v34087_v11 = vld [vmem:[#allocation12_spill] sm:$0xff]  ;;  %v28368_v5 = vpop.eup %24815  ;;  %v7781_v43 = vpop.xlane.xlu0 %7780 }
 0x361   : > { %22773 = vmatpush3.bf16.xpose.msra.mxu1 %v27650_v13  ;;  %19711 = vmatprep.mubr.msk.f32.mxu0 %vm25178_vm0, %v33928_v36  ;;  %v7987_v57 = vsub.f32 %v34087_v11, %v7797_v46  ;;  %v9404_v13 = vsel %vm7757_vm6, %v28341_v60, 0  ;;  %34091 = vst [vmem:[#allocation41_spill] sm:$0xff] %v28368_v5  ;;  %v34096_v46 = vld [vmem:[#allocation19_spill] sm:$0xff]  ;;  %v28421_v33 = vsub.f32 %v28374_v19, %v33508_v45 }
 0x362   : > { %19981 = vmatprep.mubr.msk.f32.mxu1 %vm25178_vm0, %v33928_v36  ;;  %22702 = vmatprep.subr.bf16.mxu0 %v33925_v18  ;;  %v28370_v44 = vand.u32 4294901760, %v9404_v13  ;;  %v7981_v28 = vsub.f32 %v34096_v46, %v7778_v10  ;;  %v28493_v45 = vld [vmem:[%s25213_s12 + $0x48] sm:$0xff] }
 0x363   : > { %19712 = vmatmul.mubr.f32.gmra.mrb[60].mxu0 %v27611_v39  ;;  %22774 = vmatprep.subr.bf16.mxu1 %v33925_v18  ;;  %v8059_v40 = vmul.f32 0.125, %v7987_v57 }
 0x364   : > { %19982 = vmatmul.mubr.f32.gmra.mrb[60].mxu1 %v27617_v53  ;;  %19714 = vmatprep.mubr.msk.f32.mxu0 %vm25178_vm0, %v33928_v36  ;;  %v28391_v4 = vsub.f32 %v9404_v13, %v28370_v44  ;;  %v8129_v13 = vmul.f32 1.442695, %v8052_v62  ;;  %v8053_v1 = vmul.f32 0.125, %v7981_v28  ;;  %v34105_v28 = vld [vmem:[#allocation29_spill] sm:$0xff] }
 0x365   : > { %19984 = vmatprep.mubr.msk.f32.mxu1 %vm25178_vm0, %v33928_v36  ;;  %v8143_v55 = vmul.f32 1.442695, %v8059_v40  ;;  %v7982_v40 = vsub.f32 %v34102_v32, %v7781_v43 }
 0x366   : > { %34095 = vst [vmem:[#allocation47_spill] sm:$0xff] %v28391_v4  ;;  %v28406_v47 = vpop.eup %24817  ;;  %v33507_v20 = vand.u32 4294901760, %v28391_v4  ;;  %v8131_v14 = vmul.f32 1.442695, %v8053_v1 }
 0x367   : > { %19715 = vmatmul.mubr.f32.gmra.mrb[62].mxu0 %v27684_v56  ;;  %34098 = vst [vmem:[#allocation49_spill] sm:$0xff] %v28406_v47  ;;  %24823 = vpow2.f32 %v8143_v55  ;;  %v28413_v57 = vpop.eup %24819  ;;  %v8054_v26 = vmul.f32 0.125, %v7982_v40 }
 0x368   : > { %19985 = vmatmul.mubr.f32.gmra.mrb[62].mxu1 %v27690_v8  ;;  %22704 = vmatpush3.bf16.xpose.msra.mxu0 %v27722_v29  ;;  %v9407_v29 = vsel %vm7757_vm6, %v28368_v5, 0  ;;  %34100 = vst [vmem:[#allocation51_spill] sm:$0xff] %v28413_v57  ;;  %24825 = vpow2.f32 %v8127_v6  ;;  %v9410_v37 = vsel %vm7757_vm6, %v28413_v57, 0 }
 0x369   : > { %22776 = vmatpush3.bf16.xpose.msra.mxu1 %v27734_v3  ;;  %19717 = vmatprep.mubr.msk.f32.mxu0 %vm25178_vm0, %v33928_v36  ;;  %v28395_v3 = vand.u32 4294901760, %v8483_v12  ;;  %v28404_v25 = vand.u32 4294901760, %v9407_v29  ;;  %24827 = vpow2.f32 %v8145_v34  ;;  %v28460_v1 = vand.u32 4294901760, %v9410_v37 }
 0x36a   : > { %19987 = vmatprep.mubr.msk.f32.mxu1 %vm25178_vm0, %v33928_v36  ;;  %22705 = vmatprep.subr.bf16.mxu0 %v33925_v18  ;;  %24829 = vpow2.f32 %v8129_v13 }
 0x36b   : > { %19718 = vmatmul.mubr.f32.gmra.mrb[64].mxu0 %v27687_v59  ;;  %22777 = vmatprep.subr.bf16.mxu1 %v33925_v18  ;;  %34097 = vst [vmem:[#allocation48_spill] sm:$0xff] %v28404_v25  ;;  %v28411_v11 = vsub.f32 %v8483_v12, %v28395_v3  ;;  %v28428_v10 = vsub.f32 %v9407_v29, %v28404_v25  ;;  %v8486_v12 = vsel %vm7757_vm6, %v28406_v47, 0  ;;  %24831 = vpow2.f32 %v8147_v9  ;;  %v34104_v29 = vld [vmem:[#allocation28_spill] sm:$0xff] }
 0x36c   : > { %19988 = vmatmul.mubr.f32.gmra.mrb[64].mxu1 %v27695_v31  ;;  %19720 = vmatprep.mubr.msk.f32.mxu0 %vm25178_vm0, %v33928_v36  ;;  %v7991_v55 = vsub.f32 %v34104_v29, %v7809_v51  ;;  %v28458_v13 = vand.u32 4294901760, %v8486_v12  ;;  %34109 = vst [vmem:[#allocation54_spill] sm:$0xff] %v28460_v1  ;;  %v28475_v51 = vpop.eup %24821  ;;  %v7812_v29 = vpop.xlane.xlu1 %7811  ;;  %v28511_v32 = vsub.f32 %v9410_v37, %v28460_v1  ;;  %24833 = vpow2.f32 %v8131_v14 }
 0x36d   : > { %19990 = vmatprep.mubr.msk.f32.mxu1 %vm25178_vm0, %v33928_v36  ;;  %34099 = vst [vmem:[#allocation50_spill] sm:$0xff] %v28411_v11  ;;  %34103 = vst [vmem:[#allocation52_spill] sm:$0xff] %v28428_v10  ;;  %v33506_v58 = vand.u32 4294901760, %v28411_v11 }
 0x36e   : > { %34108 = vst [vmem:[#allocation53_spill] sm:$0xff] %v28458_v13  ;;  %34111 = vst [vmem:[#allocation4_spill] sm:$0xff] %v28475_v51 }
 0x36f   : > { %19721 = vmatmul.mubr.f32.gmra.mrb[66].mxu0 %v27758_v2  ;;  %v28473_v40 = vsub.f32 %v28411_v11, %v33506_v58  ;;  %34115 = vst [vmem:[#allocation8_spill] sm:$0xff] %v28511_v32 }
 0x370   : > { %19991 = vmatmul.mubr.f32.gmra.mrb[66].mxu1 %v27766_v23  ;;  %22707 = vmatpush3.bf16.xpose.msra.mxu0 %v27810_v42  ;;  %v7785_v42 = vpop.xlane.xlu0 %7784 }
 0x371   : > { %22779 = vmatpush3.bf16.xpose.msra.mxu1 %v27814_v41  ;;  %19723 = vmatprep.mubr.msk.f32.mxu0 %vm25178_vm0, %v33928_v36  ;;  %v28438_v41 = vsub.f32 %v28391_v4, %v33507_v20  ;;  %v7983_v54 = vsub.f32 %v34105_v28, %v7785_v42  ;;  %v8149_v42 = vmul.f32 1.442695, %v8062_v27  ;;  %v28482_v28 = vld [vmem:[%s25213_s12] sm:$0xff]  ;;  %v28489_v58 = vpop.eup %24823  ;;  %v8133_v27 = vmul.f32 1.442695, %v8054_v26 }
 0x372   : > { %19993 = vmatprep.mubr.msk.f32.mxu1 %vm25178_vm0, %v33928_v36  ;;  %19745 = vmatprep.subr.mxu0 %v33928_v36  ;;  %34112 = vst [vmem:[#allocation5_spill] sm:$0xff] %v28489_v58  ;;  %v8063_v20 = vmul.f32 0.125, %v7991_v55  ;;  %v34113_v26 = vand.u32 4294901760, %v28428_v10 }
 0x373   : > { %19724 = vmatmul.mubr.f32.gmra.mrb[68].mxu0 %v27761_v24  ;;  %20015 = vmatprep.subr.mxu1 %v33928_v36  ;;  %24835 = vpow2.f32 %v8149_v42 }
 0x374   : > { %19994 = vmatmul.mubr.f32.gmra.mrb[68].mxu1 %v27769_v0  ;;  %19726 = vmatprep.mubr.msk.f32.mxu0 %vm25178_vm0, %v33928_v36  ;;  %v28505_v55 = vsub.f32 %v28428_v10, %v34113_v26  ;;  %24837 = vpow2.f32 %v8133_v27  ;;  %v28693_v10 = vld [vmem:[%s25213_s12 + $0x70] sm:$0xff] }
 0x375   : > { %v4751_v62 = vpop.f32.mrb[36].mxu0  ;;  %19996 = vmatprep.mubr.msk.f32.mxu1 %vm25178_vm0, %v33928_v36 }
 0x376   : > { %v28456_v61 = vsel %vm16148_vm5, %v4751_v62, -1e+30  ;;  %v5672_v43 = vpop.f32.mrb[36].mxu1  ;;  %v19209_v34 = vpop.f32.mrb[37].mxu0 }
 0x377   : > { %34107 = vst [vmem:[#allocation3_spill] sm:$0xff] %v28456_v61  ;;  %v28464_v16 = vsel %vm16148_vm5, %v5672_v43, -1e+30  ;;  %v19479_v48 = vpop.f32.mrb[37].mxu1  ;;  %19727 = vmatmul.mubr.f32.gmra.mrb[70].mxu0 %v27913_v35  ;;  %v7867_v9 = vsel %vm7757_vm6, %v28456_v61, -inf  ;;  %v28486_v34 = vld [vmem:[%s25213_s12 + $0x8] sm:$0xff] }
 0x378   : > { %34110 = vst [vmem:[#allocation55_spill] sm:$0xff] %v28464_v16  ;;  %19997 = vmatmul.mubr.f32.gmra.mrb[70].mxu1 %v27918_v30  ;;  %19746 = vmatpush3.xpose.msra.mxu0 %v27913_v35  ;;  %v7894_v62 = vsel %vm7757_vm6, %v28464_v16, -inf  ;;  %v8055_v43 = vmul.f32 0.125, %v7983_v54  ;;  %v28513_v48 = vpop.eup %24825  ;;  %v34117_v54 = vld [vmem:[#allocation30_spill] sm:$0xff] }
 0x379   : > { %20016 = vmatpush3.xpose.msra.mxu1 %v27918_v30  ;;  %7895 = vmax.xlane.f32.xlu1 %v7894_v62  ;;  %v28508_v62 = vsub.f32 %v8486_v12, %v28458_v13  ;;  %34116 = vst [vmem:[#allocation9_spill] sm:$0xff] %v28513_v48  ;;  %v28524_v37 = vpop.eup %24827  ;;  %v8489_v12 = vsel %vm7757_vm6, %v28475_v51, 0  ;;  %v8492_v51 = vsel %vm7757_vm6, %v28513_v48, 0  ;;  %v25114_v13 = vld [vmem:[%s25213_s12 + $0x88] sm:$0xf] }
 0x37a   : > { %7868 = vmax.xlane.f32.xlu0 %v7867_v9  ;;  %v4757_v16 = vpop.f32.mrb[38].mxu0  ;;  %19747 = vmatprep.mubr.msk.f32.mxu0 %vm25178_vm0, %v33928_v36  ;;  %v7992_v9 = vsub.f32 %v34117_v54, %v7812_v29  ;;  %34119 = vst [vmem:[#allocation12_spill] sm:$0xff] %v28524_v37  ;;  %v34121_v54 = vand.u32 4294901760, %v28482_v28  ;;  %v28658_v21 = vsel %vm7757_vm6, %v28524_v37, 0  ;;  %v28673_v37 = vld [vmem:[%s25213_s12 + $0x20] sm:$0xff] }
 0x37b   : > { %34114 = vst [vmem:[#allocation7_spill] sm:$0xff] %v28508_v62  ;;  %v28518_v46 = vsel %vm16148_vm5, %v4757_v16, -1e+30  ;;  %v5678_v61 = vpop.f32.mrb[38].mxu1  ;;  %20017 = vmatprep.mubr.msk.f32.mxu1 %vm25178_vm0, %v33928_v36  ;;  %v19212_v26 = vpop.f32.mrb[39].mxu0  ;;  %19748 = vmatmul.mubr.f32.vlgmr.msra.gmra.mrb[54].mxu0 %v27535_v22  ;;  %v34122_v22 = vand.u32 4294901760, %v28486_v34 }
 0x37c   : > { %34118 = vst [vmem:[#allocation10_spill] sm:$0xff] %v28518_v46  ;;  %v28528_v14 = vsel %vm16148_vm5, %v5678_v61, -1e+30  ;;  %v19482_v29 = vpop.f32.mrb[39].mxu1  ;;  %20018 = vmatmul.mubr.f32.vlgmr.msra.gmra.mrb[54].mxu1 %v27541_v38  ;;  %v7870_v16 = vsel %vm7757_vm6, %v28518_v46, -inf  ;;  %19750 = vmatprep.mubr.msk.f32.mxu0 %vm25178_vm0, %v33928_v36  ;;  %v34125_v46 = vand.u32 4294901760, %v28497_v7 }
 0x37d   : > { %34120 = vst [vmem:[#allocation13_spill] sm:$0xff] %v28528_v14  ;;  %v28539_v26 = vpack.c.bf16 %v34122_v22, %v34121_v54  ;;  %v8151_v61 = vmul.f32 1.442695, %v8063_v20  ;;  %v7897_v38 = vsel %vm7757_vm6, %v28528_v14, -inf  ;;  %20020 = vmatprep.mubr.msk.f32.mxu1 %vm25178_vm0, %v33928_v36  ;;  %22780 = vmatprep.subr.bf16.mxu0 %v33925_v18  ;;  %v34124_v29 = vand.u32 4294901760, %v28493_v45  ;;  %v28554_v54 = vpop.eup %24829  ;;  %v28595_v14 = vld [vmem:[%s25213_s12 + $0x60] sm:$0xff] }
 0x37e   : > { %34127 = vst [vmem:[#allocation18_spill] sm:$0xff] %v28554_v54  ;;  %v8135_v22 = vmul.f32 1.442695, %v8055_v43  ;;  %7898 = vmax.xlane.f32.xlu1 %v7897_v38  ;;  %7871 = vmax.xlane.f32.xlu0 %v7870_v16  ;;  %v4763_v20 = vpop.f32.mrb[40].mxu0  ;;  %v28559_v60 = vpop.eup %24831  ;;  %v8064_v47 = vmul.f32 0.125, %v7992_v9  ;;  %v28567_v38 = vand.u32 4294901760, %v8489_v12 }
 0x37f   : > { %34123 = vst [vmem:[#allocation15_spill] sm:$0xff] %v28539_v26  ;;  %v28552_v5 = vpack.c.bf16 %v34125_v46, %v34124_v29  ;;  %34128 = vst [vmem:[#allocation19_spill] sm:$0xff] %v28559_v60  ;;  %v28563_v29 = vsel %vm26712_vm9, %v4763_v20, -1e+30  ;;  %v5684_v43 = vpop.f32.mrb[40].mxu1  ;;  %22852 = vmatprep.subr.bf16.mxu1 %v33925_v18  ;;  %v19215_v16 = vpop.f32.mrb[41].mxu0  ;;  %19751 = vmatmul.mubr.f32.gmra.mrb[56].mxu0 %v27538_v52  ;;  %24839 = vpow2.f32 %v8151_v61 }
 0x380   : > { %34130 = vst [vmem:[#allocation24_spill] sm:$0xff] %v28563_v29  ;;  %34131 = vst [vmem:[#allocation27_spill] sm:$0xff] %v28567_v38  ;;  %v28571_v42 = vsel %vm26712_vm9, %v5684_v43, -1e+30  ;;  %v19485_v27 = vpop.f32.mrb[41].mxu1  ;;  %20021 = vmatmul.mubr.f32.gmra.mrb[56].mxu1 %v27544_v15  ;;  %22782 = vmatpush3.bf16.msra.mxu0 %v28539_v26  ;;  %v7873_v9 = vsel %vm7757_vm6, %v28563_v29, -inf  ;;  %24841 = vpow2.f32 %v8135_v22 }
 0x381   : > { %34126 = vst [vmem:[#allocation16_spill] sm:$0xff] %v28552_v5  ;;  %34132 = vst [vmem:[#allocation28_spill] sm:$0xff] %v28571_v42  ;;  %v28578_v20 = vld [vmem:[%s25213_s12 + $0x10] sm:$0xff]  ;;  %v28582_v52 = vld [vmem:[%s25213_s12 + $0x18] sm:$0xff]  ;;  %22854 = vmatpush3.bf16.msra.mxu1 %v28552_v5  ;;  %v7900_v43 = vsel %vm7757_vm6, %v28571_v42, -inf  ;;  %19753 = vmatprep.mubr.msk.f32.mxu0 %vm25178_vm0, %v33928_v36  ;;  %v34133_v61 = vand.u32 4294901760, %v28508_v62 }
 0x382   : > { %v28591_v15 = vld [vmem:[%s25213_s12 + $0x58] sm:$0xff]  ;;  %7901 = vmax.xlane.f32.xlu1 %v7900_v43  ;;  %7874 = vmax.xlane.f32.xlu0 %v7873_v9  ;;  %v4769_v57 = vpop.f32.mrb[42].mxu0  ;;  %v34134_v42 = vand.u32 4294901760, %v28511_v32  ;;  %v9413_v27 = vsel %vm7757_vm6, %v28489_v58, 0  ;;  %v8153_v43 = vmul.f32 1.442695, %v8064_v47 }
 0x383   : > { %v28601_v29 = vsub.f32 %v28508_v62, %v34133_v61  ;;  %v28614_v9 = vsel %vm16150_vm10, %v4769_v57, -1e+30  ;;  %v5690_v16 = vpop.f32.mrb[42].mxu1  ;;  %20023 = vmatprep.mubr.msk.f32.mxu1 %vm25178_vm0, %v33928_v36  ;;  %v19218_v61 = vpop.f32.mrb[43].mxu0  ;;  %19754 = vmatmul.mubr.f32.gmra.mrb[58].mxu0 %v27608_v17  ;;  %v34137_v57 = vand.u32 4294901760, %v28578_v20  ;;  %v34138_v22 = vand.u32 4294901760, %v28582_v52 }
 0x384   : > { %v28606_v46 = vsub.f32 %v28511_v32, %v34134_v42  ;;  %34135 = vst [vmem:[#allocation29_spill] sm:$0xff] %v28614_v9  ;;  %v28621_v42 = vsel %vm16150_vm10, %v5690_v16, -1e+30  ;;  %v19488_v58 = vpop.f32.mrb[43].mxu1  ;;  %20024 = vmatmul.mubr.f32.gmra.mrb[58].mxu1 %v27614_v63  ;;  %v7876_v47 = vsel %vm7757_vm6, %v28614_v9, -inf  ;;  %19756 = vmatprep.mubr.msk.f32.mxu0 %vm25178_vm0, %v33928_v36  ;;  %v28635_v17 = vsub.f32 %v8489_v12, %v28567_v38  ;;  %v28637_v16 = vpop.eup %24833  ;;  %v28677_v32 = vld [vmem:[%s25213_s12 + $0x28] sm:$0xff] }
 0x385   : > { %34136 = vst [vmem:[#allocation30_spill] sm:$0xff] %v28621_v42  ;;  %v28632_v61 = vpack.c.bf16 %v34138_v22, %v34137_v57  ;;  %34140 = vst [vmem:[#allocation57_spill] sm:$0xff] %v28637_v16  ;;  %v7903_v63 = vsel %vm7757_vm6, %v28621_v42, -inf  ;;  %20026 = vmatprep.mubr.msk.f32.mxu1 %vm25178_vm0, %v33928_v36  ;;  %22783 = vmatprep.subr.bf16.mxu0 %v33925_v18  ;;  %v34141_v58 = vand.u32 4294901760, %v28591_v15  ;;  %v34142_v9 = vand.u32 4294901760, %v28595_v14 }
 0x386   : > { %v28650_v57 = vand.u32 4294901760, %v9413_v27  ;;  %v28652_v12 = vand.u32 4294901760, %v8492_v51  ;;  %7904 = vmax.xlane.f32.xlu1 %v7903_v63  ;;  %7877 = vmax.xlane.f32.xlu0 %v7876_v47  ;;  %v4775_v22 = vpop.f32.mrb[44].mxu0  ;;  %24843 = vpow2.f32 %v8153_v43  ;;  %v34152_v62 = vand.u32 4294901760, %v28482_v28 }
 0x387   : > { %34139 = vst [vmem:[#allocation56_spill] sm:$0xff] %v28632_v61  ;;  %v28648_v48 = vpack.c.bf16 %v34142_v9, %v34141_v58  ;;  %v28662_v9 = vsel %vm7757_vm6, %v28554_v54, 0  ;;  %v28664_v58 = vpop.eup %24835  ;;  %v28668_v47 = vsel %vm26797_vm12, %v4775_v22, -1e+30  ;;  %v5696_v42 = vpop.f32.mrb[44].mxu1  ;;  %22855 = vmatprep.subr.bf16.mxu1 %v33925_v18  ;;  %19757 = vmatmul.mubr.f32.gmra.mrb[60].mxu0 %v27611_v39  ;;  %v34153_v63 = vand.u32 4294901760, %v28486_v34 }
 0x388   : > { %34144 = vst [vmem:[#allocation59_spill] sm:$0xff] %v28650_v57  ;;  %34145 = vst [vmem:[#allocation60_spill] sm:$0xff] %v28652_v12  ;;  %v19221_v49 = vpop.f32.mrb[45].mxu0  ;;  %v28682_v43 = vsel %vm26797_vm12, %v5696_v42, -1e+30  ;;  %v19491_v22 = vpop.f32.mrb[45].mxu1  ;;  %20027 = vmatmul.mubr.f32.gmra.mrb[60].mxu1 %v27617_v53  ;;  %22785 = vmatpush3.bf16.msra.mxu0 %v28632_v61  ;;  %v28708_v54 = vsub.f32 %v8492_v51, %v28652_v12 }
 0x389   : > { %34143 = vst [vmem:[#allocation58_spill] sm:$0xff] %v28648_v48  ;;  %34146 = vst [vmem:[#allocation61_spill] sm:$0xff] %v28664_v58  ;;  %v7879_v39 = vsel %vm7757_vm6, %v28668_v47, -inf  ;;  %v28689_v49 = vld [vmem:[%s25213_s12 + $0x68] sm:$0xff]  ;;  %v28696_v11 = vpop.eup %24837  ;;  %22857 = vmatpush3.bf16.msra.mxu1 %v28648_v48  ;;  %v7906_v53 = vsel %vm7757_vm6, %v28682_v43, -inf  ;;  %19759 = vmatprep.mubr.msk.f32.mxu0 %vm25178_vm0, %v33928_v36  ;;  %v28705_v22 = vsub.f32 %v9413_v27, %v28650_v57  ;;  %v28721_v42 = vand.u32 4294901760, %v28658_v21 }
 0x38a   : > { %34148 = vst [vmem:[#allocation62_spill] sm:$0xff] %v28668_v47  ;;  %34149 = vst [vmem:[#allocation63_spill] sm:$0xff] %v28682_v43  ;;  %v28713_v47 = vsub.f32 %v28482_v28, %v34152_v62  ;;  %v28718_v43 = vsub.f32 %v28486_v34, %v34153_v63  ;;  %7907 = vmax.xlane.f32.xlu1 %v7906_v53  ;;  %7880 = vmax.xlane.f32.xlu0 %v7879_v39  ;;  %v4781_v48 = vpop.f32.mrb[46].mxu0  ;;  %v28724_v27 = vand.u32 4294901760, %v28662_v9  ;;  %v28726_v51 = vpop.eup %24839  ;;  %v28800_v12 = vld [vmem:[%s25213_s12 + $0x80] sm:$0xff] }
 0x38b   : > { %34150 = vst [vmem:[#allocation64_spill] sm:$0xff] %v28696_v11  ;;  %34151 = vst [vmem:[#allocation65_spill] sm:$0xff] %v28705_v22  ;;  %v34156_v61 = vand.u32 4294901760, %v28493_v45  ;;  %v34157_v62 = vand.u32 4294901760, %v28497_v7  ;;  %v28740_v63 = vsel %vm16151_vm13, %v4781_v48, -1e+30  ;;  %20029 = vmatprep.mubr.msk.f32.mxu1 %vm25178_vm0, %v33928_v36  ;;  %19760 = vmatmul.mubr.f32.gmra.mrb[62].mxu0 %v27684_v56 }
 0x38c   : > { %34154 = vst [vmem:[#allocation66_spill] sm:$0xff] %v28724_v27  ;;  %34155 = vst [vmem:[#allocation67_spill] sm:$0xff] %v28726_v51  ;;  %v5702_v39 = vpop.f32.mrb[46].mxu1  ;;  %v19224_v53 = vpop.f32.mrb[47].mxu0  ;;  %20030 = vmatmul.mubr.f32.gmra.mrb[62].mxu1 %v27690_v8  ;;  %22786 = vmatprep.subr.bf16.mxu0 %v33925_v18  ;;  %v7882_v56 = vsel %vm7757_vm6, %v28740_v63, -inf  ;;  %v34169_v4 = vand.u32 4294901760, %v28591_v15 }
 0x38d   : > { %v28731_v28 = vsub.f32 %v28493_v45, %v34156_v61  ;;  %v28736_v34 = vsub.f32 %v28497_v7, %v34157_v62  ;;  %34158 = vst [vmem:[#allocation68_spill] sm:$0xff] %v28740_v63  ;;  %v34159_v45 = vand.u32 4294901760, %v28673_v37  ;;  %v34160_v61 = vand.u32 4294901760, %v28677_v32  ;;  %v19494_v26 = vpop.f32.mrb[47].mxu1  ;;  %22858 = vmatprep.subr.bf16.mxu1 %v33925_v18  ;;  %19762 = vmatprep.mubr.msk.f32.mxu0 %vm25178_vm0, %v33928_v36 }
 0x38e   : > { %v34162_v7 = vand.u32 4294901760, %v28578_v20  ;;  %v28758_v62 = vsel %vm16151_vm13, %v5702_v39, -1e+30  ;;  %v34164_v53 = vand.u32 4294901760, %v28689_v49  ;;  %v34168_v39 = vand.u32 4294901760, %v28582_v52  ;;  %7883 = vmax.xlane.f32.xlu0 %v7882_v56  ;;  %20032 = vmatprep.mubr.msk.f32.mxu1 %vm25178_vm0, %v33928_v36 }
 0x38f   : > { %v28749_v5 = vpack.c.bf16 %v34160_v61, %v34159_v45  ;;  %34163 = vst [vmem:[#allocation70_spill] sm:$0xff] %v28758_v62  ;;  %v34165_v45 = vand.u32 4294901760, %v28693_v10  ;;  %v7909_v8 = vsel %vm7757_vm6, %v28758_v62, -inf  ;;  %v28796_v62 = vld [vmem:[%s25213_s12 + $0x78] sm:$0xff]  ;;  %v34170_v63 = vand.u32 4294901760, %v28595_v14  ;;  %v5708_v56 = vpop.f32.mrb[48].mxu1  ;;  %19763 = vmatmul.mubr.f32.gmra.mrb[64].mxu0 %v27687_v59 }
 0x390   : > { %v28754_v48 = vsub.f32 %v28578_v20, %v34162_v7  ;;  %v28770_v20 = vpop.eup %24841  ;;  %v28775_v26 = vsub.f32 %v28582_v52, %v34168_v39  ;;  %v28783_v7 = vld [vmem:[%s25213_s12 + $0x30] sm:$0xff]  ;;  %v28793_v52 = vsub.f32 %v28591_v15, %v34169_v4  ;;  %7910 = vmax.xlane.f32.xlu1 %v7909_v8  ;;  %v4787_v39 = vpop.f32.mrb[48].mxu0  ;;  %v28820_v19 = vsel %vm26881_vm14, %v5708_v56, -1e+30  ;;  %20033 = vmatmul.mubr.f32.gmra.mrb[64].mxu1 %v27695_v31 }
 0x391   : > { %34161 = vst [vmem:[#allocation69_spill] sm:$0xff] %v28749_v5  ;;  %v28768_v61 = vpack.c.bf16 %v34165_v45, %v34164_v53  ;;  %34167 = vst [vmem:[#allocation72_spill] sm:$0xff] %v28770_v20  ;;  %v28787_v45 = vld [vmem:[%s25213_s12 + $0x38] sm:$0xff]  ;;  %v28807_v38 = vsub.f32 %v28595_v14, %v34170_v63  ;;  %v28811_v15 = vsel %vm26881_vm14, %v4787_v39, -1e+30  ;;  %22788 = vmatpush3.bf16.msra.mxu0 %v28749_v5  ;;  %v19227_v8 = vpop.f32.mrb[49].mxu0  ;;  %19765 = vmatprep.mubr.msk.f32.mxu0 %vm25178_vm0, %v33928_v36 }
 0x392   : > { %34172 = vst [vmem:[#allocation73_spill] sm:$0xff] %v28811_v15  ;;  %34173 = vst [vmem:[#allocation74_spill] sm:$0xff] %v28820_v19  ;;  %v19497_v14 = vpop.f32.mrb[49].mxu1  ;;  %v7885_v63 = vsel %vm7757_vm6, %v28811_v15, -inf  ;;  %v28827_v8 = vpop.eup %24843  ;;  %v34175_v53 = vand.u32 4294901760, %v28673_v37  ;;  %v34176_v56 = vand.u32 4294901760, %v28677_v32  ;;  %20035 = vmatprep.mubr.msk.f32.mxu1 %vm25178_vm0, %v33928_v36  ;;  %22789 = vmatprep.subr.bf16.mxu0 %v33925_v18 }
 0x393   : > { %34166 = vst [vmem:[#allocation71_spill] sm:$0xff] %v28768_v61  ;;  %22860 = vmatpush3.bf16.msra.mxu1 %v28768_v61  ;;  %34174 = vst [vmem:[#allocation75_spill] sm:$0xff] %v28827_v8  ;;  %v7912_v59 = vsel %vm7757_vm6, %v28820_v19, -inf  ;;  %v34177_v14 = vand.u32 4294901760, %v28783_v7  ;;  %v34178_v39 = vand.u32 4294901760, %v28787_v45  ;;  %7886 = vmax.xlane.f32.xlu0 %v7885_v63  ;;  %v4793_v31 = vpop.f32.mrb[50].mxu0 }
 0x394   : > { %v28832_v57 = vsub.f32 %v28673_v37, %v34175_v53  ;;  %v28837_v4 = vsub.f32 %v28677_v32, %v34176_v56  ;;  %v34180_v53 = vand.u32 4294901760, %v28689_v49  ;;  %7913 = vmax.xlane.f32.xlu1 %v7912_v59  ;;  %v34181_v56 = vand.u32 4294901760, %v28796_v62  ;;  %v5714_v63 = vpop.f32.mrb[50].mxu1  ;;  %v19230_v59 = vpop.f32.mrb[51].mxu0  ;;  %19766 = vmatmul.mubr.f32.gmra.mrb[66].mxu0 %v27758_v2 }
 0x395   : > { %v28848_v37 = vpack.c.bf16 %v34178_v39, %v34177_v14  ;;  %v34182_v19 = vand.u32 4294901760, %v28800_v12  ;;  %v34184_v61 = vand.u32 4294901760, %v28713_v47  ;;  %v28868_v39 = vsel %vm7757_vm6, %v28559_v60, 0  ;;  %v19500_v1 = vpop.f32.mrb[51].mxu1  ;;  %22861 = vmatprep.subr.bf16.mxu1 %v33925_v18  ;;  %20036 = vmatmul.mubr.f32.gmra.mrb[66].mxu1 %v27766_v23 }
 0x396   : > { %v28853_v32 = vsub.f32 %v28689_v49, %v34180_v53  ;;  %v28872_v49 = vsel %vm16152_vm15, %v4793_v31, -1e+30  ;;  %v28889_v60 = vsel %vm16152_vm15, %v5714_v63, -1e+30  ;;  %v4799_v23 = vpop.f32.mrb[52].mxu0  ;;  %19768 = vmatprep.mubr.msk.f32.mxu0 %vm25178_vm0, %v33928_v36  ;;  %20038 = vmatprep.mubr.msk.f32.mxu1 %vm25178_vm0, %v33928_v36  ;;  %v34201_v6 = vand.u32 4294901760, %v28796_v62 }
 0x397   : > { %34179 = vst [vmem:[#allocation76_spill] sm:$0xff] %v28848_v37  ;;  %v28859_v15 = vpack.c.bf16 %v34182_v19, %v34181_v56  ;;  %v28864_v5 = vsub.f32 %v28713_v47, %v34184_v61  ;;  %34185 = vst [vmem:[#allocation78_spill] sm:$0xff] %v28872_v49  ;;  %v25113_v19 = vld [vmem:[%s25213_s12 + $0x40] sm:$0xf]  ;;  %v34186_v61 = vand.u32 4294901760, %v28718_v43  ;;  %v34187_v56 = vand.u32 4294901760, %v28731_v28  ;;  %22791 = vmatpush3.bf16.msra.mxu0 %v28848_v37 }
 0x398   : > { %v28879_v14 = vsel %vm8506_vm3, %v25113_v19, 0  ;;  %34188 = vst [vmem:[#allocation79_spill] sm:$0xff] %v28889_v60  ;;  %v7888_v59 = vsel %vm7757_vm6, %v28872_v49, -inf  ;;  %v34189_v19 = vand.u32 4294901760, %v28736_v34  ;;  %v7915_v1 = vsel %vm7757_vm6, %v28889_v60, -inf  ;;  %19769 = vmatmul.mubr.f32.gmra.mrb[68].mxu0 %v27761_v24  ;;  %20060 = vmatprep.subr.mxu0 %v33928_v36 }
 0x399   : > { %34183 = vst [vmem:[#allocation77_spill] sm:$0xff] %v28859_v15  ;;  %v8684_v53 = vsub.f32 %v28718_v43, %v34186_v61  ;;  %v9600_v31 = vsub.f32 %v28731_v28, %v34187_v56  ;;  %v34190_v49 = vand.u32 4294901760, %v28693_v10  ;;  %22863 = vmatpush3.bf16.msra.mxu1 %v28859_v15  ;;  %7916 = vmax.xlane.f32.xlu1 %v7915_v1  ;;  %v28917_v60 = vsel %vm8506_vm3, %v25114_v13, 0  ;;  %v19233_v1 = vpop.f32.mrb[53].mxu0 }
 0x39a   : > { %v9607_v61 = vsub.f32 %v28736_v34, %v34189_v19  ;;  %v28913_v19 = vand.u32 4294901760, %v28879_v14  ;;  %v8678_v63 = vand.u32 4294901760, %v28864_v5  ;;  %v34192_v56 = vand.u32 4294901760, %v28783_v7  ;;  %7889 = vmax.xlane.f32.xlu0 %v7888_v59  ;;  %20039 = vmatmul.mubr.f32.gmra.mrb[68].mxu1 %v27769_v0 }
 0x39b   : > { %v28909_v25 = vsub.f32 %v28693_v10, %v34190_v49  ;;  %v28927_v10 = vsel %vm16152_vm15, %v4799_v23, -1e+30  ;;  %v5720_v49 = vpop.f32.mrb[52].mxu1  ;;  %v8685_v15 = vand.u32 4294901760, %v8684_v53  ;;  %v9601_v13 = vand.u32 4294901760, %v9600_v31  ;;  %19771 = vmatprep.mubr.msk.f32.mxu0 %vm25178_vm0, %v33928_v36  ;;  %20041 = vmatprep.mubr.msk.f32.mxu1 %vm25178_vm0, %v33928_v36 }
 0x39c   : > { %34191 = vst [vmem:[#allocation80_spill] sm:$0xff] %v28913_v19  ;;  %v28923_v2 = vsub.f32 %v28783_v7, %v34192_v56  ;;  %34193 = vst [vmem:[#allocation81_spill] sm:$0xff] %v28927_v10  ;;  %v28933_v5 = vsel %vm16152_vm15, %v5720_v49, -1e+30  ;;  %v19503_v7 = vpop.f32.mrb[53].mxu1  ;;  %v7891_v59 = vsel %vm7782_vm2, %v28927_v10, -inf  ;;  %19772 = vmatmul.mubr.f32.gmra.mrb[70].mxu0 %v27913_v35  ;;  %20330 = vmatprep.subr.mxu1 %v33928_v36 }
 0x39d   : > { %34194 = vst [vmem:[#allocation82_spill] sm:$0xff] %v28933_v5  ;;  %v9608_v56 = vand.u32 4294901760, %v9607_v61  ;;  %v34195_v23 = vand.u32 4294901760, %v28754_v48  ;;  %v7918_v53 = vsel %vm7782_vm2, %v28933_v5, -inf  ;;  %v34196_v31 = vand.u32 4294901760, %v28775_v26  ;;  %20061 = vmatpush3.msra.mxu0 %v28913_v19  ;;  %20062 = vmatprep.mubr.msk.f32.mxu0 %vm25178_vm0, %v33928_v36 }
 0x39e   : > { %v34197_v49 = vand.u32 4294901760, %v28793_v52  ;;  %v34198_v7 = vand.u32 4294901760, %v28807_v38  ;;  %v34199_v0 = vand.u32 4294901760, %v28787_v45  ;;  %7919 = vmax.xlane.f32.xlu1 %v7918_v53  ;;  %v28965_v5 = vand.u32 4294901760, %v28917_v60  ;;  %7892 = vmax.xlane.f32.xlu0 %v7891_v59 }
 0x39f   : > { %v8691_v1 = vsub.f32 %v28754_v48, %v34195_v23  ;;  %v8698_v24 = vsub.f32 %v28775_v26, %v34196_v31  ;;  %v34202_v37 = vand.u32 4294901760, %v28800_v12  ;;  %v22865_v31 = vpack.c.bf16 %v9608_v56, %v9601_v13  ;;  %20042 = vmatmul.mubr.f32.gmra.mrb[70].mxu1 %v27918_v30  ;;  %22792 = vmatprep.subr.bf16.mxu0 %v33925_v18 }
 0x3a0   : > { %v9614_v61 = vsub.f32 %v28793_v52, %v34197_v49  ;;  %v9621_v23 = vsub.f32 %v28807_v38, %v34198_v7  ;;  %v28960_v10 = vsub.f32 %v28787_v45, %v34199_v0  ;;  %34200 = vst [vmem:[#allocation83_spill] sm:$0xff] %v28965_v5  ;;  %v28972_v7 = vsub.f32 %v28796_v62, %v34201_v6 }
 0x3a1   : > { %v28977_v45 = vsub.f32 %v28800_v12, %v34202_v37  ;;  %v22793_v49 = vpack.c.bf16 %v8685_v15, %v8678_v63  ;;  %v34203_v6 = vand.u32 4294901760, %v28635_v17  ;;  %v8692_v37 = vand.u32 4294901760, %v8691_v1  ;;  %20331 = vmatpush3.msra.mxu1 %v28965_v5  ;;  %20332 = vmatprep.mubr.msk.f32.mxu1 %vm25178_vm0, %v33928_v36 }
 0x3a2   : > { %v8699_v59 = vand.u32 4294901760, %v8698_v24  ;;  %v9615_v0 = vand.u32 4294901760, %v9614_v61  ;;  %v9622_v53 = vand.u32 4294901760, %v9621_v23  ;;  %v34204_v35 = vand.u32 4294901760, %v28832_v57  ;;  %22864 = vmatprep.subr.bf16.mxu1 %v33925_v18 }
 0x3a3   : > { %v28987_v62 = vsub.f32 %v28635_v17, %v34203_v6  ;;  %v34205_v63 = vand.u32 4294901760, %v28837_v4  ;;  %v34206_v1 = vand.u32 4294901760, %v28853_v32  ;;  %v34207_v61 = vand.u32 4294901760, %v28909_v25 }
 0x3a4   : > { %v8705_v15 = vsub.f32 %v28832_v57, %v34204_v35  ;;  %v34208_v12 = vand.u32 4294901760, %v28421_v33  ;;  %v29026_v56 = vand.u32 4294901760, %v28868_v39  ;;  %v29032_v35 = vsub.f32 %v28917_v60, %v28965_v5 }
 0x3a5   : > { %v8712_v13 = vsub.f32 %v28837_v4, %v34205_v63  ;;  %v9628_v24 = vsub.f32 %v28853_v32, %v34206_v1  ;;  %v9635_v23 = vsub.f32 %v28909_v25, %v34207_v61  ;;  %v29016_v63 = vsub.f32 %v28879_v14, %v28913_v19 }
 0x3a6   : > { %20063 = vmatmul.mubr.f32.vlgmr.msra.gmra.mrb[72].mxu0 %v34208_v12  ;;  %v29023_v1 = vsub.f32 %v28658_v21, %v28721_v42  ;;  %34209 = vst [vmem:[#allocation84_spill] sm:$0xff] %v29026_v56  ;;  %v8498_v61 = vsel %vm7757_vm6, %v28637_v16, 0  ;;  %v34210_v14 = vand.u32 4294901760, %v28438_v41  ;;  %v22796_v33 = vpack.c.bf16 %v8699_v59, %v8692_v37 }
 0x3a7   : > { %20065 = vmatprep.mubr.msk.f32.mxu0 %vm25178_vm0, %v33928_v36  ;;  %v22868_v12 = vpack.c.bf16 %v9622_v53, %v9615_v0  ;;  %v9422_v21 = vsel %vm7757_vm6, %v28664_v58, 0  ;;  %22794 = vmatpush3.bf16.msra.mxu0 %v22793_v49  ;;  %v8706_v6 = vand.u32 4294901760, %v8705_v15  ;;  %v8713_v30 = vand.u32 4294901760, %v8712_v13 }
 0x3a8   : > { %20333 = vmatmul.mubr.f32.vlgmr.msra.gmra.mrb[72].mxu1 %v34210_v14  ;;  %v34211_v60 = vand.u32 4294901760, %v28923_v2  ;;  %v34212_v41 = vand.u32 4294901760, %v28960_v10  ;;  %22795 = vmatprep.subr.bf16.mxu0 %v33925_v18  ;;  %v9629_v53 = vand.u32 4294901760, %v9628_v24  ;;  %v9636_v0 = vand.u32 4294901760, %v9635_v23 }
 0x3a9   : > { %20335 = vmatprep.mubr.msk.f32.mxu1 %vm25178_vm0, %v33928_v36  ;;  %22866 = vmatpush3.bf16.msra.mxu1 %v22865_v31  ;;  %v34213_v37 = vand.u32 4294901760, %v28972_v7  ;;  %v34214_v49 = vand.u32 4294901760, %v28977_v45  ;;  %v34215_v13 = vand.u32 4294901760, %v28473_v40  ;;  %v29064_v23 = vsub.f32 %v28662_v9, %v28724_v27 }
 0x3aa   : > { %v8719_v16 = vsub.f32 %v28923_v2, %v34211_v60  ;;  %v8726_v14 = vsub.f32 %v28960_v10, %v34212_v41  ;;  %22867 = vmatprep.subr.bf16.mxu1 %v33925_v18  ;;  %v34216_v60 = vand.u32 4294901760, %v28705_v22  ;;  %v29068_v41 = vsub.f32 %v28868_v39, %v29026_v56 }
 0x3ab   : > { %v9642_v59 = vsub.f32 %v28972_v7, %v34213_v37  ;;  %v9649_v15 = vsub.f32 %v28977_v45, %v34214_v49  ;;  %20066 = vmatmul.mubr.f32.gmra.mrb[74].mxu0 %v34215_v13  ;;  %v34217_v37 = vand.u32 4294901760, %v28505_v55  ;;  %v29075_v49 = vand.u32 4294901760, %v8498_v61 }
 0x3ac   : > { %v9539_v31 = vsub.f32 %v28705_v22, %v34216_v60  ;;  %20068 = vmatprep.mubr.msk.f32.mxu0 %vm25178_vm0, %v33928_v36  ;;  %v29077_v13 = vand.u32 4294901760, %v9422_v21  ;;  %v8501_v9 = vsel %vm7757_vm6, %v28696_v11, 0  ;;  %22797 = vmatpush3.bf16.msra.mxu0 %v22796_v33  ;;  %v22799_v39 = vpack.c.bf16 %v8713_v30, %v8706_v6 }
 0x3ad   : > { %20336 = vmatmul.mubr.f32.gmra.mrb[74].mxu1 %v34217_v37  ;;  %34218 = vst [vmem:[#allocation85_spill] sm:$0xff] %v29075_v49  ;;  %v8720_v60 = vand.u32 4294901760, %v8719_v16  ;;  %v8727_v55 = vand.u32 4294901760, %v8726_v14  ;;  %v33601_v37 = vand.u32 4294901760, %v29016_v63  ;;  %22798 = vmatprep.subr.bf16.mxu0 %v33925_v18  ;;  %v22871_v40 = vpack.c.bf16 %v9636_v0, %v9629_v53 }
 0x3ae   : > { %34219 = vst [vmem:[#allocation86_spill] sm:$0xff] %v29077_v13  ;;  %20338 = vmatprep.mubr.msk.f32.mxu1 %vm25178_vm0, %v33928_v36  ;;  %22869 = vmatpush3.bf16.msra.mxu1 %v22868_v12  ;;  %v9643_v24 = vand.u32 4294901760, %v9642_v59  ;;  %v9650_v58 = vand.u32 4294901760, %v9649_v15  ;;  %v33600_v5 = vand.u32 4294901760, %v29032_v35  ;;  %v34220_v19 = vand.u32 4294901760, %v28601_v29 }
 0x3af   : > { %v8617_v11 = vand.u32 4294901760, %v28987_v62  ;;  %v9540_v22 = vand.u32 4294901760, %v9539_v31  ;;  %v34221_v30 = vand.u32 4294901760, %v28708_v54  ;;  %22870 = vmatprep.subr.bf16.mxu1 %v33925_v18  ;;  %v9425_v6 = vsel %vm7757_vm6, %v28726_v51, 0  ;;  %v34246_v51 = vld [vmem:[#allocation65_spill] sm:$0xff] }
 0x3b0   : > { %20069 = vmatmul.mubr.f32.gmra.mrb[76].mxu0 %v34220_v19  ;;  %v34222_v33 = vand.u32 4294901760, %v28606_v46  ;;  %v34223_v29 = vand.u32 4294901760, %v29023_v1  ;;  %v33599_v62 = vand.u32 4294901760, %v29064_v23  ;;  %v33598_v12 = vand.u32 4294901760, %v29068_v41 }
 0x3b1   : > { %v8626_v16 = vsub.f32 %v28708_v54, %v34221_v30  ;;  %20071 = vmatprep.mubr.msk.f32.mxu0 %vm25178_vm0, %v33928_v36  ;;  %v29105_v14 = vsub.f32 %v8498_v61, %v29075_v49  ;;  %22800 = vmatpush3.bf16.msra.mxu0 %v22799_v39  ;;  %v29110_v46 = vsub.f32 %v9422_v21, %v29077_v13  ;;  %v29112_v0 = vand.u32 4294901760, %v8501_v9 }
 0x3b2   : > { %20339 = vmatmul.mubr.f32.gmra.mrb[76].mxu1 %v34222_v33  ;;  %v9549_v19 = vsub.f32 %v29023_v1, %v34223_v29  ;;  %v22802_v53 = vpack.c.bf16 %v8727_v55, %v8720_v60  ;;  %v8733_v59 = vsub.f32 %v29016_v63, %v33601_v37  ;;  %22801 = vmatprep.subr.bf16.mxu0 %v33925_v18  ;;  %v29118_v61 = vand.u32 4294901760, %v9425_v6  ;;  %v34245_v37 = vld [vmem:[#allocation71_spill] sm:$0xff] }
 0x3b3   : > { %20341 = vmatprep.mubr.msk.f32.mxu1 %vm25178_vm0, %v33928_v36  ;;  %34224 = vst [vmem:[#allocation87_spill] sm:$0xff] %v29112_v0  ;;  %22872 = vmatpush3.bf16.msra.mxu1 %v22871_v40  ;;  %v22874_v15 = vpack.c.bf16 %v9650_v58, %v9643_v24  ;;  %v8504_v31 = vsel %vm7757_vm6, %v28770_v20, 0  ;;  %v9656_v21 = vsub.f32 %v29032_v35, %v33600_v5  ;;  %v9428_v39 = vsel %vm7757_vm6, %v28827_v8, 0  ;;  %v34244_v5 = vld [vmem:[#allocation69_spill] sm:$0xff]  ;;  %v34247_v8 = vld [vmem:[#allocation76_spill] sm:$0xff] }
 0x3b4   : > { %34225 = vst [vmem:[#allocation88_spill] sm:$0xff] %v29118_v61  ;;  %20072 = vmatmul.mubr.f32.gmra.mrb[78].mxu0 %v8617_v11  ;;  %22873 = vmatprep.subr.bf16.mxu1 %v33925_v18  ;;  %v8627_v58 = vand.u32 4294901760, %v8626_v16  ;;  %v9550_v24 = vand.u32 4294901760, %v9549_v19  ;;  %v8636_v40 = vsub.f32 %v29064_v23, %v33599_v62  ;;  %v9559_v60 = vsub.f32 %v29068_v41, %v33598_v12  ;;  %v34242_v12 = vld [vmem:[#allocation7_spill] sm:$0xff]  ;;  %v34243_v62 = vld [vmem:[#allocation8_spill] sm:$0xff] }
 0x3b5   : > { %20074 = vmatprep.mubr.msk.f32.mxu0 %vm25178_vm0, %v33928_v36  ;;  %v33597_v11 = vand.u32 4294901760, %v29105_v14  ;;  %22803 = vmatpush3.bf16.msra.mxu0 %v22802_v53  ;;  %v29142_v55 = vand.u32 4294901760, %v8504_v31  ;;  %v8734_v30 = vand.u32 4294901760, %v8733_v59  ;;  %v33596_v16 = vand.u32 4294901760, %v29110_v46 }
 0x3b6   : > { %20342 = vmatmul.mubr.f32.gmra.mrb[78].mxu1 %v9540_v22  ;;  %v29140_v22 = vsub.f32 %v8501_v9, %v29112_v0  ;;  %v29146_v33 = vsub.f32 %v9425_v6, %v29118_v61  ;;  %20105 = vmatprep.subr.mxu0 %v33928_v36  ;;  %v29149_v29 = vand.u32 4294901760, %v9428_v39  ;;  %v9657_v19 = vand.u32 4294901760, %v9656_v21 }
 0x3b7   : > { %20344 = vmatprep.mubr.msk.f32.mxu1 %vm25178_vm0, %v33928_v36  ;;  %34226 = vst [vmem:[#allocation89_spill] sm:$0xff] %v29142_v55  ;;  %22875 = vmatpush3.bf16.msra.mxu1 %v22874_v15  ;;  %v8637_v9 = vand.u32 4294901760, %v8636_v40  ;;  %v8646_v6 = vsub.f32 %v29105_v14, %v33597_v11  ;;  %v29161_v59 = vsub.f32 %v8504_v31, %v29142_v55  ;;  %v9560_v15 = vand.u32 4294901760, %v9559_v60  ;;  %v34241_v11 = vld [vmem:[#allocation58_spill] sm:$0xff] }
 0x3b8   : > { %34227 = vst [vmem:[#allocation90_spill] sm:$0xff] %v29149_v29  ;;  %20075 = vmatmul.mubr.f32.gmra.mrb[80].mxu0 %v8627_v58  ;;  %20375 = vmatprep.subr.mxu1 %v33928_v36  ;;  %v33595_v53 = vand.u32 4294901760, %v29140_v22  ;;  %v9569_v21 = vsub.f32 %v29110_v46, %v33596_v16  ;;  %v33594_v58 = vand.u32 4294901760, %v29146_v33  ;;  %v34240_v16 = vld [vmem:[#allocation56_spill] sm:$0xff]  ;;  %v34251_v20 = vand.u32 4294901760, %v28713_v47 }
 0x3b9   : > { %20077 = vmatprep.mubr.msk.f32.mxu0 %vm25178_vm0, %v33928_v36  ;;  %20106 = vmatpush3.msra.mxu0 %v8734_v30  ;;  %v8647_v31 = vand.u32 4294901760, %v8646_v6 }
 0x3ba   : > { %20345 = vmatmul.mubr.f32.gmra.mrb[80].mxu1 %v9550_v24  ;;  %v29168_v24 = vsub.f32 %v9428_v39, %v29149_v29  ;;  %22804 = vmatprep.subr.bf16.mxu0 %v33925_v18  ;;  %v8656_v40 = vsub.f32 %v29140_v22, %v33595_v53  ;;  %v33593_v39 = vand.u32 4294901760, %v29161_v59  ;;  %v9570_v60 = vand.u32 4294901760, %v9569_v21  ;;  %v34239_v53 = vld [vmem:[#allocation52_spill] sm:$0xff] }
 0x3bb   : > { %20347 = vmatprep.mubr.msk.f32.mxu1 %vm25178_vm0, %v33928_v36  ;;  %20376 = vmatpush3.msra.mxu1 %v9657_v19  ;;  %v9579_v30 = vsub.f32 %v29146_v33, %v33594_v58  ;;  %v34238_v58 = vld [vmem:[#allocation50_spill] sm:$0xff] }
 0x3bc   : > { %20078 = vmatmul.mubr.f32.gmra.mrb[82].mxu0 %v8637_v9  ;;  %22876 = vmatprep.subr.bf16.mxu1 %v33925_v18  ;;  %v33592_v19 = vand.u32 4294901760, %v29168_v24  ;;  %v8657_v9 = vand.u32 4294901760, %v8656_v40  ;;  %v8666_v6 = vsub.f32 %v29161_v59, %v33593_v39  ;;  %v22805_v40 = vpack.c.bf16 %v28718_v43, %v28713_v47  ;;  %v34237_v39 = vld [vmem:[#allocation16_spill] sm:$0xff] }
 0x3bd   : > { %20080 = vmatprep.mubr.msk.f32.mxu0 %vm25178_vm0, %v33928_v36  ;;  %v34257_v47 = vand.u32 4294901760, %v28754_v48 }
 0x3be   : > { %20348 = vmatmul.mubr.f32.gmra.mrb[82].mxu1 %v9560_v15  ;;  %v9580_v15 = vand.u32 4294901760, %v9579_v30  ;;  %v9589_v21 = vsub.f32 %v29168_v24, %v33592_v19  ;;  %v22877_v30 = vpack.c.bf16 %v28736_v34, %v28731_v28  ;;  %v34232_v19 = vld [vmem:[#allocation59_spill] sm:$0xff] }
 0x3bf   : > { %20350 = vmatprep.mubr.msk.f32.mxu1 %vm25178_vm0, %v33928_v36 }
 0x3c0   : > { %20081 = vmatmul.mubr.f32.gmra.mrb[84].mxu0 %v8647_v31  ;;  %v8667_v31 = vand.u32 4294901760, %v8666_v6  ;;  %v22880_v6 = vpack.c.bf16 %v28807_v38, %v28793_v52 }
 0x3c1   : > { %20083 = vmatprep.mubr.msk.f32.mxu0 %vm25178_vm0, %v33928_v36 }
 0x3c2   : > { %20351 = vmatmul.mubr.f32.gmra.mrb[84].mxu1 %v9570_v60  ;;  %v9590_v60 = vand.u32 4294901760, %v9589_v21  ;;  %v22811_v21 = vpack.c.bf16 %v28837_v4, %v28832_v57 }
 0x3c3   : > { %20353 = vmatprep.mubr.msk.f32.mxu1 %vm25178_vm0, %v33928_v36 }
 0x3c4   : > { %20084 = vmatmul.mubr.f32.gmra.mrb[86].mxu0 %v8657_v9  ;;  %v22808_v9 = vpack.c.bf16 %v28775_v26, %v28754_v48 }
 0x3c5   : > { %20086 = vmatprep.mubr.msk.f32.mxu0 %vm25178_vm0, %v33928_v36 }
 0x3c6   : > { %20354 = vmatmul.mubr.f32.gmra.mrb[86].mxu1 %v9580_v15  ;;  %v34228_v15 = vld [vmem:[#allocation48_spill] sm:$0xff] }
 0x3c7   : > { %20356 = vmatprep.mubr.msk.f32.mxu1 %vm25178_vm0, %v33928_v36 }
 0x3c8   : > { %20087 = vmatmul.mubr.f32.gmra.mrb[88].mxu0 %v8667_v31  ;;  %v22883_v31 = vpack.c.bf16 %v28909_v25, %v28853_v32 }
 0x3c9   : > { %20107 = vmatprep.mubr.msk.f32.mxu0 %vm25178_vm0, %v33928_v36 }
 0x3ca   : > { %20357 = vmatmul.mubr.f32.gmra.mrb[88].mxu1 %v9590_v60  ;;  %v34229_v60 = vld [vmem:[#allocation53_spill] sm:$0xff] }
 0x3cb   : > { %20377 = vmatprep.mubr.msk.f32.mxu1 %vm25178_vm0, %v33928_v36 }
 0x3cc   : > { %20108 = vmatmul.mubr.f32.vlgmr.msra.gmra.mrb[72].mxu0 %v28355_v50 }
 0x3cd   : > { %20110 = vmatprep.mubr.msk.f32.mxu0 %vm25178_vm0, %v33928_v36  ;;  %22806 = vmatpush3.bf16.msra.mxu0 %v22805_v40  ;;  %v34230_v40 = vld [vmem:[#allocation54_spill] sm:$0xff] }
 0x3ce   : > { %20378 = vmatmul.mubr.f32.vlgmr.msra.gmra.mrb[72].mxu1 %v28370_v44  ;;  %22807 = vmatprep.subr.bf16.mxu0 %v33925_v18 }
 0x3cf   : > { %20380 = vmatprep.mubr.msk.f32.mxu1 %vm25178_vm0, %v33928_v36  ;;  %22878 = vmatpush3.bf16.msra.mxu1 %v22877_v30  ;;  %v22814_v30 = vpack.c.bf16 %v28960_v10, %v28923_v2 }
 0x3d0   : > { %20111 = vmatmul.mubr.f32.gmra.mrb[74].mxu0 %v28395_v3  ;;  %22879 = vmatprep.subr.bf16.mxu1 %v33925_v18 }
 0x3d1   : > { %20113 = vmatprep.mubr.msk.f32.mxu0 %vm25178_vm0, %v33928_v36  ;;  %22809 = vmatpush3.bf16.msra.mxu0 %v22808_v9  ;;  %v22886_v9 = vpack.c.bf16 %v28977_v45, %v28972_v7 }
 0x3d2   : > { %20381 = vmatmul.mubr.f32.gmra.mrb[74].mxu1 %v34228_v15  ;;  %22810 = vmatprep.subr.bf16.mxu0 %v33925_v18 }
 0x3d3   : > { %20383 = vmatprep.mubr.msk.f32.mxu1 %vm25178_vm0, %v33928_v36  ;;  %22881 = vmatpush3.bf16.msra.mxu1 %v22880_v6  ;;  %v34231_v6 = vld [vmem:[#allocation27_spill] sm:$0xff] }
 0x3d4   : > { %20114 = vmatmul.mubr.f32.gmra.mrb[76].mxu0 %v34229_v60  ;;  %22882 = vmatprep.subr.bf16.mxu1 %v33925_v18 }
 0x3d5   : > { %20116 = vmatprep.mubr.msk.f32.mxu0 %vm25178_vm0, %v33928_v36  ;;  %22812 = vmatpush3.bf16.msra.mxu0 %v22811_v21  ;;  %v34233_v21 = vld [vmem:[#allocation60_spill] sm:$0xff] }
 0x3d6   : > { %20384 = vmatmul.mubr.f32.gmra.mrb[76].mxu1 %v34230_v40  ;;  %22813 = vmatprep.subr.bf16.mxu0 %v33925_v18 }
 0x3d7   : > { %20386 = vmatprep.mubr.msk.f32.mxu1 %vm25178_vm0, %v33928_v36  ;;  %22884 = vmatpush3.bf16.msra.mxu1 %v22883_v31  ;;  %v34234_v31 = vld [vmem:[#allocation44_spill] sm:$0xff] }
 0x3d8   : > { %20117 = vmatmul.mubr.f32.gmra.mrb[78].mxu0 %v34231_v6  ;;  %22885 = vmatprep.subr.bf16.mxu1 %v33925_v18 }
 0x3d9   : > { %20119 = vmatprep.mubr.msk.f32.mxu0 %vm25178_vm0, %v33928_v36  ;;  %22815 = vmatpush3.bf16.msra.mxu0 %v22814_v30  ;;  %v34235_v30 = vld [vmem:[#allocation47_spill] sm:$0xff] }
 0x3da   : > { %20387 = vmatmul.mubr.f32.gmra.mrb[78].mxu1 %v34232_v19  ;;  %20150 = vmatprep.subr.mxu0 %v33928_v36 }
 0x3db   : > { %20389 = vmatprep.mubr.msk.f32.mxu1 %vm25178_vm0, %v33928_v36  ;;  %22887 = vmatpush3.bf16.msra.mxu1 %v22886_v9  ;;  %v34236_v9 = vld [vmem:[#allocation15_spill] sm:$0xff] }
 0x3dc   : > { %20120 = vmatmul.mubr.f32.gmra.mrb[80].mxu0 %v34233_v21  ;;  %20420 = vmatprep.subr.mxu1 %v33928_v36 }
 0x3dd   : > { %20122 = vmatprep.mubr.msk.f32.mxu0 %vm25178_vm0, %v33928_v36  ;;  %20151 = vmatpush3.msra.mxu0 %v29016_v63 }
 0x3de   : > { %20390 = vmatmul.mubr.f32.gmra.mrb[80].mxu1 %v28721_v42  ;;  %22816 = vmatprep.subr.bf16.mxu0 %v33925_v18 }
 0x3df   : > { %20392 = vmatprep.mubr.msk.f32.mxu1 %vm25178_vm0, %v33928_v36  ;;  %20421 = vmatpush3.msra.mxu1 %v29032_v35 }
 0x3e0   : > { %20123 = vmatmul.mubr.f32.gmra.mrb[82].mxu0 %v28724_v27  ;;  %22888 = vmatprep.subr.bf16.mxu1 %v33925_v18 }
 0x3e1   : > { %20125 = vmatprep.mubr.msk.f32.mxu0 %vm25178_vm0, %v33928_v36 }
 0x3e2   : > { %20393 = vmatmul.mubr.f32.gmra.mrb[82].mxu1 %v29026_v56  ;;  %v34254_v56 = vand.u32 4294901760, %v28736_v34  ;;  %v34259_v34 = vand.u32 4294901760, %v28793_v52  ;;  %v34266_v52 = vand.u32 4294901760, %v28909_v25  ;;  %v34270_v25 = vand.u32 4294901760, %v28960_v10 }
 0x3e3   : > { %20395 = vmatprep.mubr.msk.f32.mxu1 %vm25178_vm0, %v33928_v36  ;;  %v34278_v10 = vand.u32 4294901760, %v29032_v35  ;;  %v34281_v35 = vand.u32 4294901760, %v29105_v14 }
 0x3e4   : > { %20126 = vmatmul.mubr.f32.gmra.mrb[84].mxu0 %v29075_v49  ;;  %v34253_v49 = vand.u32 4294901760, %v28731_v28 }
 0x3e5   : > { %20128 = vmatprep.mubr.msk.f32.mxu0 %vm25178_vm0, %v33928_v36 }
 0x3e6   : > { %20396 = vmatmul.mubr.f32.gmra.mrb[84].mxu1 %v29077_v13  ;;  %v22901_v27 = vpack.c.bf16 %v34254_v56, %v34253_v49  ;;  %v34261_v49 = vand.u32 4294901760, %v34238_v58 }
 0x3e7   : > { %20398 = vmatprep.mubr.msk.f32.mxu1 %vm25178_vm0, %v33928_v36 }
 0x3e8   : > { %20129 = vmatmul.mubr.f32.gmra.mrb[86].mxu0 %v29112_v0  ;;  %v34252_v0 = vand.u32 4294901760, %v28718_v43  ;;  %v34258_v43 = vand.u32 4294901760, %v28775_v26  ;;  %v34265_v26 = vand.u32 4294901760, %v28853_v32  ;;  %v34271_v32 = vand.u32 4294901760, %v28972_v7 }
 0x3e9   : > { %20131 = vmatprep.mubr.msk.f32.mxu0 %vm25178_vm0, %v33928_v36  ;;  %v34280_v7 = vand.u32 4294901760, %v29068_v41 }
 0x3ea   : > { %20399 = vmatmul.mubr.f32.gmra.mrb[86].mxu1 %v29118_v61  ;;  %v34250_v61 = vld [vmem:[#allocation83_spill] sm:$0xff]  ;;  %v22829_v13 = vpack.c.bf16 %v34252_v0, %v34251_v20  ;;  %v22832_v28 = vpack.c.bf16 %v34258_v43, %v34257_v47  ;;  %v34260_v20 = vand.u32 4294901760, %v28807_v38  ;;  %v34264_v38 = vand.u32 4294901760, %v28837_v4 }
 0x3eb   : > { %20401 = vmatprep.mubr.msk.f32.mxu1 %vm25178_vm0, %v33928_v36  ;;  %v22907_v0 = vpack.c.bf16 %v34266_v52, %v34265_v26  ;;  %v34285_v47 = vand.u32 4294901760, %v29146_v33 }
 0x3ec   : > { %20132 = vmatmul.mubr.f32.gmra.mrb[88].mxu0 %v29142_v55  ;;  %v34249_v55 = vld [vmem:[#allocation80_spill] sm:$0xff]  ;;  %v22904_v56 = vpack.c.bf16 %v34260_v20, %v34259_v34 }
 0x3ed   : > { %20152 = vmatprep.mubr.msk.f32.mxu0 %vm25178_vm0, %v33928_v36 }
 0x3ee   : > { %20402 = vmatmul.mubr.f32.gmra.mrb[88].mxu1 %v29149_v29  ;;  %v34248_v29 = vld [vmem:[#allocation77_spill] sm:$0xff] }
 0x3ef   : > { %20422 = vmatprep.mubr.msk.f32.mxu1 %vm25178_vm0, %v33928_v36 }
 0x3f0   : > { %20153 = vmatmul.mubr.f32.vlgmr.msra.gmra.mrb[72].mxu0 %v34234_v31 }
 0x3f1   : > { %20155 = vmatprep.mubr.msk.f32.mxu0 %vm25178_vm0, %v33928_v36  ;;  %22818 = vmatpush3.bf16.msra.mxu0 %v34236_v9 }
 0x3f2   : > { %20423 = vmatmul.mubr.f32.vlgmr.msra.gmra.mrb[72].mxu1 %v34235_v30  ;;  %22819 = vmatprep.subr.bf16.mxu0 %v33925_v18 }
 0x3f3   : > { %20425 = vmatprep.mubr.msk.f32.mxu1 %vm25178_vm0, %v33928_v36  ;;  %22890 = vmatpush3.bf16.msra.mxu1 %v34237_v39 }
 0x3f4   : > { %20156 = vmatmul.mubr.f32.gmra.mrb[74].mxu0 %v34238_v58  ;;  %22891 = vmatprep.subr.bf16.mxu1 %v33925_v18  ;;  %v34274_v58 = vand.u32 4294901760, %v34246_v51 }
 0x3f5   : > { %20158 = vmatprep.mubr.msk.f32.mxu0 %vm25178_vm0, %v33928_v36  ;;  %22821 = vmatpush3.bf16.msra.mxu0 %v34240_v16 }
 0x3f6   : > { %20426 = vmatmul.mubr.f32.gmra.mrb[74].mxu1 %v34239_v53  ;;  %22822 = vmatprep.subr.bf16.mxu0 %v33925_v18 }
 0x3f7   : > { %20428 = vmatprep.mubr.msk.f32.mxu1 %vm25178_vm0, %v33928_v36  ;;  %22893 = vmatpush3.bf16.msra.mxu1 %v34241_v11 }
 0x3f8   : > { %20159 = vmatmul.mubr.f32.gmra.mrb[76].mxu0 %v34242_v12  ;;  %22894 = vmatprep.subr.bf16.mxu1 %v33925_v18 }
 0x3f9   : > { %20161 = vmatprep.mubr.msk.f32.mxu0 %vm25178_vm0, %v33928_v36  ;;  %22824 = vmatpush3.bf16.msra.mxu0 %v34244_v5 }
 0x3fa   : > { %20429 = vmatmul.mubr.f32.gmra.mrb[76].mxu1 %v34243_v62  ;;  %22825 = vmatprep.subr.bf16.mxu0 %v33925_v18 }
 0x3fb   : > { %20431 = vmatprep.mubr.msk.f32.mxu1 %vm25178_vm0, %v33928_v36  ;;  %22896 = vmatpush3.bf16.msra.mxu1 %v34245_v37 }
 0x3fc   : > { %20162 = vmatmul.mubr.f32.gmra.mrb[78].mxu0 %v28635_v17  ;;  %22897 = vmatprep.subr.bf16.mxu1 %v33925_v18 }
 0x3fd   : > { %20164 = vmatprep.mubr.msk.f32.mxu0 %vm25178_vm0, %v33928_v36  ;;  %22827 = vmatpush3.bf16.msra.mxu0 %v34247_v8 }
 0x3fe   : > { %20432 = vmatmul.mubr.f32.gmra.mrb[78].mxu1 %v34246_v51  ;;  %20195 = vmatprep.subr.mxu0 %v33928_v36  ;;  %v34277_v51 = vand.u32 4294901760, %v29016_v63  ;;  %v7815_v63 = vpop.xlane.xlu0 %7814 }
 0x3ff   : > { %20434 = vmatprep.mubr.msk.f32.mxu1 %vm25178_vm0, %v33928_v36  ;;  %22899 = vmatpush3.bf16.msra.mxu1 %v34248_v29 }
 0x400   : > { %20165 = vmatmul.mubr.f32.gmra.mrb[80].mxu0 %v28708_v54  ;;  %20465 = vmatprep.subr.mxu1 %v33928_v36 }
 0x401   : > { %20167 = vmatprep.mubr.msk.f32.mxu0 %vm25178_vm0, %v33928_v36  ;;  %20196 = vmatpush3.msra.mxu0 %v34249_v55  ;;  %v34256_v55 = vand.u32 4294901760, %v34235_v30 }
 0x402   : > { %20435 = vmatmul.mubr.f32.gmra.mrb[80].mxu1 %v29023_v1  ;;  %22828 = vmatprep.subr.bf16.mxu0 %v33925_v18 }
 0x403   : > { %20437 = vmatprep.mubr.msk.f32.mxu1 %vm25178_vm0, %v33928_v36  ;;  %20466 = vmatpush3.msra.mxu1 %v34250_v61  ;;  %v34255_v61 = vand.u32 4294901760, %v34234_v31  ;;  %v34284_v31 = vld [vmem:[#allocation14_spill] sm:$0xff] }
 0x404   : > { %20168 = vmatmul.mubr.f32.gmra.mrb[82].mxu0 %v29064_v23  ;;  %22900 = vmatprep.subr.bf16.mxu1 %v33925_v18  ;;  %v7993_v30 = vsub.f32 %v34284_v31, %v7815_v63  ;;  %v34300_v63 = vld [vmem:[#allocation83_spill] sm:$0xff] }
 0x405   : > { %20170 = vmatprep.mubr.msk.f32.mxu0 %vm25178_vm0, %v33928_v36 }
 0x406   : > { %20438 = vmatmul.mubr.f32.gmra.mrb[82].mxu1 %v29068_v41  ;;  %v34283_v41 = vand.u32 4294901760, %v29140_v22  ;;  %v8065_v34 = vmul.f32 0.125, %v7993_v30 }
 0x407   : > { %20440 = vmatprep.mubr.msk.f32.mxu1 %vm25178_vm0, %v33928_v36 }
 0x408   : > { %20171 = vmatmul.mubr.f32.gmra.mrb[84].mxu0 %v29105_v14  ;;  %v7818_v14 = vpop.xlane.xlu0 %7817 }
 0x409   : > { %20173 = vmatprep.mubr.msk.f32.mxu0 %vm25178_vm0, %v33928_v36 }
 0x40a   : > { %20441 = vmatmul.mubr.f32.gmra.mrb[84].mxu1 %v29110_v46 }
 0x40b   : > { %20443 = vmatprep.mubr.msk.f32.mxu1 %vm25178_vm0, %v33928_v36 }
 0x40c   : > { %20174 = vmatmul.mubr.f32.gmra.mrb[86].mxu0 %v29140_v22  ;;  %v34288_v22 = vand.u32 4294901760, %v29168_v24 }
 0x40d   : > { %20176 = vmatprep.mubr.msk.f32.mxu0 %vm25178_vm0, %v33928_v36 }
 0x40e   : > { %20444 = vmatmul.mubr.f32.gmra.mrb[86].mxu1 %v29146_v33 }
 0x40f   : > { %20446 = vmatprep.mubr.msk.f32.mxu1 %vm25178_vm0, %v33928_v36 }
 0x410   : > { %20177 = vmatmul.mubr.f32.gmra.mrb[88].mxu0 %v29161_v59 }
 0x411   : > { %20197 = vmatprep.mubr.msk.f32.mxu0 %vm25178_vm0, %v33928_v36 }
 0x412   : > { %20447 = vmatmul.mubr.f32.gmra.mrb[88].mxu1 %v29168_v24  ;;  %v34289_v24 = vld [vmem:[#allocation22_spill] sm:$0xff] }
 0x413   : > { %20467 = vmatprep.mubr.msk.f32.mxu1 %vm25178_vm0, %v33928_v36 }
 0x414   : > { %20198 = vmatmul.mubr.f32.vlgmr.msra.gmra.mrb[72].mxu0 %v34255_v61  ;;  %v34267_v61 = vand.u32 4294901760, %v34242_v12 }
 0x415   : > { %20200 = vmatprep.mubr.msk.f32.mxu0 %vm25178_vm0, %v33928_v36  ;;  %22830 = vmatpush3.bf16.msra.mxu0 %v22829_v13  ;;  %v34262_v13 = vand.u32 4294901760, %v34239_v53  ;;  %v34273_v53 = vand.u32 4294901760, %v28635_v17  ;;  %v34276_v17 = vand.u32 4294901760, %v29023_v1  ;;  %v34282_v1 = vand.u32 4294901760, %v29110_v46  ;;  %v34286_v46 = vld [vmem:[#allocation20_spill] sm:$0xff] }
 0x416   : > { %20468 = vmatmul.mubr.f32.vlgmr.msra.gmra.mrb[72].mxu1 %v34256_v55  ;;  %22831 = vmatprep.subr.bf16.mxu0 %v33925_v18  ;;  %v34268_v55 = vand.u32 4294901760, %v34243_v62  ;;  %v34272_v62 = vand.u32 4294901760, %v28977_v45  ;;  %v7842_v45 = vpop.xlane.xlu1 %7841 }
 0x417   : > { %20470 = vmatprep.mubr.msk.f32.mxu1 %vm25178_vm0, %v33928_v36  ;;  %22902 = vmatpush3.bf16.msra.mxu1 %v22901_v27  ;;  %v34263_v27 = vand.u32 4294901760, %v28832_v57  ;;  %v34269_v57 = vand.u32 4294901760, %v28923_v2  ;;  %v34275_v2 = vand.u32 4294901760, %v28708_v54  ;;  %v34279_v54 = vand.u32 4294901760, %v29064_v23 }
 0x418   : > { %20201 = vmatmul.mubr.f32.gmra.mrb[74].mxu0 %v34261_v49  ;;  %22903 = vmatprep.subr.bf16.mxu1 %v33925_v18  ;;  %v22910_v12 = vpack.c.bf16 %v34272_v62, %v34271_v32  ;;  %v8002_v43 = vsub.f32 %v34286_v46, %v7842_v45  ;;  %v8155_v49 = vmul.f32 1.442695, %v8065_v34  ;;  %v34295_v62 = vld [vmem:[#allocation26_spill] sm:$0xff]  ;;  %v34304_v46 = vld [vmem:[#allocation84_spill] sm:$0xff] }
 0x419   : > { %20203 = vmatprep.mubr.msk.f32.mxu0 %vm25178_vm0, %v33928_v36  ;;  %22833 = vmatpush3.bf16.msra.mxu0 %v22832_v28  ;;  %v22835_v48 = vpack.c.bf16 %v34264_v38, %v34263_v27  ;;  %v22838_v4 = vpack.c.bf16 %v34270_v25, %v34269_v57  ;;  %v34287_v28 = vand.u32 4294901760, %v29161_v59  ;;  %v34290_v38 = vld [vmem:[#allocation21_spill] sm:$0xff]  ;;  %v34294_v25 = vld [vmem:[#allocation31_spill] sm:$0xff] }
 0x41a   : > { %20471 = vmatmul.mubr.f32.gmra.mrb[74].mxu1 %v34262_v13  ;;  %22834 = vmatprep.subr.bf16.mxu0 %v33925_v18  ;;  %v7845_v23 = vpop.xlane.xlu1 %7844  ;;  %v8074_v20 = vmul.f32 0.125, %v8002_v43  ;;  %24845 = vpow2.f32 %v8155_v49 }
 0x41b   : > { %20473 = vmatprep.mubr.msk.f32.mxu1 %vm25178_vm0, %v33928_v36  ;;  %22905 = vmatpush3.bf16.msra.mxu1 %v22904_v56  ;;  %v7821_v56 = vpop.xlane.xlu0 %7820  ;;  %v8003_v13 = vsub.f32 %v34289_v24, %v7845_v23  ;;  %v34301_v23 = vld [vmem:[#allocation66_spill] sm:$0xff] }
 0x41c   : > { %20204 = vmatmul.mubr.f32.gmra.mrb[76].mxu0 %v34267_v61  ;;  %22906 = vmatprep.subr.bf16.mxu1 %v33925_v18  ;;  %v8173_v59 = vmul.f32 1.442695, %v8074_v20 }
 0x41d   : > { %20206 = vmatprep.mubr.msk.f32.mxu0 %vm25178_vm0, %v33928_v36  ;;  %22836 = vmatpush3.bf16.msra.mxu0 %v22835_v48  ;;  %v7994_v48 = vsub.f32 %v34290_v38, %v7818_v14  ;;  %v34309_v38 = vld [vmem:[#allocation49_spill] sm:$0xff] }
 0x41e   : > { %20474 = vmatmul.mubr.f32.gmra.mrb[76].mxu1 %v34268_v55  ;;  %22837 = vmatprep.subr.bf16.mxu0 %v33925_v18  ;;  %v29476_v33 = vpop.xlane.xlu1 %7847  ;;  %24847 = vpow2.f32 %v8173_v59 }
 0x41f   : > { %20476 = vmatprep.mubr.msk.f32.mxu1 %vm25178_vm0, %v33928_v36  ;;  %22908 = vmatpush3.bf16.msra.mxu1 %v22907_v0  ;;  %v8066_v26 = vmul.f32 0.125, %v7994_v48  ;;  %v29571_v48 = vsel %vm7757_vm6, %v34309_v38, 0.0 }
 0x420   : > { %20207 = vmatmul.mubr.f32.gmra.mrb[78].mxu0 %v34273_v53  ;;  %22909 = vmatprep.subr.bf16.mxu1 %v33925_v18 }
 0x421   : > { %20209 = vmatprep.mubr.msk.f32.mxu0 %vm25178_vm0, %v33928_v36  ;;  %22839 = vmatpush3.bf16.msra.mxu0 %v22838_v4  ;;  %v8157_v55 = vmul.f32 1.442695, %v8066_v26 }
 0x422   : > { %20477 = vmatmul.mubr.f32.gmra.mrb[78].mxu1 %v34274_v58  ;;  %20240 = vmatprep.subr.mxu0 %v33928_v36  ;;  %v7851_v27 = vpop.xlane.xlu1 %7850  ;;  %v34296_v58 = vld [vmem:[#allocation33_spill] sm:$0xff] }
 0x423   : > { %20479 = vmatprep.mubr.msk.f32.mxu1 %vm25178_vm0, %v33928_v36  ;;  %22911 = vmatpush3.bf16.msra.mxu1 %v22910_v12  ;;  %v8005_v4 = vsub.f32 %v34294_v25, %v7851_v27  ;;  %v34315_v25 = vld [vmem:[#allocation86_spill] sm:$0xff] }
 0x424   : > { %20210 = vmatmul.mubr.f32.gmra.mrb[80].mxu0 %v34275_v2  ;;  %20510 = vmatprep.subr.mxu1 %v33928_v36 }
 0x425   : > { %20212 = vmatprep.mubr.msk.f32.mxu0 %vm25178_vm0, %v33928_v36  ;;  %20241 = vmatpush3.msra.mxu0 %v34277_v51 }
 0x426   : > { %20480 = vmatmul.mubr.f32.gmra.mrb[80].mxu1 %v34276_v17  ;;  %22840 = vmatprep.subr.bf16.mxu0 %v33925_v18  ;;  %v7854_v52 = vpop.xlane.xlu1 %7853 }
 0x427   : > { %20482 = vmatprep.mubr.msk.f32.mxu1 %vm25178_vm0, %v33928_v36  ;;  %20511 = vmatpush3.msra.mxu1 %v34278_v10  ;;  %v34298_v10 = vld [vmem:[#allocation80_spill] sm:$0xff] }
 0x428   : > { %20213 = vmatmul.mubr.f32.gmra.mrb[82].mxu0 %v34279_v54  ;;  %22912 = vmatprep.subr.bf16.mxu1 %v33925_v18  ;;  %v8077_v54 = vmul.f32 0.125, %v8005_v4 }
 0x429   : > { %20215 = vmatprep.mubr.msk.f32.mxu0 %vm25178_vm0, %v33928_v36 }
 0x42a   : > { %20483 = vmatmul.mubr.f32.gmra.mrb[82].mxu1 %v34280_v7  ;;  %v7857_v53 = vpop.xlane.xlu1 %7856  ;;  %v34299_v7 = vld [vmem:[#allocation32_spill] sm:$0xff]  ;;  %v8179_v59 = vmul.f32 1.442695, %v8077_v54 }
 0x42b   : > { %20485 = vmatprep.mubr.msk.f32.mxu1 %vm25178_vm0, %v33928_v36 }
 0x42c   : > { %20216 = vmatmul.mubr.f32.gmra.mrb[84].mxu0 %v34281_v35 }
 0x42d   : > { %20218 = vmatprep.mubr.msk.f32.mxu0 %vm25178_vm0, %v33928_v36 }
 0x42e   : > { %20486 = vmatmul.mubr.f32.gmra.mrb[84].mxu1 %v34282_v1 }
 0x42f   : > { %20488 = vmatprep.mubr.msk.f32.mxu1 %vm25178_vm0, %v33928_v36 }
 0x430   : > { %20219 = vmatmul.mubr.f32.gmra.mrb[86].mxu0 %v34283_v41 }
 0x431   : > { %20221 = vmatprep.mubr.msk.f32.mxu0 %vm25178_vm0, %v33928_v36 }
 0x432   : > { %20489 = vmatmul.mubr.f32.gmra.mrb[86].mxu1 %v34285_v47  ;;  %v34303_v47 = vld [vmem:[#allocation35_spill] sm:$0xff] }
 0x433   : > { %20491 = vmatprep.mubr.msk.f32.mxu1 %vm25178_vm0, %v33928_v36  ;;  %v8007_v14 = vsub.f32 %v34303_v47, %v7857_v53  ;;  %v34318_v53 = vld [vmem:[#allocation64_spill] sm:$0xff] }
 0x434   : > { %20222 = vmatmul.mubr.f32.gmra.mrb[88].mxu0 %v34287_v28  ;;  %v34305_v28 = vld [vmem:[#allocation34_spill] sm:$0xff] }
 0x435   : > { %20242 = vmatprep.mubr.msk.f32.mxu0 %vm25178_vm0, %v33928_v36 }
 0x436   : > { %20492 = vmatmul.mubr.f32.gmra.mrb[88].mxu1 %v34288_v22  ;;  %v7860_v22 = vpop.xlane.xlu1 %7859 }
 0x437   : > { %20512 = vmatprep.mubr.msk.f32.mxu1 %vm25178_vm0, %v33928_v36 }
 0x438   : > { %20243 = vmatmul.mubr.f32.vlgmr.msra.gmra.mrb[72].mxu0 %v28355_v50 }
 0x439   : > { %20245 = vmatprep.mubr.msk.f32.mxu0 %vm25178_vm0, %v33928_v36  ;;  %22842 = vmatpush3.bf16.msra.mxu0 %v34236_v9  ;;  %v7824_v9 = vpop.xlane.xlu0 %7823 }
 0x43a   : > { %20513 = vmatmul.mubr.f32.vlgmr.msra.gmra.mrb[72].mxu1 %v28370_v44  ;;  %22843 = vmatprep.subr.bf16.mxu0 %v33925_v18  ;;  %v7996_v12 = vsub.f32 %v34295_v62, %v7824_v9  ;;  %v34317_v62 = vld [vmem:[#allocation37_spill] sm:$0xff] }
 0x43b   : > { %20515 = vmatprep.mubr.msk.f32.mxu1 %vm25178_vm0, %v33928_v36  ;;  %22914 = vmatpush3.bf16.msra.mxu1 %v34237_v39  ;;  %v8075_v39 = vmul.f32 0.125, %v8003_v13  ;;  %v34308_v13 = vld [vmem:[#allocation4_spill] sm:$0xff] }
 0x43c   : > { %20246 = vmatmul.mubr.f32.gmra.mrb[74].mxu0 %v28395_v3  ;;  %22915 = vmatprep.subr.bf16.mxu1 %v33925_v18  ;;  %v8068_v1 = vmul.f32 0.125, %v7996_v12  ;;  %v29567_v27 = vsel %vm7757_vm6, %v34308_v13, 0.0  ;;  %v8008_v12 = vsub.f32 %v34317_v62, %v7860_v22 }
 0x43d   : > { %20248 = vmatprep.mubr.msk.f32.mxu0 %vm25178_vm0, %v33928_v36  ;;  %22845 = vmatpush3.bf16.msra.mxu0 %v34240_v16  ;;  %v34291_v16 = vld [vmem:[#allocation23_spill] sm:$0xff]  ;;  %v7827_v61 = vpop.xlane.xlu0 %7826 }
 0x43e   : > { %20516 = vmatmul.mubr.f32.gmra.mrb[74].mxu1 %v34228_v15  ;;  %22846 = vmatprep.subr.bf16.mxu0 %v33925_v18  ;;  %v7995_v0 = vsub.f32 %v34291_v16, %v7821_v56  ;;  %v7997_v45 = vsub.f32 %v34299_v7, %v7827_v61  ;;  %v34307_v56 = vld [vmem:[#allocation38_spill] sm:$0xff] }
 0x43f   : > { %20518 = vmatprep.mubr.msk.f32.mxu1 %vm25178_vm0, %v33928_v36  ;;  %22917 = vmatpush3.bf16.msra.mxu1 %v34241_v11  ;;  %v8175_v11 = vmul.f32 1.442695, %v8075_v39  ;;  %v29563_v49 = vsel %vm7757_vm6, %v34307_v56, 0.0  ;;  %v8161_v39 = vmul.f32 1.442695, %v8068_v1 }
 0x440   : > { %20249 = vmatmul.mubr.f32.gmra.mrb[76].mxu0 %v34229_v60  ;;  %22918 = vmatprep.subr.bf16.mxu1 %v33925_v18  ;;  %v8067_v32 = vmul.f32 0.125, %v7995_v0  ;;  %v8069_v24 = vmul.f32 0.125, %v7997_v45  ;;  %v34313_v0 = vld [vmem:[#allocation9_spill] sm:$0xff]  ;;  %v29612_v45 = vpop.xlane.xlu1 %7862 }
 0x441   : > { %20251 = vmatprep.mubr.msk.f32.mxu0 %vm25178_vm0, %v33928_v36  ;;  %22848 = vmatpush3.bf16.msra.mxu0 %v34244_v5  ;;  %v34292_v5 = vld [vmem:[#allocation25_spill] sm:$0xff]  ;;  %24849 = vpow2.f32 %v8175_v11  ;;  %v7830_v51 = vpop.xlane.xlu0 %7829  ;;  %v34312_v11 = vld [vmem:[#allocation18_spill] sm:$0xff]  ;;  %v29582_v61 = vsel %vm7757_vm6, %v34313_v0, 0.0  ;;  %v29639_v0 = vld [vmem:[%s25213_s12 + $0x90] sm:$0xff] }
 0x442   : > { %20519 = vmatmul.mubr.f32.gmra.mrb[76].mxu1 %v34230_v40  ;;  %22849 = vmatprep.subr.bf16.mxu0 %v33925_v18  ;;  %v8004_v57 = vsub.f32 %v34292_v5, %v29476_v33  ;;  %24851 = vpow2.f32 %v8157_v55  ;;  %v8159_v35 = vmul.f32 1.442695, %v8067_v32  ;;  %v7998_v34 = vsub.f32 %v34305_v28, %v7830_v51  ;;  %v34306_v33 = vld [vmem:[#allocation40_spill] sm:$0xff] }
 0x443   : > { %20521 = vmatprep.mubr.msk.f32.mxu1 %vm25178_vm0, %v33928_v36  ;;  %22920 = vmatpush3.bf16.msra.mxu1 %v34245_v37  ;;  %v29522_v37 = vpop.eup %24845  ;;  %v29559_v20 = vsel %vm7757_vm6, %v34306_v33, 0.0  ;;  %v29578_v16 = vsel %vm7757_vm6, %v34312_v11, 0.0  ;;  %v8080_v33 = vmul.f32 0.125, %v8008_v12 }
 0x444   : > { %20252 = vmatmul.mubr.f32.gmra.mrb[78].mxu0 %v34231_v6  ;;  %22921 = vmatprep.subr.bf16.mxu1 %v33925_v18  ;;  %34293 = vst [vmem:[#allocation48_spill] sm:$0xff] %v29522_v37  ;;  %v10327_v2 = vsel %vm7757_vm6, %v29522_v37, 0  ;;  %v8076_v17 = vmul.f32 0.125, %v8004_v57  ;;  %24853 = vpow2.f32 %v8159_v35  ;;  %v8079_v57 = vmul.f32 0.125, %v8007_v14  ;;  %v34324_v35 = vld [vmem:[#allocation72_spill] sm:$0xff] }
 0x445   : > { %20254 = vmatprep.mubr.msk.f32.mxu0 %vm25178_vm0, %v33928_v36  ;;  %22851 = vmatpush3.bf16.msra.mxu0 %v34247_v8  ;;  %v8006_v8 = vsub.f32 %v34296_v58, %v7854_v52  ;;  %v29548_v31 = vand.u32 4294901760, %v10327_v2  ;;  %v7833_v26 = vpop.xlane.xlu0 %7832  ;;  %v34311_v52 = vld [vmem:[#allocation85_spill] sm:$0xff]  ;;  %v8070_v32 = vmul.f32 0.125, %v7998_v34  ;;  %v29597_v58 = vsel %vm7757_vm6, %v34318_v53, 0.0  ;;  %v34336_v34 = vld [vmem:[#allocation43_spill] sm:$0xff]  ;;  %v29764_v37 = vld [vmem:[%s25213_s12 + $0xf0] sm:$0xff] }
 0x446   : > { %20522 = vmatmul.mubr.f32.gmra.mrb[78].mxu1 %v34232_v19  ;;  %20285 = vmatprep.subr.mxu0 %v33928_v36  ;;  %v8177_v43 = vmul.f32 1.442695, %v8076_v17  ;;  %v34320_v17 = vld [vmem:[#allocation57_spill] sm:$0xff]  ;;  %v29617_v1 = vsel %vm7782_vm2, %v34324_v35, 0.0  ;;  %v8183_v14 = vmul.f32 1.442695, %v8079_v57 }
 0x447   : > { %20524 = vmatprep.mubr.msk.f32.mxu1 %vm25178_vm0, %v33928_v36  ;;  %22923 = vmatpush3.bf16.msra.mxu1 %v34248_v29  ;;  %v29534_v29 = vpop.eup %24847  ;;  %34302 = vst [vmem:[#allocation54_spill] sm:$0xff] %v29548_v31  ;;  %v8078_v30 = vmul.f32 0.125, %v8006_v8  ;;  %v29585_v55 = vsub.f32 %v10327_v2, %v29548_v31  ;;  %v8163_v2 = vmul.f32 1.442695, %v8069_v24  ;;  %v29603_v51 = vsel %vm7757_vm6, %v34320_v17, 0.0  ;;  %v29643_v57 = vld [vmem:[%s25213_s12 + $0x98] sm:$0xff] }
 0x448   : > { %20255 = vmatmul.mubr.f32.gmra.mrb[80].mxu0 %v34233_v21  ;;  %20555 = vmatprep.subr.mxu1 %v33928_v36  ;;  %34297 = vst [vmem:[#allocation53_spill] sm:$0xff] %v29534_v29  ;;  %v11250_v41 = vsel %vm7757_vm6, %v29534_v29, 0  ;;  %24855 = vpow2.f32 %v8177_v43  ;;  %v34327_v43 = vld [vmem:[#allocation36_spill] sm:$0xff]  ;;  %v8165_v22 = vmul.f32 1.442695, %v8070_v32  ;;  %v34332_v53 = vld [vmem:[#allocation89_spill] sm:$0xff]  ;;  %v8009_v32 = vsub.f32 %v34336_v34, %v29612_v45 }
 0x449   : > { %20257 = vmatprep.mubr.msk.f32.mxu0 %vm25178_vm0, %v33928_v36  ;;  %20286 = vmatpush3.msra.mxu0 %v34298_v10  ;;  %v29573_v9 = vand.u32 4294901760, %v11250_v41  ;;  %34314 = vst [vmem:[#allocation59_spill] sm:$0xff] %v29585_v55  ;;  %v8181_v5 = vmul.f32 1.442695, %v8078_v30  ;;  %24857 = vpow2.f32 %v8179_v59  ;;  %v34321_v10 = vld [vmem:[#allocation39_spill] sm:$0xff]  ;;  %v7999_v28 = vsub.f32 %v34327_v43, %v7833_v26  ;;  %v7836_v56 = vpop.xlane.xlu0 %7835  ;;  %v29654_v17 = vld [vmem:[%s25213_s12 + $0xd8] sm:$0xff] }
 0x44a   : > { %20525 = vmatmul.mubr.f32.gmra.mrb[80].mxu1 %v28721_v42  ;;  %22924 = vmatprep.subr.bf16.mxu0 %v33925_v18  ;;  %v29607_v54 = vsel %vm7757_vm6, %v34321_v10, 0.0  ;;  %24859 = vpow2.f32 %v8161_v39  ;;  %v34325_v30 = vld [vmem:[#allocation51_spill] sm:$0xff]  ;;  %v29658_v35 = vld [vmem:[%s25213_s12 + $0xe0] sm:$0xff]  ;;  %v34340_v34 = vand.u32 4294901760, %v29639_v0 }
 0x44b   : > { %20527 = vmatprep.mubr.msk.f32.mxu1 %vm25178_vm0, %v33928_v36  ;;  %20556 = vmatpush3.msra.mxu1 %v34300_v63  ;;  %34310 = vst [vmem:[#allocation27_spill] sm:$0xff] %v29573_v9  ;;  %v29590_v4 = vpop.eup %24849  ;;  %v29610_v7 = vsub.f32 %v11250_v41, %v29573_v9  ;;  %v34323_v63 = vld [vmem:[#allocation87_spill] sm:$0xff]  ;;  %v29621_v47 = vsel %vm7757_vm6, %v34325_v30, 0.0  ;;  %24861 = vpow2.f32 %v8181_v5  ;;  %v34328_v41 = vld [vmem:[#allocation88_spill] sm:$0xff]  ;;  %v8071_v43 = vmul.f32 0.125, %v7999_v28  ;;  %v34337_v10 = vld [vmem:[#allocation42_spill] sm:$0xff] }
 0x44c   : > { %20258 = vmatmul.mubr.f32.gmra.mrb[82].mxu0 %v34301_v23  ;;  %22996 = vmatprep.subr.bf16.mxu1 %v33925_v18  ;;  %34316 = vst [vmem:[#allocation60_spill] sm:$0xff] %v29590_v4  ;;  %v29599_v8 = vpop.eup %24851  ;;  %34326 = vst [vmem:[#allocation15_spill] sm:$0xff] %v29621_v47  ;;  %v11253_v13 = vsel %vm7757_vm6, %v29590_v4, 0  ;;  %24863 = vpow2.f32 %v8163_v2  ;;  %v8000_v5 = vsub.f32 %v34337_v10, %v7836_v56  ;;  %v34341_v56 = vand.u32 4294901760, %v29643_v57 }
 0x44d   : > { %20260 = vmatprep.mubr.msk.f32.mxu0 %vm25178_vm0, %v33928_v36  ;;  %34319 = vst [vmem:[#allocation44_spill] sm:$0xff] %v29599_v8  ;;  %34322 = vst [vmem:[#allocation47_spill] sm:$0xff] %v29610_v7  ;;  %v10330_v24 = vsel %vm7757_vm6, %v29599_v8, 0  ;;  %24865 = vpow2.f32 %v8183_v14 }
 0x44e   : > { %20528 = vmatmul.mubr.f32.gmra.mrb[82].mxu1 %v34304_v46  ;;  %v6593_v59 = vpop.f32.mrb[54].mxu0  ;;  %24867 = vpow2.f32 %v8165_v22  ;;  %v29688_v10 = vpack.c.bf16 %v34341_v56, %v34340_v34  ;;  %v34346_v34 = vand.u32 4294901760, %v29654_v17  ;;  %v34347_v56 = vand.u32 4294901760, %v29658_v35 }
 0x44f   : > { %20530 = vmatprep.mubr.msk.f32.mxu1 %vm25178_vm0, %v33928_v36  ;;  %v29636_v39 = vsel %vm16148_vm5, %v6593_v59, -1e+30  ;;  %v7514_v26 = vpop.f32.mrb[54].mxu1  ;;  %v19749_v11 = vpop.f32.mrb[55].mxu0  ;;  %v34333_v59 = vld [vmem:[#allocation90_spill] sm:$0xff] }
 0x450   : > { %20261 = vmatmul.mubr.f32.gmra.mrb[84].mxu0 %v34311_v52  ;;  %34330 = vst [vmem:[#allocation16_spill] sm:$0xff] %v29636_v39  ;;  %v29648_v62 = vsel %vm16148_vm5, %v7514_v26, -1e+30  ;;  %v20019_v12 = vpop.f32.mrb[55].mxu1  ;;  %v7921_v2 = vsel %vm7757_vm6, %v29636_v39, -inf  ;;  %v29664_v11 = vand.u32 4294901760, %v10330_v24  ;;  %v29671_v39 = vpop.xlane.xlu1 %7865  ;;  %v29708_v9 = vpack.c.bf16 %v34347_v56, %v34346_v34 }
 0x451   : > { %20263 = vmatprep.mubr.msk.f32.mxu0 %vm25178_vm0, %v33928_v36  ;;  %34331 = vst [vmem:[#allocation50_spill] sm:$0xff] %v29648_v62  ;;  %v7948_v26 = vsel %vm7757_vm6, %v29648_v62, -inf  ;;  %7922 = vmax.xlane.f32.xlu0 %v7921_v2  ;;  %v29666_v12 = vand.u32 4294901760, %v11253_v13  ;;  %v29676_v2 = vpop.eup %24853  ;;  %34342 = vst [vmem:[#allocation8_spill] sm:$0xff] %v29688_v10  ;;  %v8081_v34 = vmul.f32 0.125, %v8009_v32  ;;  %v8072_v56 = vmul.f32 0.125, %v8000_v5 }
 0x452   : > { %20531 = vmatmul.mubr.f32.gmra.mrb[84].mxu1 %v34315_v25  ;;  %34334 = vst [vmem:[#allocation52_spill] sm:$0xff] %v29664_v11  ;;  %7949 = vmax.xlane.f32.xlu1 %v7948_v26  ;;  %v6599_v28 = vpop.f32.mrb[56].mxu0  ;;  %34338 = vst [vmem:[#allocation58_spill] sm:$0xff] %v29676_v2  ;;  %v34343_v26 = vand.u32 4294901760, %v29585_v55  ;;  %v29695_v22 = vpop.eup %24855 }
 0x453   : > { %20533 = vmatprep.mubr.msk.f32.mxu1 %vm25178_vm0, %v33928_v36  ;;  %34335 = vst [vmem:[#allocation56_spill] sm:$0xff] %v29666_v12  ;;  %v29680_v14 = vsel %vm16148_vm5, %v6599_v28, -1e+30  ;;  %v7520_v62 = vpop.f32.mrb[56].mxu1  ;;  %v19752_v45 = vpop.f32.mrb[57].mxu0  ;;  %34344 = vst [vmem:[#allocation69_spill] sm:$0xff] %v29695_v22 }
 0x454   : > { %20264 = vmatmul.mubr.f32.gmra.mrb[86].mxu0 %v34323_v63  ;;  %34339 = vst [vmem:[#allocation7_spill] sm:$0xff] %v29680_v14  ;;  %v29693_v30 = vsub.f32 %v29585_v55, %v34343_v26  ;;  %v8185_v28 = vmul.f32 1.442695, %v8080_v33  ;;  %v29699_v4 = vsel %vm16148_vm5, %v7520_v62, -1e+30  ;;  %v20022_v29 = vpop.f32.mrb[57].mxu1  ;;  %v29710_v26 = vpop.eup %24857 }
 0x455   : > { %20266 = vmatprep.mubr.msk.f32.mxu0 %vm25178_vm0, %v33928_v36  ;;  %34345 = vst [vmem:[#allocation71_spill] sm:$0xff] %v29699_v4  ;;  %v7924_v45 = vsel %vm7757_vm6, %v29680_v14, -inf  ;;  %34348 = vst [vmem:[#allocation65_spill] sm:$0xff] %v29708_v9  ;;  %v8167_v55 = vmul.f32 1.442695, %v8071_v43  ;;  %v7951_v33 = vsel %vm7757_vm6, %v29699_v4, -inf  ;;  %v29719_v29 = vsub.f32 %v11253_v13, %v29666_v12  ;;  %v29721_v62 = vpop.eup %24859 }
 0x456   : > { %20534 = vmatmul.mubr.f32.gmra.mrb[86].mxu1 %v34328_v41  ;;  %34349 = vst [vmem:[#allocation76_spill] sm:$0xff] %v29710_v26  ;;  %7925 = vmax.xlane.f32.xlu0 %v7924_v45  ;;  %34352 = vst [vmem:[#allocation20_spill] sm:$0xff] %v29721_v62  ;;  %v34353_v43 = vld [vmem:[#allocation46_spill] sm:$0xff]  ;;  %v6605_v31 = vpop.f32.mrb[58].mxu0  ;;  %v29729_v13 = vpop.eup %24861  ;;  %v29743_v4 = vld [vmem:[%s25213_s12 + $0xa8] sm:$0xff]  ;;  %24869 = vpow2.f32 %v8185_v28 }
 0x457   : > { %20536 = vmatprep.mubr.msk.f32.mxu1 %vm25178_vm0, %v33928_v36  ;;  %34351 = vst [vmem:[#allocation14_spill] sm:$0xff] %v29719_v29  ;;  %v8010_v14 = vsub.f32 %v34353_v43, %v29671_v39  ;;  %7952 = vmax.xlane.f32.xlu1 %v7951_v33  ;;  %34354 = vst [vmem:[#allocation22_spill] sm:$0xff] %v29729_v13  ;;  %v29733_v32 = vsel %vm26712_vm9, %v6605_v31, -1e+30  ;;  %v7526_v5 = vpop.f32.mrb[58].mxu1  ;;  %v19755_v39 = vpop.f32.mrb[59].mxu0  ;;  %24871 = vpow2.f32 %v8167_v55 }
 0x458   : > { %20267 = vmatmul.mubr.f32.gmra.mrb[88].mxu0 %v34332_v53  ;;  %34356 = vst [vmem:[#allocation21_spill] sm:$0xff] %v29733_v32  ;;  %v29739_v33 = vld [vmem:[%s25213_s12 + $0xa0] sm:$0xff]  ;;  %v20025_v39 = vpop.f32.mrb[59].mxu1  ;;  %v7927_v43 = vsel %vm7757_vm6, %v29733_v32, -inf  ;;  %v34360_v45 = vld [vmem:[#allocation45_spill] sm:$0xff]  ;;  %v34364_v28 = vand.u32 4294901760, %v29743_v4 }
 0x459   : > { %20287 = vmatprep.mubr.msk.f32.mxu0 %vm25178_vm0, %v33928_v36  ;;  %v8187_v12 = vmul.f32 1.442695, %v8081_v34  ;;  %v11256_v55 = vsel %vm7757_vm6, %v29695_v22, 0 }
 0x45a   : > { %20537 = vmatmul.mubr.f32.gmra.mrb[88].mxu1 %v34333_v59  ;;  %7928 = vmax.xlane.f32.xlu0 %v7927_v43  ;;  %v6611_v8 = vpop.f32.mrb[60].mxu0 }
 0x45b   : > { %20557 = vmatprep.mubr.msk.f32.mxu1 %vm25178_vm0, %v33928_v36  ;;  %v19758_v43 = vpop.f32.mrb[61].mxu0  ;;  %24873 = vpow2.f32 %v8187_v12 }
 0x45c   : > { %20288 = vmatmul.mubr.f32.vlgmr.msra.gmra.mrb[72].mxu0 %v28355_v50  ;;  %v29716_v50 = vsub.f32 %v10330_v24, %v29664_v11  ;;  %v10333_v24 = vsel %vm7757_vm6, %v29676_v2, 0  ;;  %v34357_v11 = vand.u32 4294901760, %v29610_v7  ;;  %v29753_v2 = vsel %vm26712_vm9, %v7526_v5, -1e+30 }
 0x45d   : > { %20290 = vmatprep.mubr.msk.f32.mxu0 %vm25178_vm0, %v33928_v36  ;;  %22926 = vmatpush3.bf16.msra.mxu0 %v29688_v10  ;;  %34358 = vst [vmem:[#allocation23_spill] sm:$0xff] %v29753_v2  ;;  %v29760_v10 = vld [vmem:[%s25213_s12 + $0xe8] sm:$0xff] }
 0x45e   : > { %20558 = vmatmul.mubr.f32.vlgmr.msra.gmra.mrb[72].mxu1 %v28370_v44  ;;  %34350 = vst [vmem:[#allocation77_spill] sm:$0xff] %v29716_v50  ;;  %v7839_v44 = vpop.xlane.xlu0 %7838  ;;  %v29749_v31 = vsub.f32 %v29610_v7, %v34357_v11  ;;  %v29767_v7 = vpop.eup %24863  ;;  %v29777_v11 = vand.u32 4294901760, %v10333_v24  ;;  %22927 = vmatprep.subr.bf16.mxu0 %v33925_v18 }
 0x45f   : > { %20560 = vmatprep.mubr.msk.f32.mxu1 %vm25178_vm0, %v33928_v36  ;;  %22998 = vmatpush3.bf16.msra.mxu1 %v29708_v9  ;;  %34359 = vst [vmem:[#allocation25_spill] sm:$0xff] %v29767_v7  ;;  %v8001_v5 = vsub.f32 %v34360_v45, %v7839_v44  ;;  %v8082_v9 = vmul.f32 0.125, %v8010_v14  ;;  %v7532_v44 = vpop.f32.mrb[60].mxu1  ;;  %v34363_v14 = vand.u32 4294901760, %v29739_v33  ;;  %v29794_v45 = vpop.eup %24865 }
 0x460   : > { %20291 = vmatmul.mubr.f32.gmra.mrb[74].mxu0 %v28395_v3  ;;  %v7954_v3 = vsel %vm7757_vm6, %v29753_v2, -inf  ;;  %34361 = vst [vmem:[#allocation31_spill] sm:$0xff] %v29777_v11  ;;  %34366 = vst [vmem:[#allocation80_spill] sm:$0xff] %v29794_v45  ;;  %v20028_v32 = vpop.f32.mrb[61].mxu1  ;;  %22999 = vmatprep.subr.bf16.mxu1 %v33925_v18  ;;  %v29810_v2 = vpop.eup %24867 }
 0x461   : > { %7955 = vmax.xlane.f32.xlu1 %v7954_v3  ;;  %20293 = vmatprep.mubr.msk.f32.mxu0 %vm25178_vm0, %v33928_v36  ;;  %v29790_v34 = vpack.c.bf16 %v34364_v28, %v34363_v14  ;;  %v29798_v3 = vsel %vm16150_vm10, %v7532_v44, -1e+30  ;;  %v34368_v14 = vand.u32 4294901760, %v29760_v10  ;;  %v34369_v28 = vand.u32 4294901760, %v29764_v37  ;;  %34371 = vst [vmem:[#allocation66_spill] sm:$0xff] %v29810_v2 }
 0x462   : > { %20561 = vmatmul.mubr.f32.gmra.mrb[74].mxu1 %v34228_v15  ;;  %v29781_v15 = vsel %vm16150_vm10, %v6611_v8, -1e+30  ;;  %v8169_v8 = vmul.f32 1.442695, %v8072_v56  ;;  %34367 = vst [vmem:[#allocation32_spill] sm:$0xff] %v29798_v3  ;;  %v8073_v56 = vmul.f32 0.125, %v8001_v5 }
 0x463   : > { %34362 = vst [vmem:[#allocation26_spill] sm:$0xff] %v29781_v15  ;;  %20563 = vmatprep.mubr.msk.f32.mxu1 %vm25178_vm0, %v33928_v36  ;;  %34365 = vst [vmem:[#allocation33_spill] sm:$0xff] %v29790_v34  ;;  %v7930_v43 = vsel %vm7757_vm6, %v29781_v15, -inf  ;;  %v29808_v39 = vpack.c.bf16 %v34369_v28, %v34368_v14  ;;  %v7957_v32 = vsel %vm7757_vm6, %v29798_v3, -inf  ;;  %v34373_v15 = vand.u32 4294901760, %v29719_v29  ;;  %v6617_v5 = vpop.f32.mrb[62].mxu0  ;;  %22929 = vmatpush3.bf16.msra.mxu0 %v29790_v34 }
 0x464   : > { %20294 = vmatmul.mubr.f32.gmra.mrb[76].mxu0 %v34229_v60  ;;  %7931 = vmax.xlane.f32.xlu0 %v7930_v43  ;;  %v34372_v60 = vand.u32 4294901760, %v29716_v50  ;;  %v8189_v28 = vmul.f32 1.442695, %v8082_v9  ;;  %v29830_v43 = vand.u32 4294901760, %v11256_v55  ;;  %v29838_v3 = vsel %vm26797_vm12, %v6617_v5, -1e+30 }
 0x465   : > { %34370 = vst [vmem:[#allocation83_spill] sm:$0xff] %v29808_v39  ;;  %v29823_v14 = vsub.f32 %v29719_v29, %v34373_v15  ;;  %7958 = vmax.xlane.f32.xlu1 %v7957_v32  ;;  %20296 = vmatprep.mubr.msk.f32.mxu0 %vm25178_vm0, %v33928_v36  ;;  %34377 = vst [vmem:[#allocation34_spill] sm:$0xff] %v29838_v3  ;;  %v7538_v9 = vpop.f32.mrb[62].mxu1  ;;  %v19761_v32 = vpop.f32.mrb[63].mxu0  ;;  %v29860_v34 = vld [vmem:[%s25213_s12 + $0xf8] sm:$0xff]  ;;  %24875 = vpow2.f32 %v8169_v8 }
 0x466   : > { %20564 = vmatmul.mubr.f32.gmra.mrb[76].mxu1 %v34230_v40  ;;  %v29818_v44 = vsub.f32 %v29716_v50, %v34372_v60  ;;  %v29828_v40 = vsub.f32 %v10333_v24, %v29777_v11  ;;  %34375 = vst [vmem:[#allocation84_spill] sm:$0xff] %v29830_v43  ;;  %v29834_v60 = vsel %vm7757_vm6, %v29721_v62, 0  ;;  %v29844_v24 = vld [vmem:[%s25213_s12 + $0xb0] sm:$0xff]  ;;  %v29848_v50 = vld [vmem:[%s25213_s12 + $0xb8] sm:$0xff]  ;;  %v29853_v5 = vsel %vm26797_vm12, %v7538_v9, -1e+30  ;;  %22930 = vmatprep.subr.bf16.mxu0 %v33925_v18 }
 0x467   : > { %20566 = vmatprep.mubr.msk.f32.mxu1 %vm25178_vm0, %v33928_v36  ;;  %34378 = vst [vmem:[#allocation40_spill] sm:$0xff] %v29853_v5  ;;  %v20031_v22 = vpop.f32.mrb[63].mxu1  ;;  %23001 = vmatpush3.bf16.msra.mxu1 %v29808_v39  ;;  %v7933_v32 = vsel %vm7757_vm6, %v29838_v3, -inf  ;;  %v29864_v11 = vld [vmem:[%s25213_s12 + $0x100] sm:$0xff]  ;;  %v8171_v9 = vmul.f32 1.442695, %v8073_v56  ;;  %24877 = vpow2.f32 %v8189_v28  ;;  %v29887_v15 = vsub.f32 %v11256_v55, %v29830_v43  ;;  %v29892_v28 = vpop.eup %24869 }
 0x468   : > { %34374 = vst [vmem:[#allocation35_spill] sm:$0xff] %v29828_v40  ;;  %20297 = vmatmul.mubr.f32.gmra.mrb[78].mxu0 %v34231_v6  ;;  %v7960_v22 = vsel %vm7757_vm6, %v29853_v5, -inf  ;;  %7934 = vmax.xlane.f32.xlu0 %v7933_v32  ;;  %v34379_v32 = vand.u32 4294901760, %v29844_v24  ;;  %v34380_v56 = vand.u32 4294901760, %v29848_v50  ;;  %v29890_v12 = vand.u32 4294901760, %v29834_v60  ;;  %v7544_v6 = vpop.f32.mrb[64].mxu1  ;;  %v29912_v3 = vpop.eup %24871 }
 0x469   : > { %7961 = vmax.xlane.f32.xlu1 %v7960_v22  ;;  %20299 = vmatprep.mubr.msk.f32.mxu0 %vm25178_vm0, %v33928_v36  ;;  %34382 = vst [vmem:[#allocation4_spill] sm:$0xff] %v29887_v15  ;;  %v34385_v55 = vand.u32 4294901760, %v29860_v34  ;;  %v11259_v5 = vsel %vm7757_vm6, %v29710_v26, 0  ;;  %v29928_v26 = vld [vmem:[%s25213_s12 + $0xc8] sm:$0xff]  ;;  %24879 = vpow2.f32 %v8171_v9  ;;  %v34389_v9 = vand.u32 4294901760, %v29828_v40 }
 0x46a   : > { %20567 = vmatmul.mubr.f32.gmra.mrb[78].mxu1 %v34232_v19  ;;  %v6623_v19 = vpop.f32.mrb[64].mxu0  ;;  %v29884_v22 = vpack.c.bf16 %v34380_v56, %v34379_v32  ;;  %34383 = vst [vmem:[#allocation49_spill] sm:$0xff] %v29890_v12  ;;  %23002 = vmatprep.subr.bf16.mxu1 %v33925_v18  ;;  %v34386_v32 = vand.u32 4294901760, %v29864_v11  ;;  %v34392_v62 = vand.u32 4294901760, %v29639_v0  ;;  %v34403_v39 = vand.u32 4294901760, %v29658_v35 }
 0x46b   : > { %20569 = vmatprep.mubr.msk.f32.mxu1 %vm25178_vm0, %v33928_v36  ;;  %v29896_v29 = vsel %vm16151_vm13, %v6623_v19, -1e+30  ;;  %v19764_v8 = vpop.f32.mrb[65].mxu0  ;;  %v29910_v19 = vsel %vm7757_vm6, %v29767_v7, 0  ;;  %v29947_v43 = vsub.f32 %v29828_v40, %v34389_v9  ;;  %v29974_v40 = vpop.eup %24873 }
 0x46c   : > { %34381 = vst [vmem:[#allocation38_spill] sm:$0xff] %v29884_v22  ;;  %34384 = vst [vmem:[#allocation85_spill] sm:$0xff] %v29896_v29  ;;  %20300 = vmatmul.mubr.f32.gmra.mrb[80].mxu0 %v34233_v21  ;;  %v29904_v56 = vpack.c.bf16 %v34386_v32, %v34385_v55  ;;  %v29916_v21 = vsel %vm16151_vm13, %v7544_v6, -1e+30  ;;  %v20034_v8 = vpop.f32.mrb[65].mxu1  ;;  %v7936_v55 = vsel %vm7757_vm6, %v29896_v29, -inf }
 0x46d   : > { %34388 = vst [vmem:[#allocation9_spill] sm:$0xff] %v29916_v21  ;;  %20302 = vmatprep.mubr.msk.f32.mxu0 %vm25178_vm0, %v33928_v36  ;;  %v29924_v32 = vld [vmem:[%s25213_s12 + $0xc0] sm:$0xff]  ;;  %v7963_v6 = vsel %vm7757_vm6, %v29916_v21, -inf  ;;  %7937 = vmax.xlane.f32.xlu0 %v7936_v55  ;;  %v29940_v29 = vld [vmem:[%s25213_s12 + $0x110] sm:$0xff]  ;;  %v6629_v7 = vpop.f32.mrb[66].mxu0  ;;  %v29952_v21 = vsub.f32 %v29834_v60, %v29890_v12  ;;  %v29954_v8 = vand.u32 4294901760, %v11259_v5 }
 0x46e   : > { %34387 = vst [vmem:[#allocation18_spill] sm:$0xff] %v29904_v56  ;;  %20570 = vmatmul.mubr.f32.gmra.mrb[80].mxu1 %v28721_v42  ;;  %v29936_v42 = vld [vmem:[%s25213_s12 + $0x108] sm:$0xff]  ;;  %7964 = vmax.xlane.f32.xlu1 %v7963_v6  ;;  %v29959_v6 = vsub.f32 %v29639_v0, %v34392_v62  ;;  %v7550_v47 = vpop.f32.mrb[66].mxu1  ;;  %v19767_v9 = vpop.f32.mrb[67].mxu0  ;;  %v29968_v60 = vand.u32 4294901760, %v29910_v19  ;;  %v29972_v55 = vsel %vm7757_vm6, %v29729_v13, 0 }
 0x46f   : > { %20572 = vmatprep.mubr.msk.f32.mxu1 %vm25178_vm0, %v33928_v36  ;;  %22932 = vmatpush3.bf16.msra.mxu0 %v29884_v22  ;;  %34390 = vst [vmem:[#allocation86_spill] sm:$0xff] %v29952_v21  ;;  %34391 = vst [vmem:[#allocation37_spill] sm:$0xff] %v29954_v8  ;;  %v29963_v22 = vsel %vm26881_vm14, %v6629_v7, -1e+30  ;;  %v34396_v0 = vand.u32 4294901760, %v29643_v57  ;;  %v20037_v9 = vpop.f32.mrb[67].mxu1 }
 0x470   : > { %34394 = vst [vmem:[#allocation64_spill] sm:$0xff] %v29963_v22  ;;  %23004 = vmatpush3.bf16.msra.mxu1 %v29904_v56  ;;  %20303 = vmatmul.mubr.f32.gmra.mrb[82].mxu0 %v34301_v23  ;;  %34395 = vst [vmem:[#allocation57_spill] sm:$0xff] %v29968_v60  ;;  %v29983_v62 = vsel %vm26881_vm14, %v7550_v47, -1e+30  ;;  %v7939_v23 = vsel %vm7757_vm6, %v29963_v22, -inf  ;;  %v34399_v56 = vand.u32 4294901760, %v29924_v32  ;;  %v30042_v22 = vsub.f32 %v29910_v19, %v29968_v60 }
 0x471   : > { %v29979_v7 = vsub.f32 %v29643_v57, %v34396_v0  ;;  %34398 = vst [vmem:[#allocation87_spill] sm:$0xff] %v29983_v62  ;;  %20305 = vmatprep.mubr.msk.f32.mxu0 %vm25178_vm0, %v33928_v36  ;;  %v34400_v13 = vand.u32 4294901760, %v29928_v26  ;;  %v34402_v57 = vand.u32 4294901760, %v29654_v17  ;;  %v7966_v0 = vsel %vm7757_vm6, %v29983_v62, -inf  ;;  %7940 = vmax.xlane.f32.xlu0 %v7939_v23 }
 0x472   : > { %20573 = vmatmul.mubr.f32.gmra.mrb[82].mxu1 %v34304_v46  ;;  %v30004_v46 = vsub.f32 %v29658_v35, %v34403_v39  ;;  %7967 = vmax.xlane.f32.xlu1 %v7966_v0  ;;  %v30021_v23 = vsub.f32 %v11259_v5, %v29954_v8  ;;  %v30024_v39 = vand.u32 4294901760, %v29972_v55  ;;  %v30028_v62 = vsel %vm7757_vm6, %v29810_v2, 0  ;;  %v7556_v0 = vpop.f32.mrb[68].mxu1  ;;  %v25131_v35 = vld [vmem:[%s25213_s12 + $0xd0] sm:$0xf] }
 0x473   : > { %34397 = vst [vmem:[#allocation39_spill] sm:$0xff] %v29979_v7  ;;  %v29994_v12 = vpack.c.bf16 %v34400_v13, %v34399_v56  ;;  %v29999_v47 = vsub.f32 %v29654_v17, %v34402_v57  ;;  %20575 = vmatprep.mubr.msk.f32.mxu1 %vm25178_vm0, %v33928_v36  ;;  %v34404_v13 = vand.u32 4294901760, %v29936_v42  ;;  %v34405_v56 = vand.u32 4294901760, %v29940_v29  ;;  %v30016_v17 = vpop.eup %24875  ;;  %v6635_v57 = vpop.f32.mrb[68].mxu0  ;;  %22933 = vmatprep.subr.bf16.mxu0 %v33925_v18 }
 0x474   : > { %34407 = vst [vmem:[#allocation36_spill] sm:$0xff] %v30021_v23  ;;  %34408 = vst [vmem:[#allocation88_spill] sm:$0xff] %v30024_v39  ;;  %20306 = vmatmul.mubr.f32.gmra.mrb[84].mxu0 %v34311_v52  ;;  %23005 = vmatprep.subr.bf16.mxu1 %v33925_v18  ;;  %v30038_v5 = vsel %vm8506_vm3, %v25131_v35, 0  ;;  %v30046_v8 = vsel %vm7757_vm6, %v29794_v45, 0  ;;  %v20040_v52 = vpop.f32.mrb[69].mxu1  ;;  %v34413_v45 = vand.u32 4294901760, %v29743_v4 }
 0x475   : > { %34401 = vst [vmem:[#allocation72_spill] sm:$0xff] %v29994_v12  ;;  %v30014_v9 = vpack.c.bf16 %v34405_v56, %v34404_v13  ;;  %v30032_v13 = vsel %vm16152_vm15, %v6635_v57, -1e+30  ;;  %v19770_v56 = vpop.f32.mrb[69].mxu0  ;;  %v30048_v57 = vpop.eup %24877  ;;  %22935 = vmatpush3.bf16.msra.mxu0 %v29994_v12  ;;  %v30066_v52 = vand.u32 4294901760, %v30028_v62  ;;  %v34412_v12 = vand.u32 4294901760, %v29739_v33  ;;  %20308 = vmatprep.mubr.msk.f32.mxu0 %vm25178_vm0, %v33928_v36 }
 0x476   : > { %34409 = vst [vmem:[#allocation2_spill] sm:$0xff] %v30032_v13  ;;  %v30052_v56 = vsel %vm16152_vm15, %v7556_v0, -1e+30  ;;  %20576 = vmatmul.mubr.f32.gmra.mrb[84].mxu1 %v34315_v25  ;;  %v7942_v19 = vsel %vm7757_vm6, %v30032_v13, -inf  ;;  %v30076_v35 = vsub.f32 %v29743_v4, %v34413_v45  ;;  %v34416_v4 = vand.u32 4294901760, %v29764_v37  ;;  %20600 = vmatprep.subr.mxu0 %v33928_v36 }
 0x477   : > { %34406 = vst [vmem:[#allocation51_spill] sm:$0xff] %v30014_v9  ;;  %34410 = vst [vmem:[#allocation89_spill] sm:$0xff] %v30052_v56  ;;  %v7969_v60 = vsel %vm7757_vm6, %v30052_v56, -inf  ;;  %23007 = vmatpush3.bf16.msra.mxu1 %v30014_v9  ;;  %7943 = vmax.xlane.f32.xlu0 %v7942_v19  ;;  %v30071_v13 = vsub.f32 %v29739_v33, %v34412_v12  ;;  %v6641_v56 = vpop.f32.mrb[70].mxu0  ;;  %v25132_v19 = vld [vmem:[%s25213_s12 + $0x118] sm:$0xf]  ;;  %v30085_v9 = vpop.eup %24879 }
 0x478   : > { %34411 = vst [vmem:[#allocation90_spill] sm:$0xff] %v30066_v52  ;;  %7970 = vmax.xlane.f32.xlu1 %v7969_v60  ;;  %v30082_v25 = vsel %vm8506_vm3, %v25132_v19, 0  ;;  %v34414_v33 = vand.u32 4294901760, %v29760_v10  ;;  %v30095_v45 = vsub.f32 %v29764_v37, %v34416_v4  ;;  %v30099_v60 = vsel %vm16152_vm15, %v6641_v56, -1e+30  ;;  %v7562_v19 = vpop.f32.mrb[70].mxu1  ;;  %20578 = vmatprep.mubr.msk.f32.mxu1 %vm25178_vm0, %v33928_v36 }
 0x479   : > { %34418 = vst [vmem:[#allocation46_spill] sm:$0xff] %v30099_v60  ;;  %v19773_v0 = vpop.f32.mrb[71].mxu0  ;;  %20309 = vmatmul.mubr.f32.gmra.mrb[86].mxu0 %v34323_v63  ;;  %v30105_v2 = vand.u32 4294901760, %v30038_v5  ;;  %v20043_v37 = vpop.f32.mrb[71].mxu1  ;;  %v7945_v56 = vsel %vm7782_vm2, %v30099_v60, -inf  ;;  %20870 = vmatprep.subr.mxu1 %v33928_v36 }
 0x47a   : > { %v30090_v12 = vsub.f32 %v29760_v10, %v34414_v33  ;;  %34417 = vst [vmem:[#allocation42_spill] sm:$0xff] %v30095_v45  ;;  %v30109_v10 = vsel %vm16152_vm15, %v7562_v19, -1e+30  ;;  %20579 = vmatmul.mubr.f32.gmra.mrb[86].mxu1 %v34328_v41  ;;  %20311 = vmatprep.mubr.msk.f32.mxu0 %vm25178_vm0, %v33928_v36  ;;  %v34420_v0 = vand.u32 4294901760, %v29959_v6  ;;  %v34421_v33 = vand.u32 4294901760, %v29979_v7 }
 0x47b   : > { %34419 = vst [vmem:[#allocation6_spill] sm:$0xff] %v30109_v10  ;;  %v7972_v38 = vsel %vm7782_vm2, %v30109_v10, -inf  ;;  %7946 = vmax.xlane.f32.xlu0 %v7945_v56  ;;  %20581 = vmatprep.mubr.msk.f32.mxu1 %vm25178_vm0, %v33928_v36  ;;  %v30127_v41 = vand.u32 4294901760, %v30082_v25  ;;  %v34422_v19 = vand.u32 4294901760, %v29999_v47  ;;  %v34426_v10 = vand.u32 4294901760, %v30021_v23 }
 0x47c   : > { %34415 = vst [vmem:[#allocation43_spill] sm:$0xff] %v30090_v12  ;;  %v10523_v63 = vsub.f32 %v29959_v6, %v34420_v0  ;;  %v10530_v4 = vsub.f32 %v29979_v7, %v34421_v33  ;;  %v34423_v0 = vand.u32 4294901760, %v30004_v46  ;;  %7973 = vmax.xlane.f32.xlu1 %v7972_v38  ;;  %v34424_v33 = vand.u32 4294901760, %v29887_v15  ;;  %20601 = vmatpush3.msra.mxu0 %v30105_v2 }
 0x47d   : > { %v11446_v37 = vsub.f32 %v29999_v47, %v34422_v19  ;;  %v30144_v7 = vsub.f32 %v29972_v55, %v30024_v39  ;;  %v30147_v19 = vand.u32 4294901760, %v30046_v8  ;;  %20312 = vmatmul.mubr.f32.gmra.mrb[88].mxu0 %v34332_v53  ;;  %v30164_v55 = vsub.f32 %v30028_v62, %v30066_v52  ;;  %20871 = vmatpush3.msra.mxu1 %v30127_v41 }
 0x47e   : > { %v11453_v60 = vsub.f32 %v30004_v46, %v34423_v0  ;;  %v30139_v56 = vsub.f32 %v29887_v15, %v34424_v33  ;;  %v34425_v0 = vand.u32 4294901760, %v29952_v21  ;;  %v30160_v15 = vsub.f32 %v30021_v23, %v34426_v10  ;;  %20582 = vmatmul.mubr.f32.gmra.mrb[88].mxu1 %v34333_v59  ;;  %20602 = vmatprep.mubr.msk.f32.mxu0 %vm25178_vm0, %v33928_v36 }
 0x47f   : > { %v10524_v53 = vand.u32 4294901760, %v10523_v63  ;;  %v10531_v38 = vand.u32 4294901760, %v10530_v4  ;;  %v33710_v39 = vand.u32 4294901760, %v30071_v13  ;;  %8264 = vadd.xlane.f32.xlu0 %v29563_v49  ;;  %v11447_v10 = vand.u32 4294901760, %v11446_v37  ;;  %20872 = vmatprep.mubr.msk.f32.mxu1 %vm25178_vm0, %v33928_v36 }
 0x480   : > { %v30155_v33 = vsub.f32 %v29952_v21, %v34425_v0  ;;  %v33709_v0 = vand.u32 4294901760, %v30076_v35  ;;  %v11454_v23 = vand.u32 4294901760, %v11453_v60  ;;  %v33708_v21 = vand.u32 4294901760, %v30090_v12  ;;  %8267 = vadd.xlane.f32.xlu1 %v29559_v20  ;;  %22936 = vmatprep.subr.bf16.mxu0 %v33925_v18 }
 0x481   : > { %v34427_v59 = vand.u32 4294901760, %v29844_v24  ;;  %v34429_v63 = vand.u32 4294901760, %v30042_v22  ;;  %v33707_v60 = vand.u32 4294901760, %v30144_v7  ;;  %v30190_v4 = vsub.f32 %v30046_v8, %v30147_v19  ;;  %23008 = vmatprep.subr.bf16.mxu1 %v33925_v18 }
 0x482   : > { %v34431_v37 = vand.u32 4294901760, %v29848_v50  ;;  %v34433_v20 = vand.u32 4294901760, %v29860_v34  ;;  %v34434_v62 = vand.u32 4294901760, %v29864_v11  ;;  %v34436_v8 = vand.u32 4294901760, %v29693_v30 }
 0x483   : > { %v30177_v52 = vsub.f32 %v29844_v24, %v34427_v59  ;;  %v30185_v49 = vsub.f32 %v30042_v22, %v34429_v63  ;;  %34430 = vst [vmem:[#allocation11_spill] sm:$0xff] %v30190_v4  ;;  %v10544_v30 = vsub.f32 %v30076_v35, %v33709_v0  ;;  %8270 = vadd.xlane.f32.xlu0 %v29571_v48  ;;  %v11386_v48 = vand.u32 4294901760, %v30160_v15 }
 0x484   : > { %v30195_v24 = vsub.f32 %v29848_v50, %v34431_v37  ;;  %v30200_v59 = vsub.f32 %v29860_v34, %v34433_v20  ;;  %v30205_v63 = vsub.f32 %v29864_v11, %v34434_v62  ;;  %20603 = vmatmul.mubr.f32.vlgmr.msra.gmra.mrb[90].mxu0 %v34436_v8  ;;  %v10345_v50 = vsel %vm7757_vm6, %v29912_v3, 0  ;;  %8273 = vadd.xlane.f32.xlu1 %v29567_v27 }
 0x485   : > { %34428 = vst [vmem:[#allocation45_spill] sm:$0xff] %v30177_v52  ;;  %v34437_v37 = vand.u32 4294901760, %v29749_v31  ;;  %20605 = vmatprep.mubr.msk.f32.mxu0 %vm25178_vm0, %v33928_v36  ;;  %v22937_v34 = vpack.c.bf16 %v10531_v38, %v10524_v53  ;;  %v11376_v20 = vand.u32 4294901760, %v30139_v56  ;;  %v10537_v11 = vsub.f32 %v30071_v13, %v33710_v39 }
 0x486   : > { %34432 = vst [vmem:[#allocation17_spill] sm:$0xff] %v30195_v24  ;;  %34435 = vst [vmem:[#allocation91_spill] sm:$0xff] %v30205_v63  ;;  %v23009_v31 = vpack.c.bf16 %v11454_v23, %v11447_v10  ;;  %v10463_v62 = vand.u32 4294901760, %v30155_v33  ;;  %v11460_v38 = vsub.f32 %v30090_v12, %v33708_v21  ;;  %v34438_v56 = vand.u32 4294901760, %v30095_v45 }
 0x487   : > { %20873 = vmatmul.mubr.f32.vlgmr.msra.gmra.mrb[90].mxu1 %v34437_v37  ;;  %v30240_v23 = vsub.f32 %v30144_v7, %v33707_v60  ;;  %v30243_v10 = vand.u32 4294901760, %v10345_v50  ;;  %v34439_v8 = vand.u32 4294901760, %v29818_v44  ;;  %v33711_v27 = vand.u32 4294901760, %v30177_v52  ;;  %22938 = vmatpush3.bf16.msra.mxu0 %v22937_v34 }
 0x488   : > { %v11467_v53 = vsub.f32 %v30095_v45, %v34438_v56  ;;  %20875 = vmatprep.mubr.msk.f32.mxu1 %vm25178_vm0, %v33928_v36  ;;  %v11268_v56 = vsel %vm7757_vm6, %v29892_v28, 0  ;;  %v34440_v60 = vand.u32 4294901760, %v29823_v14  ;;  %v10538_v21 = vand.u32 4294901760, %v10537_v11  ;;  %23010 = vmatpush3.bf16.msra.mxu1 %v23009_v31 }
 0x489   : > { %20606 = vmatmul.mubr.f32.gmra.mrb[92].mxu0 %v34439_v8  ;;  %v10545_v0 = vand.u32 4294901760, %v10544_v30  ;;  %v33713_v39 = vand.u32 4294901760, %v30200_v59  ;;  %v33712_v44 = vand.u32 4294901760, %v30205_v63  ;;  %v34441_v8 = vand.u32 4294901760, %v29924_v32  ;;  %8276 = vadd.xlane.f32.xlu0 %v29582_v61 }
 0x48a   : > { %v34442_v15 = vand.u32 4294901760, %v29928_v26  ;;  %v11461_v14 = vand.u32 4294901760, %v11460_v38  ;;  %v34443_v34 = vand.u32 4294901760, %v29936_v42  ;;  %v34444_v30 = vand.u32 4294901760, %v29940_v29  ;;  %8279 = vadd.xlane.f32.xlu1 %v29578_v16  ;;  %20608 = vmatprep.mubr.msk.f32.mxu0 %vm25178_vm0, %v33928_v36 }
 0x48b   : > { %20876 = vmatmul.mubr.f32.gmra.mrb[92].mxu1 %v34440_v60  ;;  %v30260_v33 = vsub.f32 %v29924_v32, %v34441_v8  ;;  %v11468_v60 = vand.u32 4294901760, %v11467_v53  ;;  %v10348_v61 = vsel %vm7757_vm6, %v30016_v17, 0  ;;  %v34446_v16 = vand.u32 4294901760, %v30195_v24  ;;  %22939 = vmatprep.subr.bf16.mxu0 %v33925_v18 }
 0x48c   : > { %v30265_v37 = vsub.f32 %v29928_v26, %v34442_v15  ;;  %v30271_v11 = vsub.f32 %v29936_v42, %v34443_v34  ;;  %v30276_v32 = vsub.f32 %v29940_v29, %v34444_v30  ;;  %v30282_v26 = vsub.f32 %v10345_v50, %v30243_v10  ;;  %20878 = vmatprep.mubr.msk.f32.mxu1 %vm25178_vm0, %v33928_v36 }
 0x48d   : > { %v34445_v42 = vand.u32 4294901760, %v29947_v43  ;;  %v10551_v29 = vsub.f32 %v30177_v52, %v33711_v27  ;;  %v10558_v31 = vsub.f32 %v30195_v24, %v34446_v16  ;;  %v30296_v38 = vand.u32 4294901760, %v11268_v56  ;;  %8282 = vadd.xlane.f32.xlu0 %v29603_v51  ;;  %23011 = vmatprep.subr.bf16.mxu1 %v33925_v18 }
 0x48e   : > { %v11271_v50 = vsel %vm7757_vm6, %v29974_v40, 0  ;;  %v22940_v53 = vpack.c.bf16 %v10545_v0, %v10538_v21  ;;  %v10473_v43 = vand.u32 4294901760, %v30185_v49  ;;  %v11474_v15 = vsub.f32 %v30200_v59, %v33713_v39  ;;  %8285 = vadd.xlane.f32.xlu1 %v29597_v58 }
 0x48f   : > { %20609 = vmatmul.mubr.f32.gmra.mrb[94].mxu0 %v34445_v42  ;;  %20879 = vmatmul.mubr.f32.gmra.mrb[94].mxu1 %v11376_v20  ;;  %v11481_v8 = vsub.f32 %v30205_v63, %v33712_v44  ;;  %v23012_v34 = vpack.c.bf16 %v11468_v60, %v11461_v14  ;;  %v33715_v20 = vand.u32 4294901760, %v30260_v33  ;;  %v33714_v30 = vand.u32 4294901760, %v30265_v37  ;;  %v30325_v60 = vpop.xlane.xlu0 %7868 }
 0x490   : > { %20611 = vmatprep.mubr.msk.f32.mxu0 %vm25178_vm0, %v33928_v36  ;;  %v30313_v21 = vand.u32 4294901760, %v10348_v61  ;;  %20881 = vmatprep.mubr.msk.f32.mxu1 %vm25178_vm0, %v33928_v36  ;;  %v34447_v0 = vand.u32 4294901760, %v30164_v55  ;;  %v30323_v14 = vand.u32 4294901760, %v11271_v50  ;;  %v10552_v16 = vand.u32 4294901760, %v10551_v29 }
 0x491   : > { %v10559_v58 = vand.u32 4294901760, %v10558_v31  ;;  %v30329_v27 = vsub.f32 %v11268_v56, %v30296_v38  ;;  %v10351_v44 = vsel %vm7757_vm6, %v30085_v9, 0  ;;  %22941 = vmatpush3.bf16.msra.mxu0 %v22940_v53  ;;  %v11482_v39 = vand.u32 4294901760, %v11481_v8  ;;  %23013 = vmatpush3.bf16.msra.mxu1 %v23012_v34 }
 0x492   : > { %v10482_v49 = vsub.f32 %v30164_v55, %v34447_v0  ;;  %34448 = vst [vmem:[#allocation92_spill] sm:$0xff] %v30323_v14  ;;  %v11475_v0 = vand.u32 4294901760, %v11474_v15  ;;  %v11274_v51 = vsel %vm7757_vm6, %v30048_v57, 0  ;;  %8288 = vadd.xlane.f32.xlu0 %v29617_v1  ;;  %v10565_v56 = vsub.f32 %v30260_v33, %v33715_v20  ;;  %8291 = vadd.xlane.f32.xlu1 %v29607_v54 }
 0x493   : > { %20612 = vmatmul.mubr.f32.gmra.mrb[96].mxu0 %v10463_v62  ;;  %20882 = vmatmul.mubr.f32.gmra.mrb[96].mxu1 %v11386_v48  ;;  %v11396_v62 = vand.u32 4294901760, %v30240_v23  ;;  %v10572_v48 = vsub.f32 %v30265_v37, %v33714_v30  ;;  %v30345_v29 = vsub.f32 %v10348_v61, %v30313_v21  ;;  %v34449_v1 = vand.u32 4294901760, %v30190_v4 }
 0x494   : > { %20614 = vmatprep.mubr.msk.f32.mxu0 %vm25178_vm0, %v33928_v36  ;;  %v34450_v31 = vand.u32 4294901760, %v30271_v11  ;;  %v34451_v15 = vand.u32 4294901760, %v30276_v32  ;;  %v30359_v34 = vand.u32 4294901760, %v10351_v44  ;;  %20884 = vmatprep.mubr.msk.f32.mxu1 %vm25178_vm0, %v33928_v36  ;;  %v22943_v54 = vpack.c.bf16 %v10559_v58, %v10552_v16  ;;  %v30375_v16 = vpop.xlane.xlu0 %7871 }
 0x495   : > { %v11405_v23 = vsub.f32 %v30190_v4, %v34449_v1  ;;  %v30365_v30 = vsub.f32 %v11271_v50, %v30323_v14  ;;  %v30367_v1 = vand.u32 4294901760, %v11274_v51  ;;  %23014 = vmatprep.subr.bf16.mxu1 %v33925_v18  ;;  %v23015_v20 = vpack.c.bf16 %v11482_v39, %v11475_v0  ;;  %22942 = vmatprep.subr.bf16.mxu0 %v33925_v18 }
 0x496   : > { %v11488_v53 = vsub.f32 %v30271_v11, %v34450_v31  ;;  %v11495_v8 = vsub.f32 %v30276_v32, %v34451_v15  ;;  %34452 = vst [vmem:[#allocation93_spill] sm:$0xff] %v30359_v34  ;;  %v34454_v31 = vld [vmem:[#allocation41_spill] sm:$0xff]  ;;  %v10483_v42 = vand.u32 4294901760, %v10482_v49  ;;  %v34455_v4 = vand.u32 4294901760, %v30282_v26  ;;  %v34456_v49 = vld [vmem:[#allocation15_spill] sm:$0xff]  ;;  %22944 = vmatpush3.bf16.msra.mxu0 %v22943_v54 }
 0x497   : > { %20615 = vmatmul.mubr.f32.gmra.mrb[98].mxu0 %v10473_v43  ;;  %34453 = vst [vmem:[#allocation94_spill] sm:$0xff] %v30367_v1  ;;  %20885 = vmatmul.mubr.f32.gmra.mrb[98].mxu1 %v11396_v62  ;;  %v8293_v15 = vsel %vm7757_vm6, %v34454_v31, 0.0  ;;  %v30379_v50 = vsub.f32 %v30038_v5, %v30105_v2  ;;  %v10566_v58 = vand.u32 4294901760, %v10565_v56  ;;  %v10573_v62 = vand.u32 4294901760, %v10572_v48 }
 0x498   : > { %v10492_v43 = vsub.f32 %v30282_v26, %v34455_v4  ;;  %8294 = vadd.xlane.f32.xlu0 %v8293_v15  ;;  %v30385_v39 = vsub.f32 %v30082_v25, %v30127_v41  ;;  %8297 = vadd.xlane.f32.xlu1 %v34456_v49  ;;  %v11489_v4 = vand.u32 4294901760, %v11488_v53  ;;  %v11496_v0 = vand.u32 4294901760, %v11495_v8  ;;  %v34458_v53 = vld [vmem:[#allocation5_spill] sm:$0xff]  ;;  %v34459_v8 = vld [vmem:[#allocation12_spill] sm:$0xff] }
 0x499   : > { %20617 = vmatprep.mubr.msk.f32.mxu0 %vm25178_vm0, %v33928_v36  ;;  %v30391_v5 = vsub.f32 %v10351_v44, %v30359_v34  ;;  %20887 = vmatprep.mubr.msk.f32.mxu1 %vm25178_vm0, %v33928_v36  ;;  %v11406_v56 = vand.u32 4294901760, %v11405_v23  ;;  %v34457_v48 = vand.u32 4294901760, %v30329_v27  ;;  %v33720_v31 = vand.u32 4294901760, %v30365_v30 }
 0x49a   : > { %v30400_v15 = vsub.f32 %v11274_v51, %v30367_v1  ;;  %23016 = vmatpush3.bf16.msra.mxu1 %v23015_v20  ;;  %v8299_v44 = vsel %vm7757_vm6, %v34458_v53, 0.0  ;;  %v8302_v54 = vsel %vm7757_vm6, %v34459_v8, 0.0  ;;  %v10493_v23 = vand.u32 4294901760, %v10492_v43  ;;  %v30414_v53 = vpop.xlane.xlu0 %7874  ;;  %22945 = vmatprep.subr.bf16.mxu0 %v33925_v18 }
 0x49b   : > { %v11415_v25 = vsub.f32 %v30329_v27, %v34457_v48  ;;  %20618 = vmatmul.mubr.f32.gmra.mrb[100].mxu0 %v10483_v42  ;;  %20888 = vmatmul.mubr.f32.gmra.mrb[100].mxu1 %v11406_v56  ;;  %v22946_v49 = vpack.c.bf16 %v10573_v62, %v10566_v58  ;;  %v33722_v61 = vand.u32 4294901760, %v30379_v50  ;;  %v23018_v51 = vpack.c.bf16 %v11496_v0, %v11489_v4  ;;  %v34461_v4 = vld [vmem:[#allocation61_spill] sm:$0xff] }
 0x49c   : > { %8300 = vadd.xlane.f32.xlu0 %v8299_v44  ;;  %8303 = vadd.xlane.f32.xlu1 %v8302_v54  ;;  %v34460_v20 = vand.u32 4294901760, %v30345_v29  ;;  %v33719_v48 = vand.u32 4294901760, %v30391_v5  ;;  %v33721_v56 = vand.u32 4294901760, %v30385_v39  ;;  %v11425_v58 = vsub.f32 %v30365_v30, %v33720_v31  ;;  %v34462_v44 = vld [vmem:[#allocation19_spill] sm:$0xff] }
 0x49d   : > { %20620 = vmatprep.mubr.msk.f32.mxu0 %vm25178_vm0, %v33928_v36  ;;  %20890 = vmatprep.mubr.msk.f32.mxu1 %vm25178_vm0, %v33928_v36  ;;  %v11416_v43 = vand.u32 4294901760, %v11415_v25  ;;  %v33718_v62 = vand.u32 4294901760, %v30400_v15  ;;  %v8308_v0 = vsel %vm7757_vm6, %v34461_v4, 0.0  ;;  %v10579_v25 = vsub.f32 %v30379_v50, %v33722_v61  ;;  %v34463_v4 = vld [vmem:[#allocation75_spill] sm:$0xff] }
 0x49e   : > { %v10502_v42 = vsub.f32 %v30345_v29, %v34460_v20  ;;  %23017 = vmatprep.subr.bf16.mxu1 %v33925_v18  ;;  %22947 = vmatpush3.bf16.msra.mxu0 %v22946_v49  ;;  %v8305_v8 = vsel %vm7757_vm6, %v34462_v44, 0.0  ;;  %v11502_v20 = vsub.f32 %v30385_v39, %v33721_v56  ;;  %v11426_v49 = vand.u32 4294901760, %v11425_v58  ;;  %v34464_v58 = vld [vmem:[#allocation67_spill] sm:$0xff]  ;;  %v34475_v56 = vld [vmem:[#allocation25_spill] sm:$0xff] }
 0x49f   : > { %20621 = vmatmul.mubr.f32.gmra.mrb[102].mxu0 %v10493_v23  ;;  %20891 = vmatmul.mubr.f32.gmra.mrb[102].mxu1 %v11416_v43  ;;  %v10512_v23 = vsub.f32 %v30391_v5, %v33719_v48  ;;  %v30437_v43 = vpop.xlane.xlu1 %7895  ;;  %v10580_v44 = vand.u32 4294901760, %v10579_v25  ;;  %v34465_v25 = vld [vmem:[#allocation44_spill] sm:$0xff]  ;;  %v34476_v61 = vld [vmem:[#allocation31_spill] sm:$0xff] }
 0x4a0   : > { %23019 = vmatpush3.bf16.msra.mxu1 %v23018_v51  ;;  %8309 = vadd.xlane.f32.xlu1 %v8308_v0  ;;  %v10503_v54 = vand.u32 4294901760, %v10502_v42  ;;  %v11435_v51 = vsub.f32 %v30400_v15, %v33718_v62  ;;  %v30446_v42 = vpop.xlane.xlu0 %7877  ;;  %v8314_v0 = vsel %vm7782_vm2, %v34463_v4, 0.0  ;;  %v11503_v48 = vand.u32 4294901760, %v11502_v20 }
 0x4a1   : > { %8306 = vadd.xlane.f32.xlu0 %v8305_v8  ;;  %20623 = vmatprep.mubr.msk.f32.mxu0 %vm25178_vm0, %v33928_v36  ;;  %v8311_v8 = vsel %vm7757_vm6, %v34464_v58, 0.0  ;;  %v10513_v62 = vand.u32 4294901760, %v10512_v23  ;;  %v8320_v4 = vsel %vm7757_vm6, %v34465_v25, 0.0  ;;  %v34470_v58 = vld [vmem:[#allocation39_spill] sm:$0xff] }
 0x4a2   : > { %20893 = vmatprep.mubr.msk.f32.mxu1 %vm25178_vm0, %v33928_v36  ;;  %20645 = vmatprep.subr.mxu0 %v33928_v36 }
 0x4a3   : > { %20624 = vmatmul.mubr.f32.gmra.mrb[104].mxu0 %v10503_v54  ;;  %20894 = vmatmul.mubr.f32.gmra.mrb[104].mxu1 %v11426_v49  ;;  %v11436_v54 = vand.u32 4294901760, %v11435_v51  ;;  %v30458_v49 = vpop.xlane.xlu1 %7898  ;;  %v34468_v51 = vld [vmem:[#allocation27_spill] sm:$0xff] }
 0x4a4   : > { %20626 = vmatprep.mubr.msk.f32.mxu0 %vm25178_vm0, %v33928_v36  ;;  %8315 = vadd.xlane.f32.xlu1 %v8314_v0  ;;  %v34466_v0 = vld [vmem:[#allocation48_spill] sm:$0xff]  ;;  %v30464_v20 = vpop.xlane.xlu0 %7880 }
 0x4a5   : > { %20896 = vmatprep.mubr.msk.f32.mxu1 %vm25178_vm0, %v33928_v36  ;;  %8312 = vadd.xlane.f32.xlu0 %v8311_v8  ;;  %v8317_v23 = vsel %vm7757_vm6, %v34466_v0, 0.0  ;;  %v22949_v8 = vpack.c.bf16 %v34470_v58, %v29959_v6 }
 0x4a6   : > { %20915 = vmatprep.subr.mxu1 %v33928_v36  ;;  %20646 = vmatpush3.msra.mxu0 %v10580_v44  ;;  %v34469_v44 = vld [vmem:[#allocation20_spill] sm:$0xff] }
 0x4a7   : > { %20627 = vmatmul.mubr.f32.gmra.mrb[106].mxu0 %v10513_v62  ;;  %20897 = vmatmul.mubr.f32.gmra.mrb[106].mxu1 %v11436_v54  ;;  %v34467_v62 = vld [vmem:[#allocation54_spill] sm:$0xff]  ;;  %v30483_v0 = vpop.xlane.xlu1 %7901 }
 0x4a8   : > { %20916 = vmatpush3.msra.mxu1 %v11503_v48  ;;  %8321 = vadd.xlane.f32.xlu1 %v8320_v4  ;;  %v8326_v48 = vsel %vm7757_vm6, %v34469_v44, 0.0  ;;  %v34471_v54 = vld [vmem:[#allocation58_spill] sm:$0xff]  ;;  %v23021_v4 = vpack.c.bf16 %v30004_v46, %v29999_v47  ;;  %v30489_v44 = vpop.xlane.xlu0 %7883 }
 0x4a9   : > { %8318 = vadd.xlane.f32.xlu0 %v8317_v23  ;;  %20647 = vmatprep.mubr.msk.f32.mxu0 %vm25178_vm0, %v33928_v36  ;;  %v8323_v25 = vsel %vm7757_vm6, %v34471_v54, 0.0  ;;  %v34472_v23 = vld [vmem:[#allocation52_spill] sm:$0xff]  ;;  %v34474_v54 = vld [vmem:[#allocation66_spill] sm:$0xff] }
 0x4aa   : > { %20917 = vmatprep.mubr.msk.f32.mxu1 %vm25178_vm0, %v33928_v36  ;;  %22948 = vmatprep.subr.bf16.mxu0 %v33925_v18  ;;  %v8332_v31 = vsel %vm7757_vm6, %v34474_v54, 0.0  ;;  %v34478_v54 = vld [vmem:[#allocation84_spill] sm:$0xff] }
 0x4ab   : > { %20648 = vmatmul.mubr.f32.vlgmr.msra.gmra.mrb[90].mxu0 %v34467_v62  ;;  %20918 = vmatmul.mubr.f32.vlgmr.msra.gmra.mrb[90].mxu1 %v34468_v51 }
 0x4ac   : > { %20650 = vmatprep.mubr.msk.f32.mxu0 %vm25178_vm0, %v33928_v36  ;;  %8327 = vadd.xlane.f32.xlu1 %v8326_v48  ;;  %v34473_v48 = vld [vmem:[#allocation56_spill] sm:$0xff] }
 0x4ad   : > { %8324 = vadd.xlane.f32.xlu0 %v8323_v25  ;;  %20920 = vmatprep.mubr.msk.f32.mxu1 %vm25178_vm0, %v33928_v36  ;;  %v8329_v25 = vsel %vm7757_vm6, %v34475_v56, 0.0  ;;  %v22952_v56 = vpack.c.bf16 %v30076_v35, %v30071_v13 }
 0x4ae   : > { %23020 = vmatprep.subr.bf16.mxu1 %v33925_v18  ;;  %22950 = vmatpush3.bf16.msra.mxu0 %v22949_v8  ;;  %v34477_v8 = vld [vmem:[#allocation10_spill] sm:$0xff] }
 0x4af   : > { %20651 = vmatmul.mubr.f32.gmra.mrb[92].mxu0 %v34472_v23  ;;  %20921 = vmatmul.mubr.f32.gmra.mrb[92].mxu1 %v34473_v48  ;;  %v8012_v48 = vsub.f32 %v34477_v8, %v30375_v16  ;;  %v30503_v23 = vpop.xlane.xlu1 %7904  ;;  %v8335_v16 = vsel %vm7757_vm6, %v29912_v3, 0.0  ;;  %v23024_v8 = vpack.c.bf16 %v30095_v45, %v30090_v12  ;;  %v34482_v3 = vld [vmem:[#allocation37_spill] sm:$0xff]  ;;  %v8341_v12 = vsel %vm7782_vm2, %v30085_v9, 0.0  ;;  %v34487_v9 = vld [vmem:[#allocation68_spill] sm:$0xff] }
 0x4b0   : > { %23022 = vmatpush3.bf16.msra.mxu1 %v23021_v4  ;;  %8333 = vadd.xlane.f32.xlu1 %v8332_v31  ;;  %v8338_v31 = vsel %vm7757_vm6, %v30016_v17, 0.0  ;;  %v34479_v4 = vld [vmem:[#allocation3_spill] sm:$0xff]  ;;  %v34480_v17 = vld [vmem:[#allocation49_spill] sm:$0xff] }
 0x4b1   : > { %8330 = vadd.xlane.f32.xlu0 %v8329_v25  ;;  %20653 = vmatprep.mubr.msk.f32.mxu0 %vm25178_vm0, %v33928_v36  ;;  %v8011_v25 = vsub.f32 %v34479_v4, %v30325_v60  ;;  %v8084_v60 = vmul.f32 0.125, %v8012_v48 }
 0x4b2   : > { %20923 = vmatprep.mubr.msk.f32.mxu1 %vm25178_vm0, %v33928_v36  ;;  %22951 = vmatprep.subr.bf16.mxu0 %v33925_v18 }
 0x4b3   : > { %20654 = vmatmul.mubr.f32.gmra.mrb[94].mxu0 %v34476_v61  ;;  %20924 = vmatmul.mubr.f32.gmra.mrb[94].mxu1 %v34478_v54  ;;  %v30519_v54 = vpop.xlane.xlu0 %7886  ;;  %v34483_v61 = vld [vmem:[#allocation53_spill] sm:$0xff]  ;;  %v8083_v62 = vmul.f32 0.125, %v8011_v25  ;;  %v8016_v25 = vsub.f32 %v34487_v9, %v30489_v44  ;;  %v34491_v44 = vld [vmem:[#allocation22_spill] sm:$0xff] }
 0x4b4   : > { %20656 = vmatprep.mubr.msk.f32.mxu0 %vm25178_vm0, %v33928_v36  ;;  %8339 = vadd.xlane.f32.xlu1 %v8338_v31  ;;  %v34481_v31 = vld [vmem:[#allocation29_spill] sm:$0xff]  ;;  %v8344_v51 = vsel %vm7757_vm6, %v34483_v61, 0.0 }
 0x4b5   : > { %8336 = vadd.xlane.f32.xlu0 %v8335_v16  ;;  %20926 = vmatprep.mubr.msk.f32.mxu1 %vm25178_vm0, %v33928_v36  ;;  %v8014_v4 = vsub.f32 %v34481_v31, %v30446_v42  ;;  %v34484_v16 = vld [vmem:[#allocation24_spill] sm:$0xff]  ;;  %v34485_v42 = vld [vmem:[#allocation57_spill] sm:$0xff]  ;;  %v23027_v31 = vpack.c.bf16 %v30205_v63, %v30200_v59 }
 0x4b6   : > { %23023 = vmatprep.subr.bf16.mxu1 %v33925_v18  ;;  %22953 = vmatpush3.bf16.msra.mxu0 %v22952_v56  ;;  %v8013_v45 = vsub.f32 %v34484_v16, %v30414_v53  ;;  %v34486_v61 = vld [vmem:[#allocation69_spill] sm:$0xff]  ;;  %v22955_v53 = vpack.c.bf16 %v30195_v24, %v30177_v52  ;;  %v8191_v16 = vmul.f32 1.442695, %v8083_v62  ;;  %v34492_v62 = vld [vmem:[#allocation76_spill] sm:$0xff] }
 0x4b7   : > { %20657 = vmatmul.mubr.f32.gmra.mrb[96].mxu0 %v34480_v17  ;;  %20927 = vmatmul.mubr.f32.gmra.mrb[96].mxu1 %v34482_v3  ;;  %v30534_v17 = vpop.xlane.xlu1 %7907  ;;  %v8350_v48 = vsel %vm7757_vm6, %v34486_v61, 0.0  ;;  %v8086_v56 = vmul.f32 0.125, %v8014_v4  ;;  %v34489_v61 = vld [vmem:[#allocation62_spill] sm:$0xff]  ;;  %v34495_v52 = vld [vmem:[#allocation73_spill] sm:$0xff] }
 0x4b8   : > { %23025 = vmatpush3.bf16.msra.mxu1 %v23024_v8  ;;  %8345 = vadd.xlane.f32.xlu1 %v8344_v51  ;;  %v8193_v51 = vmul.f32 1.442695, %v8084_v60  ;;  %v34488_v8 = vld [vmem:[#allocation88_spill] sm:$0xff]  ;;  %v8015_v3 = vsub.f32 %v34489_v61, %v30464_v20  ;;  %v8353_v20 = vsel %vm7757_vm6, %v34492_v62, 0.0  ;;  %v8088_v61 = vmul.f32 0.125, %v8016_v25 }
 0x4b9   : > { %8342 = vadd.xlane.f32.xlu0 %v8341_v12  ;;  %20659 = vmatprep.mubr.msk.f32.mxu0 %vm25178_vm0, %v33928_v36  ;;  %v7890_v12 = vpop.xlane.xlu0 %7889  ;;  %v34490_v60 = vld [vmem:[#allocation60_spill] sm:$0xff]  ;;  %v8017_v63 = vsub.f32 %v34495_v52, %v30519_v54  ;;  %v8362_v52 = vsel %vm7757_vm6, %v29892_v28, 0.0  ;;  %v34496_v54 = vld [vmem:[#allocation55_spill] sm:$0xff] }
 0x4ba   : > { %20929 = vmatprep.mubr.msk.f32.mxu1 %vm25178_vm0, %v33928_v36  ;;  %23026 = vmatprep.subr.bf16.mxu1 %v33925_v18  ;;  %v8347_v4 = vsel %vm7757_vm6, %v34490_v60, 0.0  ;;  %24881 = vpow2.f32 %v8193_v51  ;;  %v34493_v60 = vld [vmem:[#allocation78_spill] sm:$0xff]  ;;  %v8087_v24 = vmul.f32 0.125, %v8015_v3  ;;  %v23030_v51 = vpack.c.bf16 %v30276_v32, %v30271_v11  ;;  %v34498_v28 = vld [vmem:[#allocation80_spill] sm:$0xff] }
 0x4bb   : > { %20660 = vmatmul.mubr.f32.gmra.mrb[98].mxu0 %v34485_v42  ;;  %20930 = vmatmul.mubr.f32.gmra.mrb[98].mxu1 %v34488_v8  ;;  %v8085_v42 = vmul.f32 0.125, %v8013_v45  ;;  %v8356_v45 = vsel %vm7757_vm6, %v34491_v44, 0.0  ;;  %v30564_v9 = vpop.xlane.xlu1 %7910  ;;  %v34494_v8 = vld [vmem:[#allocation90_spill] sm:$0xff]  ;;  %24883 = vpow2.f32 %v8191_v16  ;;  %v8020_v3 = vsub.f32 %v34496_v54, %v30437_v43  ;;  %v34497_v16 = vld [vmem:[#allocation81_spill] sm:$0xff]  ;;  %v34502_v54 = vld [vmem:[#allocation63_spill] sm:$0xff] }
 0x4bc   : > { %8351 = vadd.xlane.f32.xlu1 %v8350_v48  ;;  %22954 = vmatprep.subr.bf16.mxu0 %v33925_v18  ;;  %v8197_v48 = vmul.f32 1.442695, %v8086_v56  ;;  %v22958_v56 = vpack.c.bf16 %v30265_v37, %v30260_v33  ;;  %v8359_v43 = vsel %vm7757_vm6, %v34498_v28, 0.0 }
 0x4bd   : > { %8348 = vadd.xlane.f32.xlu0 %v8347_v4  ;;  %20662 = vmatprep.mubr.msk.f32.mxu0 %vm25178_vm0, %v33928_v36  ;;  %v8018_v4 = vsub.f32 %v34493_v60, %v7890_v12  ;;  %v7893_v44 = vpop.xlane.xlu0 %7892  ;;  %v8199_v12 = vmul.f32 1.442695, %v8087_v24  ;;  %v8368_v24 = vsel %vm7782_vm2, %v30048_v57, 0.0  ;;  %v8365_v57 = vsel %vm7757_vm6, %v29974_v40, 0.0  ;;  %v34503_v40 = vld [vmem:[#allocation30_spill] sm:$0xff] }
 0x4be   : > { %22956 = vmatpush3.bf16.msra.mxu0 %v22955_v53  ;;  %20932 = vmatprep.mubr.msk.f32.mxu1 %vm25178_vm0, %v33928_v36  ;;  %v8195_v53 = vmul.f32 1.442695, %v8085_v42  ;;  %24885 = vpow2.f32 %v8197_v48  ;;  %v8201_v42 = vmul.f32 1.442695, %v8088_v61  ;;  %v34500_v61 = vld [vmem:[#allocation28_spill] sm:$0xff] }
 0x4bf   : > { %23028 = vmatpush3.bf16.msra.mxu1 %v23027_v31  ;;  %20663 = vmatmul.mubr.f32.gmra.mrb[100].mxu0 %v34494_v8  ;;  %v8090_v25 = vmul.f32 0.125, %v8018_v4  ;;  %v8089_v31 = vmul.f32 0.125, %v8017_v63  ;;  %v30588_v62 = vpop.xlane.xlu1 %7913  ;;  %v8092_v63 = vmul.f32 0.125, %v8020_v3  ;;  %v8022_v60 = vsub.f32 %v34500_v61, %v30483_v0  ;;  %v34508_v61 = vld [vmem:[#allocation47_spill] sm:$0xff] }
 0x4c0   : > { %20933 = vmatmul.mubr.f32.gmra.mrb[100].mxu1 %v30147_v19  ;;  %8357 = vadd.xlane.f32.xlu1 %v8356_v45  ;;  %24887 = vpow2.f32 %v8195_v53  ;;  %v8019_v45 = vsub.f32 %v34497_v16, %v7893_v44  ;;  %v8024_v3 = vsub.f32 %v34502_v54, %v30534_v17 }
 0x4c1   : > { %8354 = vadd.xlane.f32.xlu0 %v8353_v20  ;;  %20665 = vmatprep.mubr.msk.f32.mxu0 %vm25178_vm0, %v33928_v36  ;;  %v34499_v20 = vld [vmem:[#allocation13_spill] sm:$0xff]  ;;  %24889 = vpow2.f32 %v8201_v42  ;;  %v8205_v4 = vmul.f32 1.442695, %v8090_v25  ;;  %v8023_v25 = vsub.f32 %v34503_v40, %v30503_v23 }
 0x4c2   : > { %20935 = vmatprep.mubr.msk.f32.mxu1 %vm25178_vm0, %v33928_v36  ;;  %22957 = vmatprep.subr.bf16.mxu0 %v33925_v18  ;;  %v8021_v48 = vsub.f32 %v34499_v20, %v30458_v49  ;;  %24891 = vpow2.f32 %v8199_v12  ;;  %v8203_v49 = vmul.f32 1.442695, %v8089_v31  ;;  %v8091_v53 = vmul.f32 0.125, %v8019_v45  ;;  %v34506_v20 = vld [vmem:[#allocation59_spill] sm:$0xff] }
 0x4c3   : > { %20666 = vmatmul.mubr.f32.gmra.mrb[102].mxu0 %v30243_v10  ;;  %23029 = vmatprep.subr.bf16.mxu1 %v33925_v18  ;;  %v30617_v42 = vpop.xlane.xlu1 %7916  ;;  %24893 = vpow2.f32 %v8205_v4 }
 0x4c4   : > { %20936 = vmatmul.mubr.f32.gmra.mrb[102].mxu1 %v30296_v38  ;;  %8363 = vadd.xlane.f32.xlu1 %v8362_v52  ;;  %v30604_v44 = vpop.eup %24881  ;;  %v8094_v52 = vmul.f32 0.125, %v8022_v60  ;;  %24895 = vpow2.f32 %v8203_v49  ;;  %v8207_v12 = vmul.f32 1.442695, %v8091_v53  ;;  %v34510_v49 = vld [vmem:[#allocation70_spill] sm:$0xff] }
 0x4c5   : > { %23031 = vmatpush3.bf16.msra.mxu1 %v23030_v51  ;;  %22959 = vmatpush3.bf16.msra.mxu0 %v22958_v56  ;;  %34501 = vst [vmem:[#allocation41_spill] sm:$0xff] %v30604_v44  ;;  %v30612_v0 = vpop.eup %24883  ;;  %v8093_v51 = vmul.f32 0.125, %v8021_v48  ;;  %v8209_v56 = vmul.f32 1.442695, %v8092_v63  ;;  %v8374_v31 = vsel %vm7757_vm6, %v30604_v44, 0.0  ;;  %v8095_v48 = vmul.f32 0.125, %v8023_v25 }
 0x4c6   : > { %8360 = vadd.xlane.f32.xlu0 %v8359_v43  ;;  %20668 = vmatprep.mubr.msk.f32.mxu0 %vm25178_vm0, %v33928_v36  ;;  %v8371_v16 = vsel %vm7757_vm6, %v30612_v0, 0.0  ;;  %v8213_v28 = vmul.f32 1.442695, %v8094_v52  ;;  %v8096_v43 = vmul.f32 0.125, %v8024_v3  ;;  %v8025_v53 = vsub.f32 %v34510_v49, %v30564_v9  ;;  %v34512_v52 = vld [vmem:[#allocation77_spill] sm:$0xff]  ;;  %v34513_v3 = vld [vmem:[#allocation82_spill] sm:$0xff] }
 0x4c7   : > { %20938 = vmatprep.mubr.msk.f32.mxu1 %vm25178_vm0, %v33928_v36  ;;  %20669 = vmatmul.mubr.f32.gmra.mrb[104].mxu0 %v30313_v21  ;;  %v8211_v23 = vmul.f32 1.442695, %v8093_v51  ;;  %24897 = vpow2.f32 %v8209_v56  ;;  %v8215_v9 = vmul.f32 1.442695, %v8095_v48  ;;  %v34514_v25 = vld [vmem:[#allocation8_spill] sm:$0xff] }
 0x4c8   : > { %20939 = vmatmul.mubr.f32.gmra.mrb[104].mxu1 %v30323_v14  ;;  %8369 = vadd.xlane.f32.xlu1 %v8368_v24  ;;  %v30627_v17 = vpop.eup %24885  ;;  %v34507_v24 = vld [vmem:[#allocation74_spill] sm:$0xff]  ;;  %24899 = vpow2.f32 %v8207_v12  ;;  %v8217_v56 = vmul.f32 1.442695, %v8096_v43 }
 0x4c9   : > { %20671 = vmatprep.mubr.msk.f32.mxu0 %vm25178_vm0, %v33928_v36  ;;  %20941 = vmatprep.mubr.msk.f32.mxu1 %vm25178_vm0, %v33928_v36  ;;  %34504 = vst [vmem:[#allocation15_spill] sm:$0xff] %v30627_v17  ;;  %v8026_v63 = vsub.f32 %v34507_v24, %v30588_v62  ;;  %v8380_v60 = vsel %vm7757_vm6, %v30627_v17, 0.0  ;;  %24901 = vpow2.f32 %v8211_v23  ;;  %v34515_v12 = vld [vmem:[#allocation14_spill] sm:$0xff]  ;;  %v8097_v23 = vmul.f32 0.125, %v8025_v53  ;;  %v34518_v24 = vld [vmem:[#allocation65_spill] sm:$0xff]  ;;  %v34521_v53 = vld [vmem:[#allocation4_spill] sm:$0xff] }
 0x4ca   : > { %8366 = vadd.xlane.f32.xlu0 %v8365_v57  ;;  %20690 = vmatprep.subr.mxu0 %v33928_v36  ;;  %v30632_v45 = vpop.eup %24887  ;;  %v7920_v57 = vpop.xlane.xlu1 %7919  ;;  %24903 = vpow2.f32 %v8213_v28  ;;  %v34517_v28 = vld [vmem:[#allocation79_spill] sm:$0xff] }
 0x4cb   : > { %20672 = vmatmul.mubr.f32.gmra.mrb[106].mxu0 %v30359_v34  ;;  %20960 = vmatprep.subr.mxu1 %v33928_v36  ;;  %34505 = vst [vmem:[#allocation5_spill] sm:$0xff] %v30632_v45  ;;  %v30646_v4 = vpop.eup %24889  ;;  %v8377_v51 = vsel %vm7757_vm6, %v30632_v45, 0.0  ;;  %v8098_v54 = vmul.f32 0.125, %v8026_v63  ;;  %v8028_v40 = vsub.f32 %v34513_v3, %v7920_v57  ;;  %v8027_v43 = vsub.f32 %v34517_v28, %v30617_v42  ;;  %v34525_v28 = vld [vmem:[#allocation33_spill] sm:$0xff] }
 0x4cc   : > { %20942 = vmatmul.mubr.f32.gmra.mrb[106].mxu1 %v30367_v1  ;;  %20691 = vmatpush3.msra.mxu0 %v30379_v50  ;;  %34509 = vst [vmem:[#allocation12_spill] sm:$0xff] %v30646_v4  ;;  %v30653_v62 = vpop.eup %24891  ;;  %24905 = vpow2.f32 %v8217_v56  ;;  %v8219_v3 = vmul.f32 1.442695, %v8097_v23 }
 0x4cd   : > { %20961 = vmatpush3.msra.mxu1 %v30385_v39  ;;  %8375 = vadd.xlane.f32.xlu1 %v8374_v31  ;;  %34511 = vst [vmem:[#allocation61_spill] sm:$0xff] %v30653_v62  ;;  %v8386_v31 = vsel %vm7757_vm6, %v30646_v4, 0.0  ;;  %v8383_v48 = vsel %vm7757_vm6, %v30653_v62, 0.0  ;;  %24907 = vpow2.f32 %v8215_v9  ;;  %v8221_v42 = vmul.f32 1.442695, %v8098_v54  ;;  %v34523_v54 = vld [vmem:[#allocation86_spill] sm:$0xff] }
 0x4ce   : > { %8372 = vadd.xlane.f32.xlu0 %v8371_v16  ;;  %20692 = vmatprep.mubr.msk.f32.mxu0 %vm25178_vm0, %v33928_v36  ;;  %v30664_v16 = vpop.eup %24893  ;;  %v8100_v49 = vmul.f32 0.125, %v8028_v40  ;;  %v8099_v56 = vmul.f32 0.125, %v8027_v43  ;;  %v34526_v43 = vld [vmem:[#allocation36_spill] sm:$0xff] }
 0x4cf   : > { %20962 = vmatprep.mubr.msk.f32.mxu1 %vm25178_vm0, %v33928_v36  ;;  %20693 = vmatmul.mubr.f32.vlgmr.msra.gmra.mrb[90].mxu0 %v34506_v20  ;;  %34516 = vst [vmem:[#allocation19_spill] sm:$0xff] %v30664_v16  ;;  %v30671_v63 = vpop.eup %24895  ;;  %v8392_v57 = vsel %vm7757_vm6, %v30664_v16, 0.0  ;;  %24909 = vpow2.f32 %v8221_v42  ;;  %v34528_v16 = vld [vmem:[#allocation83_spill] sm:$0xff] }
 0x4d0   : > { %20963 = vmatmul.mubr.f32.vlgmr.msra.gmra.mrb[90].mxu1 %v34508_v61  ;;  %20695 = vmatprep.mubr.msk.f32.mxu0 %vm25178_vm0, %v33928_v36  ;;  %34519 = vst [vmem:[#allocation75_spill] sm:$0xff] %v30671_v63  ;;  %v8225_v23 = vmul.f32 1.442695, %v8100_v49  ;;  %24911 = vpow2.f32 %v8219_v3 }
 0x4d1   : > { %8381 = vadd.xlane.f32.xlu1 %v8380_v60  ;;  %22960 = vmatprep.subr.bf16.mxu0 %v33925_v18  ;;  %v34520_v60 = vld [vmem:[#allocation35_spill] sm:$0xff] }
 0x4d2   : > { %8378 = vadd.xlane.f32.xlu0 %v8377_v51  ;;  %20965 = vmatprep.mubr.msk.f32.mxu1 %vm25178_vm0, %v33928_v36  ;;  %v30683_v51 = vpop.eup %24897  ;;  %24913 = vpow2.f32 %v8225_v23  ;;  %v34532_v23 = vld [vmem:[#allocation18_spill] sm:$0xff] }
 0x4d3   : > { %23032 = vmatprep.subr.bf16.mxu1 %v33925_v18  ;;  %20696 = vmatmul.mubr.f32.gmra.mrb[92].mxu0 %v34512_v52  ;;  %v30688_v9 = vpop.eup %24899 }
 0x4d4   : > { %22962 = vmatpush3.bf16.msra.mxu0 %v34514_v25  ;;  %20966 = vmatmul.mubr.f32.gmra.mrb[92].mxu1 %v34515_v12  ;;  %34522 = vst [vmem:[#allocation67_spill] sm:$0xff] %v30688_v9  ;;  %v30694_v40 = vpop.eup %24901 }
 0x4d5   : > { %23034 = vmatpush3.bf16.msra.mxu1 %v34518_v24  ;;  %8387 = vadd.xlane.f32.xlu1 %v8386_v31  ;;  %v8389_v31 = vsel %vm7757_vm6, %v30671_v63, 0.0  ;;  %34524 = vst [vmem:[#allocation44_spill] sm:$0xff] %v30694_v40  ;;  %v8395_v63 = vsel %vm7782_vm2, %v30688_v9, 0.0 }
 0x4d6   : > { %8384 = vadd.xlane.f32.xlu0 %v8383_v48  ;;  %20698 = vmatprep.mubr.msk.f32.mxu0 %vm25178_vm0, %v33928_v36  ;;  %v8398_v48 = vsel %vm7757_vm6, %v30683_v51, 0.0 }
 0x4d7   : > { %20968 = vmatprep.mubr.msk.f32.mxu1 %vm25178_vm0, %v33928_v36  ;;  %20699 = vmatmul.mubr.f32.gmra.mrb[94].mxu0 %v34520_v60 }
 0x4d8   : > { %20969 = vmatmul.mubr.f32.gmra.mrb[94].mxu1 %v34521_v53  ;;  %20701 = vmatprep.mubr.msk.f32.mxu0 %vm25178_vm0, %v33928_v36 }
 0x4d9   : > { %8393 = vadd.xlane.f32.xlu1 %v8392_v57  ;;  %22963 = vmatprep.subr.bf16.mxu0 %v33925_v18  ;;  %v30700_v57 = vpop.eup %24903 }
 0x4da   : > { %8390 = vadd.xlane.f32.xlu0 %v8389_v31  ;;  %20971 = vmatprep.mubr.msk.f32.mxu1 %vm25178_vm0, %v33928_v36  ;;  %34527 = vst [vmem:[#allocation48_spill] sm:$0xff] %v30700_v57  ;;  %v8223_v31 = vmul.f32 1.442695, %v8099_v56  ;;  %v8404_v42 = vsel %vm7757_vm6, %v30700_v57, 0.0  ;;  %v30714_v49 = vpop.eup %24905  ;;  %v34531_v56 = vld [vmem:[#allocation38_spill] sm:$0xff]  ;;  %v34540_v57 = vld [vmem:[#allocation16_spill] sm:$0xff] }
 0x4db   : > { %23035 = vmatprep.subr.bf16.mxu1 %v33925_v18  ;;  %20702 = vmatmul.mubr.f32.gmra.mrb[96].mxu0 %v34523_v54  ;;  %34529 = vst [vmem:[#allocation20_spill] sm:$0xff] %v30714_v49  ;;  %v30719_v3 = vpop.eup %24907 }
 0x4dc   : > { %22965 = vmatpush3.bf16.msra.mxu0 %v34525_v28  ;;  %20972 = vmatmul.mubr.f32.gmra.mrb[96].mxu1 %v34526_v43  ;;  %24915 = vpow2.f32 %v8223_v31  ;;  %34530 = vst [vmem:[#allocation39_spill] sm:$0xff] %v30719_v3  ;;  %v34533_v31 = vld [vmem:[#allocation11_spill] sm:$0xff] }
 0x4dd   : > { %23037 = vmatpush3.bf16.msra.mxu1 %v34528_v16  ;;  %8399 = vadd.xlane.f32.xlu1 %v8398_v48  ;;  %v8410_v48 = vsel %vm7757_vm6, %v30714_v49, 0.0  ;;  %v34538_v49 = vld [vmem:[#allocation51_spill] sm:$0xff] }
 0x4de   : > { %8396 = vadd.xlane.f32.xlu0 %v8395_v63  ;;  %20704 = vmatprep.mubr.msk.f32.mxu0 %vm25178_vm0, %v33928_v36  ;;  %v8401_v63 = vsel %vm7757_vm6, %v30694_v40, 0.0  ;;  %v7923_v17 = vpop.xlane.xlu0 %7922 }
 0x4df   : > { %20974 = vmatprep.mubr.msk.f32.mxu1 %vm25178_vm0, %v33928_v36  ;;  %20705 = vmatmul.mubr.f32.gmra.mrb[98].mxu0 %v30042_v22  ;;  %v8029_v45 = vsub.f32 %v34540_v57, %v7923_v17 }
 0x4e0   : > { %20975 = vmatmul.mubr.f32.gmra.mrb[98].mxu1 %v30144_v7  ;;  %22966 = vmatprep.subr.bf16.mxu0 %v33925_v18 }
 0x4e1   : > { %23038 = vmatprep.subr.bf16.mxu1 %v33925_v18  ;;  %8405 = vadd.xlane.f32.xlu1 %v8404_v42  ;;  %v8407_v42 = vsel %vm7757_vm6, %v30719_v3, 0.0  ;;  %v8101_v44 = vmul.f32 0.125, %v8029_v45 }
 0x4e2   : > { %8402 = vadd.xlane.f32.xlu0 %v8401_v63  ;;  %20707 = vmatprep.mubr.msk.f32.mxu0 %vm25178_vm0, %v33928_v36  ;;  %v30733_v63 = vpop.eup %24909 }
 0x4e3   : > { %22968 = vmatpush3.bf16.msra.mxu0 %v34531_v56  ;;  %20977 = vmatprep.mubr.msk.f32.mxu1 %vm25178_vm0, %v33928_v36  ;;  %34534 = vst [vmem:[#allocation58_spill] sm:$0xff] %v30733_v63  ;;  %v30737_v9 = vpop.eup %24911  ;;  %v7926_v57 = vpop.xlane.xlu0 %7925  ;;  %v8227_v1 = vmul.f32 1.442695, %v8101_v44 }
 0x4e4   : > { %23040 = vmatpush3.bf16.msra.mxu1 %v34532_v23  ;;  %20708 = vmatmul.mubr.f32.gmra.mrb[100].mxu0 %v30164_v55  ;;  %34535 = vst [vmem:[#allocation66_spill] sm:$0xff] %v30737_v9  ;;  %v30748_v4 = vpop.eup %24913  ;;  %v8413_v62 = vsel %vm7757_vm6, %v30737_v9, 0.0  ;;  %v34541_v9 = vld [vmem:[#allocation50_spill] sm:$0xff] }
 0x4e5   : > { %20978 = vmatmul.mubr.f32.gmra.mrb[100].mxu1 %v34533_v31  ;;  %8411 = vadd.xlane.f32.xlu1 %v8410_v48  ;;  %v34536_v48 = vld [vmem:[#allocation72_spill] sm:$0xff]  ;;  %34537 = vst [vmem:[#allocation25_spill] sm:$0xff] %v30748_v4  ;;  %24917 = vpow2.f32 %v8227_v1  ;;  %v34546_v1 = vand.u32 4294901760, %v29999_v47 }
 0x4e6   : > { %8408 = vadd.xlane.f32.xlu0 %v8407_v42  ;;  %20710 = vmatprep.mubr.msk.f32.mxu0 %vm25178_vm0, %v33928_v36  ;;  %v8416_v42 = vsel %vm7757_vm6, %v30733_v63, 0.0  ;;  %v30753_v3 = vpop.eup %24915  ;;  %v7950_v63 = vpop.xlane.xlu1 %7949 }
 0x4e7   : > { %20980 = vmatprep.mubr.msk.f32.mxu1 %vm25178_vm0, %v33928_v36  ;;  %22969 = vmatprep.subr.bf16.mxu0 %v33925_v18  ;;  %34539 = vst [vmem:[#allocation10_spill] sm:$0xff] %v30753_v3  ;;  %v8038_v40 = vsub.f32 %v34541_v9, %v7950_v63  ;;  %v34542_v63 = vld [vmem:[#allocation7_spill] sm:$0xff] }
 0x4e8   : > { %20711 = vmatmul.mubr.f32.gmra.mrb[102].mxu0 %v30282_v26  ;;  %23041 = vmatprep.subr.bf16.mxu1 %v33925_v18 }
 0x4e9   : > { %20981 = vmatmul.mubr.f32.gmra.mrb[102].mxu1 %v30329_v27  ;;  %22971 = vmatpush3.bf16.msra.mxu0 %v34536_v48  ;;  %v8110_v17 = vmul.f32 0.125, %v8038_v40  ;;  %v34544_v40 = vand.u32 4294901760, %v29959_v6 }
 0x4ea   : > { %23043 = vmatpush3.bf16.msra.mxu1 %v34538_v49  ;;  %8417 = vadd.xlane.f32.xlu1 %v8416_v42  ;;  %v8422_v42 = vsel %vm7782_vm2, %v30748_v4, 0.0  ;;  %v7953_v9 = vpop.xlane.xlu1 %7952 }
 0x4eb   : > { %8414 = vadd.xlane.f32.xlu0 %v8413_v62  ;;  %20713 = vmatprep.mubr.msk.f32.mxu0 %vm25178_vm0, %v33928_v36  ;;  %v8419_v62 = vsel %vm7757_vm6, %v30753_v3, 0.0  ;;  %v8245_v4 = vmul.f32 1.442695, %v8110_v17  ;;  %v34543_v3 = vld [vmem:[#allocation71_spill] sm:$0xff] }
 0x4ec   : > { %20983 = vmatprep.mubr.msk.f32.mxu1 %vm25178_vm0, %v33928_v36  ;;  %20714 = vmatmul.mubr.f32.gmra.mrb[104].mxu0 %v30345_v29  ;;  %v8039_v45 = vsub.f32 %v34543_v3, %v7953_v9  ;;  %v7929_v3 = vpop.xlane.xlu0 %7928 }
 0x4ed   : > { %20984 = vmatmul.mubr.f32.gmra.mrb[104].mxu1 %v30365_v30  ;;  %20716 = vmatprep.mubr.msk.f32.mxu0 %vm25178_vm0, %v33928_v36  ;;  %24919 = vpow2.f32 %v8245_v4 }
 0x4ee   : > { %8423 = vadd.xlane.f32.xlu1 %v8422_v42  ;;  %20986 = vmatprep.mubr.msk.f32.mxu1 %vm25178_vm0, %v33928_v36  ;;  %v8030_v42 = vsub.f32 %v34542_v63, %v7926_v57  ;;  %v8111_v17 = vmul.f32 0.125, %v8039_v45  ;;  %v34547_v57 = vand.u32 4294901760, %v30004_v46  ;;  %v7956_v6 = vpop.xlane.xlu1 %7955  ;;  %v34552_v46 = vand.u32 4294901760, %v30071_v13  ;;  %v34559_v13 = vld [vmem:[#allocation26_spill] sm:$0xff] }
 0x4ef   : > { %8420 = vadd.xlane.f32.xlu0 %v8419_v62  ;;  %20735 = vmatprep.subr.mxu0 %v33928_v36  ;;  %v34545_v62 = vand.u32 4294901760, %v34470_v58  ;;  %v34549_v58 = vld [vmem:[#allocation21_spill] sm:$0xff] }
 0x4f0   : > { %20717 = vmatmul.mubr.f32.gmra.mrb[106].mxu0 %v30391_v5  ;;  %21005 = vmatprep.subr.mxu1 %v33928_v36  ;;  %v8102_v44 = vmul.f32 0.125, %v8030_v42  ;;  %v23045_v9 = vpack.c.bf16 %v34547_v57, %v34546_v1  ;;  %v34548_v42 = vand.u32 4294901760, %v34506_v20  ;;  %v8031_v4 = vsub.f32 %v34549_v58, %v7929_v3  ;;  %v34554_v3 = vld [vmem:[#allocation43_spill] sm:$0xff]  ;;  %v34556_v57 = vld [vmem:[#allocation42_spill] sm:$0xff] }
 0x4f1   : > { %20987 = vmatmul.mubr.f32.gmra.mrb[106].mxu1 %v30400_v15  ;;  %20736 = vmatpush3.msra.mxu0 %v30105_v2  ;;  %v22973_v34 = vpack.c.bf16 %v34545_v62, %v34544_v40  ;;  %v8247_v45 = vmul.f32 1.442695, %v8111_v17  ;;  %v34550_v40 = vand.u32 4294901760, %v34508_v61  ;;  %v34551_v62 = vld [vmem:[#allocation23_spill] sm:$0xff]  ;;  %v34553_v20 = vand.u32 4294901760, %v30076_v35  ;;  %v7932_v61 = vpop.xlane.xlu0 %7931 }
 0x4f2   : > { %21006 = vmatpush3.msra.mxu1 %v30127_v41  ;;  %21007 = vmatprep.mubr.msk.f32.mxu1 %vm25178_vm0, %v33928_v36  ;;  %v8229_v63 = vmul.f32 1.442695, %v8102_v44  ;;  %v8040_v14 = vsub.f32 %v34551_v62, %v7956_v6  ;;  %v8103_v47 = vmul.f32 0.125, %v8031_v4  ;;  %v34555_v1 = vand.u32 4294901760, %v34554_v3  ;;  %v34567_v3 = vld [vmem:[#allocation17_spill] sm:$0xff] }
 0x4f3   : > { %20737 = vmatprep.mubr.msk.f32.mxu0 %vm25178_vm0, %v33928_v36  ;;  %23044 = vmatprep.subr.bf16.mxu1 %v33925_v18  ;;  %v22976_v44 = vpack.c.bf16 %v34553_v20, %v34552_v46  ;;  %v34558_v58 = vand.u32 4294901760, %v34512_v52  ;;  %v8032_v4 = vsub.f32 %v34559_v13, %v7932_v61 }
 0x4f4   : > { %20738 = vmatmul.mubr.f32.vlgmr.msra.gmra.mrb[90].mxu0 %v34548_v42  ;;  %22972 = vmatprep.subr.bf16.mxu0 %v33925_v18  ;;  %24921 = vpow2.f32 %v8229_v63  ;;  %v8112_v17 = vmul.f32 0.125, %v8040_v14  ;;  %v34557_v63 = vand.u32 4294901760, %v34556_v57  ;;  %v8231_v6 = vmul.f32 1.442695, %v8103_v47  ;;  %v34563_v47 = vld [vmem:[#allocation91_spill] sm:$0xff] }
 0x4f5   : > { %21008 = vmatmul.mubr.f32.vlgmr.msra.gmra.mrb[90].mxu1 %v34550_v40  ;;  %20740 = vmatprep.mubr.msk.f32.mxu0 %vm25178_vm0, %v33928_v36  ;;  %24923 = vpow2.f32 %v8247_v45  ;;  %v34560_v14 = vand.u32 4294901760, %v34515_v12  ;;  %v8104_v52 = vmul.f32 0.125, %v8032_v4  ;;  %v7935_v62 = vpop.xlane.xlu0 %7934  ;;  %v34562_v12 = vand.u32 4294901760, %v30200_v59 }
 0x4f6   : > { %21010 = vmatprep.mubr.msk.f32.mxu1 %vm25178_vm0, %v33928_v36  ;;  %22974 = vmatpush3.bf16.msra.mxu0 %v22973_v34  ;;  %v23048_v42 = vpack.c.bf16 %v34557_v63, %v34555_v1  ;;  %v7959_v34 = vpop.xlane.xlu1 %7958  ;;  %v8249_v35 = vmul.f32 1.442695, %v8112_v17  ;;  %24925 = vpow2.f32 %v8231_v6  ;;  %v34564_v46 = vand.u32 4294901760, %v34563_v47  ;;  %v34565_v17 = vld [vmem:[#allocation45_spill] sm:$0xff]  ;;  %v30832_v63 = vpop.eup %24917 }
 0x4f7   : > { %23046 = vmatpush3.bf16.msra.mxu1 %v23045_v9  ;;  %22975 = vmatprep.subr.bf16.mxu0 %v33925_v18  ;;  %v34561_v9 = vld [vmem:[#allocation32_spill] sm:$0xff]  ;;  %v34566_v61 = vand.u32 4294901760, %v34565_v17  ;;  %v34568_v1 = vand.u32 4294901760, %v34567_v3  ;;  %34569 = vst [vmem:[#allocation3_spill] sm:$0xff] %v30832_v63  ;;  %v8233_v6 = vmul.f32 1.442695, %v8104_v52  ;;  %v30838_v59 = vpop.eup %24919 }
 0x4f8   : > { %20741 = vmatmul.mubr.f32.gmra.mrb[92].mxu0 %v34558_v58  ;;  %23047 = vmatprep.subr.bf16.mxu1 %v33925_v18  ;;  %v8041_v45 = vsub.f32 %v34561_v9, %v7959_v34  ;;  %24927 = vpow2.f32 %v8249_v35  ;;  %v23051_v20 = vpack.c.bf16 %v34564_v46, %v34562_v12  ;;  %34572 = vst [vmem:[#allocation29_spill] sm:$0xff] %v30838_v59  ;;  %v34573_v4 = vand.u32 4294901760, %v34521_v53  ;;  %v34574_v35 = vld [vmem:[#allocation40_spill] sm:$0xff] }
 0x4f9   : > { %21011 = vmatmul.mubr.f32.gmra.mrb[92].mxu1 %v34560_v14  ;;  %20743 = vmatprep.mubr.msk.f32.mxu0 %vm25178_vm0, %v33928_v36  ;;  %v22979_v57 = vpack.c.bf16 %v34568_v1, %v34566_v61  ;;  %24929 = vpow2.f32 %v8233_v6  ;;  %v8452_v53 = vsel %vm7757_vm6, %v30838_v59, 0.0  ;;  %v34578_v17 = vand.u32 4294901760, %v34526_v43 }
 0x4fa   : > { %21013 = vmatprep.mubr.msk.f32.mxu1 %vm25178_vm0, %v33928_v36  ;;  %22977 = vmatpush3.bf16.msra.mxu0 %v22976_v44  ;;  %v8113_v40 = vmul.f32 0.125, %v8041_v45  ;;  %v34570_v44 = vand.u32 4294901760, %v34520_v60  ;;  %v7962_v58 = vpop.xlane.xlu1 %7961  ;;  %v8425_v60 = vsel %vm7757_vm6, %v30832_v63, 0.0  ;;  %v7938_v12 = vpop.xlane.xlu0 %7937  ;;  %v34581_v43 = vand.u32 4294901760, %v30260_v33 }
 0x4fb   : > { %23049 = vmatpush3.bf16.msra.mxu1 %v23048_v42  ;;  %22978 = vmatprep.subr.bf16.mxu0 %v33925_v18  ;;  %v34571_v42 = vld [vmem:[#allocation34_spill] sm:$0xff]  ;;  %v8042_v14 = vsub.f32 %v34574_v35, %v7962_v58 }
 0x4fc   : > { %20744 = vmatmul.mubr.f32.gmra.mrb[94].mxu0 %v34570_v44  ;;  %v8033_v34 = vsub.f32 %v34571_v42, %v7935_v62  ;;  %23050 = vmatprep.subr.bf16.mxu1 %v33925_v18  ;;  %v8251_v13 = vmul.f32 1.442695, %v8113_v40  ;;  %v34576_v62 = vand.u32 4294901760, %v34523_v54  ;;  %v34580_v54 = vld [vmem:[#allocation9_spill] sm:$0xff]  ;;  %v34582_v44 = vand.u32 4294901760, %v30265_v37 }
 0x4fd   : > { %21014 = vmatmul.mubr.f32.gmra.mrb[94].mxu1 %v34573_v4  ;;  %20746 = vmatprep.mubr.msk.f32.mxu0 %vm25178_vm0, %v33928_v36  ;;  %v8114_v45 = vmul.f32 0.125, %v8042_v14 }
 0x4fe   : > { %21016 = vmatprep.mubr.msk.f32.mxu1 %vm25178_vm0, %v33928_v36  ;;  %v8105_v9 = vmul.f32 0.125, %v8033_v34  ;;  %8426 = vadd.xlane.f32.xlu0 %v8425_v60  ;;  %24931 = vpow2.f32 %v8251_v13  ;;  %v30851_v52 = vpop.eup %24921  ;;  %v7965_v61 = vpop.xlane.xlu1 %7964  ;;  %v22982_v58 = vpack.c.bf16 %v34582_v44, %v34581_v43  ;;  %v34583_v34 = vand.u32 4294901760, %v30271_v11  ;;  %v34589_v11 = vld [vmem:[#allocation64_spill] sm:$0xff]  ;;  %v34595_v43 = vld [vmem:[#allocation2_spill] sm:$0xff] }
 0x4ff   : > { %23052 = vmatpush3.bf16.msra.mxu1 %v23051_v20  ;;  %22980 = vmatpush3.bf16.msra.mxu0 %v22979_v57  ;;  %34575 = vst [vmem:[#allocation53_spill] sm:$0xff] %v30851_v52  ;;  %v30855_v47 = vpop.eup %24923  ;;  %v8253_v46 = vmul.f32 1.442695, %v8114_v45  ;;  %v34579_v20 = vld [vmem:[#allocation85_spill] sm:$0xff]  ;;  %v8428_v1 = vsel %vm7757_vm6, %v30851_v52, 0.0  ;;  %v8043_v57 = vsub.f32 %v34580_v54, %v7965_v61  ;;  %v34584_v13 = vand.u32 4294901760, %v30276_v32  ;;  %v7941_v33 = vpop.xlane.xlu0 %7940 }
 0x500   : > { %v8235_v40 = vmul.f32 1.442695, %v8105_v9  ;;  %20747 = vmatmul.mubr.f32.gmra.mrb[96].mxu0 %v34576_v62  ;;  %8453 = vadd.xlane.f32.xlu1 %v8452_v53  ;;  %34577 = vst [vmem:[#allocation24_spill] sm:$0xff] %v30855_v47  ;;  %v8034_v3 = vsub.f32 %v34579_v20, %v7938_v12  ;;  %v8455_v6 = vsel %vm7757_vm6, %v30855_v47, 0.0  ;;  %v30879_v35 = vpop.eup %24925  ;;  %v34586_v60 = vand.u32 4294901760, %v30042_v22  ;;  %v34590_v22 = vld [vmem:[#allocation87_spill] sm:$0xff] }
 0x501   : > { %21017 = vmatmul.mubr.f32.gmra.mrb[96].mxu1 %v34578_v17  ;;  %20749 = vmatprep.mubr.msk.f32.mxu0 %vm25178_vm0, %v33928_v36  ;;  %v23054_v4 = vpack.c.bf16 %v34584_v13, %v34583_v34  ;;  %34585 = vst [vmem:[#allocation69_spill] sm:$0xff] %v30879_v35  ;;  %v8115_v14 = vmul.f32 0.125, %v8043_v57  ;;  %v34588_v45 = vand.u32 4294901760, %v30144_v7  ;;  %v8035_v32 = vsub.f32 %v34589_v11, %v7941_v33 }
 0x502   : > { %24933 = vpow2.f32 %v8235_v40  ;;  %21019 = vmatprep.mubr.msk.f32.mxu1 %vm25178_vm0, %v33928_v36  ;;  %22981 = vmatprep.subr.bf16.mxu0 %v33925_v18  ;;  %v8106_v42 = vmul.f32 0.125, %v8034_v3  ;;  %v30883_v37 = vpop.eup %24927  ;;  %v7968_v53 = vpop.xlane.xlu1 %7967  ;;  %v8431_v40 = vsel %vm7757_vm6, %v30879_v35, 0.0  ;;  %v34592_v20 = vand.u32 4294901760, %v30164_v55  ;;  %v34596_v55 = vld [vmem:[#allocation89_spill] sm:$0xff]  ;;  %v31273_v35 = vld [vmem:[%s25213_s12 + $0x1a0] sm:$0xff] }
 0x503   : > { %24935 = vpow2.f32 %v8253_v46  ;;  %8456 = vadd.xlane.f32.xlu0 %v8455_v6  ;;  %23053 = vmatprep.subr.bf16.mxu1 %v33925_v18  ;;  %34587 = vst [vmem:[#allocation68_spill] sm:$0xff] %v30883_v37  ;;  %v8255_v62 = vmul.f32 1.442695, %v8115_v14  ;;  %v8044_v12 = vsub.f32 %v34590_v22, %v7968_v53  ;;  %v8458_v46 = vsel %vm7757_vm6, %v30883_v37, 0.0  ;;  %v30897_v17 = vpop.eup %24929  ;;  %v31269_v37 = vld [vmem:[%s25213_s12 + $0x198] sm:$0xff] }
 0x504   : > { %20750 = vmatmul.mubr.f32.gmra.mrb[98].mxu0 %v34586_v60  ;;  %8429 = vadd.xlane.f32.xlu1 %v8428_v1  ;;  %v8237_v9 = vmul.f32 1.442695, %v8106_v42  ;;  %v8107_v7 = vmul.f32 0.125, %v8035_v32  ;;  %34591 = vst [vmem:[#allocation62_spill] sm:$0xff] %v30897_v17  ;;  %v7944_v3 = vpop.xlane.xlu0 %7943  ;;  %v34594_v57 = vand.u32 4294901760, %v34533_v31  ;;  %v34598_v14 = vand.u32 4294901760, %v30282_v26 }
 0x505   : > { %21020 = vmatmul.mubr.f32.gmra.mrb[98].mxu1 %v34588_v45  ;;  %20752 = vmatprep.mubr.msk.f32.mxu0 %vm25178_vm0, %v33928_v36  ;;  %v8116_v61 = vmul.f32 0.125, %v8044_v12  ;;  %v8036_v44 = vsub.f32 %v34595_v43, %v7944_v3  ;;  %v34600_v53 = vand.u32 4294901760, %v30329_v27  ;;  %v34601_v32 = vld [vmem:[#allocation46_spill] sm:$0xff]  ;;  %v34603_v27 = vand.u32 4294901760, %v30379_v50 }
 0x506   : > { %21022 = vmatprep.mubr.msk.f32.mxu1 %vm25178_vm0, %v33928_v36  ;;  %22983 = vmatpush3.bf16.msra.mxu0 %v22982_v58  ;;  %24937 = vpow2.f32 %v8237_v9  ;;  %v8239_v54 = vmul.f32 1.442695, %v8107_v7  ;;  %v7971_v6 = vpop.xlane.xlu1 %7970  ;;  %v8434_v58 = vsel %vm7757_vm6, %v30897_v17, 0.0  ;;  %v34602_v26 = vld [vmem:[#allocation6_spill] sm:$0xff]  ;;  %v34604_v7 = vand.u32 4294901760, %v30385_v39 }
 0x507   : > { %8432 = vadd.xlane.f32.xlu0 %v8431_v40  ;;  %23055 = vmatpush3.bf16.msra.mxu1 %v23054_v4  ;;  %24939 = vpow2.f32 %v8255_v62  ;;  %v8257_v42 = vmul.f32 1.442695, %v8116_v61  ;;  %v8045_v34 = vsub.f32 %v34596_v55, %v7971_v6  ;;  %v8108_v31 = vmul.f32 0.125, %v8036_v44 }
 0x508   : > { %20753 = vmatmul.mubr.f32.gmra.mrb[100].mxu0 %v34592_v20  ;;  %8459 = vadd.xlane.f32.xlu1 %v8458_v46  ;;  %v30901_v1 = vpop.eup %24931  ;;  %24941 = vpow2.f32 %v8239_v54  ;;  %v7947_v60 = vpop.xlane.xlu0 %7946  ;;  %v34605_v20 = vand.u32 4294901760, %v30345_v29  ;;  %v34607_v50 = vand.u32 4294901760, %v30365_v30 }
 0x509   : > { %34593 = vst [vmem:[#allocation60_spill] sm:$0xff] %v30901_v1  ;;  %21023 = vmatmul.mubr.f32.gmra.mrb[100].mxu1 %v34594_v57  ;;  %20755 = vmatprep.mubr.msk.f32.mxu0 %vm25178_vm0, %v33928_v36  ;;  %v8461_v13 = vsel %vm7757_vm6, %v30901_v1, 0.0  ;;  %24943 = vpow2.f32 %v8257_v42  ;;  %v8117_v9 = vmul.f32 0.125, %v8045_v34  ;;  %v8241_v45 = vmul.f32 1.442695, %v8108_v31 }
 0x50a   : > { %21025 = vmatprep.mubr.msk.f32.mxu1 %vm25178_vm0, %v33928_v36  ;;  %20780 = vmatprep.subr.mxu0 %v33928_v36  ;;  %v7974_v11 = vpop.xlane.xlu1 %7973  ;;  %v8037_v40 = vsub.f32 %v34601_v32, %v7947_v60  ;;  %v34611_v34 = vand.u32 4294901760, %v30400_v15  ;;  %v34613_v60 = vld [vmem:[#allocation54_spill] sm:$0xff]  ;;  %v34616_v32 = vld [vmem:[#allocation52_spill] sm:$0xff] }
 0x50b   : > { %8462 = vadd.xlane.f32.xlu0 %v8461_v13  ;;  %21050 = vmatprep.subr.mxu1 %v33928_v36  ;;  %v8046_v22 = vsub.f32 %v34602_v26, %v7974_v11  ;;  %24945 = vpow2.f32 %v8241_v45  ;;  %v8259_v57 = vmul.f32 1.442695, %v8117_v9  ;;  %v34615_v9 = vld [vmem:[#allocation27_spill] sm:$0xff] }
 0x50c   : > { %v30917_v4 = vpop.eup %24933  ;;  %20756 = vmatmul.mubr.f32.gmra.mrb[102].mxu0 %v34598_v14  ;;  %8435 = vadd.xlane.f32.xlu1 %v8434_v58  ;;  %v8109_v46 = vmul.f32 0.125, %v8037_v40  ;;  %v30941_v3 = vpop.xlane.xlu0 %8264  ;;  %v34609_v58 = vand.u32 4294901760, %v30391_v5 }
 0x50d   : > { %34597 = vst [vmem:[#allocation22_spill] sm:$0xff] %v30917_v4  ;;  %v30921_v33 = vpop.eup %24935  ;;  %21026 = vmatmul.mubr.f32.gmra.mrb[102].mxu1 %v34600_v53  ;;  %20758 = vmatprep.mubr.msk.f32.mxu0 %vm25178_vm0, %v33928_v36  ;;  %v8437_v62 = vsel %vm7757_vm6, %v30917_v4, 0.0  ;;  %v8118_v61 = vmul.f32 0.125, %v8046_v22 }
 0x50e   : > { %34599 = vst [vmem:[#allocation76_spill] sm:$0xff] %v30921_v33  ;;  %21028 = vmatprep.mubr.msk.f32.mxu1 %vm25178_vm0, %v33928_v36  ;;  %v8464_v12 = vsel %vm7757_vm6, %v30921_v33, 0.0  ;;  %20781 = vmatpush3.msra.mxu0 %v34603_v27  ;;  %v8243_v6 = vmul.f32 1.442695, %v8109_v46  ;;  %v30947_v43 = vpop.xlane.xlu1 %8267  ;;  %v34621_v27 = vld [vmem:[#allocation31_spill] sm:$0xff]  ;;  %v34622_v46 = vld [vmem:[#allocation84_spill] sm:$0xff] }
 0x50f   : > { %8438 = vadd.xlane.f32.xlu0 %v8437_v62  ;;  %21051 = vmatpush3.msra.mxu1 %v34604_v7  ;;  %v8261_v44 = vmul.f32 1.442695, %v8118_v61  ;;  %v34618_v62 = vld [vmem:[#allocation56_spill] sm:$0xff] }
 0x510   : > { %20759 = vmatmul.mubr.f32.gmra.mrb[104].mxu0 %v34605_v20  ;;  %8465 = vadd.xlane.f32.xlu1 %v8464_v12  ;;  %v30943_v54 = vpop.eup %24937  ;;  %24947 = vpow2.f32 %v8243_v6  ;;  %v30963_v42 = vpop.xlane.xlu0 %8270  ;;  %v34623_v20 = vld [vmem:[#allocation49_spill] sm:$0xff] }
 0x511   : > { %34606 = vst [vmem:[#allocation78_spill] sm:$0xff] %v30943_v54  ;;  %21029 = vmatmul.mubr.f32.gmra.mrb[104].mxu1 %v34607_v50  ;;  %20761 = vmatprep.mubr.msk.f32.mxu0 %vm25178_vm0, %v33928_v36  ;;  %v30951_v39 = vpop.eup %24939  ;;  %v8440_v29 = vsel %vm7757_vm6, %v30943_v54, 0.0  ;;  %24949 = vpow2.f32 %v8261_v44  ;;  %v34626_v50 = vld [vmem:[#allocation88_spill] sm:$0xff] }
 0x512   : > { %34608 = vst [vmem:[#allocation90_spill] sm:$0xff] %v30951_v39  ;;  %21031 = vmatprep.mubr.msk.f32.mxu1 %vm25178_vm0, %v33928_v36  ;;  %23056 = vmatprep.subr.bf16.mxu1 %v33925_v18  ;;  %v8467_v30 = vsel %vm7757_vm6, %v30951_v39, 0.0  ;;  %v30965_v55 = vpop.eup %24941  ;;  %24951 = vpow2.f32 %v8259_v57  ;;  %v30973_v31 = vpop.xlane.xlu1 %8273  ;;  %v34624_v57 = vld [vmem:[#allocation37_spill] sm:$0xff]  ;;  %v34627_v44 = vld [vmem:[#allocation92_spill] sm:$0xff] }
 0x513   : > { %22984 = vmatprep.subr.bf16.mxu0 %v33925_v18  ;;  %34610 = vst [vmem:[#allocation73_spill] sm:$0xff] %v30965_v55  ;;  %8468 = vadd.xlane.f32.xlu0 %v8467_v30  ;;  %v30969_v13 = vpop.eup %24943  ;;  %v8443_v5 = vsel %vm7757_vm6, %v30965_v55, 0.0  ;;  %24953 = vrcp.f32 %v30941_v3  ;;  %v31088_v30 = vld [vmem:[%s25213_s12 + $0x120] sm:$0xff]  ;;  %v34638_v55 = vld [vmem:[#allocation5_spill] sm:$0xff]  ;;  %v34642_v54 = vld [vmem:[#allocation48_spill] sm:$0xff] }
 0x514   : > { %20762 = vmatmul.mubr.f32.gmra.mrb[106].mxu0 %v34609_v58  ;;  %8441 = vadd.xlane.f32.xlu1 %v8440_v29  ;;  %34612 = vst [vmem:[#allocation55_spill] sm:$0xff] %v30969_v13  ;;  %v8470_v14 = vsel %vm7757_vm6, %v30969_v13, 0.0  ;;  %v33752_v58 = vand.u32 4294901760, %v31088_v30  ;;  %v31184_v39 = vsel %vm7757_vm6, %v34638_v55, 0  ;;  %v31198_v55 = vsel %vm7757_vm6, %v34642_v54, 0  ;;  %v31215_v54 = vld [vmem:[%s25213_s12 + $0x190] sm:$0xff] }
 0x515   : > { %21032 = vmatmul.mubr.f32.gmra.mrb[106].mxu1 %v34611_v34  ;;  %20782 = vmatprep.mubr.msk.f32.mxu0 %vm25178_vm0, %v33928_v36  ;;  %v30982_v15 = vpop.eup %24945  ;;  %v31228_v4 = vand.u32 4294901760, %v31184_v39  ;;  %v31244_v17 = vand.u32 4294901760, %v31198_v55 }
 0x516   : > { %21052 = vmatprep.mubr.msk.f32.mxu1 %vm25178_vm0, %v33928_v36  ;;  %34614 = vst [vmem:[#allocation81_spill] sm:$0xff] %v30982_v15  ;;  %v30989_v45 = vpop.xlane.xlu0 %8276  ;;  %v8446_v53 = vsel %vm7757_vm6, %v30982_v15, 0.0 }
 0x517   : > { %8444 = vadd.xlane.f32.xlu0 %v8443_v5  ;;  %v30995_v11 = vpop.xlane.xlu1 %8279 }
 0x518   : > { %20783 = vmatmul.mubr.f32.vlgmr.msra.gmra.mrb[90].mxu0 %v34613_v60  ;;  %8471 = vadd.xlane.f32.xlu1 %v8470_v14 }
 0x519   : > { %21053 = vmatmul.mubr.f32.vlgmr.msra.gmra.mrb[90].mxu1 %v34615_v9  ;;  %20785 = vmatprep.mubr.msk.f32.mxu0 %vm25178_vm0, %v33928_v36 }
 0x51a   : > { %21055 = vmatprep.mubr.msk.f32.mxu1 %vm25178_vm0, %v33928_v36  ;;  %22986 = vmatpush3.bf16.msra.mxu0 %v34514_v25  ;;  %v30998_v40 = vpop.eup %24947  ;;  %v31015_v12 = vpop.xlane.xlu0 %8282 }
 0x51b   : > { %23058 = vmatpush3.bf16.msra.mxu1 %v34518_v24  ;;  %34617 = vst [vmem:[#allocation80_spill] sm:$0xff] %v30998_v40  ;;  %v31003_v26 = vpop.eup %24949  ;;  %v8449_v25 = vsel %vm7782_vm2, %v30998_v40, 0.0  ;;  %22987 = vmatprep.subr.bf16.mxu0 %v33925_v18  ;;  %v31021_v7 = vpop.xlane.xlu1 %8285 }
 0x51c   : > { %20786 = vmatmul.mubr.f32.gmra.mrb[92].mxu0 %v34616_v32  ;;  %8447 = vadd.xlane.f32.xlu1 %v8446_v53  ;;  %34619 = vst [vmem:[#allocation13_spill] sm:$0xff] %v31003_v26  ;;  %v31010_v24 = vpop.eup %24951  ;;  %v8476_v22 = vsel %vm7782_vm2, %v31003_v26, 0.0  ;;  %v31101_v53 = vld [vmem:[%s25213_s12 + $0x168] sm:$0xff] }
 0x51d   : > { %21056 = vmatmul.mubr.f32.gmra.mrb[92].mxu1 %v34618_v62  ;;  %20788 = vmatprep.mubr.msk.f32.mxu0 %vm25178_vm0, %v33928_v36  ;;  %34620 = vst [vmem:[#allocation28_spill] sm:$0xff] %v31010_v24  ;;  %v8473_v61 = vsel %vm7757_vm6, %v31010_v24, 0.0  ;;  %v31154_v24 = vld [vmem:[%s25213_s12 + $0x180] sm:$0xff] }
 0x51e   : > { %21058 = vmatprep.mubr.msk.f32.mxu1 %vm25178_vm0, %v33928_v36  ;;  %23059 = vmatprep.subr.bf16.mxu1 %v33925_v18 }
 0x51f   : > { %8450 = vadd.xlane.f32.xlu0 %v8449_v25  ;;  %22989 = vmatpush3.bf16.msra.mxu0 %v34525_v28  ;;  %v31034_v6 = vpop.xlane.xlu0 %8288  ;;  %v34625_v28 = vld [vmem:[#allocation57_spill] sm:$0xff] }
 0x520   : > { %20789 = vmatmul.mubr.f32.gmra.mrb[94].mxu0 %v34621_v27  ;;  %8477 = vadd.xlane.f32.xlu1 %v8476_v22  ;;  %v31105_v22 = vld [vmem:[%s25213_s12 + $0x170] sm:$0xff] }
 0x521   : > { %21059 = vmatmul.mubr.f32.gmra.mrb[94].mxu1 %v34622_v46  ;;  %20791 = vmatprep.mubr.msk.f32.mxu0 %vm25178_vm0, %v33928_v36 }
 0x522   : > { %21061 = vmatprep.mubr.msk.f32.mxu1 %vm25178_vm0, %v33928_v36  ;;  %23061 = vmatpush3.bf16.msra.mxu1 %v34528_v16  ;;  %v8292_v16 = vpop.xlane.xlu1 %8291 }
 0x523   : > { %8474 = vadd.xlane.f32.xlu0 %v8473_v61  ;;  %22990 = vmatprep.subr.bf16.mxu0 %v33925_v18  ;;  %24955 = vrcp.f32 %v8292_v16  ;;  %v34632_v61 = vld [vmem:[#allocation44_spill] sm:$0xff] }
 0x524   : > { %20792 = vmatmul.mubr.f32.gmra.mrb[96].mxu0 %v34623_v20  ;;  %23062 = vmatprep.subr.bf16.mxu1 %v33925_v18  ;;  %24957 = vrcp.f32 %v30947_v43  ;;  %v12173_v43 = vsel %vm7757_vm6, %v30612_v0, 0  ;;  %v31128_v25 = vsel %vm7757_vm6, %v34632_v61, 0 }
 0x525   : > { %21062 = vmatmul.mubr.f32.gmra.mrb[96].mxu1 %v34624_v57  ;;  %20794 = vmatprep.mubr.msk.f32.mxu0 %vm25178_vm0, %v33928_v36  ;;  %v31169_v40 = vand.u32 4294901760, %v31128_v25 }
 0x526   : > { %21064 = vmatprep.mubr.msk.f32.mxu1 %vm25178_vm0, %v33928_v36  ;;  %23064 = vmatpush3.bf16.msra.mxu1 %v34532_v23 }
 0x527   : > { %22992 = vmatpush3.bf16.msra.mxu0 %v34531_v56  ;;  %23065 = vmatprep.subr.bf16.mxu1 %v33925_v18  ;;  %v8295_v56 = vpop.xlane.xlu0 %8294 }
 0x528   : > { %20795 = vmatmul.mubr.f32.gmra.mrb[98].mxu0 %v34625_v28  ;;  %22993 = vmatprep.subr.bf16.mxu0 %v33925_v18  ;;  %24959 = vrcp.f32 %v8295_v56 }
 0x529   : > { %21065 = vmatmul.mubr.f32.gmra.mrb[98].mxu1 %v34626_v50  ;;  %20797 = vmatprep.mubr.msk.f32.mxu0 %vm25178_vm0, %v33928_v36  ;;  %24961 = vrcp.f32 %v30963_v42  ;;  %v31092_v42 = vld [vmem:[%s25213_s12 + $0x128] sm:$0xff] }
 0x52a   : > { %21067 = vmatprep.mubr.msk.f32.mxu1 %vm25178_vm0, %v33928_v36  ;;  %23067 = vmatpush3.bf16.msra.mxu1 %v34538_v49  ;;  %v8298_v49 = vpop.xlane.xlu1 %8297  ;;  %v33751_v34 = vand.u32 4294901760, %v31092_v42 }
 0x52b   : > { %22995 = vmatpush3.bf16.msra.mxu0 %v34536_v48  ;;  %21095 = vmatprep.subr.mxu1 %v33928_v36  ;;  %24963 = vrcp.f32 %v8298_v49  ;;  %v8301_v23 = vpop.xlane.xlu0 %8300 }
 0x52c   : > { %20798 = vmatmul.mubr.f32.gmra.mrb[100].mxu0 %v34494_v8  ;;  %20825 = vmatprep.subr.mxu0 %v33928_v36  ;;  %24965 = vrcp.f32 %v30973_v31  ;;  %v31110_v31 = vand.u32 4294901760, %v12173_v43 }
 0x52d   : > { %21068 = vmatmul.mubr.f32.gmra.mrb[100].mxu1 %v30147_v19  ;;  %20800 = vmatprep.mubr.msk.f32.mxu0 %vm25178_vm0, %v33928_v36  ;;  %24967 = vrcp.f32 %v8301_v23 }
 0x52e   : > { %21070 = vmatprep.mubr.msk.f32.mxu1 %vm25178_vm0, %v33928_v36  ;;  %21096 = vmatpush3.msra.mxu1 %v30127_v41  ;;  %v13096_v41 = vsel %vm7757_vm6, %v30683_v51, 0  ;;  %v8304_v49 = vpop.xlane.xlu1 %8303  ;;  %24969 = vrcp.f32 %v30989_v45  ;;  %v34633_v45 = vand.u32 4294901760, %v31101_v53 }
 0x52f   : > { %20826 = vmatpush3.msra.mxu0 %v30105_v2  ;;  %23140 = vmatprep.subr.bf16.mxu1 %v33925_v18  ;;  %v24954_v2 = vpop.eup %24953  ;;  %v9351_v48 = vpop.f32.mrb[72].mxu0  ;;  %v31108_v56 = vand.u32 4294901760, %v13096_v41  ;;  %24971 = vrcp.f32 %v8304_v49 }
 0x530   : > { %20801 = vmatmul.mubr.f32.gmra.mrb[102].mxu0 %v30243_v10  ;;  %23068 = vmatprep.subr.bf16.mxu0 %v33925_v18  ;;  %v24956_v3 = vpop.eup %24955  ;;  %v15936_v51 = vmul.f32 %v24954_v2, %v9351_v48  ;;  %v20289_v5 = vpop.f32.mrb[73].mxu0  ;;  %v34628_v2 = vld [vmem:[#allocation93_spill] sm:$0xff]  ;;  %24973 = vrcp.f32 %v30995_v11 }
 0x531   : > { %21071 = vmatmul.mubr.f32.gmra.mrb[102].mxu1 %v30296_v38  ;;  %20803 = vmatprep.mubr.msk.f32.mxu0 %vm25178_vm0, %v33928_v36  ;;  %v10274_v29 = vpop.f32.mrb[72].mxu1  ;;  %v24958_v16 = vpop.eup %24957  ;;  %v31122_v5 = vpack.c.bf16 %v33751_v34, %v33752_v58  ;;  %v31138_v58 = vld [vmem:[%s25213_s12 + $0x138] sm:$0xff]  ;;  %v31158_v49 = vsub.f32 %v13096_v41, %v31108_v56 }
 0x532   : > { %21073 = vmatprep.mubr.msk.f32.mxu1 %vm25178_vm0, %v33928_v36  ;;  %v15945_v0 = vmul.f32 %v24956_v3, %v10274_v29  ;;  %16008 = vst.msk [vmem:[%s31080_s15] sm:$0xff] %vm197_vm1, %v15936_v51  ;;  %v20559_v14 = vpop.f32.mrb[73].mxu1  ;;  %v24960_v48 = vpop.eup %24959  ;;  %v34629_v3 = vld [vmem:[#allocation94_spill] sm:$0xff] }
 0x533   : > { %v9357_v23 = vpop.f32.mrb[74].mxu0  ;;  %34630 = vst [vmem:[#allocation63_spill] sm:$0xff] %v31122_v5  ;;  %34636 = vst [vmem:[#allocation59_spill] sm:$0xff] %v31158_v49 }
 0x534   : > { %20804 = vmatmul.mubr.f32.gmra.mrb[104].mxu0 %v30313_v21  ;;  %16018 = vst.msk [vmem:[%s31080_s15 + $0x48] sm:$0xff] %vm197_vm1, %v15945_v0  ;;  %v15937_v51 = vmul.f32 %v24958_v16, %v9357_v23  ;;  %v34631_v0 = vld [vmem:[#allocation41_spill] sm:$0xff]  ;;  %v20292_v16 = vpop.f32.mrb[75].mxu0  ;;  %v31134_v23 = vld [vmem:[%s25213_s12 + $0x130] sm:$0xff] }
 0x535   : > { %21074 = vmatmul.mubr.f32.gmra.mrb[104].mxu1 %v34627_v44  ;;  %20806 = vmatprep.mubr.msk.f32.mxu0 %vm25178_vm0, %v33928_v36  ;;  %v10280_v29 = vpop.f32.mrb[74].mxu1  ;;  %v12176_v14 = vsel %vm7757_vm6, %v34631_v0, 0  ;;  %v31150_v16 = vld [vmem:[%s25213_s12 + $0x178] sm:$0xff]  ;;  %v24962_v0 = vpop.eup %24961 }
 0x536   : > { %21076 = vmatprep.mubr.msk.f32.mxu1 %vm25178_vm0, %v33928_v36  ;;  %v15946_v26 = vmul.f32 %v24960_v48, %v10280_v29  ;;  %16009 = vst.msk [vmem:[%s31080_s15 + $0x8] sm:$0xff] %vm197_vm1, %v15937_v51  ;;  %v20562_v61 = vpop.f32.mrb[75].mxu1  ;;  %v34634_v48 = vand.u32 4294901760, %v31105_v22  ;;  %v31161_v51 = vsub.f32 %v12173_v43, %v31110_v31  ;;  %v24964_v34 = vpop.eup %24963  ;;  %v31175_v43 = vld [vmem:[%s25213_s12 + $0x140] sm:$0xff]  ;;  %v34643_v11 = vand.u32 4294901760, %v31150_v16 }
 0x537   : > { %v8307_v61 = vpop.xlane.xlu0 %8306 }
 0x538   : > { %20807 = vmatmul.mubr.f32.gmra.mrb[106].mxu0 %v34628_v2  ;;  %v31147_v29 = vpack.c.bf16 %v34634_v48, %v34633_v45  ;;  %34637 = vst [vmem:[#allocation74_spill] sm:$0xff] %v31161_v51  ;;  %16019 = vst.msk [vmem:[%s31080_s15 + $0x50] sm:$0xff] %vm197_vm1, %v15946_v26  ;;  %v9363_v45 = vpop.f32.mrb[76].mxu0  ;;  %v31166_v48 = vand.u32 4294901760, %v12176_v14  ;;  %v34640_v26 = vand.u32 4294901760, %v31138_v58  ;;  %24975 = vrcp.f32 %v8307_v61 }
 0x539   : > { %21077 = vmatmul.mubr.f32.gmra.mrb[106].mxu1 %v34629_v3  ;;  %20827 = vmatprep.mubr.msk.f32.mxu0 %vm25178_vm0, %v33928_v36  ;;  %v10286_v15 = vpop.f32.mrb[76].mxu1  ;;  %v15938_v41 = vmul.f32 %v24962_v0, %v9363_v45  ;;  %v20295_v0 = vpop.f32.mrb[77].mxu0  ;;  %v34639_v45 = vand.u32 4294901760, %v31134_v23  ;;  %24977 = vrcp.f32 %v31015_v12 }
 0x53a   : > { %21097 = vmatprep.mubr.msk.f32.mxu1 %vm25178_vm0, %v33928_v36  ;;  %34635 = vst [vmem:[#allocation30_spill] sm:$0xff] %v31147_v29 }
 0x53b   : > { %v31194_v13 = vpack.c.bf16 %v34640_v26, %v34639_v45  ;;  %16010 = vst.msk [vmem:[%s31080_s15 + $0x10] sm:$0xff] %vm197_vm1, %v15938_v41  ;;  %v31211_v26 = vld [vmem:[%s25213_s12 + $0x188] sm:$0xff]  ;;  %v24966_v41 = vpop.eup %24965  ;;  %v9369_v33 = vpop.f32.mrb[78].mxu0  ;;  %v31225_v45 = vsub.f32 %v12176_v14, %v31166_v48  ;;  %v31241_v14 = vsub.f32 %v31128_v25, %v31169_v40  ;;  %v34655_v25 = vand.u32 4294901760, %v31158_v49 }
 0x53c   : > { %20828 = vmatmul.mubr.f32.vlgmr.msra.gmra.mrb[90].mxu0 %v34613_v60  ;;  %v31179_v60 = vld [vmem:[%s25213_s12 + $0x148] sm:$0xff]  ;;  %v24968_v61 = vpop.eup %24967 }
 0x53d   : > { %21098 = vmatmul.mubr.f32.vlgmr.msra.gmra.mrb[90].mxu1 %v34615_v9  ;;  %20830 = vmatprep.mubr.msk.f32.mxu0 %vm25178_vm0, %v33928_v36  ;;  %v15947_v9 = vmul.f32 %v24964_v34, %v10286_v15  ;;  %34641 = vst [vmem:[#allocation47_spill] sm:$0xff] %v31194_v13  ;;  %v20565_v15 = vpop.f32.mrb[77].mxu1  ;;  %v34644_v34 = vand.u32 4294901760, %v31154_v24  ;;  %34646 = vst [vmem:[#allocation77_spill] sm:$0xff] %v31225_v45  ;;  %v31288_v47 = vsub.f32 %v31158_v49, %v34655_v25 }
 0x53e   : > { %21100 = vmatprep.mubr.msk.f32.mxu1 %vm25178_vm0, %v33928_v36  ;;  %23070 = vmatpush3.bf16.msra.mxu0 %v31122_v5  ;;  %v8310_v15 = vpop.xlane.xlu1 %8309  ;;  %34650 = vst [vmem:[#allocation8_spill] sm:$0xff] %v31241_v14  ;;  %v31299_v25 = vsub.f32 %v31184_v39, %v31228_v4  ;;  %v31313_v39 = vsub.f32 %v31198_v55, %v31244_v17 }
 0x53f   : > { %23142 = vmatpush3.bf16.msra.mxu1 %v31147_v29  ;;  %23071 = vmatprep.subr.bf16.mxu0 %v33925_v18  ;;  %v31208_v0 = vpack.c.bf16 %v34644_v34, %v34643_v11  ;;  %16020 = vst.msk [vmem:[%s31080_s15 + $0x58] sm:$0xff] %vm197_vm1, %v15947_v9  ;;  %v10292_v9 = vpop.f32.mrb[78].mxu1  ;;  %v34647_v11 = vand.u32 4294901760, %v31175_v43  ;;  %v34648_v34 = vand.u32 4294901760, %v31179_v60  ;;  %24979 = vrcp.f32 %v8310_v15  ;;  %v34656_v15 = vld [vmem:[#allocation15_spill] sm:$0xff] }
 0x540   : > { %20831 = vmatmul.mubr.f32.gmra.mrb[92].mxu0 %v34616_v32  ;;  %23143 = vmatprep.subr.bf16.mxu1 %v33925_v18  ;;  %v15939_v32 = vmul.f32 %v24966_v41, %v9369_v33  ;;  %v20298_v33 = vpop.f32.mrb[79].mxu0  ;;  %v31251_v41 = vld [vmem:[%s25213_s12 + $0x150] sm:$0xff]  ;;  %v20568_v12 = vpop.f32.mrb[79].mxu1  ;;  %v12182_v52 = vsel %vm7757_vm6, %v34656_v15, 0  ;;  %34657 = vst [vmem:[#allocation79_spill] sm:$0xff] %v31299_v25  ;;  %24981 = vrcp.f32 %v31021_v7  ;;  %34661 = vst [vmem:[#allocation35_spill] sm:$0xff] %v31313_v39 }
 0x541   : > { %34645 = vst [vmem:[#allocation70_spill] sm:$0xff] %v31208_v0  ;;  %21101 = vmatmul.mubr.f32.gmra.mrb[92].mxu1 %v34618_v62  ;;  %20833 = vmatprep.mubr.msk.f32.mxu0 %vm25178_vm0, %v33928_v36  ;;  %v31237_v1 = vpack.c.bf16 %v34648_v34, %v34647_v11  ;;  %v15948_v62 = vmul.f32 %v24968_v61, %v10292_v9  ;;  %v31255_v11 = vld [vmem:[%s25213_s12 + $0x158] sm:$0xff]  ;;  %v34651_v61 = vand.u32 4294901760, %v31211_v26  ;;  %v34652_v9 = vand.u32 4294901760, %v31215_v54  ;;  %v8313_v12 = vpop.xlane.xlu0 %8312  ;;  %v9375_v34 = vpop.f32.mrb[80].mxu0 }
 0x542   : > { %21103 = vmatprep.mubr.msk.f32.mxu1 %vm25178_vm0, %v33928_v36  ;;  %23073 = vmatpush3.bf16.msra.mxu0 %v31194_v13  ;;  %16011 = vst.msk [vmem:[%s31080_s15 + $0x18] sm:$0xff] %vm197_vm1, %v15939_v32  ;;  %v24970_v32 = vpop.eup %24969  ;;  %24983 = vrcp.f32 %v8313_v12  ;;  %v34662_v7 = vand.u32 4294901760, %v31269_v37  ;;  %v31329_v55 = vand.u32 4294901760, %v12182_v52  ;;  %v8316_v63 = vpop.xlane.xlu1 %8315  ;;  %v34691_v29 = vand.u32 4294901760, %v31211_v26 }
 0x543   : > { %34649 = vst [vmem:[#allocation82_spill] sm:$0xff] %v31237_v1  ;;  %23145 = vmatpush3.bf16.msra.mxu1 %v31208_v0  ;;  %23074 = vmatprep.subr.bf16.mxu0 %v33925_v18  ;;  %v31266_v33 = vpack.c.bf16 %v34652_v9, %v34651_v61  ;;  %16021 = vst.msk [vmem:[%s31080_s15 + $0x60] sm:$0xff] %vm197_vm1, %v15948_v62  ;;  %v34654_v61 = vand.u32 4294901760, %v31161_v51  ;;  %v24972_v59 = vpop.eup %24971  ;;  %v15940_v62 = vmul.f32 %v24970_v32, %v9375_v34 }
 0x544   : > { %20834 = vmatmul.mubr.f32.gmra.mrb[94].mxu0 %v34621_v27  ;;  %23146 = vmatprep.subr.bf16.mxu1 %v33925_v18  ;;  %v10298_v27 = vpop.f32.mrb[80].mxu1  ;;  %v34658_v34 = vand.u32 4294901760, %v31251_v41  ;;  %v34659_v32 = vand.u32 4294901760, %v31255_v11  ;;  %v24974_v12 = vpop.eup %24973  ;;  %24985 = vrcp.f32 %v31034_v6  ;;  %v31376_v6 = vsub.f32 %v12182_v52, %v31329_v55 }
 0x545   : > { %34653 = vst [vmem:[#allocation14_spill] sm:$0xff] %v31266_v33  ;;  %v31283_v9 = vsub.f32 %v31161_v51, %v34654_v61  ;;  %21104 = vmatmul.mubr.f32.gmra.mrb[94].mxu1 %v34622_v46  ;;  %20836 = vmatprep.mubr.msk.f32.mxu0 %vm25178_vm0, %v33928_v36  ;;  %v15949_v15 = vmul.f32 %v24972_v59, %v10298_v27  ;;  %v20301_v46 = vpop.f32.mrb[81].mxu0  ;;  %16012 = vst.msk [vmem:[%s31080_s15 + $0x20] sm:$0xff] %vm197_vm1, %v15940_v62  ;;  %v20571_v59 = vpop.f32.mrb[81].mxu1  ;;  %v34663_v27 = vand.u32 4294901760, %v31273_v35 }
 0x546   : > { %21106 = vmatprep.mubr.msk.f32.mxu1 %vm25178_vm0, %v33928_v36  ;;  %23076 = vmatpush3.bf16.msra.mxu0 %v31237_v1  ;;  %v31309_v61 = vpack.c.bf16 %v34659_v32, %v34658_v34  ;;  %v25149_v34 = vld [vmem:[%s25213_s12 + $0x160] sm:$0xf]  ;;  %v9381_v62 = vpop.f32.mrb[82].mxu0  ;;  %v25150_v59 = vld [vmem:[%s25213_s12 + $0x1a8] sm:$0xf]  ;;  %v10304_v1 = vpop.f32.mrb[82].mxu1  ;;  %24987 = vrcp.f32 %v8316_v63 }
 0x547   : > { %23148 = vmatpush3.bf16.msra.mxu1 %v31266_v33  ;;  %23077 = vmatprep.subr.bf16.mxu0 %v33925_v18  ;;  %v31323_v46 = vpack.c.bf16 %v34663_v27, %v34662_v7  ;;  %v31327_v32 = vsel %vm8506_vm3, %v25149_v34, 0  ;;  %16022 = vst.msk [vmem:[%s31080_s15 + $0x68] sm:$0xff] %vm197_vm1, %v15949_v15  ;;  %v31337_v33 = vsel %vm8506_vm3, %v25150_v59, 0  ;;  %v24976_v34 = vpop.eup %24975  ;;  %v34665_v15 = vand.u32 4294901760, %v31225_v45  ;;  %v20304_v13 = vpop.f32.mrb[83].mxu0  ;;  %34670 = vst [vmem:[#allocation36_spill] sm:$0xff] %v31376_v6 }
 0x548   : > { %34660 = vst [vmem:[#allocation65_spill] sm:$0xff] %v31309_v61  ;;  %20837 = vmatmul.mubr.f32.gmra.mrb[96].mxu0 %v34623_v20  ;;  %23149 = vmatprep.subr.bf16.mxu1 %v33925_v18  ;;  %v15941_v20 = vmul.f32 %v24974_v12, %v9381_v62  ;;  %v34666_v59 = vand.u32 4294901760, %v31241_v14  ;;  %v31360_v12 = vand.u32 4294901760, %v31327_v32  ;;  %v31373_v13 = vand.u32 4294901760, %v31337_v33  ;;  %v9387_v52 = vpop.f32.mrb[84].mxu0  ;;  %v34674_v27 = vld [vmem:[#allocation39_spill] sm:$0xff] }
 0x549   : > { %34664 = vst [vmem:[#allocation4_spill] sm:$0xff] %v31323_v46  ;;  %21107 = vmatmul.mubr.f32.gmra.mrb[96].mxu1 %v34624_v57  ;;  %20839 = vmatprep.mubr.msk.f32.mxu0 %vm25178_vm0, %v33928_v36  ;;  %v31347_v0 = vsub.f32 %v31225_v45, %v34665_v15  ;;  %v15950_v57 = vmul.f32 %v24976_v34, %v10304_v1  ;;  %v34668_v15 = vand.u32 4294901760, %v31088_v30  ;;  %v20574_v1 = vpop.f32.mrb[83].mxu1  ;;  %v24978_v34 = vpop.eup %24977  ;;  %v34671_v63 = vand.u32 4294901760, %v31092_v42 }
 0x54a   : > { %v31352_v7 = vsub.f32 %v31241_v14, %v34666_v59  ;;  %21109 = vmatprep.mubr.msk.f32.mxu1 %vm25178_vm0, %v33928_v36  ;;  %23079 = vmatpush3.bf16.msra.mxu0 %v31309_v61  ;;  %34667 = vst [vmem:[#allocation86_spill] sm:$0xff] %v31360_v12  ;;  %16013 = vst.msk [vmem:[%s31080_s15 + $0x28] sm:$0xff] %vm197_vm1, %v15941_v20 }
 0x54b   : > { %v31366_v59 = vsub.f32 %v31088_v30, %v34668_v15  ;;  %23151 = vmatpush3.bf16.msra.mxu1 %v31323_v46  ;;  %21140 = vmatprep.subr.mxu0 %v33928_v36  ;;  %34669 = vst [vmem:[#allocation33_spill] sm:$0xff] %v31373_v13  ;;  %v31381_v62 = vsub.f32 %v31092_v42, %v34671_v63  ;;  %v34672_v30 = vand.u32 4294901760, %v31101_v53  ;;  %v34673_v15 = vand.u32 4294901760, %v31105_v22  ;;  %v24980_v63 = vpop.eup %24979 }
 0x54c   : > { %16023 = vst.msk [vmem:[%s31080_s15 + $0x70] sm:$0xff] %vm197_vm1, %v15950_v57  ;;  %20840 = vmatmul.mubr.f32.gmra.mrb[98].mxu0 %v34625_v28  ;;  %21410 = vmatprep.subr.mxu1 %v33928_v36  ;;  %v13105_v42 = vsel %vm7757_vm6, %v34674_v27, 0  ;;  %v34675_v57 = vand.u32 4294901760, %v31299_v25 }
 0x54d   : > { %v31386_v20 = vsub.f32 %v31101_v53, %v34672_v30  ;;  %v31391_v1 = vsub.f32 %v31105_v22, %v34673_v15  ;;  %21110 = vmatmul.mubr.f32.gmra.mrb[98].mxu1 %v34626_v50  ;;  %v10310_v53 = vpop.f32.mrb[84].mxu1  ;;  %20842 = vmatprep.mubr.msk.f32.mxu0 %vm25178_vm0, %v33928_v36  ;;  %v15942_v22 = vmul.f32 %v24978_v34, %v9387_v52  ;;  %v34676_v15 = vld [vmem:[#allocation61_spill] sm:$0xff]  ;;  %v20307_v50 = vpop.f32.mrb[85].mxu0  ;;  %v34677_v52 = vand.u32 4294901760, %v31313_v39 }
 0x54e   : > { %v31406_v28 = vsub.f32 %v31299_v25, %v34675_v57  ;;  %v31410_v46 = vsel %vm7757_vm6, %v34676_v15, 0  ;;  %v15951_v27 = vmul.f32 %v24980_v63, %v10310_v53  ;;  %21112 = vmatprep.mubr.msk.f32.mxu1 %vm25178_vm0, %v33928_v36  ;;  %21141 = vmatpush3.msra.mxu0 %v31360_v12  ;;  %v34678_v57 = vld [vmem:[#allocation20_spill] sm:$0xff]  ;;  %v34679_v63 = vand.u32 4294901760, %v31134_v23  ;;  %v20577_v15 = vpop.f32.mrb[85].mxu1 }
 0x54f   : > { %v31419_v30 = vsub.f32 %v31313_v39, %v34677_v52  ;;  %v31423_v61 = vsel %vm7757_vm6, %v34678_v57, 0  ;;  %16014 = vst.msk [vmem:[%s31080_s15 + $0x30] sm:$0xff] %vm197_vm1, %v15942_v22  ;;  %21411 = vmatpush3.msra.mxu1 %v31373_v13  ;;  %23080 = vmatprep.subr.bf16.mxu0 %v33925_v18  ;;  %v31436_v34 = vand.u32 4294901760, %v13105_v42  ;;  %v24982_v57 = vpop.eup %24981  ;;  %v34680_v39 = vand.u32 4294901760, %v31138_v58 }
 0x550   : > { %v31428_v53 = vsub.f32 %v31134_v23, %v34679_v63  ;;  %16024 = vst.msk [vmem:[%s31080_s15 + $0x78] sm:$0xff] %vm197_vm1, %v15951_v27  ;;  %20843 = vmatmul.mubr.f32.gmra.mrb[100].mxu0 %v34494_v8  ;;  %v9393_v23 = vpop.f32.mrb[86].mxu0  ;;  %23152 = vmatprep.subr.bf16.mxu1 %v33925_v18  ;;  %v24984_v52 = vpop.eup %24983  ;;  %v34681_v50 = vand.u32 4294901760, %v31150_v16 }
 0x551   : > { %v31441_v25 = vsub.f32 %v31138_v58, %v34680_v39  ;;  %v34682_v39 = vand.u32 4294901760, %v31154_v24  ;;  %21113 = vmatmul.mubr.f32.gmra.mrb[100].mxu1 %v30147_v19  ;;  %v10316_v27 = vpop.f32.mrb[86].mxu1  ;;  %20845 = vmatprep.mubr.msk.f32.mxu0 %vm25178_vm0, %v33928_v36  ;;  %v15943_v15 = vmul.f32 %v24982_v57, %v9393_v23  ;;  %v31471_v19 = vand.u32 4294901760, %v31423_v61 }
 0x552   : > { %v31453_v58 = vsub.f32 %v31150_v16, %v34681_v50  ;;  %v15952_v22 = vmul.f32 %v24984_v52, %v10316_v27  ;;  %21115 = vmatprep.mubr.msk.f32.mxu1 %vm25178_vm0, %v33928_v36  ;;  %v20310_v16 = vpop.f32.mrb[87].mxu0  ;;  %v20580_v50 = vpop.f32.mrb[87].mxu1  ;;  %v34683_v57 = vand.u32 4294901760, %v31366_v59  ;;  %v34684_v23 = vand.u32 4294901760, %v31376_v6 }
 0x553   : > { %v31458_v8 = vsub.f32 %v31154_v24, %v34682_v39  ;;  %v31468_v24 = vand.u32 4294901760, %v31410_v46  ;;  %16015 = vst.msk [vmem:[%s31080_s15 + $0x38] sm:$0xff] %vm197_vm1, %v15943_v15  ;;  %v31484_v27 = vsub.f32 %v13105_v42, %v31436_v34  ;;  %v24986_v16 = vpop.eup %24985  ;;  %v9399_v50 = vpop.f32.mrb[88].mxu0  ;;  %v34686_v15 = vand.u32 4294901760, %v31381_v62 }
 0x554   : > { %v12369_v52 = vsub.f32 %v31366_v59, %v34683_v57  ;;  %v31481_v39 = vsub.f32 %v31376_v6, %v34684_v23  ;;  %16025 = vst.msk [vmem:[%s31080_s15 + $0x80] sm:$0xff] %vm197_vm1, %v15952_v22  ;;  %20846 = vmatmul.mubr.f32.gmra.mrb[102].mxu0 %v30243_v10  ;;  %v34687_v57 = vand.u32 4294901760, %v31386_v20  ;;  %v34688_v23 = vand.u32 4294901760, %v31391_v1  ;;  %v24988_v45 = vpop.eup %24987  ;;  %v10322_v10 = vpop.f32.mrb[88].mxu1 }
 0x555   : > { %34685 = vst [vmem:[#allocation83_spill] sm:$0xff] %v31484_v27  ;;  %v12376_v14 = vsub.f32 %v31381_v62, %v34686_v15  ;;  %21116 = vmatmul.mubr.f32.gmra.mrb[102].mxu1 %v30296_v38  ;;  %20848 = vmatprep.mubr.msk.f32.mxu0 %vm25178_vm0, %v33928_v36  ;;  %v15944_v22 = vmul.f32 %v24986_v16, %v9399_v50  ;;  %v33798_v15 = vand.u32 4294901760, %v31441_v25  ;;  %v34690_v38 = vand.u32 4294901760, %v31179_v60  ;;  %v20313_v16 = vpop.f32.mrb[89].mxu0  ;;  %v20583_v50 = vpop.f32.mrb[89].mxu1 }
 0x556   : > { %v13292_v63 = vsub.f32 %v31386_v20, %v34687_v57  ;;  %v13299_v6 = vsub.f32 %v31391_v1, %v34688_v23  ;;  %v34689_v23 = vand.u32 4294901760, %v31175_v43  ;;  %v15953_v49 = vmul.f32 %v24988_v45, %v10322_v10  ;;  %21118 = vmatprep.mubr.msk.f32.mxu1 %vm25178_vm0, %v33928_v36 }
 0x557   : > { %v31513_v5 = vsub.f32 %v31179_v60, %v34690_v38  ;;  %v31519_v57 = vsub.f32 %v31410_v46, %v31468_v24  ;;  %16017 = vst.msk [vmem:[%s31080_s15 + $0x40] sm:$0xf] %vm16016_vm4, %v15944_v22  ;;  %v12370_v45 = vand.u32 4294901760, %v12369_v52  ;;  %v31535_v10 = vsub.f32 %v31423_v61, %v31471_v19 }
 0x558   : > { %v31508_v42 = vsub.f32 %v31175_v43, %v34689_v23  ;;  %v31524_v43 = vsub.f32 %v31211_v26, %v34691_v29  ;;  %v34692_v23 = vand.u32 4294901760, %v31215_v54  ;;  %16026 = vst.msk [vmem:[%s31080_s15 + $0x88] sm:$0xf] %vm16016_vm4, %v15953_v49  ;;  %20849 = vmatmul.mubr.f32.gmra.mrb[104].mxu0 %v30313_v21  ;;  %v12377_v46 = vand.u32 4294901760, %v12376_v14 }
 0x559   : > { %v13293_v38 = vand.u32 4294901760, %v13292_v63  ;;  %v13300_v29 = vand.u32 4294901760, %v13299_v6  ;;  %v34693_v26 = vand.u32 4294901760, %v31428_v53  ;;  %21119 = vmatmul.mubr.f32.gmra.mrb[104].mxu1 %v34627_v44  ;;  %20851 = vmatprep.mubr.msk.f32.mxu0 %vm25178_vm0, %v33928_v36  ;;  %v34694_v49 = vand.u32 4294901760, %v31453_v58  ;;  %v34696_v6 = vld [vmem:[#allocation12_spill] sm:$0xff] }
 0x55a   : > { %v31529_v60 = vsub.f32 %v31215_v54, %v34692_v23  ;;  %v12390_v54 = vsub.f32 %v31441_v25, %v33798_v15  ;;  %v34695_v14 = vand.u32 4294901760, %v31458_v8  ;;  %v12188_v63 = vsel %vm7757_vm6, %v34696_v6, 0  ;;  %21121 = vmatprep.mubr.msk.f32.mxu1 %vm25178_vm0, %v33928_v36  ;;  %v34701_v23 = vld [vmem:[#allocation66_spill] sm:$0xff] }
 0x55b   : > { %v12383_v16 = vsub.f32 %v31428_v53, %v34693_v26  ;;  %v13306_v21 = vsub.f32 %v31453_v58, %v34694_v49  ;;  %v34697_v44 = vand.u32 4294901760, %v31251_v41  ;;  %v34698_v22 = vand.u32 4294901760, %v31255_v11 }
 0x55c   : > { %v13313_v61 = vsub.f32 %v31458_v8, %v34695_v14  ;;  %v34699_v49 = vand.u32 4294901760, %v31269_v37  ;;  %20852 = vmatmul.mubr.f32.gmra.mrb[106].mxu0 %v34628_v2  ;;  %v23153_v15 = vpack.c.bf16 %v13300_v29, %v13293_v38  ;;  %v13111_v51 = vsel %vm7757_vm6, %v34701_v23, 0 }
 0x55d   : > { %v31560_v52 = vsub.f32 %v31251_v41, %v34697_v44  ;;  %v31565_v50 = vsub.f32 %v31255_v11, %v34698_v22  ;;  %v34700_v41 = vand.u32 4294901760, %v31273_v35  ;;  %v33801_v11 = vand.u32 4294901760, %v31524_v43  ;;  %21122 = vmatmul.mubr.f32.gmra.mrb[106].mxu1 %v34629_v3  ;;  %21142 = vmatprep.mubr.msk.f32.mxu0 %vm25178_vm0, %v33928_v36 }
 0x55e   : > { %v31574_v14 = vsub.f32 %v31269_v37, %v34699_v49  ;;  %v33802_v44 = vand.u32 4294901760, %v31529_v60  ;;  %v23081_v22 = vpack.c.bf16 %v12377_v46, %v12370_v45  ;;  %v12391_v37 = vand.u32 4294901760, %v12390_v54  ;;  %21412 = vmatprep.mubr.msk.f32.mxu1 %vm25178_vm0, %v33928_v36 }
 0x55f   : > { %v31579_v6 = vsub.f32 %v31273_v35, %v34700_v41  ;;  %v12384_v35 = vand.u32 4294901760, %v12383_v16  ;;  %v13307_v49 = vand.u32 4294901760, %v13306_v21  ;;  %v13314_v41 = vand.u32 4294901760, %v13313_v61 }
 0x560   : > { %v34702_v2 = vand.u32 4294901760, %v31508_v42  ;;  %v34703_v46 = vand.u32 4294901760, %v31513_v5  ;;  %v13320_v16 = vsub.f32 %v31524_v43, %v33801_v11  ;;  %v13327_v54 = vsub.f32 %v31529_v60, %v33802_v44  ;;  %v34707_v11 = vld [vmem:[#allocation75_spill] sm:$0xff] }
 0x561   : > { %v31610_v23 = vsub.f32 %v31327_v32, %v31360_v12  ;;  %v31616_v26 = vand.u32 4294901760, %v13111_v51  ;;  %v12191_v29 = vsel %vm7757_vm6, %v34707_v11, 0  ;;  %v31622_v44 = vsub.f32 %v31337_v33, %v31373_v13 }
 0x562   : > { %v12397_v45 = vsub.f32 %v31508_v42, %v34702_v2  ;;  %v12404_v38 = vsub.f32 %v31513_v5, %v34703_v46  ;;  %v34704_v2 = vand.u32 4294901760, %v31283_v9  ;;  %v31614_v46 = vand.u32 4294901760, %v12188_v63 }
 0x563   : > { %34706 = vst [vmem:[#allocation18_spill] sm:$0xff] %v31616_v26  ;;  %v34708_v61 = vand.u32 4294901760, %v31288_v47  ;;  %v23084_v32 = vpack.c.bf16 %v12391_v37, %v12384_v35  ;;  %v23156_v9 = vpack.c.bf16 %v13314_v41, %v13307_v49  ;;  %v34710_v33 = vand.u32 4294901760, %v31560_v52 }
 0x564   : > { %21143 = vmatmul.mubr.f32.vlgmr.msra.gmra.mrb[108].mxu0 %v34704_v2  ;;  %34705 = vst [vmem:[#allocation38_spill] sm:$0xff] %v31614_v46  ;;  %v34709_v2 = vld [vmem:[#allocation58_spill] sm:$0xff]  ;;  %v12398_v11 = vand.u32 4294901760, %v12397_v45  ;;  %v12405_v3 = vand.u32 4294901760, %v12404_v38  ;;  %v34711_v47 = vand.u32 4294901760, %v31565_v50  ;;  %v13321_v35 = vand.u32 4294901760, %v13320_v16 }
 0x565   : > { %21413 = vmatmul.mubr.f32.vlgmr.msra.gmra.mrb[108].mxu1 %v34708_v61  ;;  %21145 = vmatprep.mubr.msk.f32.mxu0 %vm25178_vm0, %v33928_v36  ;;  %v13114_v21 = vsel %vm7757_vm6, %v34709_v2, 0  ;;  %v12411_v13 = vsub.f32 %v31560_v52, %v34710_v33  ;;  %v13328_v37 = vand.u32 4294901760, %v13327_v54  ;;  %v34712_v49 = vand.u32 4294901760, %v31574_v14 }
 0x566   : > { %21415 = vmatprep.mubr.msk.f32.mxu1 %vm25178_vm0, %v33928_v36  ;;  %23082 = vmatpush3.bf16.msra.mxu0 %v23081_v22  ;;  %v12418_v61 = vsub.f32 %v31565_v50, %v34711_v47  ;;  %v34713_v22 = vand.u32 4294901760, %v31579_v6  ;;  %v34714_v38 = vand.u32 4294901760, %v31347_v0  ;;  %v34715_v2 = vand.u32 4294901760, %v31484_v27 }
 0x567   : > { %23154 = vmatpush3.bf16.msra.mxu1 %v23153_v15  ;;  %23083 = vmatprep.subr.bf16.mxu0 %v33925_v18  ;;  %v13334_v41 = vsub.f32 %v31574_v14, %v34712_v49  ;;  %v31654_v33 = vsub.f32 %v12188_v63, %v31614_v46  ;;  %v34716_v47 = vand.u32 4294901760, %v31352_v7  ;;  %v31661_v0 = vsub.f32 %v13111_v51, %v31616_v26 }
 0x568   : > { %v13341_v45 = vsub.f32 %v31579_v6, %v34713_v22  ;;  %21146 = vmatmul.mubr.f32.gmra.mrb[110].mxu0 %v34714_v38  ;;  %23155 = vmatprep.subr.bf16.mxu1 %v33925_v18  ;;  %v13231_v15 = vsub.f32 %v31484_v27, %v34715_v2  ;;  %v31663_v49 = vand.u32 4294901760, %v12191_v29  ;;  %v31665_v22 = vand.u32 4294901760, %v13114_v21  ;;  %v34719_v38 = vld [vmem:[#allocation19_spill] sm:$0xff] }
 0x569   : > { %21416 = vmatmul.mubr.f32.gmra.mrb[110].mxu1 %v34716_v47  ;;  %21148 = vmatprep.mubr.msk.f32.mxu0 %vm25178_vm0, %v33928_v36  ;;  %v12194_v2 = vsel %vm7757_vm6, %v34719_v38, 0  ;;  %v23087_v63 = vpack.c.bf16 %v12405_v3, %v12398_v11  ;;  %v12412_v7 = vand.u32 4294901760, %v12411_v13  ;;  %v12419_v47 = vand.u32 4294901760, %v12418_v61  ;;  %v34723_v11 = vld [vmem:[#allocation10_spill] sm:$0xff] }
 0x56a   : > { %34717 = vst [vmem:[#allocation11_spill] sm:$0xff] %v31663_v49  ;;  %34718 = vst [vmem:[#allocation72_spill] sm:$0xff] %v31665_v22  ;;  %21418 = vmatprep.mubr.msk.f32.mxu1 %vm25178_vm0, %v33928_v36  ;;  %23085 = vmatpush3.bf16.msra.mxu0 %v23084_v32  ;;  %v33820_v54 = vand.u32 4294901760, %v31610_v23  ;;  %v23159_v51 = vpack.c.bf16 %v13328_v37, %v13321_v35  ;;  %v13335_v16 = vand.u32 4294901760, %v13334_v41  ;;  %v13342_v12 = vand.u32 4294901760, %v13341_v45 }
 0x56b   : > { %23157 = vmatpush3.bf16.msra.mxu1 %v23156_v9  ;;  %23086 = vmatprep.subr.bf16.mxu0 %v33925_v18  ;;  %v33819_v27 = vand.u32 4294901760, %v31622_v44  ;;  %v34720_v26 = vand.u32 4294901760, %v31406_v28  ;;  %v12309_v38 = vand.u32 4294901760, %v31481_v39  ;;  %v34721_v32 = vand.u32 4294901760, %v31519_v57 }
 0x56c   : > { %v34722_v3 = vand.u32 4294901760, %v31535_v10  ;;  %23158 = vmatprep.subr.bf16.mxu1 %v33925_v18  ;;  %v13117_v61 = vsel %vm7757_vm6, %v34723_v11, 0  ;;  %v34724_v35 = vand.u32 4294901760, %v31419_v30  ;;  %v13232_v28 = vand.u32 4294901760, %v13231_v15 }
 0x56d   : > { %21149 = vmatmul.mubr.f32.gmra.mrb[112].mxu0 %v34720_v26  ;;  %v12318_v13 = vsub.f32 %v31519_v57, %v34721_v32  ;;  %v33818_v39 = vand.u32 4294901760, %v31654_v33  ;;  %v33811_v26 = vand.u32 4294901760, %v31661_v0  ;;  %v31693_v37 = vsub.f32 %v12191_v29, %v31663_v49 }
 0x56e   : > { %v13241_v9 = vsub.f32 %v31535_v10, %v34722_v3  ;;  %21419 = vmatmul.mubr.f32.gmra.mrb[112].mxu1 %v34724_v35  ;;  %21151 = vmatprep.mubr.msk.f32.mxu0 %vm25178_vm0, %v33928_v36  ;;  %v31698_v41 = vsub.f32 %v13114_v21, %v31665_v22  ;;  %v23090_v30 = vpack.c.bf16 %v12419_v47, %v12412_v7  ;;  %v31700_v45 = vand.u32 4294901760, %v12194_v2  ;;  %v34727_v3 = vld [vmem:[#allocation67_spill] sm:$0xff] }
 0x56f   : > { %21421 = vmatprep.mubr.msk.f32.mxu1 %vm25178_vm0, %v33928_v36  ;;  %23088 = vmatpush3.bf16.msra.mxu0 %v23087_v63  ;;  %v12425_v15 = vsub.f32 %v31610_v23, %v33820_v54  ;;  %v23162_v32 = vpack.c.bf16 %v13342_v12, %v13335_v16  ;;  %v31706_v29 = vand.u32 4294901760, %v13117_v61  ;;  %v12197_v11 = vsel %vm7757_vm6, %v34727_v3, 0  ;;  %v34728_v63 = vld [vmem:[#allocation25_spill] sm:$0xff]  ;;  %v34747_v54 = vld [vmem:[#allocation4_spill] sm:$0xff] }
 0x570   : > { %34725 = vst [vmem:[#allocation51_spill] sm:$0xff] %v31700_v45  ;;  %23160 = vmatpush3.bf16.msra.mxu1 %v23159_v51  ;;  %23089 = vmatprep.subr.bf16.mxu0 %v33925_v18  ;;  %v13348_v21 = vsub.f32 %v31622_v44, %v33819_v27  ;;  %v13120_v7 = vsel %vm7757_vm6, %v34728_v63, 0  ;;  %v12319_v12 = vand.u32 4294901760, %v12318_v13  ;;  %v13242_v16 = vand.u32 4294901760, %v13241_v9  ;;  %v34746_v27 = vld [vmem:[#allocation65_spill] sm:$0xff] }
 0x571   : > { %34726 = vst [vmem:[#allocation16_spill] sm:$0xff] %v31706_v29  ;;  %21152 = vmatmul.mubr.f32.gmra.mrb[114].mxu0 %v12309_v38  ;;  %23161 = vmatprep.subr.bf16.mxu1 %v33925_v18  ;;  %v12328_v47 = vsub.f32 %v31654_v33, %v33818_v39  ;;  %v13251_v51 = vsub.f32 %v31661_v0, %v33811_v26  ;;  %v33817_v38 = vand.u32 4294901760, %v31693_v37  ;;  %v12426_v13 = vand.u32 4294901760, %v12425_v15  ;;  %v34745_v39 = vld [vmem:[#allocation83_spill] sm:$0xff] }
 0x572   : > { %21422 = vmatmul.mubr.f32.gmra.mrb[114].mxu1 %v13232_v28  ;;  %21154 = vmatprep.mubr.msk.f32.mxu0 %vm25178_vm0, %v33928_v36  ;;  %v31728_v35 = vsub.f32 %v12194_v2, %v31700_v45  ;;  %v31730_v28 = vand.u32 4294901760, %v12197_v11  ;;  %v33816_v9 = vand.u32 4294901760, %v31698_v41  ;;  %v31734_v3 = vsub.f32 %v13117_v61, %v31706_v29 }
 0x573   : > { %21424 = vmatprep.mubr.msk.f32.mxu1 %vm25178_vm0, %v33928_v36  ;;  %23091 = vmatpush3.bf16.msra.mxu0 %v23090_v30  ;;  %v31737_v63 = vand.u32 4294901760, %v13120_v7  ;;  %v13349_v26 = vand.u32 4294901760, %v13348_v21  ;;  %v12329_v2 = vand.u32 4294901760, %v12328_v47  ;;  %v12338_v61 = vsub.f32 %v31693_v37, %v33817_v38  ;;  %v34744_v38 = vld [vmem:[#allocation36_spill] sm:$0xff] }
 0x574   : > { %34729 = vst [vmem:[#allocation50_spill] sm:$0xff] %v31730_v28  ;;  %23163 = vmatpush3.bf16.msra.mxu1 %v23162_v32  ;;  %21185 = vmatprep.subr.mxu0 %v33928_v36  ;;  %v33815_v30 = vand.u32 4294901760, %v31728_v35  ;;  %v31749_v15 = vsub.f32 %v12197_v11, %v31730_v28  ;;  %v13252_v32 = vand.u32 4294901760, %v13251_v51  ;;  %v13261_v21 = vsub.f32 %v31698_v41, %v33816_v9  ;;  %v34743_v9 = vld [vmem:[#allocation14_spill] sm:$0xff] }
 0x575   : > { %34730 = vst [vmem:[#allocation7_spill] sm:$0xff] %v31737_v63  ;;  %21155 = vmatmul.mubr.f32.gmra.mrb[116].mxu0 %v12319_v12  ;;  %21455 = vmatprep.subr.mxu1 %v33928_v36  ;;  %v33814_v12 = vand.u32 4294901760, %v31734_v3  ;;  %v12339_v11 = vand.u32 4294901760, %v12338_v61 }
 0x576   : > { %21425 = vmatmul.mubr.f32.gmra.mrb[116].mxu1 %v13242_v16  ;;  %21157 = vmatprep.mubr.msk.f32.mxu0 %vm25178_vm0, %v33928_v36  ;;  %v31756_v16 = vsub.f32 %v13120_v7, %v31737_v63  ;;  %v12348_v47 = vsub.f32 %v31728_v35, %v33815_v30  ;;  %v33813_v7 = vand.u32 4294901760, %v31749_v15  ;;  %v34742_v30 = vld [vmem:[#allocation82_spill] sm:$0xff] }
 0x577   : > { %21427 = vmatprep.mubr.msk.f32.mxu1 %vm25178_vm0, %v33928_v36  ;;  %21186 = vmatpush3.msra.mxu0 %v12426_v13  ;;  %v13271_v51 = vsub.f32 %v31734_v3, %v33814_v12  ;;  %v34741_v12 = vld [vmem:[#allocation35_spill] sm:$0xff] }
 0x578   : > { %21456 = vmatpush3.msra.mxu1 %v13349_v26  ;;  %23092 = vmatprep.subr.bf16.mxu0 %v33925_v18  ;;  %v13262_v26 = vand.u32 4294901760, %v13261_v21  ;;  %v33812_v13 = vand.u32 4294901760, %v31756_v16  ;;  %v12358_v61 = vsub.f32 %v31749_v15, %v33813_v7  ;;  %v34740_v7 = vld [vmem:[#allocation79_spill] sm:$0xff] }
 0x579   : > { %21158 = vmatmul.mubr.f32.gmra.mrb[118].mxu0 %v12329_v2  ;;  %23164 = vmatprep.subr.bf16.mxu1 %v33925_v18  ;;  %v12349_v2 = vand.u32 4294901760, %v12348_v47  ;;  %v23093_v47 = vpack.c.bf16 %v31381_v62, %v31366_v59 }
 0x57a   : > { %21428 = vmatmul.mubr.f32.gmra.mrb[118].mxu1 %v13252_v32  ;;  %21160 = vmatprep.mubr.msk.f32.mxu0 %vm25178_vm0, %v33928_v36  ;;  %v13272_v32 = vand.u32 4294901760, %v13271_v51  ;;  %v13281_v21 = vsub.f32 %v31756_v16, %v33812_v13  ;;  %v23165_v51 = vpack.c.bf16 %v31391_v1, %v31386_v20  ;;  %v34739_v13 = vld [vmem:[#allocation70_spill] sm:$0xff] }
 0x57b   : > { %21430 = vmatprep.mubr.msk.f32.mxu1 %vm25178_vm0, %v33928_v36 }
 0x57d   : > { %21161 = vmatmul.mubr.f32.gmra.mrb[120].mxu0 %v12339_v11  ;;  %v12359_v11 = vand.u32 4294901760, %v12358_v61  ;;  %v23168_v61 = vpack.c.bf16 %v31458_v8, %v31453_v58 }
 0x57e   : > { %21431 = vmatmul.mubr.f32.gmra.mrb[120].mxu1 %v13262_v26  ;;  %21163 = vmatprep.mubr.msk.f32.mxu0 %vm25178_vm0, %v33928_v36  ;;  %v13282_v26 = vand.u32 4294901760, %v13281_v21  ;;  %v23171_v21 = vpack.c.bf16 %v31529_v60, %v31524_v43 }
 0x57f   : > { %21433 = vmatprep.mubr.msk.f32.mxu1 %vm25178_vm0, %v33928_v36 }
 0x581   : > { %21164 = vmatmul.mubr.f32.gmra.mrb[122].mxu0 %v12349_v2  ;;  %v23096_v2 = vpack.c.bf16 %v31441_v25, %v31428_v53 }
 0x582   : > { %21434 = vmatmul.mubr.f32.gmra.mrb[122].mxu1 %v13272_v32  ;;  %21166 = vmatprep.mubr.msk.f32.mxu0 %vm25178_vm0, %v33928_v36  ;;  %v23099_v32 = vpack.c.bf16 %v31513_v5, %v31508_v42 }
 0x583   : > { %21436 = vmatprep.mubr.msk.f32.mxu1 %vm25178_vm0, %v33928_v36 }
 0x585   : > { %21167 = vmatmul.mubr.f32.gmra.mrb[124].mxu0 %v12359_v11  ;;  %v23102_v11 = vpack.c.bf16 %v31565_v50, %v31560_v52 }
 0x586   : > { %21437 = vmatmul.mubr.f32.gmra.mrb[124].mxu1 %v13282_v26  ;;  %21187 = vmatprep.mubr.msk.f32.mxu0 %vm25178_vm0, %v33928_v36  ;;  %v23174_v26 = vpack.c.bf16 %v31579_v6, %v31574_v14 }
 0x587   : > { %21457 = vmatprep.mubr.msk.f32.mxu1 %vm25178_vm0, %v33928_v36 }
 0x589   : > { %21188 = vmatmul.mubr.f32.vlgmr.msra.gmra.mrb[108].mxu0 %v31110_v31 }
 0x58a   : > { %21458 = vmatmul.mubr.f32.vlgmr.msra.gmra.mrb[108].mxu1 %v31108_v56  ;;  %21190 = vmatprep.mubr.msk.f32.mxu0 %vm25178_vm0, %v33928_v36 }
 0x58b   : > { %21460 = vmatprep.mubr.msk.f32.mxu1 %vm25178_vm0, %v33928_v36  ;;  %23094 = vmatpush3.bf16.msra.mxu0 %v23093_v47  ;;  %v34731_v47 = vld [vmem:[#allocation18_spill] sm:$0xff] }
 0x58c   : > { %23166 = vmatpush3.bf16.msra.mxu1 %v23165_v51  ;;  %23095 = vmatprep.subr.bf16.mxu0 %v33925_v18  ;;  %v34732_v51 = vld [vmem:[#allocation74_spill] sm:$0xff] }
 0x58d   : > { %21191 = vmatmul.mubr.f32.gmra.mrb[110].mxu0 %v31166_v48  ;;  %23167 = vmatprep.subr.bf16.mxu1 %v33925_v18 }
 0x58e   : > { %21461 = vmatmul.mubr.f32.gmra.mrb[110].mxu1 %v31169_v40  ;;  %21193 = vmatprep.mubr.msk.f32.mxu0 %vm25178_vm0, %v33928_v36 }
 0x58f   : > { %21463 = vmatprep.mubr.msk.f32.mxu1 %vm25178_vm0, %v33928_v36  ;;  %23097 = vmatpush3.bf16.msra.mxu0 %v23096_v2  ;;  %v34733_v2 = vld [vmem:[#allocation59_spill] sm:$0xff] }
 0x590   : > { %23169 = vmatpush3.bf16.msra.mxu1 %v23168_v61  ;;  %23098 = vmatprep.subr.bf16.mxu0 %v33925_v18  ;;  %v34734_v61 = vld [vmem:[#allocation63_spill] sm:$0xff] }
 0x591   : > { %21194 = vmatmul.mubr.f32.gmra.mrb[112].mxu0 %v31228_v4  ;;  %23170 = vmatprep.subr.bf16.mxu1 %v33925_v18 }
 0x592   : > { %21464 = vmatmul.mubr.f32.gmra.mrb[112].mxu1 %v31244_v17  ;;  %21196 = vmatprep.mubr.msk.f32.mxu0 %vm25178_vm0, %v33928_v36 }
 0x593   : > { %21466 = vmatprep.mubr.msk.f32.mxu1 %vm25178_vm0, %v33928_v36  ;;  %23100 = vmatpush3.bf16.msra.mxu0 %v23099_v32  ;;  %v34735_v32 = vld [vmem:[#allocation30_spill] sm:$0xff] }
 0x594   : > { %23172 = vmatpush3.bf16.msra.mxu1 %v23171_v21  ;;  %23101 = vmatprep.subr.bf16.mxu0 %v33925_v18  ;;  %v34736_v21 = vld [vmem:[#allocation77_spill] sm:$0xff] }
 0x595   : > { %21197 = vmatmul.mubr.f32.gmra.mrb[114].mxu0 %v31329_v55  ;;  %23173 = vmatprep.subr.bf16.mxu1 %v33925_v18 }
 0x596   : > { %21467 = vmatmul.mubr.f32.gmra.mrb[114].mxu1 %v31436_v34  ;;  %21199 = vmatprep.mubr.msk.f32.mxu0 %vm25178_vm0, %v33928_v36 }
 0x597   : > { %21469 = vmatprep.mubr.msk.f32.mxu1 %vm25178_vm0, %v33928_v36  ;;  %23103 = vmatpush3.bf16.msra.mxu0 %v23102_v11  ;;  %v34737_v11 = vld [vmem:[#allocation8_spill] sm:$0xff] }
 0x598   : > { %23175 = vmatpush3.bf16.msra.mxu1 %v23174_v26  ;;  %21230 = vmatprep.subr.mxu0 %v33928_v36  ;;  %v34738_v26 = vld [vmem:[#allocation47_spill] sm:$0xff] }
 0x599   : > { %21200 = vmatmul.mubr.f32.gmra.mrb[116].mxu0 %v31468_v24  ;;  %21500 = vmatprep.subr.mxu1 %v33928_v36 }
 0x59a   : > { %21470 = vmatmul.mubr.f32.gmra.mrb[116].mxu1 %v31471_v19  ;;  %21202 = vmatprep.mubr.msk.f32.mxu0 %vm25178_vm0, %v33928_v36 }
 0x59b   : > { %21472 = vmatprep.mubr.msk.f32.mxu1 %vm25178_vm0, %v33928_v36  ;;  %21231 = vmatpush3.msra.mxu0 %v31610_v23 }
 0x59c   : > { %21501 = vmatpush3.msra.mxu1 %v31622_v44  ;;  %23104 = vmatprep.subr.bf16.mxu0 %v33925_v18 }
 0x59d   : > { %21203 = vmatmul.mubr.f32.gmra.mrb[118].mxu0 %v31614_v46  ;;  %23176 = vmatprep.subr.bf16.mxu1 %v33925_v18 }
 0x59e   : > { %21473 = vmatmul.mubr.f32.gmra.mrb[118].mxu1 %v34731_v47  ;;  %21205 = vmatprep.mubr.msk.f32.mxu0 %vm25178_vm0, %v33928_v36  ;;  %v34753_v47 = vand.u32 4294901760, %v31391_v1  ;;  %v34758_v1 = vand.u32 4294901760, %v31453_v58 }
 0x59f   : > { %21475 = vmatprep.mubr.msk.f32.mxu1 %vm25178_vm0, %v33928_v36 }
 0x5a1   : > { %21206 = vmatmul.mubr.f32.gmra.mrb[120].mxu0 %v31663_v49  ;;  %v34752_v49 = vand.u32 4294901760, %v31386_v20 }
 0x5a2   : > { %21476 = vmatmul.mubr.f32.gmra.mrb[120].mxu1 %v31665_v22  ;;  %21208 = vmatprep.mubr.msk.f32.mxu0 %vm25178_vm0, %v33928_v36 }
 0x5a3   : > { %21478 = vmatprep.mubr.msk.f32.mxu1 %vm25178_vm0, %v33928_v36  ;;  %v23189_v46 = vpack.c.bf16 %v34753_v47, %v34752_v49  ;;  %v34759_v49 = vand.u32 4294901760, %v31458_v8  ;;  %v34764_v8 = vand.u32 4294901760, %v31524_v43  ;;  %v34767_v47 = vand.u32 4294901760, %v34741_v12 }
 0x5a5   : > { %21209 = vmatmul.mubr.f32.gmra.mrb[122].mxu0 %v31700_v45  ;;  %v34751_v45 = vand.u32 4294901760, %v31381_v62  ;;  %v34756_v62 = vand.u32 4294901760, %v31428_v53  ;;  %v34763_v53 = vand.u32 4294901760, %v31513_v5  ;;  %v34768_v5 = vand.u32 4294901760, %v31560_v52 }
 0x5a6   : > { %21479 = vmatmul.mubr.f32.gmra.mrb[122].mxu1 %v31706_v29  ;;  %21211 = vmatprep.mubr.msk.f32.mxu0 %vm25178_vm0, %v33928_v36  ;;  %v34750_v29 = vand.u32 4294901760, %v31366_v59  ;;  %v34757_v59 = vand.u32 4294901760, %v31441_v25  ;;  %v34762_v25 = vand.u32 4294901760, %v31508_v42  ;;  %v34769_v42 = vand.u32 4294901760, %v31565_v50 }
 0x5a7   : > { %21481 = vmatprep.mubr.msk.f32.mxu1 %vm25178_vm0, %v33928_v36  ;;  %v34774_v52 = vand.u32 4294901760, %v31519_v57  ;;  %v34775_v50 = vand.u32 4294901760, %v31535_v10 }
 0x5a8   : > { %v23117_v22 = vpack.c.bf16 %v34751_v45, %v34750_v29  ;;  %v23120_v20 = vpack.c.bf16 %v34757_v59, %v34756_v62  ;;  %v23192_v45 = vpack.c.bf16 %v34759_v49, %v34758_v1  ;;  %v34760_v29 = vand.u32 4294901760, %v34736_v21  ;;  %v34791_v59 = vld [vmem:[#allocation29_spill] sm:$0xff]  ;;  %v34792_v49 = vld [vmem:[#allocation11_spill] sm:$0xff] }
 0x5a9   : > { %21212 = vmatmul.mubr.f32.gmra.mrb[124].mxu0 %v31730_v28  ;;  %v34749_v28 = vld [vmem:[#allocation33_spill] sm:$0xff]  ;;  %v23123_v58 = vpack.c.bf16 %v34763_v53, %v34762_v25  ;;  %v23126_v43 = vpack.c.bf16 %v34769_v42, %v34768_v5  ;;  %v34795_v53 = vld [vmem:[#allocation51_spill] sm:$0xff] }
 0x5aa   : > { %21482 = vmatmul.mubr.f32.gmra.mrb[124].mxu1 %v31737_v63  ;;  %21232 = vmatprep.mubr.msk.f32.mxu0 %vm25178_vm0, %v33928_v36  ;;  %v34748_v63 = vld [vmem:[#allocation86_spill] sm:$0xff] }
 0x5ab   : > { %21502 = vmatprep.mubr.msk.f32.mxu1 %vm25178_vm0, %v33928_v36 }
 0x5ad   : > { %21233 = vmatmul.mubr.f32.vlgmr.msra.gmra.mrb[108].mxu0 %v34732_v51 }
 0x5ae   : > { %21503 = vmatmul.mubr.f32.vlgmr.msra.gmra.mrb[108].mxu1 %v34733_v2  ;;  %21235 = vmatprep.mubr.msk.f32.mxu0 %vm25178_vm0, %v33928_v36 }
 0x5af   : > { %21505 = vmatprep.mubr.msk.f32.mxu1 %vm25178_vm0, %v33928_v36  ;;  %23106 = vmatpush3.bf16.msra.mxu0 %v34734_v61 }
 0x5b0   : > { %23178 = vmatpush3.bf16.msra.mxu1 %v34735_v32  ;;  %23107 = vmatprep.subr.bf16.mxu0 %v33925_v18 }
 0x5b1   : > { %21236 = vmatmul.mubr.f32.gmra.mrb[110].mxu0 %v34736_v21  ;;  %23179 = vmatprep.subr.bf16.mxu1 %v33925_v18  ;;  %v34789_v21 = vld [vmem:[#allocation3_spill] sm:$0xff] }
 0x5b2   : > { %21506 = vmatmul.mubr.f32.gmra.mrb[110].mxu1 %v34737_v11  ;;  %21238 = vmatprep.mubr.msk.f32.mxu0 %vm25178_vm0, %v33928_v36 }
 0x5b3   : > { %21508 = vmatprep.mubr.msk.f32.mxu1 %vm25178_vm0, %v33928_v36  ;;  %23109 = vmatpush3.bf16.msra.mxu0 %v34738_v26 }
 0x5b4   : > { %23181 = vmatpush3.bf16.msra.mxu1 %v34739_v13  ;;  %23110 = vmatprep.subr.bf16.mxu0 %v33925_v18 }
 0x5b5   : > { %21239 = vmatmul.mubr.f32.gmra.mrb[112].mxu0 %v34740_v7  ;;  %23182 = vmatprep.subr.bf16.mxu1 %v33925_v18 }
 0x5b6   : > { %21509 = vmatmul.mubr.f32.gmra.mrb[112].mxu1 %v34741_v12  ;;  %21241 = vmatprep.mubr.msk.f32.mxu0 %vm25178_vm0, %v33928_v36  ;;  %v34771_v12 = vand.u32 4294901760, %v31579_v6  ;;  %v34777_v6 = vand.u32 4294901760, %v31622_v44  ;;  %v34781_v44 = vand.u32 4294901760, %v31698_v41 }
 0x5b7   : > { %21511 = vmatprep.mubr.msk.f32.mxu1 %vm25178_vm0, %v33928_v36  ;;  %23112 = vmatpush3.bf16.msra.mxu0 %v34742_v30 }
 0x5b8   : > { %23184 = vmatpush3.bf16.msra.mxu1 %v34743_v9  ;;  %23113 = vmatprep.subr.bf16.mxu0 %v33925_v18 }
 0x5b9   : > { %21242 = vmatmul.mubr.f32.gmra.mrb[114].mxu0 %v34744_v38  ;;  %23185 = vmatprep.subr.bf16.mxu1 %v33925_v18 }
 0x5ba   : > { %21512 = vmatmul.mubr.f32.gmra.mrb[114].mxu1 %v34745_v39  ;;  %21244 = vmatprep.mubr.msk.f32.mxu0 %vm25178_vm0, %v33928_v36 }
 0x5bb   : > { %21514 = vmatprep.mubr.msk.f32.mxu1 %vm25178_vm0, %v33928_v36  ;;  %23115 = vmatpush3.bf16.msra.mxu0 %v34746_v27 }
 0x5bc   : > { %23187 = vmatpush3.bf16.msra.mxu1 %v34747_v54  ;;  %21275 = vmatprep.subr.mxu0 %v33928_v36 }
 0x5bd   : > { %21245 = vmatmul.mubr.f32.gmra.mrb[116].mxu0 %v31519_v57  ;;  %21545 = vmatprep.subr.mxu1 %v33928_v36  ;;  %v34778_v57 = vand.u32 4294901760, %v31654_v33 }
 0x5be   : > { %21515 = vmatmul.mubr.f32.gmra.mrb[116].mxu1 %v31535_v10  ;;  %21247 = vmatprep.mubr.msk.f32.mxu0 %vm25178_vm0, %v33928_v36  ;;  %v34779_v10 = vand.u32 4294901760, %v31661_v0 }
 0x5bf   : > { %21517 = vmatprep.mubr.msk.f32.mxu1 %vm25178_vm0, %v33928_v36  ;;  %21276 = vmatpush3.msra.mxu0 %v34748_v63  ;;  %v34755_v63 = vand.u32 4294901760, %v34733_v2  ;;  %v34773_v2 = vand.u32 4294901760, %v34745_v39  ;;  %v34783_v39 = vand.u32 4294901760, %v31734_v3 }
 0x5c0   : > { %21546 = vmatpush3.msra.mxu1 %v34749_v28  ;;  %23116 = vmatprep.subr.bf16.mxu0 %v33925_v18  ;;  %v34754_v28 = vand.u32 4294901760, %v34732_v51  ;;  %v34772_v51 = vand.u32 4294901760, %v34744_v38  ;;  %v34785_v38 = vand.u32 4294901760, %v31756_v16 }
 0x5c1   : > { %21248 = vmatmul.mubr.f32.gmra.mrb[118].mxu0 %v31654_v33  ;;  %23188 = vmatprep.subr.bf16.mxu1 %v33925_v18  ;;  %v34782_v33 = vand.u32 4294901760, %v31728_v35 }
 0x5c2   : > { %21518 = vmatmul.mubr.f32.gmra.mrb[118].mxu1 %v31661_v0  ;;  %21250 = vmatprep.mubr.msk.f32.mxu0 %vm25178_vm0, %v33928_v36  ;;  %v8319_v0 = vpop.xlane.xlu0 %8318 }
 0x5c3   : > { %21520 = vmatprep.mubr.msk.f32.mxu1 %vm25178_vm0, %v33928_v36  ;;  %24989 = vrcp.f32 %v8319_v0 }
 0x5c5   : > { %21251 = vmatmul.mubr.f32.gmra.mrb[120].mxu0 %v31693_v37 }
 0x5c6   : > { %21521 = vmatmul.mubr.f32.gmra.mrb[120].mxu1 %v31698_v41  ;;  %21253 = vmatprep.mubr.msk.f32.mxu0 %vm25178_vm0, %v33928_v36  ;;  %v34784_v41 = vand.u32 4294901760, %v31749_v15 }
 0x5c7   : > { %21523 = vmatprep.mubr.msk.f32.mxu1 %vm25178_vm0, %v33928_v36 }
 0x5c9   : > { %21254 = vmatmul.mubr.f32.gmra.mrb[122].mxu0 %v31728_v35  ;;  %v32066_v35 = vpop.xlane.xlu0 %8324 }
 0x5ca   : > { %21524 = vmatmul.mubr.f32.gmra.mrb[122].mxu1 %v31734_v3  ;;  %21256 = vmatprep.mubr.msk.f32.mxu0 %vm25178_vm0, %v33928_v36 }
 0x5cb   : > { %21526 = vmatprep.mubr.msk.f32.mxu1 %vm25178_vm0, %v33928_v36 }
 0x5cd   : > { %21257 = vmatmul.mubr.f32.gmra.mrb[124].mxu0 %v31749_v15  ;;  %v32081_v15 = vpop.xlane.xlu0 %8330 }
 0x5ce   : > { %21527 = vmatmul.mubr.f32.gmra.mrb[124].mxu1 %v31756_v16  ;;  %21277 = vmatprep.mubr.msk.f32.mxu0 %vm25178_vm0, %v33928_v36 }
 0x5cf   : > { %21547 = vmatprep.mubr.msk.f32.mxu1 %vm25178_vm0, %v33928_v36 }
 0x5d1   : > { %21278 = vmatmul.mubr.f32.vlgmr.msra.gmra.mrb[108].mxu0 %v34754_v28 }
 0x5d2   : > { %21548 = vmatmul.mubr.f32.vlgmr.msra.gmra.mrb[108].mxu1 %v34755_v63  ;;  %21280 = vmatprep.mubr.msk.f32.mxu0 %vm25178_vm0, %v33928_v36  ;;  %v34766_v63 = vand.u32 4294901760, %v34740_v7 }
 0x5d3   : > { %21550 = vmatprep.mubr.msk.f32.mxu1 %vm25178_vm0, %v33928_v36  ;;  %23118 = vmatpush3.bf16.msra.mxu0 %v23117_v22  ;;  %v34761_v22 = vand.u32 4294901760, %v34737_v11  ;;  %v14019_v11 = vsel %vm7757_vm6, %v34789_v21, 0 }
 0x5d4   : > { %23190 = vmatpush3.bf16.msra.mxu1 %v23189_v46  ;;  %23119 = vmatprep.subr.bf16.mxu0 %v33925_v18  ;;  %v34765_v46 = vand.u32 4294901760, %v31529_v60  ;;  %v34770_v60 = vand.u32 4294901760, %v31574_v14  ;;  %v34776_v14 = vand.u32 4294901760, %v31610_v23  ;;  %v34780_v23 = vand.u32 4294901760, %v31693_v37  ;;  %v32056_v37 = vpop.xlane.xlu1 %8321 }
 0x5d5   : > { %21281 = vmatmul.mubr.f32.gmra.mrb[110].mxu0 %v34760_v29  ;;  %23191 = vmatprep.subr.bf16.mxu1 %v33925_v18  ;;  %v32140_v1 = vand.u32 4294901760, %v14019_v11 }
 0x5d6   : > { %21551 = vmatmul.mubr.f32.gmra.mrb[110].mxu1 %v34761_v22  ;;  %21283 = vmatprep.mubr.msk.f32.mxu0 %vm25178_vm0, %v33928_v36  ;;  %v23195_v28 = vpack.c.bf16 %v34765_v46, %v34764_v8  ;;  %v23198_v7 = vpack.c.bf16 %v34771_v12, %v34770_v60  ;;  %v32162_v8 = vld [vmem:[%s25213_s12 + $0x1b0] sm:$0xff]  ;;  %v32173_v60 = vld [vmem:[%s25213_s12 + $0x1f8] sm:$0xff] }
 0x5d7   : > { %21553 = vmatprep.mubr.msk.f32.mxu1 %vm25178_vm0, %v33928_v36  ;;  %23121 = vmatpush3.bf16.msra.mxu0 %v23120_v20  ;;  %v14942_v20 = vsel %vm7757_vm6, %v34791_v59, 0  ;;  %v32152_v25 = vsub.f32 %v14019_v11, %v32140_v1  ;;  %v33841_v46 = vand.u32 4294901760, %v32162_v8  ;;  %v33839_v12 = vand.u32 4294901760, %v32173_v60 }
 0x5d8   : > { %23193 = vmatpush3.bf16.msra.mxu1 %v23192_v45  ;;  %23122 = vmatprep.subr.bf16.mxu0 %v33925_v18  ;;  %v32069_v3 = vpop.xlane.xlu1 %8327  ;;  %v34793_v45 = vld [vmem:[#allocation72_spill] sm:$0xff]  ;;  %v32149_v29 = vand.u32 4294901760, %v14942_v20 }
 0x5d9   : > { %21284 = vmatmul.mubr.f32.gmra.mrb[112].mxu0 %v34766_v63  ;;  %23194 = vmatprep.subr.bf16.mxu1 %v33925_v18  ;;  %34794 = vst [vmem:[#allocation71_spill] sm:$0xff] %v32152_v25 }
 0x5da   : > { %21554 = vmatmul.mubr.f32.gmra.mrb[112].mxu1 %v34767_v47  ;;  %21286 = vmatprep.mubr.msk.f32.mxu0 %vm25178_vm0, %v33928_v36  ;;  %v24990_v47 = vpop.eup %24989  ;;  %v32170_v5 = vsub.f32 %v14942_v20, %v32149_v29  ;;  %v32221_v20 = vld [vmem:[%s25213_s12 + $0x210] sm:$0xff] }
 0x5db   : > { %21556 = vmatprep.mubr.msk.f32.mxu1 %vm25178_vm0, %v33928_v36  ;;  %23124 = vmatpush3.bf16.msra.mxu0 %v23123_v58  ;;  %v34796_v58 = vld [vmem:[#allocation16_spill] sm:$0xff] }
 0x5dc   : > { %23196 = vmatpush3.bf16.msra.mxu1 %v23195_v28  ;;  %23125 = vmatprep.subr.bf16.mxu0 %v33925_v18  ;;  %v32089_v16 = vpop.xlane.xlu1 %8333  ;;  %v32166_v28 = vld [vmem:[%s25213_s12 + $0x1b8] sm:$0xff]  ;;  %34797 = vst [vmem:[#allocation21_spill] sm:$0xff] %v32170_v5 }
 0x5dd   : > { %21287 = vmatmul.mubr.f32.gmra.mrb[114].mxu0 %v34772_v51  ;;  %23197 = vmatprep.subr.bf16.mxu1 %v33925_v18  ;;  %v33840_v63 = vand.u32 4294901760, %v32166_v28 }
 0x5de   : > { %21557 = vmatmul.mubr.f32.gmra.mrb[114].mxu1 %v34773_v2  ;;  %21289 = vmatprep.mubr.msk.f32.mxu0 %vm25178_vm0, %v33928_v36 }
 0x5df   : > { %21559 = vmatprep.mubr.msk.f32.mxu1 %vm25178_vm0, %v33928_v36  ;;  %23127 = vmatpush3.bf16.msra.mxu0 %v23126_v43 }
 0x5e0   : > { %23199 = vmatpush3.bf16.msra.mxu1 %v23198_v7  ;;  %21320 = vmatprep.subr.mxu0 %v33928_v36  ;;  %v32177_v7 = vld [vmem:[%s25213_s12 + $0x200] sm:$0xff] }
 0x5e1   : > { %21290 = vmatmul.mubr.f32.gmra.mrb[116].mxu0 %v34774_v52  ;;  %21590 = vmatprep.subr.mxu1 %v33928_v36  ;;  %v33838_v51 = vand.u32 4294901760, %v32177_v7 }
 0x5e2   : > { %21560 = vmatmul.mubr.f32.gmra.mrb[116].mxu1 %v34775_v50  ;;  %21292 = vmatprep.mubr.msk.f32.mxu0 %vm25178_vm0, %v33928_v36 }
 0x5e3   : > { %21562 = vmatprep.mubr.msk.f32.mxu1 %vm25178_vm0, %v33928_v36  ;;  %21321 = vmatpush3.msra.mxu0 %v34776_v14  ;;  %v32214_v11 = vpack.c.bf16 %v33838_v51, %v33839_v12 }
 0x5e4   : > { %21591 = vmatpush3.msra.mxu1 %v34777_v6  ;;  %23128 = vmatprep.subr.bf16.mxu0 %v33925_v18  ;;  %v34798_v6 = vld [vmem:[#allocation50_spill] sm:$0xff] }
 0x5e5   : > { %21293 = vmatmul.mubr.f32.gmra.mrb[118].mxu0 %v34778_v57  ;;  %23200 = vmatprep.subr.bf16.mxu1 %v33925_v18  ;;  %v33835_v57 = vand.u32 4294901760, %v32152_v25  ;;  %34803 = vst [vmem:[#allocation43_spill] sm:$0xff] %v32214_v11 }
 0x5e6   : > { %21563 = vmatmul.mubr.f32.gmra.mrb[118].mxu1 %v34779_v10  ;;  %21295 = vmatprep.mubr.msk.f32.mxu0 %vm25178_vm0, %v33928_v36 }
 0x5e7   : > { %21565 = vmatprep.mubr.msk.f32.mxu1 %vm25178_vm0, %v33928_v36 }
 0x5e9   : > { %21296 = vmatmul.mubr.f32.gmra.mrb[120].mxu0 %v34780_v23 }
 0x5ea   : > { %21566 = vmatmul.mubr.f32.gmra.mrb[120].mxu1 %v34781_v44  ;;  %21298 = vmatprep.mubr.msk.f32.mxu0 %vm25178_vm0, %v33928_v36  ;;  %v34799_v44 = vld [vmem:[#allocation7_spill] sm:$0xff] }
 0x5eb   : > { %21568 = vmatprep.mubr.msk.f32.mxu1 %vm25178_vm0, %v33928_v36 }
 0x5ed   : > { %21299 = vmatmul.mubr.f32.gmra.mrb[122].mxu0 %v34782_v33  ;;  %v34800_v33 = vld [vmem:[#allocation53_spill] sm:$0xff] }
 0x5ee   : > { %21569 = vmatmul.mubr.f32.gmra.mrb[122].mxu1 %v34783_v39  ;;  %21301 = vmatprep.mubr.msk.f32.mxu0 %vm25178_vm0, %v33928_v36  ;;  %v14022_v0 = vsel %vm7757_vm6, %v34800_v33, 0  ;;  %v34801_v39 = vld [vmem:[#allocation24_spill] sm:$0xff] }
 0x5ef   : > { %21571 = vmatprep.mubr.msk.f32.mxu1 %vm25178_vm0, %v33928_v36 }
 0x5f1   : > { %21302 = vmatmul.mubr.f32.gmra.mrb[124].mxu0 %v34784_v41  ;;  %v32198_v41 = vpack.c.bf16 %v33840_v63, %v33841_v46 }
 0x5f2   : > { %21572 = vmatmul.mubr.f32.gmra.mrb[124].mxu1 %v34785_v38  ;;  %21322 = vmatprep.mubr.msk.f32.mxu0 %vm25178_vm0, %v33928_v36  ;;  %v32201_v38 = vld [vmem:[%s25213_s12 + $0x1c0] sm:$0xff] }
 0x5f3   : > { %21592 = vmatprep.mubr.msk.f32.mxu1 %vm25178_vm0, %v33928_v36  ;;  %34802 = vst [vmem:[#allocation23_spill] sm:$0xff] %v32198_v41 }
 0x5f5   : > { %21323 = vmatmul.mubr.f32.vlgmr.msra.gmra.mrb[108].mxu0 %v31110_v31 }
 0x5f6   : > { %21593 = vmatmul.mubr.f32.vlgmr.msra.gmra.mrb[108].mxu1 %v31108_v56  ;;  %21325 = vmatprep.mubr.msk.f32.mxu0 %vm25178_vm0, %v33928_v36 }
 0x5f7   : > { %21595 = vmatprep.mubr.msk.f32.mxu1 %vm25178_vm0, %v33928_v36  ;;  %23130 = vmatpush3.bf16.msra.mxu0 %v34734_v61  ;;  %v32101_v61 = vpop.xlane.xlu0 %8336 }
 0x5f8   : > { %23202 = vmatpush3.bf16.msra.mxu1 %v34735_v32  ;;  %23131 = vmatprep.subr.bf16.mxu0 %v33925_v18  ;;  %v34788_v32 = vld [vmem:[#allocation38_spill] sm:$0xff] }
 0x5f9   : > { %21326 = vmatmul.mubr.f32.gmra.mrb[110].mxu0 %v31166_v48  ;;  %23203 = vmatprep.subr.bf16.mxu1 %v33925_v18 }
 0x5fa   : > { %21596 = vmatmul.mubr.f32.gmra.mrb[110].mxu1 %v31169_v40  ;;  %21328 = vmatprep.mubr.msk.f32.mxu0 %vm25178_vm0, %v33928_v36 }
 0x5fb   : > { %21598 = vmatprep.mubr.msk.f32.mxu1 %vm25178_vm0, %v33928_v36  ;;  %23133 = vmatpush3.bf16.msra.mxu0 %v34738_v26  ;;  %v34790_v26 = vld [vmem:[#allocation18_spill] sm:$0xff] }
 0x5fc   : > { %23205 = vmatpush3.bf16.msra.mxu1 %v34739_v13  ;;  %23134 = vmatprep.subr.bf16.mxu0 %v33925_v18  ;;  %v32107_v13 = vpop.xlane.xlu1 %8339 }
 0x5fd   : > { %21329 = vmatmul.mubr.f32.gmra.mrb[112].mxu0 %v31228_v4  ;;  %23206 = vmatprep.subr.bf16.mxu1 %v33925_v18 }
 0x5fe   : > { %21599 = vmatmul.mubr.f32.gmra.mrb[112].mxu1 %v31244_v17  ;;  %21331 = vmatprep.mubr.msk.f32.mxu0 %vm25178_vm0, %v33928_v36 }
 0x5ff   : > { %21601 = vmatprep.mubr.msk.f32.mxu1 %vm25178_vm0, %v33928_v36  ;;  %23136 = vmatpush3.bf16.msra.mxu0 %v34742_v30  ;;  %v34786_v30 = vld [vmem:[#allocation86_spill] sm:$0xff] }
 0x600   : > { %23208 = vmatpush3.bf16.msra.mxu1 %v34743_v9  ;;  %23137 = vmatprep.subr.bf16.mxu0 %v33925_v18  ;;  %v32119_v9 = vpop.xlane.xlu0 %8342 }
 0x601   : > { %21332 = vmatmul.mubr.f32.gmra.mrb[114].mxu0 %v31329_v55  ;;  %23209 = vmatprep.subr.bf16.mxu1 %v33925_v18 }
 0x602   : > { %21602 = vmatmul.mubr.f32.gmra.mrb[114].mxu1 %v31436_v34  ;;  %21334 = vmatprep.mubr.msk.f32.mxu0 %vm25178_vm0, %v33928_v36 }
 0x603   : > { %21604 = vmatprep.mubr.msk.f32.mxu1 %vm25178_vm0, %v33928_v36  ;;  %23139 = vmatpush3.bf16.msra.mxu0 %v34746_v27  ;;  %v8346_v27 = vpop.xlane.xlu1 %8345 }
 0x604   : > { %23211 = vmatpush3.bf16.msra.mxu1 %v34747_v54  ;;  %21365 = vmatprep.subr.mxu0 %v33928_v36  ;;  %v34787_v54 = vld [vmem:[#allocation33_spill] sm:$0xff]  ;;  %24991 = vrcp.f32 %v8346_v27  ;;  %v8349_v62 = vpop.xlane.xlu0 %8348 }
 0x605   : > { %21335 = vmatmul.mubr.f32.gmra.mrb[116].mxu0 %v31468_v24  ;;  %21635 = vmatprep.subr.mxu1 %v33928_v36  ;;  %24993 = vrcp.f32 %v32056_v37  ;;  %v14945_v37 = vsel %vm7757_vm6, %v34801_v39, 0 }
 0x606   : > { %21605 = vmatmul.mubr.f32.gmra.mrb[116].mxu1 %v31471_v19  ;;  %21337 = vmatprep.mubr.msk.f32.mxu0 %vm25178_vm0, %v33928_v36  ;;  %24995 = vrcp.f32 %v8349_v62  ;;  %v32217_v62 = vld [vmem:[%s25213_s12 + $0x208] sm:$0xff] }
 0x607   : > { %21607 = vmatprep.mubr.msk.f32.mxu1 %vm25178_vm0, %v33928_v36  ;;  %21366 = vmatpush3.msra.mxu0 %v34786_v30  ;;  %v8352_v22 = vpop.xlane.xlu1 %8351  ;;  %24997 = vrcp.f32 %v32066_v35  ;;  %v33837_v35 = vand.u32 4294901760, %v32201_v38  ;;  %v33843_v59 = vand.u32 4294901760, %v32217_v62 }
 0x608   : > { %21636 = vmatpush3.msra.mxu1 %v34787_v54  ;;  %23212 = vmatprep.subr.bf16.mxu0 %v33925_v18  ;;  %24999 = vrcp.f32 %v8352_v22  ;;  %v8355_v42 = vpop.xlane.xlu0 %8354  ;;  %v33842_v22 = vand.u32 4294901760, %v32221_v20 }
 0x609   : > { %21338 = vmatmul.mubr.f32.gmra.mrb[118].mxu0 %v34788_v32  ;;  %23284 = vmatprep.subr.bf16.mxu1 %v33925_v18  ;;  %25001 = vrcp.f32 %v32069_v3  ;;  %v32205_v3 = vld [vmem:[%s25213_s12 + $0x1c8] sm:$0xff] }
 0x60a   : > { %21608 = vmatmul.mubr.f32.gmra.mrb[118].mxu1 %v34790_v26  ;;  %21340 = vmatprep.mubr.msk.f32.mxu0 %vm25178_vm0, %v33928_v36  ;;  %25003 = vrcp.f32 %v8355_v42  ;;  %v33836_v30 = vand.u32 4294901760, %v32205_v3 }
 0x60b   : > { %21610 = vmatprep.mubr.msk.f32.mxu1 %vm25178_vm0, %v33928_v36  ;;  %v8358_v54 = vpop.xlane.xlu1 %8357  ;;  %25005 = vrcp.f32 %v32081_v15  ;;  %v32259_v15 = vld [vmem:[%s25213_s12 + $0x1d0] sm:$0xff] }
 0x60c   : > { %25007 = vrcp.f32 %v8358_v54  ;;  %v32263_v54 = vld [vmem:[%s25213_s12 + $0x1d8] sm:$0xff] }
 0x60d   : > { %21341 = vmatmul.mubr.f32.gmra.mrb[120].mxu0 %v34792_v49  ;;  %25009 = vrcp.f32 %v32089_v16  ;;  %v32319_v16 = vld [vmem:[%s25213_s12 + $0x1e0] sm:$0xff] }
 0x60e   : > { %21611 = vmatmul.mubr.f32.gmra.mrb[120].mxu1 %v34793_v45  ;;  %21343 = vmatprep.mubr.msk.f32.mxu0 %vm25178_vm0, %v33928_v36  ;;  %v24992_v2 = vpop.eup %24991 }
 0x60f   : > { %21613 = vmatprep.mubr.msk.f32.mxu1 %vm25178_vm0, %v33928_v36  ;;  %v11197_v43 = vpop.f32.mrb[90].mxu0  ;;  %v24994_v27 = vpop.eup %24993 }
 0x610   : > { %v15954_v52 = vmul.f32 %v24990_v47, %v11197_v43  ;;  %v12120_v50 = vpop.f32.mrb[90].mxu1  ;;  %v20829_v14 = vpop.f32.mrb[91].mxu0  ;;  %v33844_v47 = vand.u32 4294901760, %v32170_v5 }
 0x611   : > { %21344 = vmatmul.mubr.f32.gmra.mrb[122].mxu0 %v34795_v53  ;;  %v15963_v10 = vmul.f32 %v24992_v2, %v12120_v50  ;;  %v21099_v23 = vpop.f32.mrb[91].mxu1  ;;  %v24996_v42 = vpop.eup %24995  ;;  %v32229_v50 = vsub.f32 %v32152_v25, %v33835_v57  ;;  %v32231_v14 = vand.u32 4294901760, %v14022_v0 }
 0x612   : > { %21614 = vmatmul.mubr.f32.gmra.mrb[122].mxu1 %v34796_v58  ;;  %21346 = vmatprep.mubr.msk.f32.mxu0 %vm25178_vm0, %v33928_v36  ;;  %16027 = vst.msk [vmem:[%s31080_s15 + $0x90] sm:$0xff] %vm197_vm1, %v15954_v52 }
 0x613   : > { %21616 = vmatprep.mubr.msk.f32.mxu1 %vm25178_vm0, %v33928_v36  ;;  %16036 = vst.msk [vmem:[%s31080_s15 + $0xd8] sm:$0xff] %vm197_vm1, %v15963_v10  ;;  %v11203_v21 = vpop.f32.mrb[92].mxu0  ;;  %v32233_v10 = vand.u32 4294901760, %v14945_v37 }
 0x614   : > { %v15955_v43 = vmul.f32 %v24994_v27, %v11203_v21  ;;  %v12126_v2 = vpop.f32.mrb[92].mxu1  ;;  %v20832_v52 = vpop.f32.mrb[93].mxu0  ;;  %v34805_v27 = vld [vmem:[#allocation68_spill] sm:$0xff] }
 0x615   : > { %21347 = vmatmul.mubr.f32.gmra.mrb[124].mxu0 %v34798_v6  ;;  %v15964_v23 = vmul.f32 %v24996_v42, %v12126_v2  ;;  %v21102_v33 = vpop.f32.mrb[93].mxu1  ;;  %v32245_v21 = vsel %vm7757_vm6, %v34805_v27, 0  ;;  %v33846_v42 = vand.u32 4294901760, %v32259_v15  ;;  %v24998_v2 = vpop.eup %24997  ;;  %v32277_v27 = vld [vmem:[%s25213_s12 + $0x218] sm:$0xff] }
 0x616   : > { %21617 = vmatmul.mubr.f32.gmra.mrb[124].mxu1 %v34799_v44  ;;  %21367 = vmatprep.mubr.msk.f32.mxu0 %vm25178_vm0, %v33928_v36  ;;  %16028 = vst.msk [vmem:[%s31080_s15 + $0x98] sm:$0xff] %vm197_vm1, %v15955_v43  ;;  %v33845_v43 = vand.u32 4294901760, %v32263_v54  ;;  %v8361_v52 = vpop.xlane.xlu0 %8360  ;;  %v33851_v57 = vand.u32 4294901760, %v32277_v27  ;;  %v25000_v51 = vpop.eup %24999 }
 0x617   : > { %21637 = vmatprep.mubr.msk.f32.mxu1 %vm25178_vm0, %v33928_v36  ;;  %16037 = vst.msk [vmem:[%s31080_s15 + $0xe0] sm:$0xff] %vm197_vm1, %v15964_v23  ;;  %v11209_v33 = vpop.f32.mrb[94].mxu0  ;;  %v32287_v23 = vsub.f32 %v32170_v5, %v33844_v47  ;;  %25011 = vrcp.f32 %v8361_v52 }
 0x618   : > { %v15956_v12 = vmul.f32 %v24998_v2, %v11209_v33  ;;  %v12132_v63 = vpop.f32.mrb[94].mxu1  ;;  %v20835_v46 = vpop.f32.mrb[95].mxu0  ;;  %v32337_v33 = vld [vmem:[%s25213_s12 + $0x228] sm:$0xff]  ;;  %25013 = vrcp.f32 %v32101_v61 }
 0x619   : > { %21368 = vmatmul.mubr.f32.vlgmr.msra.gmra.mrb[108].mxu0 %v31110_v31  ;;  %v34804_v31 = vld [vmem:[#allocation69_spill] sm:$0xff]  ;;  %v15965_v47 = vmul.f32 %v25000_v51, %v12132_v63  ;;  %v32305_v46 = vand.u32 4294901760, %v32245_v21  ;;  %v32323_v51 = vld [vmem:[%s25213_s12 + $0x1e8] sm:$0xff] }
 0x61a   : > { %21638 = vmatmul.mubr.f32.vlgmr.msra.gmra.mrb[108].mxu1 %v31108_v56  ;;  %21370 = vmatprep.mubr.msk.f32.mxu0 %vm25178_vm0, %v33928_v36  ;;  %v32241_v39 = vsel %vm7757_vm6, %v34804_v31, 0  ;;  %v32256_v56 = vpack.c.bf16 %v33836_v30, %v33837_v35  ;;  %v32274_v31 = vpack.c.bf16 %v33842_v22, %v33843_v59  ;;  %v32281_v30 = vld [vmem:[%s25213_s12 + $0x220] sm:$0xff]  ;;  %v32292_v22 = vsub.f32 %v14022_v0, %v32231_v14  ;;  %v21105_v35 = vpop.f32.mrb[95].mxu1  ;;  %v25002_v0 = vpop.eup %25001 }
 0x61b   : > { %21640 = vmatprep.mubr.msk.f32.mxu1 %vm25178_vm0, %v33928_v36  ;;  %23214 = vmatpush3.bf16.msra.mxu0 %v32198_v41  ;;  %v32295_v59 = vsub.f32 %v14945_v37, %v32233_v10  ;;  %16029 = vst.msk [vmem:[%s31080_s15 + $0xa0] sm:$0xff] %vm197_vm1, %v15956_v12  ;;  %v8364_v37 = vpop.xlane.xlu1 %8363  ;;  %16038 = vst.msk [vmem:[%s31080_s15 + $0xe8] sm:$0xff] %vm197_vm1, %v15965_v47  ;;  %v11215_v35 = vpop.f32.mrb[96].mxu0  ;;  %v34811_v2 = vand.u32 4294901760, %v32281_v30  ;;  %v34816_v61 = vand.u32 4294901760, %v32323_v51 }
 0x61c   : > { %34806 = vst [vmem:[#allocation42_spill] sm:$0xff] %v32256_v56  ;;  %23286 = vmatpush3.bf16.msra.mxu1 %v32214_v11  ;;  %23215 = vmatprep.subr.bf16.mxu0 %v33925_v18  ;;  %34807 = vst [vmem:[#allocation26_spill] sm:$0xff] %v32274_v31  ;;  %v25004_v47 = vpop.eup %25003  ;;  %v15957_v63 = vmul.f32 %v25002_v0, %v11215_v35  ;;  %25015 = vrcp.f32 %v8364_v37  ;;  %v8367_v0 = vpop.xlane.xlu0 %8366  ;;  %v34818_v37 = vand.u32 4294901760, %v32337_v33 }
 0x61d   : > { %21371 = vmatmul.mubr.f32.gmra.mrb[110].mxu0 %v31166_v48  ;;  %23287 = vmatprep.subr.bf16.mxu1 %v33925_v18  ;;  %34808 = vst [vmem:[#allocation32_spill] sm:$0xff] %v32292_v22  ;;  %34809 = vst [vmem:[#allocation91_spill] sm:$0xff] %v32295_v59  ;;  %v32302_v48 = vand.u32 4294901760, %v32241_v39  ;;  %v32334_v52 = vpack.c.bf16 %v34811_v2, %v33851_v57  ;;  %25017 = vrcp.f32 %v32107_v13 }
 0x61e   : > { %21641 = vmatmul.mubr.f32.gmra.mrb[110].mxu1 %v31169_v40  ;;  %21373 = vmatprep.mubr.msk.f32.mxu0 %vm25178_vm0, %v33928_v36  ;;  %v32316_v40 = vpack.c.bf16 %v33845_v43, %v33846_v42  ;;  %v32341_v42 = vld [vmem:[%s25213_s12 + $0x230] sm:$0xff]  ;;  %16030 = vst.msk [vmem:[%s31080_s15 + $0xa8] sm:$0xff] %vm197_vm1, %v15957_v63  ;;  %25019 = vrcp.f32 %v8367_v0 }
 0x61f   : > { %21643 = vmatprep.mubr.msk.f32.mxu1 %vm25178_vm0, %v33928_v36  ;;  %23217 = vmatpush3.bf16.msra.mxu0 %v32256_v56  ;;  %34812 = vst [vmem:[#allocation17_spill] sm:$0xff] %v32334_v52  ;;  %v33858_v12 = vand.u32 4294901760, %v32341_v42  ;;  %v20838_v56 = vpop.f32.mrb[97].mxu0  ;;  %25021 = vrcp.f32 %v32119_v9 }
 0x620   : > { %34810 = vst [vmem:[#allocation45_spill] sm:$0xff] %v32316_v40  ;;  %23289 = vmatpush3.bf16.msra.mxu1 %v32274_v31  ;;  %23218 = vmatprep.subr.bf16.mxu0 %v33925_v18  ;;  %v12138_v31 = vpop.f32.mrb[96].mxu1  ;;  %v32354_v56 = vsub.f32 %v32241_v39, %v32302_v48  ;;  %v11221_v63 = vpop.f32.mrb[98].mxu0  ;;  %v34821_v39 = vld [vmem:[#allocation60_spill] sm:$0xff] }
 0x621   : > { %21374 = vmatmul.mubr.f32.gmra.mrb[112].mxu0 %v31228_v4  ;;  %23290 = vmatprep.subr.bf16.mxu1 %v33925_v18  ;;  %v15966_v43 = vmul.f32 %v25004_v47, %v12138_v31  ;;  %v21108_v11 = vpop.f32.mrb[97].mxu1  ;;  %v32358_v4 = vsub.f32 %v32245_v21, %v32305_v46  ;;  %v25006_v21 = vpop.eup %25005  ;;  %v32381_v35 = vpack.c.bf16 %v33858_v12, %v34818_v37  ;;  %v25167_v47 = vld [vmem:[%s25213_s12 + $0x1f0] sm:$0xf]  ;;  %v25168_v37 = vld [vmem:[%s25213_s12 + $0x238] sm:$0xf] }
 0x622   : > { %21644 = vmatmul.mubr.f32.gmra.mrb[112].mxu1 %v31244_v17  ;;  %21376 = vmatprep.mubr.msk.f32.mxu0 %vm25178_vm0, %v33928_v36  ;;  %34813 = vst [vmem:[#allocation34_spill] sm:$0xff] %v32354_v56  ;;  %v34815_v17 = vand.u32 4294901760, %v32319_v16  ;;  %v25008_v57 = vpop.eup %25007  ;;  %v15958_v2 = vmul.f32 %v25006_v21, %v11221_v63  ;;  %v32395_v12 = vsel %vm8506_vm3, %v25168_v37, 0  ;;  %v34827_v37 = vand.u32 4294901760, %v32173_v60 }
 0x623   : > { %34814 = vst [vmem:[#allocation40_spill] sm:$0xff] %v32358_v4  ;;  %21646 = vmatprep.mubr.msk.f32.mxu1 %vm25178_vm0, %v33928_v36  ;;  %23220 = vmatpush3.bf16.msra.mxu0 %v32316_v40  ;;  %16039 = vst.msk [vmem:[%s31080_s15 + $0xf0] sm:$0xff] %vm197_vm1, %v15966_v43  ;;  %v14951_v43 = vsel %vm7757_vm6, %v34821_v39, 0  ;;  %v20841_v40 = vpop.f32.mrb[99].mxu0  ;;  %v34823_v39 = vand.u32 4294901760, %v32295_v59 }
 0x624   : > { %v32369_v11 = vpack.c.bf16 %v34816_v61, %v34815_v17  ;;  %23292 = vmatpush3.bf16.msra.mxu1 %v32334_v52  ;;  %23221 = vmatprep.subr.bf16.mxu0 %v33925_v18  ;;  %34819 = vst [vmem:[#allocation9_spill] sm:$0xff] %v32381_v35  ;;  %v32385_v17 = vsel %vm8506_vm3, %v25167_v47, 0  ;;  %v34820_v61 = vld [vmem:[#allocation62_spill] sm:$0xff]  ;;  %v12144_v52 = vpop.f32.mrb[98].mxu1  ;;  %v34822_v47 = vand.u32 4294901760, %v32292_v22  ;;  %16031 = vst.msk [vmem:[%s31080_s15 + $0xb0] sm:$0xff] %vm197_vm1, %v15958_v2 }
 0x625   : > { %v14028_v31 = vsel %vm7757_vm6, %v34820_v61, 0  ;;  %21377 = vmatmul.mubr.f32.gmra.mrb[114].mxu0 %v31329_v55  ;;  %23293 = vmatprep.subr.bf16.mxu1 %v33925_v18  ;;  %v32405_v21 = vsub.f32 %v32295_v59, %v34823_v39  ;;  %v15967_v40 = vmul.f32 %v25008_v57, %v12144_v52  ;;  %v21111_v55 = vpop.f32.mrb[99].mxu1  ;;  %v32419_v13 = vand.u32 4294901760, %v32385_v17  ;;  %v25010_v52 = vpop.eup %25009 }
 0x626   : > { %34817 = vst [vmem:[#allocation85_spill] sm:$0xff] %v32369_v11  ;;  %v32400_v61 = vsub.f32 %v32292_v22, %v34822_v47  ;;  %21647 = vmatmul.mubr.f32.gmra.mrb[114].mxu1 %v31436_v34  ;;  %21379 = vmatprep.mubr.msk.f32.mxu0 %vm25178_vm0, %v33928_v36  ;;  %v32421_v34 = vand.u32 4294901760, %v14028_v31  ;;  %v32423_v57 = vand.u32 4294901760, %v14951_v43  ;;  %v8370_v47 = vpop.xlane.xlu1 %8369  ;;  %v34825_v39 = vand.u32 4294901760, %v32162_v8 }
 0x627   : > { %21649 = vmatprep.mubr.msk.f32.mxu1 %vm25178_vm0, %v33928_v36  ;;  %23223 = vmatpush3.bf16.msra.mxu0 %v32369_v11  ;;  %34824 = vst [vmem:[#allocation64_spill] sm:$0xff] %v32419_v13  ;;  %v34826_v2 = vand.u32 4294901760, %v32166_v28  ;;  %v32438_v63 = vsub.f32 %v32173_v60, %v34827_v37  ;;  %16040 = vst.msk [vmem:[%s31080_s15 + $0xf8] sm:$0xff] %vm197_vm1, %v15967_v40  ;;  %v11227_v11 = vpop.f32.mrb[100].mxu0  ;;  %v34829_v59 = vand.u32 4294901760, %v32177_v7  ;;  %v12150_v60 = vpop.f32.mrb[100].mxu1  ;;  %25023 = vrcp.f32 %v8370_v47 }
 0x628   : > { %v32428_v0 = vsub.f32 %v32162_v8, %v34825_v39  ;;  %23295 = vmatpush3.bf16.msra.mxu1 %v32381_v35  ;;  %21680 = vmatprep.subr.mxu0 %v33928_v36  ;;  %v32445_v8 = vand.u32 4294901760, %v32395_v12  ;;  %v25012_v39 = vpop.eup %25011  ;;  %v20844_v37 = vpop.f32.mrb[101].mxu0  ;;  %v34830_v35 = vld [vmem:[#allocation22_spill] sm:$0xff] }
 0x629   : > { %v32433_v55 = vsub.f32 %v32166_v28, %v34826_v2  ;;  %v32450_v28 = vsub.f32 %v32177_v7, %v34829_v59  ;;  %v15959_v2 = vmul.f32 %v25010_v52, %v11227_v11  ;;  %21380 = vmatmul.mubr.f32.gmra.mrb[116].mxu0 %v31468_v24  ;;  %21950 = vmatprep.subr.mxu1 %v33928_v36  ;;  %v14031_v22 = vsel %vm7757_vm6, %v34830_v35, 0  ;;  %v21114_v5 = vpop.f32.mrb[101].mxu1  ;;  %v25014_v35 = vpop.eup %25013 }
 0x62a   : > { %34828 = vst [vmem:[#allocation87_spill] sm:$0xff] %v32445_v8  ;;  %v15968_v41 = vmul.f32 %v25012_v39, %v12150_v60  ;;  %21650 = vmatmul.mubr.f32.gmra.mrb[116].mxu1 %v31471_v19  ;;  %21382 = vmatprep.mubr.msk.f32.mxu0 %vm25178_vm0, %v33928_v36  ;;  %v34831_v24 = vand.u32 4294901760, %v32354_v56  ;;  %v34832_v19 = vand.u32 4294901760, %v32358_v4  ;;  %v32478_v5 = vsub.f32 %v14028_v31, %v32421_v34  ;;  %v11233_v52 = vpop.f32.mrb[102].mxu0  ;;  %v25016_v31 = vpop.eup %25015 }
 0x62b   : > { %16032 = vst.msk [vmem:[%s31080_s15 + $0xb8] sm:$0xff] %vm197_vm1, %v15959_v2  ;;  %21652 = vmatprep.mubr.msk.f32.mxu1 %vm25178_vm0, %v33928_v36  ;;  %21681 = vmatpush3.msra.mxu0 %v32419_v13  ;;  %v32481_v11 = vsub.f32 %v14951_v43, %v32423_v57  ;;  %v33871_v47 = vand.u32 4294901760, %v32428_v0  ;;  %v32490_v60 = vand.u32 4294901760, %v14031_v22  ;;  %v34836_v43 = vand.u32 4294901760, %v32201_v38  ;;  %v12156_v7 = vpop.f32.mrb[102].mxu1  ;;  %v20847_v40 = vpop.f32.mrb[103].mxu0 }
 0x62c   : > { %v32465_v59 = vsub.f32 %v32354_v56, %v34831_v24  ;;  %v32475_v9 = vsub.f32 %v32358_v4, %v34832_v19  ;;  %34833 = vst [vmem:[#allocation2_spill] sm:$0xff] %v32478_v5  ;;  %16041 = vst.msk [vmem:[%s31080_s15 + $0x100] sm:$0xff] %vm197_vm1, %v15968_v41  ;;  %21951 = vmatpush3.msra.mxu1 %v32445_v8  ;;  %23224 = vmatprep.subr.bf16.mxu0 %v33925_v18  ;;  %v34837_v41 = vand.u32 4294901760, %v32205_v3 }
 0x62d   : > { %34834 = vst [vmem:[#allocation89_spill] sm:$0xff] %v32481_v11  ;;  %34835 = vst [vmem:[#allocation46_spill] sm:$0xff] %v32490_v60  ;;  %v32495_v37 = vsub.f32 %v32201_v38, %v34836_v43  ;;  %v15960_v19 = vmul.f32 %v25014_v35, %v11233_v52  ;;  %21383 = vmatmul.mubr.f32.gmra.mrb[118].mxu0 %v34788_v32  ;;  %23296 = vmatprep.subr.bf16.mxu1 %v33925_v18  ;;  %v33876_v2 = vand.u32 4294901760, %v32450_v28  ;;  %v21117_v52 = vpop.f32.mrb[103].mxu1  ;;  %v34840_v32 = vld [vmem:[#allocation76_spill] sm:$0xff] }
 0x62e   : > { %v32500_v24 = vsub.f32 %v32205_v3, %v34837_v41  ;;  %v34838_v39 = vand.u32 4294901760, %v32217_v62  ;;  %v34839_v43 = vand.u32 4294901760, %v32221_v20  ;;  %v15969_v35 = vmul.f32 %v25016_v31, %v12156_v7  ;;  %21653 = vmatmul.mubr.f32.gmra.mrb[118].mxu1 %v34790_v26  ;;  %21385 = vmatprep.mubr.msk.f32.mxu0 %vm25178_vm0, %v33928_v36  ;;  %v11239_v31 = vpop.f32.mrb[104].mxu0  ;;  %v12162_v7 = vpop.f32.mrb[104].mxu1 }
 0x62f   : > { %v32520_v40 = vsel %vm7757_vm6, %v34840_v32, 0  ;;  %16033 = vst.msk [vmem:[%s31080_s15 + $0xc0] sm:$0xff] %vm197_vm1, %v15960_v19  ;;  %21655 = vmatprep.mubr.msk.f32.mxu1 %vm25178_vm0, %v33928_v36  ;;  %v14215_v41 = vsub.f32 %v32428_v0, %v33871_v47  ;;  %v34841_v19 = vand.u32 4294901760, %v32433_v55  ;;  %v34842_v52 = vand.u32 4294901760, %v32438_v63  ;;  %v21120_v56 = vpop.f32.mrb[105].mxu1 }
 0x630   : > { %v32508_v38 = vsub.f32 %v32217_v62, %v34838_v39  ;;  %v32513_v3 = vsub.f32 %v32221_v20, %v34839_v43  ;;  %v25018_v39 = vpop.eup %25017  ;;  %16042 = vst.msk [vmem:[%s31080_s15 + $0x108] sm:$0xff] %vm197_vm1, %v15969_v35  ;;  %v32542_v20 = vsub.f32 %v14031_v22, %v32490_v60  ;;  %v20850_v35 = vpop.f32.mrb[105].mxu0  ;;  %v15145_v47 = vsub.f32 %v32450_v28, %v33876_v2 }
 0x631   : > { %v14222_v43 = vsub.f32 %v32433_v55, %v34841_v19  ;;  %v15138_v32 = vsub.f32 %v32438_v63, %v34842_v52  ;;  %v25020_v62 = vpop.eup %25019  ;;  %v15961_v26 = vmul.f32 %v25018_v39, %v11239_v31  ;;  %21386 = vmatmul.mubr.f32.gmra.mrb[120].mxu0 %v34792_v49  ;;  %v32556_v39 = vand.u32 4294901760, %v32520_v40  ;;  %v12168_v19 = vpop.f32.mrb[106].mxu1 }
 0x632   : > { %v15970_v52 = vmul.f32 %v25020_v62, %v12162_v7  ;;  %21656 = vmatmul.mubr.f32.gmra.mrb[120].mxu1 %v34793_v45  ;;  %21388 = vmatprep.mubr.msk.f32.mxu0 %vm25178_vm0, %v33928_v36  ;;  %v34843_v31 = vand.u32 4294901760, %v32259_v15  ;;  %v34844_v62 = vand.u32 4294901760, %v32263_v54  ;;  %v34845_v45 = vand.u32 4294901760, %v32277_v27 }
 0x633   : > { %16034 = vst.msk [vmem:[%s31080_s15 + $0xc8] sm:$0xff] %vm197_vm1, %v15961_v26  ;;  %21658 = vmatprep.mubr.msk.f32.mxu1 %vm25178_vm0, %v33928_v36  ;;  %v34846_v2 = vand.u32 4294901760, %v32478_v5  ;;  %v34847_v49 = vand.u32 4294901760, %v32281_v30  ;;  %v15139_v26 = vand.u32 4294901760, %v15138_v32  ;;  %v34852_v32 = vld [vmem:[#allocation78_spill] sm:$0xff] }
 0x634   : > { %v32561_v35 = vsub.f32 %v32259_v15, %v34843_v31  ;;  %v32566_v56 = vsub.f32 %v32263_v54, %v34844_v62  ;;  %v32571_v7 = vsub.f32 %v32277_v27, %v34845_v45  ;;  %v25022_v31 = vpop.eup %25021  ;;  %16043 = vst.msk [vmem:[%s31080_s15 + $0x110] sm:$0xff] %vm197_vm1, %v15970_v52  ;;  %v11245_v27 = vpop.f32.mrb[106].mxu0  ;;  %v14216_v62 = vand.u32 4294901760, %v14215_v41 }
 0x635   : > { %v32580_v15 = vsub.f32 %v32478_v5, %v34846_v2  ;;  %v32585_v54 = vsub.f32 %v32281_v30, %v34847_v49  ;;  %v14223_v45 = vand.u32 4294901760, %v14222_v43  ;;  %v25024_v22 = vpop.eup %25023  ;;  %v15962_v4 = vmul.f32 %v25022_v31, %v11245_v27  ;;  %v20853_v25 = vpop.f32.mrb[107].mxu0  ;;  %21389 = vmatmul.mubr.f32.gmra.mrb[122].mxu0 %v34795_v53 }
 0x636   : > { %v15146_v2 = vand.u32 4294901760, %v15145_v47  ;;  %v34848_v5 = vand.u32 4294901760, %v32495_v37  ;;  %v34849_v30 = vand.u32 4294901760, %v32500_v24  ;;  %v15971_v41 = vmul.f32 %v25024_v22, %v12168_v19  ;;  %v21123_v43 = vpop.f32.mrb[107].mxu1  ;;  %21659 = vmatmul.mubr.f32.gmra.mrb[122].mxu1 %v34796_v58  ;;  %21391 = vmatprep.mubr.msk.f32.mxu0 %vm25178_vm0, %v33928_v36 }
 0x637   : > { %v34850_v25 = vand.u32 4294901760, %v32508_v38  ;;  %v34851_v47 = vand.u32 4294901760, %v32513_v3  ;;  %v32607_v49 = vsel %vm7757_vm6, %v34852_v32, 0  ;;  %v34853_v19 = vand.u32 4294901760, %v32319_v16  ;;  %16035 = vst.msk [vmem:[%s31080_s15 + $0xd0] sm:$0xf] %vm16016_vm4, %v15962_v4  ;;  %21661 = vmatprep.mubr.msk.f32.mxu1 %vm25178_vm0, %v33928_v36 }
 0x638   : > { %v14229_v60 = vsub.f32 %v32495_v37, %v34848_v5  ;;  %v14236_v52 = vsub.f32 %v32500_v24, %v34849_v30  ;;  %v34854_v58 = vand.u32 4294901760, %v32323_v51  ;;  %v33884_v27 = vand.u32 4294901760, %v32561_v35  ;;  %16044 = vst.msk [vmem:[%s31080_s15 + $0x118] sm:$0xf] %vm16016_vm4, %v15971_v41 }
 0x639   : > { %v15152_v53 = vsub.f32 %v32508_v38, %v34850_v25  ;;  %v15159_v5 = vsub.f32 %v32513_v3, %v34851_v47  ;;  %v32612_v22 = vsub.f32 %v32319_v16, %v34853_v19  ;;  %v34855_v43 = vand.u32 4294901760, %v32337_v33  ;;  %21392 = vmatmul.mubr.f32.gmra.mrb[124].mxu0 %v34798_v6 }
 0x63a   : > { %v32617_v31 = vsub.f32 %v32323_v51, %v34854_v58  ;;  %v34856_v16 = vand.u32 4294901760, %v32341_v42  ;;  %v33883_v51 = vand.u32 4294901760, %v32571_v7  ;;  %v23225_v32 = vpack.c.bf16 %v14223_v45, %v14216_v62  ;;  %v34857_v58 = vld [vmem:[#allocation90_spill] sm:$0xff]  ;;  %21662 = vmatmul.mubr.f32.gmra.mrb[124].mxu1 %v34799_v44  ;;  %21682 = vmatprep.mubr.msk.f32.mxu0 %vm25178_vm0, %v33928_v36 }
 0x63b   : > { %v32628_v25 = vsub.f32 %v32337_v33, %v34855_v43  ;;  %v23297_v19 = vpack.c.bf16 %v15146_v2, %v15139_v26  ;;  %v14957_v30 = vsel %vm7757_vm6, %v34857_v58, 0  ;;  %v34858_v33 = vld [vmem:[#allocation73_spill] sm:$0xff]  ;;  %v14237_v41 = vand.u32 4294901760, %v14236_v52  ;;  %21952 = vmatprep.mubr.msk.f32.mxu1 %vm25178_vm0, %v33928_v36 }
 0x63c   : > { %v32633_v47 = vsub.f32 %v32341_v42, %v34856_v16  ;;  %v32644_v43 = vsel %vm7757_vm6, %v34858_v33, 0  ;;  %v14230_v42 = vand.u32 4294901760, %v14229_v60  ;;  %v15153_v16 = vand.u32 4294901760, %v15152_v53 }
 0x63d   : > { %v15160_v4 = vand.u32 4294901760, %v15159_v5  ;;  %v14243_v6 = vsub.f32 %v32561_v35, %v33884_v27  ;;  %v34859_v62 = vand.u32 4294901760, %v32566_v56  ;;  %v33885_v44 = vand.u32 4294901760, %v32612_v22 }
 0x63e   : > { %v15166_v60 = vsub.f32 %v32571_v7, %v33883_v51  ;;  %v34860_v2 = vand.u32 4294901760, %v32585_v54  ;;  %v32669_v58 = vsub.f32 %v32385_v17, %v32419_v13  ;;  %v34861_v33 = vand.u32 4294901760, %v32229_v50 }
 0x63f   : > { %v14250_v45 = vsub.f32 %v32566_v56, %v34859_v62  ;;  %v32675_v62 = vsub.f32 %v32520_v40, %v32556_v39  ;;  %v32678_v51 = vand.u32 4294901760, %v32607_v49  ;;  %v32680_v27 = vand.u32 4294901760, %v14957_v30 }
 0x640   : > { %v15173_v52 = vsub.f32 %v32585_v54, %v34860_v2  ;;  %21683 = vmatmul.mubr.f32.vlgmr.msra.gmra.mrb[126].mxu0 %v34861_v33  ;;  %v32684_v2 = vsub.f32 %v32395_v12, %v32445_v8  ;;  %v34864_v5 = vand.u32 4294901760, %v32287_v23  ;;  %v23228_v50 = vpack.c.bf16 %v14237_v41, %v14230_v42  ;;  %v34865_v33 = vld [vmem:[#allocation55_spill] sm:$0xff] }
 0x641   : > { %34862 = vst [vmem:[#allocation6_spill] sm:$0xff] %v32678_v51  ;;  %34863 = vst [vmem:[#allocation54_spill] sm:$0xff] %v32680_v27  ;;  %21685 = vmatprep.mubr.msk.f32.mxu0 %vm25178_vm0, %v33928_v36  ;;  %v23300_v17 = vpack.c.bf16 %v15160_v4, %v15153_v16  ;;  %v14960_v40 = vsel %vm7757_vm6, %v34865_v33, 0  ;;  %23226 = vmatpush3.bf16.msra.mxu0 %v23225_v32  ;;  %v14244_v53 = vand.u32 4294901760, %v14243_v6  ;;  %v14251_v26 = vand.u32 4294901760, %v14250_v45 }
 0x642   : > { %21953 = vmatmul.mubr.f32.vlgmr.msra.gmra.mrb[126].mxu1 %v34864_v5  ;;  %v14257_v12 = vsub.f32 %v32612_v22, %v33885_v44  ;;  %v34866_v23 = vand.u32 4294901760, %v32617_v31  ;;  %23227 = vmatprep.subr.bf16.mxu0 %v33925_v18  ;;  %v15167_v4 = vand.u32 4294901760, %v15166_v60  ;;  %v15174_v42 = vand.u32 4294901760, %v15173_v52 }
 0x643   : > { %21955 = vmatprep.mubr.msk.f32.mxu1 %vm25178_vm0, %v33928_v36  ;;  %23298 = vmatpush3.bf16.msra.mxu1 %v23297_v19  ;;  %v34867_v41 = vand.u32 4294901760, %v32628_v25  ;;  %v34868_v32 = vand.u32 4294901760, %v32633_v47  ;;  %v34869_v45 = vand.u32 4294901760, %v32400_v61  ;;  %v34870_v33 = vand.u32 4294901760, %v32481_v11 }
 0x644   : > { %v14264_v5 = vsub.f32 %v32617_v31, %v34866_v23  ;;  %23299 = vmatprep.subr.bf16.mxu1 %v33925_v18  ;;  %v32716_v23 = vand.u32 4294901760, %v32644_v43  ;;  %v32724_v61 = vsub.f32 %v32607_v49, %v32678_v51  ;;  %v33903_v60 = vand.u32 4294901760, %v32669_v58 }
 0x645   : > { %v15180_v16 = vsub.f32 %v32628_v25, %v34867_v41  ;;  %v15187_v6 = vsub.f32 %v32633_v47, %v34868_v32  ;;  %21686 = vmatmul.mubr.f32.gmra.mrb[128].mxu0 %v34869_v45  ;;  %v15077_v19 = vsub.f32 %v32481_v11, %v34870_v33  ;;  %v34872_v41 = vand.u32 4294901760, %v32405_v21  ;;  %v34874_v33 = vld [vmem:[#allocation81_spill] sm:$0xff] }
 0x646   : > { %34871 = vst [vmem:[#allocation27_spill] sm:$0xff] %v32716_v23  ;;  %21688 = vmatprep.mubr.msk.f32.mxu0 %vm25178_vm0, %v33928_v36  ;;  %v32727_v32 = vsub.f32 %v14957_v30, %v32680_v27  ;;  %v32729_v45 = vand.u32 4294901760, %v14960_v40  ;;  %v14040_v44 = vsel %vm7757_vm6, %v34874_v33, 0  ;;  %23229 = vmatpush3.bf16.msra.mxu0 %v23228_v50  ;;  %v23231_v21 = vpack.c.bf16 %v14251_v26, %v14244_v53  ;;  %v34877_v50 = vld [vmem:[#allocation28_spill] sm:$0xff] }
 0x647   : > { %21956 = vmatmul.mubr.f32.gmra.mrb[128].mxu1 %v34872_v41  ;;  %v14258_v41 = vand.u32 4294901760, %v14257_v12  ;;  %v14265_v52 = vand.u32 4294901760, %v14264_v5  ;;  %23230 = vmatprep.subr.bf16.mxu0 %v33925_v18  ;;  %v23303_v49 = vpack.c.bf16 %v15174_v42, %v15167_v4  ;;  %v15181_v30 = vand.u32 4294901760, %v15180_v16 }
 0x648   : > { %34873 = vst [vmem:[#allocation52_spill] sm:$0xff] %v32729_v45  ;;  %21958 = vmatprep.mubr.msk.f32.mxu1 %vm25178_vm0, %v33928_v36  ;;  %23301 = vmatpush3.bf16.msra.mxu1 %v23300_v17  ;;  %v15188_v8 = vand.u32 4294901760, %v15187_v6  ;;  %v33902_v13 = vand.u32 4294901760, %v32684_v2  ;;  %v34875_v11 = vand.u32 4294901760, %v32465_v59  ;;  %v14155_v33 = vand.u32 4294901760, %v32580_v15 }
 0x649   : > { %v15078_v27 = vand.u32 4294901760, %v15077_v19  ;;  %v34876_v26 = vand.u32 4294901760, %v32542_v20  ;;  %23302 = vmatprep.subr.bf16.mxu1 %v33925_v18  ;;  %v14963_v17 = vsel %vm7757_vm6, %v34877_v50, 0  ;;  %v34878_v12 = vand.u32 4294901760, %v32475_v9 }
 0x64a   : > { %21689 = vmatmul.mubr.f32.gmra.mrb[130].mxu0 %v34875_v11  ;;  %v34879_v59 = vand.u32 4294901760, %v32675_v62  ;;  %v33901_v15 = vand.u32 4294901760, %v32724_v61  ;;  %v33900_v5 = vand.u32 4294901760, %v32727_v32  ;;  %v32758_v4 = vsub.f32 %v32644_v43, %v32716_v23 }
 0x64b   : > { %v14164_v53 = vsub.f32 %v32542_v20, %v34876_v26  ;;  %21959 = vmatmul.mubr.f32.gmra.mrb[130].mxu1 %v34878_v12  ;;  %21691 = vmatprep.mubr.msk.f32.mxu0 %vm25178_vm0, %v33928_v36  ;;  %v32763_v9 = vsub.f32 %v14960_v40, %v32729_v45  ;;  %v23234_v42 = vpack.c.bf16 %v14265_v52, %v14258_v41  ;;  %v32765_v16 = vand.u32 4294901760, %v14040_v44  ;;  %v34882_v26 = vld [vmem:[#allocation80_spill] sm:$0xff]  ;;  %v34883_v52 = vld [vmem:[#allocation13_spill] sm:$0xff] }
 0x64c   : > { %v15087_v11 = vsub.f32 %v32675_v62, %v34879_v59  ;;  %21961 = vmatprep.mubr.msk.f32.mxu1 %vm25178_vm0, %v33928_v36  ;;  %23232 = vmatpush3.bf16.msra.mxu0 %v23231_v21  ;;  %v14271_v6 = vsub.f32 %v32669_v58, %v33903_v60  ;;  %v23306_v19 = vpack.c.bf16 %v15188_v8, %v15181_v30  ;;  %v32771_v43 = vand.u32 4294901760, %v14963_v17  ;;  %v34903_v60 = vld [vmem:[#allocation9_spill] sm:$0xff] }
 0x64d   : > { %34880 = vst [vmem:[#allocation56_spill] sm:$0xff] %v32765_v16  ;;  %23304 = vmatpush3.bf16.msra.mxu1 %v23303_v49  ;;  %23233 = vmatprep.subr.bf16.mxu0 %v33925_v18  ;;  %v14043_v50 = vsel %vm7757_vm6, %v34882_v26, 0  ;;  %v15194_v40 = vsub.f32 %v32684_v2, %v33902_v13  ;;  %v14966_v21 = vsel %vm7757_vm6, %v34883_v52, 0  ;;  %v14165_v8 = vand.u32 4294901760, %v14164_v53  ;;  %v34902_v13 = vld [vmem:[#allocation85_spill] sm:$0xff] }
 0x64e   : > { %34881 = vst [vmem:[#allocation31_spill] sm:$0xff] %v32771_v43  ;;  %21692 = vmatmul.mubr.f32.gmra.mrb[132].mxu0 %v14155_v33  ;;  %23305 = vmatprep.subr.bf16.mxu1 %v33925_v18  ;;  %v15088_v41 = vand.u32 4294901760, %v15087_v11  ;;  %v14174_v49 = vsub.f32 %v32724_v61, %v33901_v15  ;;  %v33899_v30 = vand.u32 4294901760, %v32758_v4  ;;  %v15097_v33 = vsub.f32 %v32727_v32, %v33900_v5  ;;  %v34900_v5 = vld [vmem:[#allocation2_spill] sm:$0xff]  ;;  %v34901_v15 = vld [vmem:[#allocation89_spill] sm:$0xff] }
 0x64f   : > { %21962 = vmatmul.mubr.f32.gmra.mrb[132].mxu1 %v15078_v27  ;;  %21694 = vmatprep.mubr.msk.f32.mxu0 %vm25178_vm0, %v33928_v36  ;;  %v32793_v27 = vsub.f32 %v14040_v44, %v32765_v16  ;;  %v32795_v12 = vand.u32 4294901760, %v14043_v50  ;;  %v14272_v53 = vand.u32 4294901760, %v14271_v6  ;;  %v33898_v59 = vand.u32 4294901760, %v32763_v9 }
 0x650   : > { %21964 = vmatprep.mubr.msk.f32.mxu1 %vm25178_vm0, %v33928_v36  ;;  %23235 = vmatpush3.bf16.msra.mxu0 %v23234_v42  ;;  %v32799_v11 = vsub.f32 %v14963_v17, %v32771_v43  ;;  %v32802_v26 = vand.u32 4294901760, %v14966_v21  ;;  %v15195_v52 = vand.u32 4294901760, %v15194_v40  ;;  %v14175_v44 = vand.u32 4294901760, %v14174_v49 }
 0x651   : > { %34884 = vst [vmem:[#allocation84_spill] sm:$0xff] %v32795_v12  ;;  %23307 = vmatpush3.bf16.msra.mxu1 %v23306_v19  ;;  %21725 = vmatprep.subr.mxu0 %v33928_v36  ;;  %v14184_v17 = vsub.f32 %v32758_v4, %v33899_v30  ;;  %v33897_v42 = vand.u32 4294901760, %v32793_v27  ;;  %v32814_v6 = vsub.f32 %v14043_v50, %v32795_v12  ;;  %v15098_v19 = vand.u32 4294901760, %v15097_v33  ;;  %v34899_v30 = vld [vmem:[#allocation17_spill] sm:$0xff] }
 0x652   : > { %34885 = vst [vmem:[#allocation49_spill] sm:$0xff] %v32802_v26  ;;  %21695 = vmatmul.mubr.f32.gmra.mrb[134].mxu0 %v14165_v8  ;;  %21995 = vmatprep.subr.mxu1 %v33928_v36  ;;  %v15107_v40 = vsub.f32 %v32763_v9, %v33898_v59  ;;  %v33896_v8 = vand.u32 4294901760, %v32799_v11  ;;  %v34898_v59 = vld [vmem:[#allocation45_spill] sm:$0xff] }
 0x653   : > { %21965 = vmatmul.mubr.f32.gmra.mrb[134].mxu1 %v15088_v41  ;;  %21697 = vmatprep.mubr.msk.f32.mxu0 %vm25178_vm0, %v33928_v36  ;;  %v32821_v41 = vsub.f32 %v14966_v21, %v32802_v26  ;;  %v14185_v50 = vand.u32 4294901760, %v14184_v17  ;;  %v14194_v49 = vsub.f32 %v32793_v27, %v33897_v42  ;;  %v33895_v21 = vand.u32 4294901760, %v32814_v6  ;;  %v34897_v42 = vld [vmem:[#allocation40_spill] sm:$0xff] }
 0x654   : > { %21967 = vmatprep.mubr.msk.f32.mxu1 %vm25178_vm0, %v33928_v36  ;;  %21726 = vmatpush3.msra.mxu0 %v14272_v53  ;;  %v15108_v33 = vand.u32 4294901760, %v15107_v40  ;;  %v15117_v53 = vsub.f32 %v32799_v11, %v33896_v8  ;;  %v34896_v8 = vld [vmem:[#allocation34_spill] sm:$0xff] }
 0x655   : > { %21996 = vmatpush3.msra.mxu1 %v15195_v52  ;;  %23236 = vmatprep.subr.bf16.mxu0 %v33925_v18  ;;  %v33894_v52 = vand.u32 4294901760, %v32821_v41  ;;  %v14204_v17 = vsub.f32 %v32814_v6, %v33895_v21  ;;  %v34895_v21 = vld [vmem:[#allocation26_spill] sm:$0xff] }
 0x656   : > { %21698 = vmatmul.mubr.f32.gmra.mrb[136].mxu0 %v14175_v44  ;;  %23308 = vmatprep.subr.bf16.mxu1 %v33925_v18  ;;  %v14195_v44 = vand.u32 4294901760, %v14194_v49  ;;  %v23237_v49 = vpack.c.bf16 %v32433_v55, %v32428_v0 }
 0x657   : > { %21968 = vmatmul.mubr.f32.gmra.mrb[136].mxu1 %v15098_v19  ;;  %21700 = vmatprep.mubr.msk.f32.mxu0 %vm25178_vm0, %v33928_v36  ;;  %v15118_v19 = vand.u32 4294901760, %v15117_v53  ;;  %v15127_v40 = vsub.f32 %v32821_v41, %v33894_v52  ;;  %v23309_v53 = vpack.c.bf16 %v32450_v28, %v32438_v63  ;;  %v34894_v52 = vld [vmem:[#allocation42_spill] sm:$0xff] }
 0x658   : > { %21970 = vmatprep.mubr.msk.f32.mxu1 %vm25178_vm0, %v33928_v36 }
 0x65a   : > { %21701 = vmatmul.mubr.f32.gmra.mrb[138].mxu0 %v14185_v50  ;;  %v14205_v50 = vand.u32 4294901760, %v14204_v17  ;;  %v23312_v17 = vpack.c.bf16 %v32513_v3, %v32508_v38 }
 0x65b   : > { %21971 = vmatmul.mubr.f32.gmra.mrb[138].mxu1 %v15108_v33  ;;  %21703 = vmatprep.mubr.msk.f32.mxu0 %vm25178_vm0, %v33928_v36  ;;  %v15128_v33 = vand.u32 4294901760, %v15127_v40  ;;  %v23315_v40 = vpack.c.bf16 %v32585_v54, %v32571_v7 }
 0x65c   : > { %21973 = vmatprep.mubr.msk.f32.mxu1 %vm25178_vm0, %v33928_v36 }
 0x65e   : > { %21704 = vmatmul.mubr.f32.gmra.mrb[140].mxu0 %v14195_v44  ;;  %v23240_v44 = vpack.c.bf16 %v32500_v24, %v32495_v37 }
 0x65f   : > { %21974 = vmatmul.mubr.f32.gmra.mrb[140].mxu1 %v15118_v19  ;;  %21706 = vmatprep.mubr.msk.f32.mxu0 %vm25178_vm0, %v33928_v36  ;;  %v23243_v19 = vpack.c.bf16 %v32566_v56, %v32561_v35 }
 0x660   : > { %21976 = vmatprep.mubr.msk.f32.mxu1 %vm25178_vm0, %v33928_v36 }
 0x662   : > { %21707 = vmatmul.mubr.f32.gmra.mrb[142].mxu0 %v14205_v50  ;;  %v23246_v50 = vpack.c.bf16 %v32617_v31, %v32612_v22 }
 0x663   : > { %21977 = vmatmul.mubr.f32.gmra.mrb[142].mxu1 %v15128_v33  ;;  %21727 = vmatprep.mubr.msk.f32.mxu0 %vm25178_vm0, %v33928_v36  ;;  %v23318_v33 = vpack.c.bf16 %v32633_v47, %v32628_v25 }
 0x664   : > { %21997 = vmatprep.mubr.msk.f32.mxu1 %vm25178_vm0, %v33928_v36 }
 0x666   : > { %21728 = vmatmul.mubr.f32.vlgmr.msra.gmra.mrb[126].mxu0 %v32140_v1 }
 0x667   : > { %21998 = vmatmul.mubr.f32.vlgmr.msra.gmra.mrb[126].mxu1 %v32149_v29  ;;  %21730 = vmatprep.mubr.msk.f32.mxu0 %vm25178_vm0, %v33928_v36 }
 0x668   : > { %22000 = vmatprep.mubr.msk.f32.mxu1 %vm25178_vm0, %v33928_v36  ;;  %23238 = vmatpush3.bf16.msra.mxu0 %v23237_v49  ;;  %v34886_v49 = vld [vmem:[#allocation46_spill] sm:$0xff] }
 0x669   : > { %23310 = vmatpush3.bf16.msra.mxu1 %v23309_v53  ;;  %23239 = vmatprep.subr.bf16.mxu0 %v33925_v18  ;;  %v34887_v53 = vld [vmem:[#allocation54_spill] sm:$0xff] }
 0x66a   : > { %21731 = vmatmul.mubr.f32.gmra.mrb[128].mxu0 %v32231_v14  ;;  %23311 = vmatprep.subr.bf16.mxu1 %v33925_v18 }
 0x66b   : > { %22001 = vmatmul.mubr.f32.gmra.mrb[128].mxu1 %v32233_v10  ;;  %21733 = vmatprep.mubr.msk.f32.mxu0 %vm25178_vm0, %v33928_v36 }
 0x66c   : > { %22003 = vmatprep.mubr.msk.f32.mxu1 %vm25178_vm0, %v33928_v36  ;;  %23241 = vmatpush3.bf16.msra.mxu0 %v23240_v44  ;;  %v34888_v44 = vld [vmem:[#allocation71_spill] sm:$0xff] }
 0x66d   : > { %23313 = vmatpush3.bf16.msra.mxu1 %v23312_v17  ;;  %23242 = vmatprep.subr.bf16.mxu0 %v33925_v18  ;;  %v34889_v17 = vld [vmem:[#allocation21_spill] sm:$0xff] }
 0x66e   : > { %21734 = vmatmul.mubr.f32.gmra.mrb[130].mxu0 %v32302_v48  ;;  %23314 = vmatprep.subr.bf16.mxu1 %v33925_v18 }
 0x66f   : > { %22004 = vmatmul.mubr.f32.gmra.mrb[130].mxu1 %v32305_v46  ;;  %21736 = vmatprep.mubr.msk.f32.mxu0 %vm25178_vm0, %v33928_v36 }
 0x670   : > { %22006 = vmatprep.mubr.msk.f32.mxu1 %vm25178_vm0, %v33928_v36  ;;  %23244 = vmatpush3.bf16.msra.mxu0 %v23243_v19  ;;  %v34890_v19 = vld [vmem:[#allocation23_spill] sm:$0xff] }
 0x671   : > { %23316 = vmatpush3.bf16.msra.mxu1 %v23315_v40  ;;  %23245 = vmatprep.subr.bf16.mxu0 %v33925_v18  ;;  %v34891_v40 = vld [vmem:[#allocation43_spill] sm:$0xff] }
 0x672   : > { %21737 = vmatmul.mubr.f32.gmra.mrb[132].mxu0 %v32421_v34  ;;  %23317 = vmatprep.subr.bf16.mxu1 %v33925_v18 }
 0x673   : > { %22007 = vmatmul.mubr.f32.gmra.mrb[132].mxu1 %v32423_v57  ;;  %21739 = vmatprep.mubr.msk.f32.mxu0 %vm25178_vm0, %v33928_v36 }
 0x674   : > { %22009 = vmatprep.mubr.msk.f32.mxu1 %vm25178_vm0, %v33928_v36  ;;  %23247 = vmatpush3.bf16.msra.mxu0 %v23246_v50  ;;  %v34892_v50 = vld [vmem:[#allocation32_spill] sm:$0xff] }
 0x675   : > { %23319 = vmatpush3.bf16.msra.mxu1 %v23318_v33  ;;  %21770 = vmatprep.subr.mxu0 %v33928_v36  ;;  %v34893_v33 = vld [vmem:[#allocation91_spill] sm:$0xff] }
 0x676   : > { %21740 = vmatmul.mubr.f32.gmra.mrb[134].mxu0 %v34886_v49  ;;  %22040 = vmatprep.subr.mxu1 %v33928_v36 }
 0x677   : > { %22010 = vmatmul.mubr.f32.gmra.mrb[134].mxu1 %v32556_v39  ;;  %21742 = vmatprep.mubr.msk.f32.mxu0 %vm25178_vm0, %v33928_v36 }
 0x678   : > { %22012 = vmatprep.mubr.msk.f32.mxu1 %vm25178_vm0, %v33928_v36  ;;  %21771 = vmatpush3.msra.mxu0 %v32669_v58 }
 0x679   : > { %22041 = vmatpush3.msra.mxu1 %v32684_v2  ;;  %23248 = vmatprep.subr.bf16.mxu0 %v33925_v18 }
 0x67a   : > { %21743 = vmatmul.mubr.f32.gmra.mrb[136].mxu0 %v32678_v51  ;;  %23320 = vmatprep.subr.bf16.mxu1 %v33925_v18 }
 0x67b   : > { %22013 = vmatmul.mubr.f32.gmra.mrb[136].mxu1 %v34887_v53  ;;  %21745 = vmatprep.mubr.msk.f32.mxu0 %vm25178_vm0, %v33928_v36  ;;  %v34909_v53 = vand.u32 4294901760, %v32450_v28  ;;  %v34914_v28 = vand.u32 4294901760, %v32508_v38 }
 0x67c   : > { %22015 = vmatprep.mubr.msk.f32.mxu1 %vm25178_vm0, %v33928_v36 }
 0x67e   : > { %21746 = vmatmul.mubr.f32.gmra.mrb[138].mxu0 %v32716_v23  ;;  %v34908_v23 = vand.u32 4294901760, %v32438_v63  ;;  %v34913_v63 = vand.u32 4294901760, %v32500_v24  ;;  %v34919_v24 = vand.u32 4294901760, %v32566_v56  ;;  %v34925_v56 = vand.u32 4294901760, %v32617_v31 }
 0x67f   : > { %22016 = vmatmul.mubr.f32.gmra.mrb[138].mxu1 %v32729_v45  ;;  %21748 = vmatprep.mubr.msk.f32.mxu0 %vm25178_vm0, %v33928_v36  ;;  %v34931_v31 = vand.u32 4294901760, %v32675_v62 }
 0x680   : > { %22018 = vmatprep.mubr.msk.f32.mxu1 %vm25178_vm0, %v33928_v36  ;;  %v23333_v51 = vpack.c.bf16 %v34909_v53, %v34908_v23  ;;  %v34915_v23 = vand.u32 4294901760, %v32513_v3  ;;  %v34920_v3 = vand.u32 4294901760, %v32571_v7  ;;  %v34923_v53 = vand.u32 4294901760, %v34897_v42 }
 0x682   : > { %21749 = vmatmul.mubr.f32.gmra.mrb[140].mxu0 %v32765_v16  ;;  %v34907_v16 = vand.u32 4294901760, %v32433_v55 }
 0x683   : > { %22019 = vmatmul.mubr.f32.gmra.mrb[140].mxu1 %v32771_v43  ;;  %21751 = vmatprep.mubr.msk.f32.mxu0 %vm25178_vm0, %v33928_v36  ;;  %v34906_v43 = vand.u32 4294901760, %v32428_v0  ;;  %v34912_v0 = vand.u32 4294901760, %v32495_v37  ;;  %v34918_v37 = vand.u32 4294901760, %v32561_v35  ;;  %v34924_v35 = vand.u32 4294901760, %v32612_v22 }
 0x684   : > { %22021 = vmatprep.mubr.msk.f32.mxu1 %vm25178_vm0, %v33928_v36  ;;  %v34930_v22 = vand.u32 4294901760, %v32542_v20 }
 0x685   : > { %v23261_v45 = vpack.c.bf16 %v34907_v16, %v34906_v43  ;;  %v23264_v55 = vpack.c.bf16 %v34913_v63, %v34912_v0  ;;  %v23336_v16 = vpack.c.bf16 %v34915_v23, %v34914_v28  ;;  %v34916_v43 = vand.u32 4294901760, %v34892_v50  ;;  %v34948_v63 = vld [vmem:[#allocation56_spill] sm:$0xff] }
 0x686   : > { %21752 = vmatmul.mubr.f32.gmra.mrb[142].mxu0 %v32795_v12  ;;  %v34905_v12 = vld [vmem:[#allocation87_spill] sm:$0xff]  ;;  %v23267_v38 = vpack.c.bf16 %v34919_v24, %v34918_v37  ;;  %v23270_v7 = vpack.c.bf16 %v34925_v56, %v34924_v35 }
 0x687   : > { %22022 = vmatmul.mubr.f32.gmra.mrb[142].mxu1 %v32802_v26  ;;  %21772 = vmatprep.mubr.msk.f32.mxu0 %vm25178_vm0, %v33928_v36  ;;  %v34904_v26 = vld [vmem:[#allocation64_spill] sm:$0xff] }
 0x688   : > { %22042 = vmatprep.mubr.msk.f32.mxu1 %vm25178_vm0, %v33928_v36 }
 0x68a   : > { %21773 = vmatmul.mubr.f32.vlgmr.msra.gmra.mrb[126].mxu0 %v34888_v44 }
 0x68b   : > { %22043 = vmatmul.mubr.f32.vlgmr.msra.gmra.mrb[126].mxu1 %v34889_v17  ;;  %21775 = vmatprep.mubr.msk.f32.mxu0 %vm25178_vm0, %v33928_v36 }
 0x68c   : > { %22045 = vmatprep.mubr.msk.f32.mxu1 %vm25178_vm0, %v33928_v36  ;;  %23250 = vmatpush3.bf16.msra.mxu0 %v34890_v19 }
 0x68d   : > { %23322 = vmatpush3.bf16.msra.mxu1 %v34891_v40  ;;  %23251 = vmatprep.subr.bf16.mxu0 %v33925_v18 }
 0x68e   : > { %21776 = vmatmul.mubr.f32.gmra.mrb[128].mxu0 %v34892_v50  ;;  %23323 = vmatprep.subr.bf16.mxu1 %v33925_v18  ;;  %v34946_v50 = vld [vmem:[#allocation27_spill] sm:$0xff] }
 0x68f   : > { %22046 = vmatmul.mubr.f32.gmra.mrb[128].mxu1 %v34893_v33  ;;  %21778 = vmatprep.mubr.msk.f32.mxu0 %vm25178_vm0, %v33928_v36 }
 0x690   : > { %22048 = vmatprep.mubr.msk.f32.mxu1 %vm25178_vm0, %v33928_v36  ;;  %23253 = vmatpush3.bf16.msra.mxu0 %v34894_v52 }
 0x691   : > { %23325 = vmatpush3.bf16.msra.mxu1 %v34895_v21  ;;  %23254 = vmatprep.subr.bf16.mxu0 %v33925_v18 }
 0x692   : > { %21779 = vmatmul.mubr.f32.gmra.mrb[130].mxu0 %v34896_v8  ;;  %23326 = vmatprep.subr.bf16.mxu1 %v33925_v18 }
 0x693   : > { %22049 = vmatmul.mubr.f32.gmra.mrb[130].mxu1 %v34897_v42  ;;  %21781 = vmatprep.mubr.msk.f32.mxu0 %vm25178_vm0, %v33928_v36  ;;  %v34927_v42 = vand.u32 4294901760, %v32633_v47  ;;  %v34933_v47 = vand.u32 4294901760, %v32684_v2  ;;  %v34937_v2 = vand.u32 4294901760, %v32763_v9 }
 0x694   : > { %22051 = vmatprep.mubr.msk.f32.mxu1 %vm25178_vm0, %v33928_v36  ;;  %23256 = vmatpush3.bf16.msra.mxu0 %v34898_v59 }
 0x695   : > { %23328 = vmatpush3.bf16.msra.mxu1 %v34899_v30  ;;  %23257 = vmatprep.subr.bf16.mxu0 %v33925_v18 }
 0x696   : > { %21782 = vmatmul.mubr.f32.gmra.mrb[132].mxu0 %v34900_v5  ;;  %23329 = vmatprep.subr.bf16.mxu1 %v33925_v18 }
 0x697   : > { %22052 = vmatmul.mubr.f32.gmra.mrb[132].mxu1 %v34901_v15  ;;  %21784 = vmatprep.mubr.msk.f32.mxu0 %vm25178_vm0, %v33928_v36 }
 0x698   : > { %22054 = vmatprep.mubr.msk.f32.mxu1 %vm25178_vm0, %v33928_v36  ;;  %23259 = vmatpush3.bf16.msra.mxu0 %v34902_v13 }
 0x699   : > { %23331 = vmatpush3.bf16.msra.mxu1 %v34903_v60  ;;  %21815 = vmatprep.subr.mxu0 %v33928_v36 }
 0x69a   : > { %21785 = vmatmul.mubr.f32.gmra.mrb[134].mxu0 %v32542_v20  ;;  %22085 = vmatprep.subr.mxu1 %v33928_v36  ;;  %v34934_v20 = vand.u32 4294901760, %v32724_v61 }
 0x69b   : > { %22055 = vmatmul.mubr.f32.gmra.mrb[134].mxu1 %v32675_v62  ;;  %21787 = vmatprep.mubr.msk.f32.mxu0 %vm25178_vm0, %v33928_v36  ;;  %v34935_v62 = vand.u32 4294901760, %v32727_v32 }
 0x69c   : > { %22057 = vmatprep.mubr.msk.f32.mxu1 %vm25178_vm0, %v33928_v36  ;;  %21816 = vmatpush3.msra.mxu0 %v34904_v26  ;;  %v34911_v26 = vand.u32 4294901760, %v34889_v17  ;;  %v34929_v17 = vand.u32 4294901760, %v34901_v15  ;;  %v34939_v15 = vand.u32 4294901760, %v32799_v11 }
 0x69d   : > { %22086 = vmatpush3.msra.mxu1 %v34905_v12  ;;  %23260 = vmatprep.subr.bf16.mxu0 %v33925_v18  ;;  %v34910_v12 = vand.u32 4294901760, %v34888_v44  ;;  %v34928_v44 = vand.u32 4294901760, %v34900_v5  ;;  %v8376_v5 = vpop.xlane.xlu1 %8375 }
 0x69e   : > { %21788 = vmatmul.mubr.f32.gmra.mrb[136].mxu0 %v32724_v61  ;;  %23332 = vmatprep.subr.bf16.mxu1 %v33925_v18  ;;  %v34938_v61 = vand.u32 4294901760, %v32793_v27 }
 0x69f   : > { %22058 = vmatmul.mubr.f32.gmra.mrb[136].mxu1 %v32727_v32  ;;  %21790 = vmatprep.mubr.msk.f32.mxu0 %vm25178_vm0, %v33928_v36  ;;  %v8373_v32 = vpop.xlane.xlu0 %8372 }
 0x6a0   : > { %22060 = vmatprep.mubr.msk.f32.mxu1 %vm25178_vm0, %v33928_v36  ;;  %25025 = vrcp.f32 %v8373_v32 }
 0x6a2   : > { %21791 = vmatmul.mubr.f32.gmra.mrb[138].mxu0 %v32758_v4 }
 0x6a3   : > { %22061 = vmatmul.mubr.f32.gmra.mrb[138].mxu1 %v32763_v9  ;;  %21793 = vmatprep.mubr.msk.f32.mxu0 %vm25178_vm0, %v33928_v36  ;;  %v34941_v9 = vand.u32 4294901760, %v32821_v41 }
 0x6a4   : > { %22063 = vmatprep.mubr.msk.f32.mxu1 %vm25178_vm0, %v33928_v36 }
 0x6a6   : > { %21794 = vmatmul.mubr.f32.gmra.mrb[140].mxu0 %v32793_v27  ;;  %v8379_v27 = vpop.xlane.xlu0 %8378 }
 0x6a7   : > { %22064 = vmatmul.mubr.f32.gmra.mrb[140].mxu1 %v32799_v11  ;;  %21796 = vmatprep.mubr.msk.f32.mxu0 %vm25178_vm0, %v33928_v36  ;;  %v33130_v11 = vpop.xlane.xlu1 %8381 }
 0x6a8   : > { %22066 = vmatprep.mubr.msk.f32.mxu1 %vm25178_vm0, %v33928_v36 }
 0x6aa   : > { %21797 = vmatmul.mubr.f32.gmra.mrb[142].mxu0 %v32814_v6  ;;  %v25026_v28 = vpop.eup %25025 }
 0x6ab   : > { %22067 = vmatmul.mubr.f32.gmra.mrb[142].mxu1 %v32821_v41  ;;  %21817 = vmatprep.mubr.msk.f32.mxu0 %vm25178_vm0, %v33928_v36  ;;  %v33150_v41 = vpop.xlane.xlu1 %8387 }
 0x6ac   : > { %22087 = vmatprep.mubr.msk.f32.mxu1 %vm25178_vm0, %v33928_v36 }
 0x6ae   : > { %21818 = vmatmul.mubr.f32.vlgmr.msra.gmra.mrb[126].mxu0 %v34910_v12 }
 0x6af   : > { %22088 = vmatmul.mubr.f32.vlgmr.msra.gmra.mrb[126].mxu1 %v34911_v26  ;;  %21820 = vmatprep.mubr.msk.f32.mxu0 %vm25178_vm0, %v33928_v36  ;;  %v34922_v26 = vand.u32 4294901760, %v34896_v8 }
 0x6b0   : > { %22090 = vmatprep.mubr.msk.f32.mxu1 %vm25178_vm0, %v33928_v36  ;;  %23262 = vmatpush3.bf16.msra.mxu0 %v23261_v45  ;;  %v34917_v45 = vand.u32 4294901760, %v34893_v33  ;;  %v34947_v33 = vld [vmem:[#allocation52_spill] sm:$0xff] }
 0x6b1   : > { %23334 = vmatpush3.bf16.msra.mxu1 %v23333_v51  ;;  %23263 = vmatprep.subr.bf16.mxu0 %v33925_v18  ;;  %v34921_v51 = vand.u32 4294901760, %v32585_v54  ;;  %v34926_v54 = vand.u32 4294901760, %v32628_v25  ;;  %v34932_v25 = vand.u32 4294901760, %v32669_v58  ;;  %v34936_v58 = vand.u32 4294901760, %v32758_v4 }
 0x6b2   : > { %21821 = vmatmul.mubr.f32.gmra.mrb[128].mxu0 %v34916_v43  ;;  %23335 = vmatprep.subr.bf16.mxu1 %v33925_v18  ;;  %v34940_v4 = vand.u32 4294901760, %v32814_v6  ;;  %v33142_v6 = vpop.xlane.xlu0 %8384 }
 0x6b3   : > { %22091 = vmatmul.mubr.f32.gmra.mrb[128].mxu1 %v34917_v45  ;;  %21823 = vmatprep.mubr.msk.f32.mxu0 %vm25178_vm0, %v33928_v36  ;;  %v23339_v12 = vpack.c.bf16 %v34921_v51, %v34920_v3  ;;  %v23342_v8 = vpack.c.bf16 %v34927_v42, %v34926_v54 }
 0x6b4   : > { %22093 = vmatprep.mubr.msk.f32.mxu1 %vm25178_vm0, %v33928_v36  ;;  %23265 = vmatpush3.bf16.msra.mxu0 %v23264_v55  ;;  %v34949_v55 = vld [vmem:[#allocation31_spill] sm:$0xff] }
 0x6b5   : > { %23337 = vmatpush3.bf16.msra.mxu1 %v23336_v16  ;;  %23266 = vmatprep.subr.bf16.mxu0 %v33925_v18 }
 0x6b6   : > { %21824 = vmatmul.mubr.f32.gmra.mrb[130].mxu0 %v34922_v26  ;;  %23338 = vmatprep.subr.bf16.mxu1 %v33925_v18 }
 0x6b7   : > { %22094 = vmatmul.mubr.f32.gmra.mrb[130].mxu1 %v34923_v53  ;;  %21826 = vmatprep.mubr.msk.f32.mxu0 %vm25178_vm0, %v33928_v36 }
 0x6b8   : > { %22096 = vmatprep.mubr.msk.f32.mxu1 %vm25178_vm0, %v33928_v36  ;;  %23268 = vmatpush3.bf16.msra.mxu0 %v23267_v38  ;;  %v34950_v38 = vld [vmem:[#allocation84_spill] sm:$0xff] }
 0x6b9   : > { %23340 = vmatpush3.bf16.msra.mxu1 %v23339_v12  ;;  %23269 = vmatprep.subr.bf16.mxu0 %v33925_v18  ;;  %v34951_v12 = vld [vmem:[#allocation49_spill] sm:$0xff] }
 0x6ba   : > { %21827 = vmatmul.mubr.f32.gmra.mrb[132].mxu0 %v34928_v44  ;;  %23341 = vmatprep.subr.bf16.mxu1 %v33925_v18 }
 0x6bb   : > { %22097 = vmatmul.mubr.f32.gmra.mrb[132].mxu1 %v34929_v17  ;;  %21829 = vmatprep.mubr.msk.f32.mxu0 %vm25178_vm0, %v33928_v36 }
 0x6bc   : > { %22099 = vmatprep.mubr.msk.f32.mxu1 %vm25178_vm0, %v33928_v36  ;;  %23271 = vmatpush3.bf16.msra.mxu0 %v23270_v7 }
 0x6bd   : > { %23343 = vmatpush3.bf16.msra.mxu1 %v23342_v8  ;;  %21860 = vmatprep.subr.mxu0 %v33928_v36 }
 0x6be   : > { %21830 = vmatmul.mubr.f32.gmra.mrb[134].mxu0 %v34930_v22  ;;  %22130 = vmatprep.subr.mxu1 %v33928_v36 }
 0x6bf   : > { %22100 = vmatmul.mubr.f32.gmra.mrb[134].mxu1 %v34931_v31  ;;  %21832 = vmatprep.mubr.msk.f32.mxu0 %vm25178_vm0, %v33928_v36 }
 0x6c0   : > { %22102 = vmatprep.mubr.msk.f32.mxu1 %vm25178_vm0, %v33928_v36  ;;  %21861 = vmatpush3.msra.mxu0 %v34932_v25 }
 0x6c1   : > { %22131 = vmatpush3.msra.mxu1 %v34933_v47  ;;  %23272 = vmatprep.subr.bf16.mxu0 %v33925_v18 }
 0x6c2   : > { %21833 = vmatmul.mubr.f32.gmra.mrb[136].mxu0 %v34934_v20  ;;  %23344 = vmatprep.subr.bf16.mxu1 %v33925_v18 }
 0x6c3   : > { %22103 = vmatmul.mubr.f32.gmra.mrb[136].mxu1 %v34935_v62  ;;  %21835 = vmatprep.mubr.msk.f32.mxu0 %vm25178_vm0, %v33928_v36 }
 0x6c4   : > { %22105 = vmatprep.mubr.msk.f32.mxu1 %vm25178_vm0, %v33928_v36 }
 0x6c6   : > { %21836 = vmatmul.mubr.f32.gmra.mrb[138].mxu0 %v34936_v58 }
 0x6c7   : > { %22106 = vmatmul.mubr.f32.gmra.mrb[138].mxu1 %v34937_v2  ;;  %21838 = vmatprep.mubr.msk.f32.mxu0 %vm25178_vm0, %v33928_v36 }
 0x6c8   : > { %22108 = vmatprep.mubr.msk.f32.mxu1 %vm25178_vm0, %v33928_v36 }
 0x6ca   : > { %21839 = vmatmul.mubr.f32.gmra.mrb[140].mxu0 %v34938_v61 }
 0x6cb   : > { %22109 = vmatmul.mubr.f32.gmra.mrb[140].mxu1 %v34939_v15  ;;  %21841 = vmatprep.mubr.msk.f32.mxu0 %vm25178_vm0, %v33928_v36 }
 0x6cc   : > { %22111 = vmatprep.mubr.msk.f32.mxu1 %vm25178_vm0, %v33928_v36 }
 0x6ce   : > { %21842 = vmatmul.mubr.f32.gmra.mrb[142].mxu0 %v34940_v4 }
 0x6cf   : > { %22112 = vmatmul.mubr.f32.gmra.mrb[142].mxu1 %v34941_v9  ;;  %21862 = vmatprep.mubr.msk.f32.mxu0 %vm25178_vm0, %v33928_v36 }
 0x6d0   : > { %22132 = vmatprep.mubr.msk.f32.mxu1 %vm25178_vm0, %v33928_v36 }
 0x6d2   : > { %21863 = vmatmul.mubr.f32.vlgmr.msra.gmra.mrb[126].mxu0 %v32140_v1 }
 0x6d3   : > { %22133 = vmatmul.mubr.f32.vlgmr.msra.gmra.mrb[126].mxu1 %v32149_v29  ;;  %21865 = vmatprep.mubr.msk.f32.mxu0 %vm25178_vm0, %v33928_v36 }
 0x6d4   : > { %22135 = vmatprep.mubr.msk.f32.mxu1 %vm25178_vm0, %v33928_v36  ;;  %23274 = vmatpush3.bf16.msra.mxu0 %v34890_v19  ;;  %v34945_v19 = vld [vmem:[#allocation54_spill] sm:$0xff] }
 0x6d5   : > { %23346 = vmatpush3.bf16.msra.mxu1 %v34891_v40  ;;  %23275 = vmatprep.subr.bf16.mxu0 %v33925_v18 }
 0x6d6   : > { %21866 = vmatmul.mubr.f32.gmra.mrb[128].mxu0 %v32231_v14  ;;  %23347 = vmatprep.subr.bf16.mxu1 %v33925_v18 }
 0x6d7   : > { %22136 = vmatmul.mubr.f32.gmra.mrb[128].mxu1 %v32233_v10  ;;  %21868 = vmatprep.mubr.msk.f32.mxu0 %vm25178_vm0, %v33928_v36 }
 0x6d8   : > { %22138 = vmatprep.mubr.msk.f32.mxu1 %vm25178_vm0, %v33928_v36  ;;  %23277 = vmatpush3.bf16.msra.mxu0 %v34894_v52  ;;  %v33162_v52 = vpop.xlane.xlu0 %8390 }
 0x6d9   : > { %23349 = vmatpush3.bf16.msra.mxu1 %v34895_v21  ;;  %23278 = vmatprep.subr.bf16.mxu0 %v33925_v18  ;;  %v33168_v21 = vpop.xlane.xlu1 %8393 }
 0x6da   : > { %21869 = vmatmul.mubr.f32.gmra.mrb[130].mxu0 %v32302_v48  ;;  %23350 = vmatprep.subr.bf16.mxu1 %v33925_v18 }
 0x6db   : > { %22139 = vmatmul.mubr.f32.gmra.mrb[130].mxu1 %v32305_v46  ;;  %21871 = vmatprep.mubr.msk.f32.mxu0 %vm25178_vm0, %v33928_v36 }
 0x6dc   : > { %22141 = vmatprep.mubr.msk.f32.mxu1 %vm25178_vm0, %v33928_v36  ;;  %23280 = vmatpush3.bf16.msra.mxu0 %v34898_v59  ;;  %v34944_v59 = vld [vmem:[#allocation6_spill] sm:$0xff] }
 0x6dd   : > { %23352 = vmatpush3.bf16.msra.mxu1 %v34899_v30  ;;  %23281 = vmatprep.subr.bf16.mxu0 %v33925_v18  ;;  %v34942_v30 = vld [vmem:[#allocation64_spill] sm:$0xff] }
 0x6de   : > { %21872 = vmatmul.mubr.f32.gmra.mrb[132].mxu0 %v32421_v34  ;;  %23353 = vmatprep.subr.bf16.mxu1 %v33925_v18  ;;  %v33180_v18 = vpop.xlane.xlu0 %8396 }
 0x6df   : > { %22142 = vmatmul.mubr.f32.gmra.mrb[132].mxu1 %v32423_v57  ;;  %21874 = vmatprep.mubr.msk.f32.mxu0 %vm25178_vm0, %v33928_v36 }
 0x6e0   : > { %22144 = vmatprep.mubr.msk.f32.mxu1 %vm25178_vm0, %v33928_v36  ;;  %23283 = vmatpush3.bf16.msra.mxu0 %v34902_v13  ;;  %v8400_v13 = vpop.xlane.xlu1 %8399 }
 0x6e1   : > { %23355 = vmatpush3.bf16.msra.mxu1 %v34903_v60  ;;  %21905 = vmatprep.subr.mxu0 %v33928_v36  ;;  %v34943_v60 = vld [vmem:[#allocation87_spill] sm:$0xff]  ;;  %25027 = vrcp.f32 %v8400_v13 }
 0x6e2   : > { %21875 = vmatmul.mubr.f32.gmra.mrb[134].mxu0 %v34886_v49  ;;  %22175 = vmatprep.subr.mxu1 %v33928_v36  ;;  %v8403_v40 = vpop.xlane.xlu0 %8402  ;;  %25029 = vrcp.f32 %v8376_v5 }
 0x6e3   : > { %22145 = vmatmul.mubr.f32.gmra.mrb[134].mxu1 %v32556_v39  ;;  %21877 = vmatprep.mubr.msk.f32.mxu0 %vm25178_vm0, %v33928_v36  ;;  %25031 = vrcp.f32 %v8403_v40 }
 0x6e4   : > { %22147 = vmatprep.mubr.msk.f32.mxu1 %vm25178_vm0, %v33928_v36  ;;  %21906 = vmatpush3.msra.mxu0 %v34942_v30  ;;  %v8406_v0 = vpop.xlane.xlu1 %8405  ;;  %25033 = vrcp.f32 %v8379_v27 }
 0x6e5   : > { %22176 = vmatpush3.msra.mxu1 %v34943_v60  ;;  %25035 = vrcp.f32 %v8406_v0 }
 0x6e6   : > { %21878 = vmatmul.mubr.f32.gmra.mrb[136].mxu0 %v34944_v59  ;;  %v8409_v23 = vpop.xlane.xlu0 %8408  ;;  %25037 = vrcp.f32 %v33130_v11 }
 0x6e7   : > { %22148 = vmatmul.mubr.f32.gmra.mrb[136].mxu1 %v34945_v19  ;;  %21880 = vmatprep.mubr.msk.f32.mxu0 %vm25178_vm0, %v33928_v36  ;;  %25039 = vrcp.f32 %v8409_v23 }
 0x6e8   : > { %22150 = vmatprep.mubr.msk.f32.mxu1 %vm25178_vm0, %v33928_v36  ;;  %v8412_v53 = vpop.xlane.xlu1 %8411  ;;  %25041 = vrcp.f32 %v33142_v6 }
 0x6e9   : > { %25043 = vrcp.f32 %v8412_v53 }
 0x6ea   : > { %21881 = vmatmul.mubr.f32.gmra.mrb[138].mxu0 %v34946_v50  ;;  %v8415_v22 = vpop.xlane.xlu0 %8414  ;;  %25045 = vrcp.f32 %v33150_v41 }
 0x6eb   : > { %22151 = vmatmul.mubr.f32.gmra.mrb[138].mxu1 %v34947_v33  ;;  %21883 = vmatprep.mubr.msk.f32.mxu0 %vm25178_vm0, %v33928_v36  ;;  %v25028_v43 = vpop.eup %25027  ;;  %25047 = vrcp.f32 %v8415_v22 }
 0x6ec   : > { %22153 = vmatprep.mubr.msk.f32.mxu1 %vm25178_vm0, %v33928_v36  ;;  %v13043_v16 = vpop.f32.mrb[108].mxu0  ;;  %v25030_v26 = vpop.eup %25029  ;;  %25049 = vrcp.f32 %v33162_v52 }
 0x6ed   : > { %v15972_v45 = vmul.f32 %v25026_v28, %v13043_v16  ;;  %v13966_v37 = vpop.f32.mrb[108].mxu1  ;;  %v21369_v24 = vpop.f32.mrb[109].mxu0 }
 0x6ee   : > { %21884 = vmatmul.mubr.f32.gmra.mrb[140].mxu0 %v34948_v63  ;;  %v15981_v3 = vmul.f32 %v25028_v43, %v13966_v37  ;;  %v21639_v51 = vpop.f32.mrb[109].mxu1  ;;  %v25032_v56 = vpop.eup %25031 }
 0x6ef   : > { %22154 = vmatmul.mubr.f32.gmra.mrb[140].mxu1 %v34949_v55  ;;  %21886 = vmatprep.mubr.msk.f32.mxu0 %vm25178_vm0, %v33928_v36  ;;  %16045 = vst.msk [vmem:[%s31080_s15 + $0x120] sm:$0xff] %vm197_vm1, %v15972_v45  ;;  %v25034_v17 = vpop.eup %25033  ;;  %v8418_v2 = vpop.xlane.xlu1 %8417 }
 0x6f0   : > { %22156 = vmatprep.mubr.msk.f32.mxu1 %vm25178_vm0, %v33928_v36  ;;  %16054 = vst.msk [vmem:[%s31080_s15 + $0x168] sm:$0xff] %vm197_vm1, %v15981_v3  ;;  %v13049_v35 = vpop.f32.mrb[110].mxu0  ;;  %v25036_v31 = vpop.eup %25035  ;;  %25051 = vrcp.f32 %v8418_v2 }
 0x6f1   : > { %v15973_v7 = vmul.f32 %v25030_v26, %v13049_v35  ;;  %v13972_v54 = vpop.f32.mrb[110].mxu1  ;;  %v21372_v42 = vpop.f32.mrb[111].mxu0  ;;  %25053 = vrcp.f32 %v33168_v21 }
 0x6f2   : > { %21887 = vmatmul.mubr.f32.gmra.mrb[142].mxu0 %v34950_v38  ;;  %v15982_v8 = vmul.f32 %v25032_v56, %v13972_v54  ;;  %v21642_v44 = vpop.f32.mrb[111].mxu1  ;;  %v25038_v58 = vpop.eup %25037 }
 0x6f3   : > { %22157 = vmatmul.mubr.f32.gmra.mrb[142].mxu1 %v34951_v12  ;;  %21907 = vmatprep.mubr.msk.f32.mxu0 %vm25178_vm0, %v33928_v36  ;;  %16046 = vst.msk [vmem:[%s31080_s15 + $0x128] sm:$0xff] %vm197_vm1, %v15973_v7  ;;  %v25040_v61 = vpop.eup %25039  ;;  %v8421_v27 = vpop.xlane.xlu0 %8420 }
 0x6f4   : > { %22177 = vmatprep.mubr.msk.f32.mxu1 %vm25178_vm0, %v33928_v36  ;;  %16055 = vst.msk [vmem:[%s31080_s15 + $0x170] sm:$0xff] %vm197_vm1, %v15982_v8  ;;  %v25042_v9 = vpop.eup %25041  ;;  %25055 = vrcp.f32 %v8421_v27  ;;  %v8424_v60 = vpop.xlane.xlu1 %8423 }
 0x6f5   : > { %v13978_v47 = vpop.f32.mrb[112].mxu1  ;;  %v25044_v11 = vpop.eup %25043  ;;  %25057 = vrcp.f32 %v33180_v18 }
 0x6f6   : > { %21908 = vmatmul.mubr.f32.vlgmr.msra.gmra.mrb[126].mxu0 %v32140_v1  ;;  %v13055_v1 = vpop.f32.mrb[112].mxu0  ;;  %v15983_v20 = vmul.f32 %v25036_v31, %v13978_v47  ;;  %v21645_v62 = vpop.f32.mrb[113].mxu1  ;;  %25059 = vrcp.f32 %v8424_v60 }
 0x6f7   : > { %22178 = vmatmul.mubr.f32.vlgmr.msra.gmra.mrb[126].mxu1 %v32149_v29  ;;  %21910 = vmatprep.mubr.msk.f32.mxu0 %vm25178_vm0, %v33928_v36  ;;  %v15974_v25 = vmul.f32 %v25034_v17, %v13055_v1  ;;  %v21375_v29 = vpop.f32.mrb[113].mxu0  ;;  %v25046_v13 = vpop.eup %25045 }
 0x6f8   : > { %22180 = vmatprep.mubr.msk.f32.mxu1 %vm25178_vm0, %v33928_v36  ;;  %16056 = vst.msk [vmem:[%s31080_s15 + $0x178] sm:$0xff] %vm197_vm1, %v15983_v20  ;;  %v25048_v21 = vpop.eup %25047  ;;  %v8427_v22 = vpop.xlane.xlu0 %8426 }
 0x6f9   : > { %16047 = vst.msk [vmem:[%s31080_s15 + $0x130] sm:$0xff] %vm197_vm1, %v15974_v25  ;;  %v13984_v15 = vpop.f32.mrb[114].mxu1  ;;  %v25050_v16 = vpop.eup %25049  ;;  %25061 = vrcp.f32 %v8427_v22 }
 0x6fa   : > { %21911 = vmatmul.mubr.f32.gmra.mrb[128].mxu0 %v32231_v14  ;;  %v13061_v14 = vpop.f32.mrb[114].mxu0  ;;  %v15984_v5 = vmul.f32 %v25040_v61, %v13984_v15  ;;  %v21648_v4 = vpop.f32.mrb[115].mxu1 }
 0x6fb   : > { %22181 = vmatmul.mubr.f32.gmra.mrb[128].mxu1 %v32233_v10  ;;  %21913 = vmatprep.mubr.msk.f32.mxu0 %vm25178_vm0, %v33928_v36  ;;  %v15975_v32 = vmul.f32 %v25038_v58, %v13061_v14  ;;  %v21378_v10 = vpop.f32.mrb[115].mxu0  ;;  %v25052_v18 = vpop.eup %25051 }
 0x6fc   : > { %22183 = vmatprep.mubr.msk.f32.mxu1 %vm25178_vm0, %v33928_v36  ;;  %16057 = vst.msk [vmem:[%s31080_s15 + $0x180] sm:$0xff] %vm197_vm1, %v15984_v5  ;;  %v25054_v3 = vpop.eup %25053  ;;  %v8457_v1 = vpop.xlane.xlu0 %8456 }
 0x6fd   : > { %16048 = vst.msk [vmem:[%s31080_s15 + $0x138] sm:$0xff] %vm197_vm1, %v15975_v32  ;;  %v13990_v41 = vpop.f32.mrb[116].mxu1 }
 0x6fe   : > { %21914 = vmatmul.mubr.f32.gmra.mrb[130].mxu0 %v32302_v48  ;;  %v13067_v48 = vpop.f32.mrb[116].mxu0  ;;  %v15985_v52 = vmul.f32 %v25044_v11, %v13990_v41  ;;  %v21651_v30 = vpop.f32.mrb[117].mxu1 }
 0x6ff   : > { %22184 = vmatmul.mubr.f32.gmra.mrb[130].mxu1 %v32305_v46  ;;  %21916 = vmatprep.mubr.msk.f32.mxu0 %vm25178_vm0, %v33928_v36  ;;  %v15976_v6 = vmul.f32 %v25042_v9, %v13067_v48  ;;  %v21381_v46 = vpop.f32.mrb[117].mxu0  ;;  %v25056_v26 = vpop.eup %25055 }
 0x700   : > { %22186 = vmatprep.mubr.msk.f32.mxu1 %vm25178_vm0, %v33928_v36  ;;  %16058 = vst.msk [vmem:[%s31080_s15 + $0x188] sm:$0xff] %vm197_vm1, %v15985_v52  ;;  %v25058_v7 = vpop.eup %25057  ;;  %v8433_v25 = vpop.xlane.xlu0 %8432 }
 0x701   : > { %16049 = vst.msk [vmem:[%s31080_s15 + $0x140] sm:$0xff] %vm197_vm1, %v15976_v6  ;;  %v13996_v0 = vpop.f32.mrb[118].mxu1  ;;  %v25060_v42 = vpop.eup %25059 }
 0x702   : > { %21917 = vmatmul.mubr.f32.gmra.mrb[132].mxu0 %v32421_v34  ;;  %v13073_v34 = vpop.f32.mrb[118].mxu0  ;;  %v15986_v28 = vmul.f32 %v25048_v21, %v13996_v0  ;;  %v21654_v23 = vpop.f32.mrb[119].mxu1 }
 0x703   : > { %22187 = vmatmul.mubr.f32.gmra.mrb[132].mxu1 %v32423_v57  ;;  %21919 = vmatprep.mubr.msk.f32.mxu0 %vm25178_vm0, %v33928_v36  ;;  %v15977_v40 = vmul.f32 %v25046_v13, %v13073_v34  ;;  %v21384_v57 = vpop.f32.mrb[119].mxu0 }
 0x704   : > { %22189 = vmatprep.mubr.msk.f32.mxu1 %vm25178_vm0, %v33928_v36  ;;  %16059 = vst.msk [vmem:[%s31080_s15 + $0x190] sm:$0xff] %vm197_vm1, %v15986_v28  ;;  %v8463_v47 = vpop.xlane.xlu0 %8462 }
 0x705   : > { %16050 = vst.msk [vmem:[%s31080_s15 + $0x148] sm:$0xff] %vm197_vm1, %v15977_v40  ;;  %v14002_v45 = vpop.f32.mrb[120].mxu1 }
 0x706   : > { %21920 = vmatmul.mubr.f32.gmra.mrb[134].mxu0 %v34886_v49  ;;  %v13079_v49 = vpop.f32.mrb[120].mxu0  ;;  %v21657_v24 = vpop.f32.mrb[121].mxu1 }
 0x707   : > { %22190 = vmatmul.mubr.f32.gmra.mrb[134].mxu1 %v32556_v39  ;;  %21922 = vmatprep.mubr.msk.f32.mxu0 %vm25178_vm0, %v33928_v36  ;;  %v15978_v43 = vmul.f32 %v25050_v16, %v13079_v49  ;;  %v21387_v37 = vpop.f32.mrb[121].mxu0  ;;  %v15987_v39 = vmul.f32 %v25052_v18, %v14002_v45 }
 0x708   : > { %22192 = vmatprep.mubr.msk.f32.mxu1 %vm25178_vm0, %v33928_v36  ;;  %v13085_v51 = vpop.f32.mrb[122].mxu0  ;;  %v8439_v20 = vpop.xlane.xlu0 %8438 }
 0x709   : > { %16051 = vst.msk [vmem:[%s31080_s15 + $0x150] sm:$0xff] %vm197_vm1, %v15978_v43  ;;  %16060 = vst.msk [vmem:[%s31080_s15 + $0x198] sm:$0xff] %vm197_vm1, %v15987_v39  ;;  %v14008_v53 = vpop.f32.mrb[122].mxu1  ;;  %v21390_v35 = vpop.f32.mrb[123].mxu0 }
 0x70a   : > { %21923 = vmatmul.mubr.f32.gmra.mrb[136].mxu0 %v34944_v59  ;;  %v15979_v59 = vmul.f32 %v25054_v3, %v13085_v51  ;;  %v21660_v56 = vpop.f32.mrb[123].mxu1 }
 0x70b   : > { %22193 = vmatmul.mubr.f32.gmra.mrb[136].mxu1 %v34945_v19  ;;  %21925 = vmatprep.mubr.msk.f32.mxu0 %vm25178_vm0, %v33928_v36  ;;  %v15988_v19 = vmul.f32 %v25056_v26, %v14008_v53 }
 0x70c   : > { %22195 = vmatprep.mubr.msk.f32.mxu1 %vm25178_vm0, %v33928_v36  ;;  %16052 = vst.msk [vmem:[%s31080_s15 + $0x158] sm:$0xff] %vm197_vm1, %v15979_v59  ;;  %v13091_v54 = vpop.f32.mrb[124].mxu0 }
 0x70d   : > { %16061 = vst.msk [vmem:[%s31080_s15 + $0x1a0] sm:$0xff] %vm197_vm1, %v15988_v19  ;;  %v14014_v8 = vpop.f32.mrb[124].mxu1  ;;  %v21393_v44 = vpop.f32.mrb[125].mxu0 }
 0x70e   : > { %21926 = vmatmul.mubr.f32.gmra.mrb[138].mxu0 %v34946_v50  ;;  %v15980_v50 = vmul.f32 %v25058_v7, %v13091_v54  ;;  %v21663_v17 = vpop.f32.mrb[125].mxu1 }
 0x70f   : > { %22196 = vmatmul.mubr.f32.gmra.mrb[138].mxu1 %v34947_v33  ;;  %21928 = vmatprep.mubr.msk.f32.mxu0 %vm25178_vm0, %v33928_v36  ;;  %v15989_v33 = vmul.f32 %v25060_v42, %v14014_v8 }
 0x710   : > { %22198 = vmatprep.mubr.msk.f32.mxu1 %vm25178_vm0, %v33928_v36  ;;  %16053 = vst.msk [vmem:[%s31080_s15 + $0x160] sm:$0xf] %vm16016_vm4, %v15980_v50 }
 0x711   : > { %16062 = vst.msk [vmem:[%s31080_s15 + $0x1a8] sm:$0xf] %vm16016_vm4, %v15989_v33 }
 0x712   : > { %21929 = vmatmul.mubr.f32.gmra.mrb[140].mxu0 %v34948_v63  ;;  %v8454_v63 = vpop.xlane.xlu1 %8453 }
 0x713   : > { %22199 = vmatmul.mubr.f32.gmra.mrb[140].mxu1 %v34949_v55  ;;  %21931 = vmatprep.mubr.msk.f32.mxu0 %vm25178_vm0, %v33928_v36  ;;  %25063 = vrcp.f32 %v8454_v63 }
 0x714   : > { %22201 = vmatprep.mubr.msk.f32.mxu1 %vm25178_vm0, %v33928_v36 }
 0x716   : > { %21932 = vmatmul.mubr.f32.gmra.mrb[142].mxu0 %v34950_v38  ;;  %v8430_v31 = vpop.xlane.xlu1 %8429  ;;  %v25062_v38 = vpop.eup %25061 }
 0x717   : > { %22202 = vmatmul.mubr.f32.gmra.mrb[142].mxu1 %v34951_v12  ;;  %25065 = vrcp.f32 %v8430_v31  ;;  %v8469_v12 = vpop.xlane.xlu0 %8468 }
 0x718   : > { %25067 = vrcp.f32 %v8457_v1 }
 0x719   : > { %25069 = vrcp.f32 %v8433_v25 }
 0x71a   : > { %v8460_v55 = vpop.xlane.xlu1 %8459 }
 0x71b   : > { %25071 = vrcp.f32 %v8460_v55  ;;  %v8445_v6 = vpop.xlane.xlu0 %8444 }
 0x71d   : > { %v25064_v58 = vpop.eup %25063 }
 0x71e   : > { %v8436_v29 = vpop.xlane.xlu1 %8435 }
 0x71f   : > { %25073 = vrcp.f32 %v8436_v29  ;;  %v8451_v0 = vpop.xlane.xlu0 %8450 }
 0x720   : > { %25075 = vrcp.f32 %v8463_v47 }
 0x721   : > { %v25066_v5 = vpop.eup %25065  ;;  %25077 = vrcp.f32 %v8439_v20 }
 0x722   : > { %v8466_v36 = vpop.xlane.xlu1 %8465  ;;  %v25068_v9 = vpop.eup %25067 }
 0x723   : > { %25079 = vrcp.f32 %v8466_v36  ;;  %v25070_v52 = vpop.eup %25069  ;;  %v8475_v51 = vpop.xlane.xlu0 %8474 }
 0x725   : > { %v25072_v60 = vpop.eup %25071 }
 0x726   : > { %v8442_v32 = vpop.xlane.xlu1 %8441 }
 0x727   : > { %25081 = vrcp.f32 %v8442_v32 }
 0x728   : > { %25083 = vrcp.f32 %v8469_v12 }
 0x729   : > { %v25074_v23 = vpop.eup %25073  ;;  %25085 = vrcp.f32 %v8445_v6 }
 0x72a   : > { %v8472_v30 = vpop.xlane.xlu1 %8471  ;;  %v25076_v49 = vpop.eup %25075 }
 0x72b   : > { %25087 = vrcp.f32 %v8472_v30  ;;  %v25078_v3 = vpop.eup %25077 }
 0x72d   : > { %v25080_v59 = vpop.eup %25079 }
 0x72e   : > { %v8448_v37 = vpop.xlane.xlu1 %8447 }
 0x72f   : > { %25089 = vrcp.f32 %v8448_v37 }
 0x730   : > { %25091 = vrcp.f32 %v8475_v51 }
 0x731   : > { %v25082_v54 = vpop.eup %25081  ;;  %25093 = vrcp.f32 %v8451_v0 }
 0x732   : > { %v8478_v42 = vpop.xlane.xlu1 %8477  ;;  %v25084_v8 = vpop.eup %25083 }
 0x733   : > { %25095 = vrcp.f32 %v8478_v42  ;;  %v25086_v1 = vpop.eup %25085 }
 0x735   : > { %v25088_v25 = vpop.eup %25087 }
 0x7c9   : > { %v14889_v62 = vpop.f32.mrb[126].mxu0 }
 0x7ca   : > { %v15990_v2 = vmul.f32 %v25062_v38, %v14889_v62  ;;  %v15812_v14 = vpop.f32.mrb[126].mxu1  ;;  %v21909_v61 = vpop.f32.mrb[127].mxu0 }
 0x7cb   : > { %v15999_v15 = vmul.f32 %v25064_v58, %v15812_v14  ;;  %v22179_v10 = vpop.f32.mrb[127].mxu1  ;;  %v25090_v38 = vpop.eup %25089 }
 0x7cc   : > { %16063 = vst.msk [vmem:[%s31080_s15 + $0x1b0] sm:$0xff] %vm197_vm1, %v15990_v2  ;;  %v25092_v62 = vpop.eup %25091 }
 0x7cd   : > { %16072 = vst.msk [vmem:[%s31080_s15 + $0x1f8] sm:$0xff] %vm197_vm1, %v15999_v15  ;;  %v14895_v4 = vpop.f32.mrb[128].mxu0  ;;  %v25094_v15 = vpop.eup %25093 }
 0x7ce   : > { %v15991_v27 = vmul.f32 %v25066_v5, %v14895_v4  ;;  %v15818_v48 = vpop.f32.mrb[128].mxu1  ;;  %v21912_v11 = vpop.f32.mrb[129].mxu0 }
 0x7cf   : > { %v16000_v41 = vmul.f32 %v25068_v9, %v15818_v48  ;;  %v22182_v46 = vpop.f32.mrb[129].mxu1  ;;  %v25096_v5 = vpop.eup %25095 }
 0x7d0   : > { %16064 = vst.msk [vmem:[%s31080_s15 + $0x1b8] sm:$0xff] %vm197_vm1, %v15991_v27 }
 0x7d1   : > { %16073 = vst.msk [vmem:[%s31080_s15 + $0x200] sm:$0xff] %vm197_vm1, %v16000_v41  ;;  %v14901_v13 = vpop.f32.mrb[130].mxu0 }
 0x7d2   : > { %v15992_v34 = vmul.f32 %v25070_v52, %v14901_v13  ;;  %v15824_v21 = vpop.f32.mrb[130].mxu1  ;;  %v21915_v40 = vpop.f32.mrb[131].mxu0 }
 0x7d3   : > { %v16001_v57 = vmul.f32 %v25072_v60, %v15824_v21  ;;  %v22185_v28 = vpop.f32.mrb[131].mxu1 }
 0x7d4   : > { %16065 = vst.msk [vmem:[%s31080_s15 + $0x1c0] sm:$0xff] %vm197_vm1, %v15992_v34 }
 0x7d5   : > { %16074 = vst.msk [vmem:[%s31080_s15 + $0x208] sm:$0xff] %vm197_vm1, %v16001_v57  ;;  %v14907_v16 = vpop.f32.mrb[132].mxu0 }
 0x7d6   : > { %v15993_v18 = vmul.f32 %v25074_v23, %v14907_v16  ;;  %v15830_v43 = vpop.f32.mrb[132].mxu1  ;;  %v21918_v45 = vpop.f32.mrb[133].mxu0 }
 0x7d7   : > { %v16002_v39 = vmul.f32 %v25076_v49, %v15830_v43  ;;  %v22188_v24 = vpop.f32.mrb[133].mxu1 }
 0x7d8   : > { %16066 = vst.msk [vmem:[%s31080_s15 + $0x1c8] sm:$0xff] %vm197_vm1, %v15993_v18 }
 0x7d9   : > { %16075 = vst.msk [vmem:[%s31080_s15 + $0x210] sm:$0xff] %vm197_vm1, %v16002_v39  ;;  %v14913_v26 = vpop.f32.mrb[134].mxu0 }
 0x7da   : > { %v15994_v53 = vmul.f32 %v25078_v3, %v14913_v26  ;;  %v15836_v35 = vpop.f32.mrb[134].mxu1  ;;  %v21921_v19 = vpop.f32.mrb[135].mxu0 }
 0x7db   : > { %v16003_v56 = vmul.f32 %v25080_v59, %v15836_v35  ;;  %v22191_v7 = vpop.f32.mrb[135].mxu1 }
 0x7dc   : > { %16067 = vst.msk [vmem:[%s31080_s15 + $0x1d0] sm:$0xff] %vm197_vm1, %v15994_v53 }
 0x7dd   : > { %16076 = vst.msk [vmem:[%s31080_s15 + $0x218] sm:$0xff] %vm197_vm1, %v16003_v56  ;;  %v14919_v50 = vpop.f32.mrb[136].mxu0 }
 0x7de   : > { %v15995_v44 = vmul.f32 %v25082_v54, %v14919_v50  ;;  %v15842_v33 = vpop.f32.mrb[136].mxu1  ;;  %v21924_v17 = vpop.f32.mrb[137].mxu0 }
 0x7df   : > { %v16004_v22 = vmul.f32 %v25084_v8, %v15842_v33  ;;  %v22194_v63 = vpop.f32.mrb[137].mxu1 }
 0x7e0   : > { %16068 = vst.msk [vmem:[%s31080_s15 + $0x1d8] sm:$0xff] %vm197_vm1, %v15995_v44 }
 0x7e1   : > { %16077 = vst.msk [vmem:[%s31080_s15 + $0x220] sm:$0xff] %vm197_vm1, %v16004_v22  ;;  %v14925_v31 = vpop.f32.mrb[138].mxu0 }
 0x7e2   : > { %v15996_v55 = vmul.f32 %v25086_v1, %v14925_v31  ;;  %v15848_v47 = vpop.f32.mrb[138].mxu1  ;;  %v21927_v29 = vpop.f32.mrb[139].mxu0 }
 0x7e3   : > { %v16005_v20 = vmul.f32 %v25088_v25, %v15848_v47  ;;  %v22197_v36 = vpop.f32.mrb[139].mxu1 }
 0x7e4   : > { %16069 = vst.msk [vmem:[%s31080_s15 + $0x1e0] sm:$0xff] %vm197_vm1, %v15996_v55 }
 0x7e5   : > { %16078 = vst.msk [vmem:[%s31080_s15 + $0x228] sm:$0xff] %vm197_vm1, %v16005_v20  ;;  %v14931_v12 = vpop.f32.mrb[140].mxu0 }
 0x7e6   : > { %v15997_v58 = vmul.f32 %v25090_v38, %v14931_v12  ;;  %v15854_v2 = vpop.f32.mrb[140].mxu1  ;;  %v21930_v14 = vpop.f32.mrb[141].mxu0 }
 0x7e7   : > { %v16006_v61 = vmul.f32 %v25092_v62, %v15854_v2  ;;  %v22200_v32 = vpop.f32.mrb[141].mxu1 }
 0x7e8   : > { %16070 = vst.msk [vmem:[%s31080_s15 + $0x1e8] sm:$0xff] %vm197_vm1, %v15997_v58 }
 0x7e9   : > { %16079 = vst.msk [vmem:[%s31080_s15 + $0x230] sm:$0xff] %vm197_vm1, %v16006_v61  ;;  %v14937_v10 = vpop.f32.mrb[142].mxu0 }
 0x7ea   : > { %v15998_v4 = vmul.f32 %v25094_v15, %v14937_v10  ;;  %v15860_v9 = vpop.f32.mrb[142].mxu1  ;;  %v21933_v27 = vpop.f32.mrb[143].mxu0 }
 0x7eb   : > { %v16007_v48 = vmul.f32 %v25096_v5, %v15860_v9  ;;  %v22203_v11 = vpop.f32.mrb[143].mxu1 }
 0x7ec   : > { %16071 = vst.msk [vmem:[%s31080_s15 + $0x1f0] sm:$0xf] %vm16016_vm4, %v15998_v4 }
 0x7ed   : > { %16080 = vst.msk [vmem:[%s31080_s15 + $0x238] sm:$0xf] %vm16016_vm4, %v16007_v48 }
 0x7ee PF: > { %s11_s6 = sadd.s32 1, %s25175_s6  }
 0x7ef   : > { %p8_p4 = scmp.ge.s32.totalorder %s11_s6, 4  }
 0x7f1   :  { %10 = sbr.rel (!%p8_p4) target bundleno = 1 (0x1), region = 54 }

</bundles_post_ra>
